<compile_context>
chip_gen: v7x
topology: tpu7x:2x2x1
jax: 0.10.0
libtpu: 0.0.40
codegen_flags: <defaults>
</compile_context>

<pallas_src>
import functools

import jax
import jax.numpy as jnp
from jax.experimental import pallas as pl
from jax.experimental.pallas import tpu as pltpu

NEG_SLOPE = 0.05
MXU_DTYPE = jnp.bfloat16        # matmul operand dtype (accumulation stays f32)
ROW_TILE = 1024                 # row tile for the mem-bound 1x1 conv kernel


def _vmem_limit_bytes():
    cap = 128 * 1024 * 1024
    try:
        cap = int(getattr(pltpu.get_tpu_info(), "vmem_capacity_bytes", cap))
    except Exception:
        pass
    # leave pipelining headroom below the physical capacity (64 MiB on v7x).
    return min(100 * 1024 * 1024, (cap * 4) // 5)


VMEM_LIMIT = _vmem_limit_bytes()


def _leaky_relu(x):
    return jnp.where(x >= 0.0, x, x * NEG_SLOPE)


def _params(n_axes):
    return pltpu.CompilerParams(
        dimension_semantics=("parallel",) * n_axes,
        vmem_limit_bytes=VMEM_LIMIT)


def _cost(flops, bytes_accessed, transcendentals=0):
    return pl.CostEstimate(flops=int(flops), transcendentals=int(transcendentals),
                           bytes_accessed=int(bytes_accessed))


# ----------------------------------------------------------------------------
# Kernels
# ----------------------------------------------------------------------------
def _cat_conv3x3_kernel(*refs, has_res, fuse_1x1):
    """Fused trunk stage (one image per grid step):
       u = cat([0.2*ltpe + y, y], C); 3x3 conv (pad=1) via 9 tap-accumulated
       matmuls; + bias; LeakyReLU; optional residual; optional fused 1x1 (c5).
    """
    it = iter(refs)
    ltpe_ref = next(it)
    y_ref = next(it)
    res_ref = next(it) if has_res else None
    w_ref = next(it)                       # (9, 2C, Cmid)
    b_ref = next(it)                       # (1, Cmid)
    w5_ref = next(it) if fuse_1x1 else None
    b5_ref = next(it) if fuse_1x1 else None
    o_ref = next(it)                       # (1, H*W, Cout)
    pad_ref = next(it)                     # VMEM scratch (H+2, W+2, 2C)

    _, H, W, C = y_ref.shape
    C2 = 2 * C
    m = H * W

    y = y_ref[0]
    a = ltpe_ref[0] * 0.2 + y
    # zero-pad the fused-cat activation inside VMEM (no HBM padding pass)
    pad_ref[...] = jnp.zeros(pad_ref.shape, pad_ref.dtype)
    pad_ref[1:H + 1, 1:W + 1, :] = jnp.concatenate([a, y], axis=-1)

    acc = None
    t = 0
    for kh in range(3):
        for kw in range(3):
            tap = pad_ref[kh:kh + H, kw:kw + W, :]
            tap = tap.reshape(m, C2).astype(MXU_DTYPE)
            d = jnp.dot(tap, w_ref[t], preferred_element_type=jnp.float32)
            acc = d if acc is None else acc + d
            t += 1
    acc = _leaky_relu(acc + b_ref[...])
    if has_res:
        acc = acc + res_ref[0]
    if fuse_1x1:
        acc = jnp.dot(acc.astype(MXU_DTYPE), w5_ref[...],
                      preferred_element_type=jnp.float32) + b5_ref[...]
    o_ref[0] = acc


def _conv3x3_p1_kernel(x_ref, w_ref, b_ref, o_ref, pad_ref):
    """Plain 3x3 conv, pad=1, stride=1, tap-accumulated, in-VMEM padding."""
    _, H, W, C = x_ref.shape
    m = H * W
    pad_ref[...] = jnp.zeros(pad_ref.shape, pad_ref.dtype)
    pad_ref[1:H + 1, 1:W + 1, :] = x_ref[0]
    acc = None
    t = 0
    for kh in range(3):
        for kw in range(3):
            tap = pad_ref[kh:kh + H, kw:kw + W, :]
            tap = tap.reshape(m, C).astype(MXU_DTYPE)
            d = jnp.dot(tap, w_ref[t], preferred_element_type=jnp.float32)
            acc = d if acc is None else acc + d
            t += 1
    o_ref[0] = acc + b_ref[...]


def _conv3x3_s2_kernel(x_ref, w_ref, b_ref, o_ref, *, Ho, Wo, C):
    """3x3 / stride-2 / pad-0 conv.  Input arrives through the free
    stride-phase view (1, H/2, 2, W/2, 2C); each tap is a static slice."""
    v = x_ref[0]                                          # (H2, 2, W2, 2C)
    acc = None
    t = 0
    for kh in range(3):
        for kw in range(3):
            ro, p = kh // 2, kh % 2
            co, q = kw // 2, kw % 2
            tap = v[ro:ro + Ho, p, co:co + Wo, q * C:(q + 1) * C]
            tap = tap.reshape(Ho * Wo, C).astype(MXU_DTYPE)
            d = jnp.dot(tap, w_ref[t], preferred_element_type=jnp.float32)
            acc = d if acc is None else acc + d
            t += 1
    o_ref[0] = acc + b_ref[...]


def _maxpool_kernel(x_ref, o_ref, *, ksize, stride, Ho, Wo):
    """ksize x ksize / stride max pool; separable maxes, only the strided
    outputs are materialized and written back."""
    x = x_ref[...]                                        # (1, H, W, C)
    _, H, W, _ = x.shape
    Hd = H - ksize + 1
    Wd = W - ksize + 1
    rm = x[:, 0:Hd]
    for d in range(1, ksize):
        rm = jnp.maximum(rm, x[:, d:d + Hd])
    if Ho < Hd:
        rm = jnp.concatenate(
            [rm[:, i * stride:i * stride + 1] for i in range(Ho)], axis=1)
    else:
        rm = rm[:, :Ho]
    cm = rm[:, :, 0:Wd]
    for d in range(1, ksize):
        cm = jnp.maximum(cm, rm[:, :, d:d + Wd])
    if Wo < Wd:
        cm = jnp.concatenate(
            [cm[:, :, j * stride:j * stride + 1] for j in range(Wo)], axis=2)
    else:
        cm = cm[:, :, :Wo]
    o_ref[...] = cm


def _conv1x1_kernel(x_ref, w_ref, b_ref, o_ref):
    acc = jnp.dot(x_ref[...].astype(MXU_DTYPE), w_ref[...],
                  preferred_element_type=jnp.float32)
    o_ref[...] = acc + b_ref[...]


def _esa_tail_kernel(c3_ref, c1_ref, x_ref, r_ref, wf_ref, bf_ref,
                     w4_ref, b4_ref, o_ref):
    """Fused ESA tail for one image:
       c3_up = R @ c3_low   (exact bilinear resize as one matmul)
       cf    = conv_f(c1_)
       c4    = conv4(c3_up + cf);   out = x * sigmoid(c4)
    """
    _, Hs, Ws, F = c3_ref.shape
    c3l = c3_ref[0].reshape(Hs * Ws, F)
    c3u = jnp.dot(r_ref[...], c3l, preferred_element_type=jnp.float32)  # (m, F)
    cf = jnp.dot(c1_ref[0].astype(MXU_DTYPE), wf_ref[...],
                 preferred_element_type=jnp.float32) + bf_ref[...]
    c4 = jnp.dot((c3u + cf).astype(MXU_DTYPE), w4_ref[...],
                 preferred_element_type=jnp.float32) + b4_ref[...]
    o_ref[0] = x_ref[0] * jax.nn.sigmoid(c4)


# ----------------------------------------------------------------------------
# Wrappers (glue: free reshapes only; no HBM padding / repartition passes)
# ----------------------------------------------------------------------------
def cat_conv3x3(ltpe, y, wb, res=None, fuse=None):
    w, b = wb
    N, H, W, C = y.shape
    C2 = 2 * C
    Cmid = w.shape[-1]
    w9 = w.reshape(9, C2, Cmid).astype(MXU_DTYPE)

    arrays = [ltpe, y]
    in_specs = [pl.BlockSpec((1, H, W, C), lambda n: (n, 0, 0, 0)),
                pl.BlockSpec((1, H, W, C), lambda n: (n, 0, 0, 0))]
    if res is not None:
        arrays.append(res.reshape(N, H * W, Cmid))
        in_specs.append(pl.BlockSpec((1, H * W, Cmid), lambda n: (n, 0, 0)))
    arrays += [w9, b.reshape(1, Cmid)]
    in_specs += [pl.BlockSpec((9, C2, Cmid), lambda n: (0, 0, 0)),
                 pl.BlockSpec((1, Cmid), lambda n: (0, 0))]
    Cout = Cmid
    flops = 2 * N * H * W * 9 * C2 * Cmid
    if fuse is not None:
        w5, b5 = fuse
        C5o = w5.shape[-1]
        arrays += [w5.reshape(Cmid, C5o).astype(MXU_DTYPE), b5.reshape(1, C5o)]
        in_specs += [pl.BlockSpec((Cmid, C5o), lambda n: (0, 0)),
                     pl.BlockSpec((1, C5o), lambda n: (0, 0))]
        Cout = C5o
        flops += 2 * N * H * W * Cmid * C5o
    bytes_acc = 4 * N * H * W * (2 * C + Cout + (Cmid if res is not None else 0))

    out3 = pl.pallas_call(
        functools.partial(_cat_conv3x3_kernel,
                          has_res=res is not None, fuse_1x1=fuse is not None),
        grid=(N,),
        in_specs=in_specs,
        out_specs=pl.BlockSpec((1, H * W, Cout), lambda n: (n, 0, 0)),
        out_shape=jax.ShapeDtypeStruct((N, H * W, Cout), jnp.float32),
        scratch_shapes=[pltpu.VMEM((H + 2, W + 2, C2), jnp.float32)],
        compiler_params=_params(1),
        cost_estimate=_cost(flops, bytes_acc),
    )(*arrays)
    return out3.reshape(N, H, W, Cout)


def conv3x3_p1(x, wb):
    w, b = wb
    N, H, W, Cin = x.shape
    Cout = w.shape[-1]
    w9 = w.reshape(9, Cin, Cout).astype(MXU_DTYPE)
    out3 = pl.pallas_call(
        _conv3x3_p1_kernel,
        grid=(N,),
        in_specs=[pl.BlockSpec((1, H, W, Cin), lambda n: (n, 0, 0, 0)),
                  pl.BlockSpec((9, Cin, Cout), lambda n: (0, 0, 0)),
                  pl.BlockSpec((1, Cout), lambda n: (0, 0))],
        out_specs=pl.BlockSpec((1, H * W, Cout), lambda n: (n, 0, 0)),
        out_shape=jax.ShapeDtypeStruct((N, H * W, Cout), jnp.float32),
        scratch_shapes=[pltpu.VMEM((H + 2, W + 2, Cin), jnp.float32)],
        compiler_params=_params(1),
        cost_estimate=_cost(2 * N * H * W * 9 * Cin * Cout,
                            4 * N * H * W * (Cin + Cout)),
    )(x, w9, b.reshape(1, Cout))
    return out3.reshape(N, H, W, Cout)


def conv3x3_s2(x, wb):
    w, b = wb
    N, H, W, Cin = x.shape
    Cout = w.shape[-1]
    Ho = (H - 3) // 2 + 1
    Wo = (W - 3) // 2 + 1
    if (H % 2) or (W % 2):
        # TODO(synk): odd spatial sizes pay one small XLA pad; fold into producer.
        x = jnp.pad(x, ((0, 0), (0, H % 2), (0, W % 2), (0, 0)))
    He, We = x.shape[1], x.shape[2]
    # free, layout-preserving stride-phase view of the input
    x5 = x.reshape(N, He // 2, 2, We // 2, 2 * Cin)
    w9 = w.reshape(9, Cin, Cout).astype(MXU_DTYPE)
    out3 = pl.pallas_call(
        functools.partial(_conv3x3_s2_kernel, Ho=Ho, Wo=Wo, C=Cin),
        grid=(N,),
        in_specs=[pl.BlockSpec((1, He // 2, 2, We // 2, 2 * Cin),
                               lambda n: (n, 0, 0, 0, 0)),
                  pl.BlockSpec((9, Cin, Cout), lambda n: (0, 0, 0)),
                  pl.BlockSpec((1, Cout), lambda n: (0, 0))],
        out_specs=pl.BlockSpec((1, Ho * Wo, Cout), lambda n: (n, 0, 0)),
        out_shape=jax.ShapeDtypeStruct((N, Ho * Wo, Cout), jnp.float32),
        compiler_params=_params(1),
        cost_estimate=_cost(2 * N * Ho * Wo * 9 * Cin * Cout,
                            4 * N * (He * We * Cin + Ho * Wo * Cout)),
    )(x5, w9, b.reshape(1, Cout))
    return out3.reshape(N, Ho, Wo, Cout)


def max_pool2d(x, *, ksize, stride):
    N, H, W, C = x.shape
    Ho = (H - ksize) // stride + 1
    Wo = (W - ksize) // stride + 1
    return pl.pallas_call(
        functools.partial(_maxpool_kernel, ksize=ksize, stride=stride,
                          Ho=Ho, Wo=Wo),
        grid=(N,),
        in_specs=[pl.BlockSpec((1, H, W, C), lambda n: (n, 0, 0, 0))],
        out_specs=pl.BlockSpec((1, Ho, Wo, C), lambda n: (n, 0, 0, 0)),
        out_shape=jax.ShapeDtypeStruct((N, Ho, Wo, C), x.dtype),
        compiler_params=_params(1),
        cost_estimate=_cost(0, 4 * N * C * (H * W + Ho * Wo)),
    )(x)


def conv1x1(x, wb):
    w, b = wb
    N, H, W, Cin = x.shape
    Cout = w.shape[-1]
    M = N * H * W
    tm = min(ROW_TILE, M)
    out2 = pl.pallas_call(
        _conv1x1_kernel,
        grid=(pl.cdiv(M, tm),),
        in_specs=[pl.BlockSpec((tm, Cin), lambda i: (i, 0)),
                  pl.BlockSpec((Cin, Cout), lambda i: (0, 0)),
                  pl.BlockSpec((1, Cout), lambda i: (0, 0))],
        out_specs=pl.BlockSpec((tm, Cout), lambda i: (i, 0)),
        out_shape=jax.ShapeDtypeStruct((M, Cout), jnp.float32),
        compiler_params=_params(1),
        cost_estimate=_cost(2 * M * Cin * Cout, 4 * M * (Cin + Cout)),
    )(x.reshape(M, Cin), w.reshape(Cin, Cout).astype(MXU_DTYPE),
      b.reshape(1, Cout))
    return out2.reshape(N, H, W, Cout)


def _interp_matrix(out_size, in_size):
    """Row matrix of F.interpolate(mode='bilinear', align_corners=False)."""
    scale = in_size / out_size
    src = (jnp.arange(out_size, dtype=jnp.float32) + 0.5) * scale - 0.5
    src = jnp.maximum(src, 0.0)
    i0 = jnp.minimum(jnp.floor(src).astype(jnp.int32), in_size - 1)
    i1 = jnp.minimum(i0 + 1, in_size - 1)
    lam = jnp.clip(src - i0.astype(jnp.float32), 0.0, 1.0)
    m0 = jax.nn.one_hot(i0, in_size, dtype=jnp.float32) * (1.0 - lam)[:, None]
    m1 = jax.nn.one_hot(i1, in_size, dtype=jnp.float32) * lam[:, None]
    return m0 + m1                                        # (out_size, in_size)


def esa_tail(c3, c1_, xg, wb_f, wb_4):
    """Fused: conv_f + bilinear upsample + conv4 + sigmoid + gating multiply."""
    wf, bf = wb_f
    w4, b4 = wb_4
    N, Hs, Ws, F = c3.shape
    _, H, W, C = xg.shape
    M = H * W
    rh = _interp_matrix(H, Hs)                            # (H, Hs)
    rw = _interp_matrix(W, Ws)                            # (W, Ws)
    # combined separable interp matrix: R[(h,w),(hs,ws)] = rh[h,hs]*rw[w,ws]
    r = (rh[:, None, :, None] * rw[None, :, None, :]).reshape(M, Hs * Ws)
    out3 = pl.pallas_call(
        _esa_tail_kernel,
        grid=(N,),
        in_specs=[pl.BlockSpec((1, Hs, Ws, F), lambda n: (n, 0, 0, 0)),
                  pl.BlockSpec((1, M, F), lambda n: (n, 0, 0)),
                  pl.BlockSpec((1, M, C), lambda n: (n, 0, 0)),
                  pl.BlockSpec((M, Hs * Ws), lambda n: (0, 0)),
                  pl.BlockSpec((F, F), lambda n: (0, 0)),
                  pl.BlockSpec((1, F), lambda n: (0, 0)),
                  pl.BlockSpec((F, C), lambda n: (0, 0)),
                  pl.BlockSpec((1, C), lambda n: (0, 0))],
        out_specs=pl.BlockSpec((1, M, C), lambda n: (n, 0, 0)),
        out_shape=jax.ShapeDtypeStruct((N, M, C), jnp.float32),
        compiler_params=_params(1),
        cost_estimate=_cost(
            2 * N * M * (Hs * Ws * F + F * F + F * C),
            4 * N * M * (F + 2 * C),
            transcendentals=N * M * C),
    )(c3, c1_.reshape(N, M, F), xg.reshape(N, M, C), r,
      wf.reshape(F, F).astype(MXU_DTYPE), bf.reshape(1, F),
      w4.reshape(F, C).astype(MXU_DTYPE), b4.reshape(1, C))
    return out3.reshape(N, H, W, C)


# ----------------------------------------------------------------------------
# RLFB forward (NHWC internally)
# ----------------------------------------------------------------------------
def rlfb_forward_nhwc(p, x, ltpe):
    x0 = x
    out = cat_conv3x3(ltpe, x, p["c1_r"])
    out = cat_conv3x3(ltpe, out, p["c2_r"])
    # third trunk conv: residual add and the following c5 (1x1) fused in-kernel
    xg = cat_conv3x3(ltpe, out, p["c3_r"], res=x0, fuse=p["c5"])

    # --- ESA ---
    c1_ = conv1x1(xg, p["esa_conv1"])                     # 1x1
    c1 = conv3x3_s2(c1_, p["esa_conv2"])                  # 3x3, stride 2, pad 0
    v_max = max_pool2d(c1, ksize=7, stride=3)
    c3 = conv3x3_p1(v_max, p["esa_conv3"])                # 3x3, pad 1
    # conv_f + bilinear + conv4 + sigmoid gate fused:
    return esa_tail(c3, c1_, xg, p["esa_conv_f"], p["esa_conv4"])


@jax.jit
def rlfb_forward(p, x_nchw, ltpe_nchw):
    x = jnp.transpose(x_nchw, (0, 2, 3, 1))
    ltpe = jnp.transpose(ltpe_nchw, (0, 2, 3, 1))
    out = rlfb_forward_nhwc(p, x, ltpe)
    return jnp.transpose(out, (0, 3, 1, 2))


# ----------------------------------------------------------------------------
# Deterministic parameter init (shapes from RLFB.__init__ / ESA.__init__)
# ----------------------------------------------------------------------------
def init_conv_params(key, kh, kw, cin, cout):
    k1, k2 = jax.random.split(key)
    bound = 1.0 / (kh * kw * cin) ** 0.5
    w = jax.random.uniform(k1, (kh, kw, cin, cout), jnp.float32, -bound, bound)
    b = jax.random.uniform(k2, (cout,), jnp.float32, -bound, bound)
    return w, b


def init_rlfb_params(key, in_ch, mid_ch, out_ch, esa_ch):
    shapes = {
        "c1_r": (3, 3, in_ch * 2, mid_ch),
        "c2_r": (3, 3, mid_ch * 2, mid_ch),
        "c3_r": (3, 3, mid_ch * 2, in_ch),
        "c5": (1, 1, in_ch, out_ch),
        "esa_conv1": (1, 1, out_ch, esa_ch),
        "esa_conv_f": (1, 1, esa_ch, esa_ch),
        "esa_conv2": (3, 3, esa_ch, esa_ch),
        "esa_conv3": (3, 3, esa_ch, esa_ch),
        "esa_conv4": (1, 1, esa_ch, out_ch),
    }
    keys = jax.random.split(key, len(shapes))
    return {name: init_conv_params(k, *s)
            for k, (name, s) in zip(keys, shapes.items())}


if __name__ == "__main__":
    key = jax.random.PRNGKey(0)
    kp, kx, kl = jax.random.split(key, 3)
    in_ch = 4
    params = init_rlfb_params(kp, in_ch, in_ch, in_ch, esa_ch=16)

    # PyTorch-style NCHW inputs (H=W=16 so ESA's maxpool(7,3) is valid).
    x = jax.random.normal(kx, (2, in_ch, 16, 16), jnp.float32)
    ltpe = jax.random.normal(kl, (2, in_ch, 16, 16), jnp.float32)

    out = rlfb_forward(params, x, ltpe)
    out = jax.block_until_ready(out)
    assert out.shape == (2, in_ch, 16, 16), out.shape
    assert bool(jnp.all(jnp.isfinite(out)))
    print("KERNEL_OK")
</pallas_src>

<mosaic_0001>
module attributes {stable_mosaic.version = 11 : i64} {
  func.func @_cat_conv3x3_kernel(%arg0: i32, %arg1: memref<1x16x16x4xf32, #tpu.memory_space<vmem>>, %arg2: memref<1x16x16x4xf32, #tpu.memory_space<vmem>>, %arg3: memref<9x8x4xbf16, #tpu.memory_space<vmem>>, %arg4: memref<1x4xf32, #tpu.memory_space<vmem>>, %arg5: memref<1x256x4xf32, #tpu.memory_space<vmem>>, %arg6: memref<18x18x8xf32, #tpu.memory_space<vmem>>) attributes {dimension_semantics = [#tpu.dimension_semantics<parallel>], iteration_bounds = array<i64: 2>, scalar_prefetch = 0 : i64, scratch_operands = 1 : i64, tpu.core_type = #tpu.core_type<tc>, window_params = [{transform_indices = @transform_0, window_bounds = array<i64: 1, 16, 16, 4>}, {transform_indices = @transform_1, window_bounds = array<i64: 1, 16, 16, 4>}, {pipeline_mode = #tpu.pipeline_mode<synchronous>, transform_indices = @transform_2, window_bounds = array<i64: 9, 8, 4>}, {pipeline_mode = #tpu.pipeline_mode<synchronous>, transform_indices = @transform_3, window_bounds = array<i64: 1, 4>}, {transform_indices = @transform_4, window_bounds = array<i64: 1, 256, 4>}]} {
    %c0 = arith.constant 0 : index
    %c0_0 = arith.constant 0 : index
    %c0_1 = arith.constant 0 : index
    %c0_2 = arith.constant 0 : index
    %0 = vector.load %arg2[%c0, %c0_0, %c0_1, %c0_2] : memref<1x16x16x4xf32, #tpu.memory_space<vmem>>, vector<1x16x16x4xf32>
    %1 = vector.shape_cast %0 : vector<1x16x16x4xf32> to vector<16x16x4xf32>
    %c0_3 = arith.constant 0 : index
    %c0_4 = arith.constant 0 : index
    %c0_5 = arith.constant 0 : index
    %c0_6 = arith.constant 0 : index
    %2 = vector.load %arg1[%c0_3, %c0_4, %c0_5, %c0_6] : memref<1x16x16x4xf32, #tpu.memory_space<vmem>>, vector<1x16x16x4xf32>
    %3 = vector.shape_cast %2 : vector<1x16x16x4xf32> to vector<16x16x4xf32>
    %cst = arith.constant 2.000000e-01 : f32
    %4 = vector.broadcast %cst : f32 to vector<16x16x4xf32>
    %5 = arith.mulf %3, %4 : vector<16x16x4xf32>
    %6 = arith.addf %5, %1 : vector<16x16x4xf32>
    %cst_7 = arith.constant 0.000000e+00 : f32
    %7 = vector.broadcast %cst_7 : f32 to vector<18x18x8xf32>
    %c0_8 = arith.constant 0 : index
    %c0_9 = arith.constant 0 : index
    %c0_10 = arith.constant 0 : index
    %8 = vector.load %arg6[%c0_8, %c0_9, %c0_10] : memref<18x18x8xf32, #tpu.memory_space<vmem>>, vector<18x18x8xf32>
    tpu.vector_store %arg6[%c0_8, %c0_9, %c0_10], %7 {strides = array<i32>} : memref<18x18x8xf32, #tpu.memory_space<vmem>>, vector<18x18x8xf32>,
    %9 = tpu.concatenate %6, %1 in 2 : vector<16x16x4xf32>, vector<16x16x4xf32> -> vector<16x16x8xf32>
    %c1 = arith.constant 1 : index
    %c1_11 = arith.constant 1 : index
    %c0_12 = arith.constant 0 : index
    %10 = vector.load %arg6[%c1, %c1_11, %c0_12] : memref<18x18x8xf32, #tpu.memory_space<vmem>>, vector<16x16x8xf32>
    tpu.vector_store %arg6[%c1, %c1_11, %c0_12], %9 {strides = array<i32>} : memref<18x18x8xf32, #tpu.memory_space<vmem>>, vector<16x16x8xf32>,
    %c0_13 = arith.constant 0 : index
    %c0_14 = arith.constant 0 : index
    %c0_15 = arith.constant 0 : index
    %11 = vector.load %arg6[%c0_13, %c0_14, %c0_15] : memref<18x18x8xf32, #tpu.memory_space<vmem>>, vector<16x16x8xf32>
    %12 = vector.shape_cast %11 : vector<16x16x8xf32> to vector<256x8xf32>
    %13 = arith.truncf %12 : vector<256x8xf32> to vector<256x8xbf16>
    %c0_16 = arith.constant 0 : index
    %c0_17 = arith.constant 0 : index
    %c0_18 = arith.constant 0 : index
    %14 = vector.load %arg3[%c0_16, %c0_17, %c0_18] : memref<9x8x4xbf16, #tpu.memory_space<vmem>>, vector<1x8x4xbf16>
    %15 = vector.shape_cast %14 : vector<1x8x4xbf16> to vector<8x4xbf16>
    %cst_19 = arith.constant dense<0.000000e+00> : vector<256x4xf32>
    %16 = tpu.matmul %13, %15, %cst_19 {dimension_numbers = #tpu.dot_dimension_numbers<[1], [0], [0], [1], [0, 0, 1, 1], [], []>} : vector<256x8xbf16>, vector<8x4xbf16>, vector<256x4xf32> -> vector<256x4xf32>
    %c0_20 = arith.constant 0 : index
    %c1_21 = arith.constant 1 : index
    %c0_22 = arith.constant 0 : index
    %17 = vector.load %arg6[%c0_20, %c1_21, %c0_22] : memref<18x18x8xf32, #tpu.memory_space<vmem>>, vector<16x16x8xf32>
    %18 = vector.shape_cast %17 : vector<16x16x8xf32> to vector<256x8xf32>
    %19 = arith.truncf %18 : vector<256x8xf32> to vector<256x8xbf16>
    %c1_23 = arith.constant 1 : index
    %c0_24 = arith.constant 0 : index
    %c0_25 = arith.constant 0 : index
    %20 = vector.load %arg3[%c1_23, %c0_24, %c0_25] : memref<9x8x4xbf16, #tpu.memory_space<vmem>>, vector<1x8x4xbf16>
    %21 = vector.shape_cast %20 : vector<1x8x4xbf16> to vector<8x4xbf16>
    %cst_26 = arith.constant dense<0.000000e+00> : vector<256x4xf32>
    %22 = tpu.matmul %19, %21, %cst_26 {dimension_numbers = #tpu.dot_dimension_numbers<[1], [0], [0], [1], [0, 0, 1, 1], [], []>} : vector<256x8xbf16>, vector<8x4xbf16>, vector<256x4xf32> -> vector<256x4xf32>
    %23 = arith.addf %16, %22 : vector<256x4xf32>
    %c0_27 = arith.constant 0 : index
    %c2 = arith.constant 2 : index
    %c0_28 = arith.constant 0 : index
    %24 = vector.load %arg6[%c0_27, %c2, %c0_28] : memref<18x18x8xf32, #tpu.memory_space<vmem>>, vector<16x16x8xf32>
    %25 = vector.shape_cast %24 : vector<16x16x8xf32> to vector<256x8xf32>
    %26 = arith.truncf %25 : vector<256x8xf32> to vector<256x8xbf16>
    %c2_29 = arith.constant 2 : index
    %c0_30 = arith.constant 0 : index
    %c0_31 = arith.constant 0 : index
    %27 = vector.load %arg3[%c2_29, %c0_30, %c0_31] : memref<9x8x4xbf16, #tpu.memory_space<vmem>>, vector<1x8x4xbf16>
    %28 = vector.shape_cast %27 : vector<1x8x4xbf16> to vector<8x4xbf16>
    %cst_32 = arith.constant dense<0.000000e+00> : vector<256x4xf32>
    %29 = tpu.matmul %26, %28, %cst_32 {dimension_numbers = #tpu.dot_dimension_numbers<[1], [0], [0], [1], [0, 0, 1, 1], [], []>} : vector<256x8xbf16>, vector<8x4xbf16>, vector<256x4xf32> -> vector<256x4xf32>
    %30 = arith.addf %23, %29 : vector<256x4xf32>
    %c1_33 = arith.constant 1 : index
    %c0_34 = arith.constant 0 : index
    %c0_35 = arith.constant 0 : index
    %31 = vector.load %arg6[%c1_33, %c0_34, %c0_35] : memref<18x18x8xf32, #tpu.memory_space<vmem>>, vector<16x16x8xf32>
    %32 = vector.shape_cast %31 : vector<16x16x8xf32> to vector<256x8xf32>
    %33 = arith.truncf %32 : vector<256x8xf32> to vector<256x8xbf16>
    %c3 = arith.constant 3 : index
    %c0_36 = arith.constant 0 : index
    %c0_37 = arith.constant 0 : index
    %34 = vector.load %arg3[%c3, %c0_36, %c0_37] : memref<9x8x4xbf16, #tpu.memory_space<vmem>>, vector<1x8x4xbf16>
    %35 = vector.shape_cast %34 : vector<1x8x4xbf16> to vector<8x4xbf16>
    %cst_38 = arith.constant dense<0.000000e+00> : vector<256x4xf32>
    %36 = tpu.matmul %33, %35, %cst_38 {dimension_numbers = #tpu.dot_dimension_numbers<[1], [0], [0], [1], [0, 0, 1, 1], [], []>} : vector<256x8xbf16>, vector<8x4xbf16>, vector<256x4xf32> -> vector<256x4xf32>
    %37 = arith.addf %30, %36 : vector<256x4xf32>
    %c1_39 = arith.constant 1 : index
    %c1_40 = arith.constant 1 : index
    %c0_41 = arith.constant 0 : index
    %38 = vector.load %arg6[%c1_39, %c1_40, %c0_41] : memref<18x18x8xf32, #tpu.memory_space<vmem>>, vector<16x16x8xf32>
    %39 = vector.shape_cast %38 : vector<16x16x8xf32> to vector<256x8xf32>
    %40 = arith.truncf %39 : vector<256x8xf32> to vector<256x8xbf16>
    %c4 = arith.constant 4 : index
    %c0_42 = arith.constant 0 : index
    %c0_43 = arith.constant 0 : index
    %41 = vector.load %arg3[%c4, %c0_42, %c0_43] : memref<9x8x4xbf16, #tpu.memory_space<vmem>>, vector<1x8x4xbf16>
    %42 = vector.shape_cast %41 : vector<1x8x4xbf16> to vector<8x4xbf16>
    %cst_44 = arith.constant dense<0.000000e+00> : vector<256x4xf32>
    %43 = tpu.matmul %40, %42, %cst_44 {dimension_numbers = #tpu.dot_dimension_numbers<[1], [0], [0], [1], [0, 0, 1, 1], [], []>} : vector<256x8xbf16>, vector<8x4xbf16>, vector<256x4xf32> -> vector<256x4xf32>
    %44 = arith.addf %37, %43 : vector<256x4xf32>
    %c1_45 = arith.constant 1 : index
    %c2_46 = arith.constant 2 : index
    %c0_47 = arith.constant 0 : index
    %45 = vector.load %arg6[%c1_45, %c2_46, %c0_47] : memref<18x18x8xf32, #tpu.memory_space<vmem>>, vector<16x16x8xf32>
    %46 = vector.shape_cast %45 : vector<16x16x8xf32> to vector<256x8xf32>
    %47 = arith.truncf %46 : vector<256x8xf32> to vector<256x8xbf16>
    %c5 = arith.constant 5 : index
    %c0_48 = arith.constant 0 : index
    %c0_49 = arith.constant 0 : index
    %48 = vector.load %arg3[%c5, %c0_48, %c0_49] : memref<9x8x4xbf16, #tpu.memory_space<vmem>>, vector<1x8x4xbf16>
    %49 = vector.shape_cast %48 : vector<1x8x4xbf16> to vector<8x4xbf16>
    %cst_50 = arith.constant dense<0.000000e+00> : vector<256x4xf32>
    %50 = tpu.matmul %47, %49, %cst_50 {dimension_numbers = #tpu.dot_dimension_numbers<[1], [0], [0], [1], [0, 0, 1, 1], [], []>} : vector<256x8xbf16>, vector<8x4xbf16>, vector<256x4xf32> -> vector<256x4xf32>
    %51 = arith.addf %44, %50 : vector<256x4xf32>
    %c2_51 = arith.constant 2 : index
    %c0_52 = arith.constant 0 : index
    %c0_53 = arith.constant 0 : index
    %52 = vector.load %arg6[%c2_51, %c0_52, %c0_53] : memref<18x18x8xf32, #tpu.memory_space<vmem>>, vector<16x16x8xf32>
    %53 = vector.shape_cast %52 : vector<16x16x8xf32> to vector<256x8xf32>
    %54 = arith.truncf %53 : vector<256x8xf32> to vector<256x8xbf16>
    %c6 = arith.constant 6 : index
    %c0_54 = arith.constant 0 : index
    %c0_55 = arith.constant 0 : index
    %55 = vector.load %arg3[%c6, %c0_54, %c0_55] : memref<9x8x4xbf16, #tpu.memory_space<vmem>>, vector<1x8x4xbf16>
    %56 = vector.shape_cast %55 : vector<1x8x4xbf16> to vector<8x4xbf16>
    %cst_56 = arith.constant dense<0.000000e+00> : vector<256x4xf32>
    %57 = tpu.matmul %54, %56, %cst_56 {dimension_numbers = #tpu.dot_dimension_numbers<[1], [0], [0], [1], [0, 0, 1, 1], [], []>} : vector<256x8xbf16>, vector<8x4xbf16>, vector<256x4xf32> -> vector<256x4xf32>
    %58 = arith.addf %51, %57 : vector<256x4xf32>
    %c2_57 = arith.constant 2 : index
    %c1_58 = arith.constant 1 : index
    %c0_59 = arith.constant 0 : index
    %59 = vector.load %arg6[%c2_57, %c1_58, %c0_59] : memref<18x18x8xf32, #tpu.memory_space<vmem>>, vector<16x16x8xf32>
    %60 = vector.shape_cast %59 : vector<16x16x8xf32> to vector<256x8xf32>
    %61 = arith.truncf %60 : vector<256x8xf32> to vector<256x8xbf16>
    %c7 = arith.constant 7 : index
    %c0_60 = arith.constant 0 : index
    %c0_61 = arith.constant 0 : index
    %62 = vector.load %arg3[%c7, %c0_60, %c0_61] : memref<9x8x4xbf16, #tpu.memory_space<vmem>>, vector<1x8x4xbf16>
    %63 = vector.shape_cast %62 : vector<1x8x4xbf16> to vector<8x4xbf16>
    %cst_62 = arith.constant dense<0.000000e+00> : vector<256x4xf32>
    %64 = tpu.matmul %61, %63, %cst_62 {dimension_numbers = #tpu.dot_dimension_numbers<[1], [0], [0], [1], [0, 0, 1, 1], [], []>} : vector<256x8xbf16>, vector<8x4xbf16>, vector<256x4xf32> -> vector<256x4xf32>
    %65 = arith.addf %58, %64 : vector<256x4xf32>
    %c2_63 = arith.constant 2 : index
    %c2_64 = arith.constant 2 : index
    %c0_65 = arith.constant 0 : index
    %66 = vector.load %arg6[%c2_63, %c2_64, %c0_65] : memref<18x18x8xf32, #tpu.memory_space<vmem>>, vector<16x16x8xf32>
    %67 = vector.shape_cast %66 : vector<16x16x8xf32> to vector<256x8xf32>
    %68 = arith.truncf %67 : vector<256x8xf32> to vector<256x8xbf16>
    %c8 = arith.constant 8 : index
    %c0_66 = arith.constant 0 : index
    %c0_67 = arith.constant 0 : index
    %69 = vector.load %arg3[%c8, %c0_66, %c0_67] : memref<9x8x4xbf16, #tpu.memory_space<vmem>>, vector<1x8x4xbf16>
    %70 = vector.shape_cast %69 : vector<1x8x4xbf16> to vector<8x4xbf16>
    %cst_68 = arith.constant dense<0.000000e+00> : vector<256x4xf32>
    %71 = tpu.matmul %68, %70, %cst_68 {dimension_numbers = #tpu.dot_dimension_numbers<[1], [0], [0], [1], [0, 0, 1, 1], [], []>} : vector<256x8xbf16>, vector<8x4xbf16>, vector<256x4xf32> -> vector<256x4xf32>
    %72 = arith.addf %65, %71 : vector<256x4xf32>
    %c0_69 = arith.constant 0 : index
    %c0_70 = arith.constant 0 : index
    %73 = vector.load %arg4[%c0_69, %c0_70] : memref<1x4xf32, #tpu.memory_space<vmem>>, vector<1x4xf32>
    %74 = vector.broadcast %73 : vector<1x4xf32> to vector<256x4xf32>
    %75 = arith.addf %72, %74 : vector<256x4xf32>
    %cst_71 = arith.constant 0.000000e+00 : f32
    %76 = vector.broadcast %cst_71 : f32 to vector<256x4xf32>
    %77 = arith.cmpf oge, %75, %76 : vector<256x4xf32>
    %cst_72 = arith.constant 5.000000e-02 : f32
    %78 = vector.broadcast %cst_72 : f32 to vector<256x4xf32>
    %79 = arith.mulf %75, %78 : vector<256x4xf32>
    %80 = arith.select %77, %75, %79 : vector<256x4xi1>, vector<256x4xf32>
    %c0_73 = arith.constant 0 : index
    %c0_74 = arith.constant 0 : index
    %c0_75 = arith.constant 0 : index
    %81 = vector.load %arg5[%c0_73, %c0_74, %c0_75] : memref<1x256x4xf32, #tpu.memory_space<vmem>>, vector<1x256x4xf32>
    %82 = vector.shape_cast %81 : vector<1x256x4xf32> to vector<256x4xf32>
    %83 = vector.shape_cast %80 : vector<256x4xf32> to vector<1x256x4xf32>
    tpu.vector_store %arg5[%c0_73, %c0_74, %c0_75], %83 {strides = array<i32>} : memref<1x256x4xf32, #tpu.memory_space<vmem>>, vector<1x256x4xf32>,
    return
  }
  func.func @transform_0(%arg0: i32) -> (i32, i32, i32, i32) {
    %c0_i32 = arith.constant 0 : i32
    %c0_i32_0 = arith.constant 0 : i32
    %c0_i32_1 = arith.constant 0 : i32
    %c0_i32_2 = arith.constant 0 : i32
    return %arg0, %c0_i32, %c0_i32_0, %c0_i32_1 : i32, i32, i32, i32
  }
  func.func @transform_1(%arg0: i32) -> (i32, i32, i32, i32) {
    %c0_i32 = arith.constant 0 : i32
    %c0_i32_0 = arith.constant 0 : i32
    %c0_i32_1 = arith.constant 0 : i32
    %c0_i32_2 = arith.constant 0 : i32
    return %arg0, %c0_i32, %c0_i32_0, %c0_i32_1 : i32, i32, i32, i32
  }
  func.func @transform_2(%arg0: i32) -> (i32, i32, i32) {
    %c0_i32 = arith.constant 0 : i32
    %c0_i32_0 = arith.constant 0 : i32
    %c0_i32_1 = arith.constant 0 : i32
    %c0_i32_2 = arith.constant 0 : i32
    return %c0_i32, %c0_i32_0, %c0_i32_1 : i32, i32, i32
  }
  func.func @transform_3(%arg0: i32) -> (i32, i32) {
    %c0_i32 = arith.constant 0 : i32
    %c0_i32_0 = arith.constant 0 : i32
    %c0_i32_1 = arith.constant 0 : i32
    return %c0_i32, %c0_i32_0 : i32, i32
  }
  func.func @transform_4(%arg0: i32) -> (i32, i32, i32) {
    %c0_i32 = arith.constant 0 : i32
    %c0_i32_0 = arith.constant 0 : i32
    %c0_i32_1 = arith.constant 0 : i32
    return %arg0, %c0_i32, %c0_i32_0 : i32, i32, i32
  }
}

module attributes {stable_mosaic.version = 11 : i64} {
  func.func @_conv1x1_kernel(%arg0: i32, %arg1: memref<512x4xf32, #tpu.memory_space<vmem>>, %arg2: memref<4x16xbf16, #tpu.memory_space<vmem>>, %arg3: memref<1x16xf32, #tpu.memory_space<vmem>>, %arg4: memref<512x16xf32, #tpu.memory_space<vmem>>) attributes {dimension_semantics = [#tpu.dimension_semantics<parallel>], iteration_bounds = array<i64: 1>, scalar_prefetch = 0 : i64, scratch_operands = 0 : i64, tpu.core_type = #tpu.core_type<tc>, window_params = [{transform_indices = @transform_0, window_bounds = array<i64: 512, 4>}, {pipeline_mode = #tpu.pipeline_mode<synchronous>, transform_indices = @transform_1, window_bounds = array<i64: 4, 16>}, {pipeline_mode = #tpu.pipeline_mode<synchronous>, transform_indices = @transform_2, window_bounds = array<i64: 1, 16>}, {transform_indices = @transform_3, window_bounds = array<i64: 512, 16>}]} {
    %c0 = arith.constant 0 : index
    %c0_0 = arith.constant 0 : index
    %0 = vector.load %arg1[%c0, %c0_0] : memref<512x4xf32, #tpu.memory_space<vmem>>, vector<512x4xf32>
    %1 = arith.truncf %0 : vector<512x4xf32> to vector<512x4xbf16>
    %c0_1 = arith.constant 0 : index
    %c0_2 = arith.constant 0 : index
    %2 = vector.load %arg2[%c0_1, %c0_2] : memref<4x16xbf16, #tpu.memory_space<vmem>>, vector<4x16xbf16>
    %cst = arith.constant dense<0.000000e+00> : vector<512x16xf32>
    %3 = tpu.matmul %1, %2, %cst {dimension_numbers = #tpu.dot_dimension_numbers<[1], [0], [0], [1], [0, 0, 1, 1], [], []>} : vector<512x4xbf16>, vector<4x16xbf16>, vector<512x16xf32> -> vector<512x16xf32>
    %c0_3 = arith.constant 0 : index
    %c0_4 = arith.constant 0 : index
    %4 = vector.load %arg3[%c0_3, %c0_4] : memref<1x16xf32, #tpu.memory_space<vmem>>, vector<1x16xf32>
    %5 = vector.broadcast %4 : vector<1x16xf32> to vector<512x16xf32>
    %6 = arith.addf %3, %5 : vector<512x16xf32>
    %c0_5 = arith.constant 0 : index
    %c0_6 = arith.constant 0 : index
    %7 = vector.load %arg4[%c0_5, %c0_6] : memref<512x16xf32, #tpu.memory_space<vmem>>, vector<512x16xf32>
    tpu.vector_store %arg4[%c0_5, %c0_6], %6 {strides = array<i32>} : memref<512x16xf32, #tpu.memory_space<vmem>>, vector<512x16xf32>,
    return
  }
  func.func @transform_0(%arg0: i32) -> (i32, i32) {
    %c0_i32 = arith.constant 0 : i32
    %c0_i32_0 = arith.constant 0 : i32
    return %arg0, %c0_i32 : i32, i32
  }
  func.func @transform_1(%arg0: i32) -> (i32, i32) {
    %c0_i32 = arith.constant 0 : i32
    %c0_i32_0 = arith.constant 0 : i32
    %c0_i32_1 = arith.constant 0 : i32
    return %c0_i32, %c0_i32_0 : i32, i32
  }
  func.func @transform_2(%arg0: i32) -> (i32, i32) {
    %c0_i32 = arith.constant 0 : i32
    %c0_i32_0 = arith.constant 0 : i32
    %c0_i32_1 = arith.constant 0 : i32
    return %c0_i32, %c0_i32_0 : i32, i32
  }
  func.func @transform_3(%arg0: i32) -> (i32, i32) {
    %c0_i32 = arith.constant 0 : i32
    %c0_i32_0 = arith.constant 0 : i32
    return %arg0, %c0_i32 : i32, i32
  }
}

module attributes {stable_mosaic.version = 11 : i64} {
  func.func @_cat_conv3x3_kernel(%arg0: i32, %arg1: memref<1x16x16x4xf32, #tpu.memory_space<vmem>>, %arg2: memref<1x16x16x4xf32, #tpu.memory_space<vmem>>, %arg3: memref<1x256x4xf32, #tpu.memory_space<vmem>>, %arg4: memref<9x8x4xbf16, #tpu.memory_space<vmem>>, %arg5: memref<1x4xf32, #tpu.memory_space<vmem>>, %arg6: memref<4x4xbf16, #tpu.memory_space<vmem>>, %arg7: memref<1x4xf32, #tpu.memory_space<vmem>>, %arg8: memref<1x256x4xf32, #tpu.memory_space<vmem>>, %arg9: memref<18x18x8xf32, #tpu.memory_space<vmem>>) attributes {dimension_semantics = [#tpu.dimension_semantics<parallel>], iteration_bounds = array<i64: 2>, scalar_prefetch = 0 : i64, scratch_operands = 1 : i64, tpu.core_type = #tpu.core_type<tc>, window_params = [{transform_indices = @transform_0, window_bounds = array<i64: 1, 16, 16, 4>}, {transform_indices = @transform_1, window_bounds = array<i64: 1, 16, 16, 4>}, {transform_indices = @transform_2, window_bounds = array<i64: 1, 256, 4>}, {pipeline_mode = #tpu.pipeline_mode<synchronous>, transform_indices = @transform_3, window_bounds = array<i64: 9, 8, 4>}, {pipeline_mode = #tpu.pipeline_mode<synchronous>, transform_indices = @transform_4, window_bounds = array<i64: 1, 4>}, {pipeline_mode = #tpu.pipeline_mode<synchronous>, transform_indices = @transform_5, window_bounds = array<i64: 4, 4>}, {pipeline_mode = #tpu.pipeline_mode<synchronous>, transform_indices = @transform_6, window_bounds = array<i64: 1, 4>}, {transform_indices = @transform_7, window_bounds = array<i64: 1, 256, 4>}]} {
    %c0 = arith.constant 0 : index
    %c0_0 = arith.constant 0 : index
    %c0_1 = arith.constant 0 : index
    %c0_2 = arith.constant 0 : index
    %0 = vector.load %arg2[%c0, %c0_0, %c0_1, %c0_2] : memref<1x16x16x4xf32, #tpu.memory_space<vmem>>, vector<1x16x16x4xf32>
    %1 = vector.shape_cast %0 : vector<1x16x16x4xf32> to vector<16x16x4xf32>
    %c0_3 = arith.constant 0 : index
    %c0_4 = arith.constant 0 : index
    %c0_5 = arith.constant 0 : index
    %c0_6 = arith.constant 0 : index
    %2 = vector.load %arg1[%c0_3, %c0_4, %c0_5, %c0_6] : memref<1x16x16x4xf32, #tpu.memory_space<vmem>>, vector<1x16x16x4xf32>
    %3 = vector.shape_cast %2 : vector<1x16x16x4xf32> to vector<16x16x4xf32>
    %cst = arith.constant 2.000000e-01 : f32
    %4 = vector.broadcast %cst : f32 to vector<16x16x4xf32>
    %5 = arith.mulf %3, %4 : vector<16x16x4xf32>
    %6 = arith.addf %5, %1 : vector<16x16x4xf32>
    %cst_7 = arith.constant 0.000000e+00 : f32
    %7 = vector.broadcast %cst_7 : f32 to vector<18x18x8xf32>
    %c0_8 = arith.constant 0 : index
    %c0_9 = arith.constant 0 : index
    %c0_10 = arith.constant 0 : index
    %8 = vector.load %arg9[%c0_8, %c0_9, %c0_10] : memref<18x18x8xf32, #tpu.memory_space<vmem>>, vector<18x18x8xf32>
    tpu.vector_store %arg9[%c0_8, %c0_9, %c0_10], %7 {strides = array<i32>} : memref<18x18x8xf32, #tpu.memory_space<vmem>>, vector<18x18x8xf32>,
    %9 = tpu.concatenate %6, %1 in 2 : vector<16x16x4xf32>, vector<16x16x4xf32> -> vector<16x16x8xf32>
    %c1 = arith.constant 1 : index
    %c1_11 = arith.constant 1 : index
    %c0_12 = arith.constant 0 : index
    %10 = vector.load %arg9[%c1, %c1_11, %c0_12] : memref<18x18x8xf32, #tpu.memory_space<vmem>>, vector<16x16x8xf32>
    tpu.vector_store %arg9[%c1, %c1_11, %c0_12], %9 {strides = array<i32>} : memref<18x18x8xf32, #tpu.memory_space<vmem>>, vector<16x16x8xf32>,
    %c0_13 = arith.constant 0 : index
    %c0_14 = arith.constant 0 : index
    %c0_15 = arith.constant 0 : index
    %11 = vector.load %arg9[%c0_13, %c0_14, %c0_15] : memref<18x18x8xf32, #tpu.memory_space<vmem>>, vector<16x16x8xf32>
    %12 = vector.shape_cast %11 : vector<16x16x8xf32> to vector<256x8xf32>
    %13 = arith.truncf %12 : vector<256x8xf32> to vector<256x8xbf16>
    %c0_16 = arith.constant 0 : index
    %c0_17 = arith.constant 0 : index
    %c0_18 = arith.constant 0 : index
    %14 = vector.load %arg4[%c0_16, %c0_17, %c0_18] : memref<9x8x4xbf16, #tpu.memory_space<vmem>>, vector<1x8x4xbf16>
    %15 = vector.shape_cast %14 : vector<1x8x4xbf16> to vector<8x4xbf16>
    %cst_19 = arith.constant dense<0.000000e+00> : vector<256x4xf32>
    %16 = tpu.matmul %13, %15, %cst_19 {dimension_numbers = #tpu.dot_dimension_numbers<[1], [0], [0], [1], [0, 0, 1, 1], [], []>} : vector<256x8xbf16>, vector<8x4xbf16>, vector<256x4xf32> -> vector<256x4xf32>
    %c0_20 = arith.constant 0 : index
    %c1_21 = arith.constant 1 : index
    %c0_22 = arith.constant 0 : index
    %17 = vector.load %arg9[%c0_20, %c1_21, %c0_22] : memref<18x18x8xf32, #tpu.memory_space<vmem>>, vector<16x16x8xf32>
    %18 = vector.shape_cast %17 : vector<16x16x8xf32> to vector<256x8xf32>
    %19 = arith.truncf %18 : vector<256x8xf32> to vector<256x8xbf16>
    %c1_23 = arith.constant 1 : index
    %c0_24 = arith.constant 0 : index
    %c0_25 = arith.constant 0 : index
    %20 = vector.load %arg4[%c1_23, %c0_24, %c0_25] : memref<9x8x4xbf16, #tpu.memory_space<vmem>>, vector<1x8x4xbf16>
    %21 = vector.shape_cast %20 : vector<1x8x4xbf16> to vector<8x4xbf16>
    %cst_26 = arith.constant dense<0.000000e+00> : vector<256x4xf32>
    %22 = tpu.matmul %19, %21, %cst_26 {dimension_numbers = #tpu.dot_dimension_numbers<[1], [0], [0], [1], [0, 0, 1, 1], [], []>} : vector<256x8xbf16>, vector<8x4xbf16>, vector<256x4xf32> -> vector<256x4xf32>
    %23 = arith.addf %16, %22 : vector<256x4xf32>
    %c0_27 = arith.constant 0 : index
    %c2 = arith.constant 2 : index
    %c0_28 = arith.constant 0 : index
    %24 = vector.load %arg9[%c0_27, %c2, %c0_28] : memref<18x18x8xf32, #tpu.memory_space<vmem>>, vector<16x16x8xf32>
    %25 = vector.shape_cast %24 : vector<16x16x8xf32> to vector<256x8xf32>
    %26 = arith.truncf %25 : vector<256x8xf32> to vector<256x8xbf16>
    %c2_29 = arith.constant 2 : index
    %c0_30 = arith.constant 0 : index
    %c0_31 = arith.constant 0 : index
    %27 = vector.load %arg4[%c2_29, %c0_30, %c0_31] : memref<9x8x4xbf16, #tpu.memory_space<vmem>>, vector<1x8x4xbf16>
    %28 = vector.shape_cast %27 : vector<1x8x4xbf16> to vector<8x4xbf16>
    %cst_32 = arith.constant dense<0.000000e+00> : vector<256x4xf32>
    %29 = tpu.matmul %26, %28, %cst_32 {dimension_numbers = #tpu.dot_dimension_numbers<[1], [0], [0], [1], [0, 0, 1, 1], [], []>} : vector<256x8xbf16>, vector<8x4xbf16>, vector<256x4xf32> -> vector<256x4xf32>
    %30 = arith.addf %23, %29 : vector<256x4xf32>
    %c1_33 = arith.constant 1 : index
    %c0_34 = arith.constant 0 : index
    %c0_35 = arith.constant 0 : index
    %31 = vector.load %arg9[%c1_33, %c0_34, %c0_35] : memref<18x18x8xf32, #tpu.memory_space<vmem>>, vector<16x16x8xf32>
    %32 = vector.shape_cast %31 : vector<16x16x8xf32> to vector<256x8xf32>
    %33 = arith.truncf %32 : vector<256x8xf32> to vector<256x8xbf16>
    %c3 = arith.constant 3 : index
    %c0_36 = arith.constant 0 : index
    %c0_37 = arith.constant 0 : index
    %34 = vector.load %arg4[%c3, %c0_36, %c0_37] : memref<9x8x4xbf16, #tpu.memory_space<vmem>>, vector<1x8x4xbf16>
    %35 = vector.shape_cast %34 : vector<1x8x4xbf16> to vector<8x4xbf16>
    %cst_38 = arith.constant dense<0.000000e+00> : vector<256x4xf32>
    %36 = tpu.matmul %33, %35, %cst_38 {dimension_numbers = #tpu.dot_dimension_numbers<[1], [0], [0], [1], [0, 0, 1, 1], [], []>} : vector<256x8xbf16>, vector<8x4xbf16>, vector<256x4xf32> -> vector<256x4xf32>
    %37 = arith.addf %30, %36 : vector<256x4xf32>
    %c1_39 = arith.constant 1 : index
    %c1_40 = arith.constant 1 : index
    %c0_41 = arith.constant 0 : index
    %38 = vector.load %arg9[%c1_39, %c1_40, %c0_41] : memref<18x18x8xf32, #tpu.memory_space<vmem>>, vector<16x16x8xf32>
    %39 = vector.shape_cast %38 : vector<16x16x8xf32> to vector<256x8xf32>
    %40 = arith.truncf %39 : vector<256x8xf32> to vector<256x8xbf16>
    %c4 = arith.constant 4 : index
    %c0_42 = arith.constant 0 : index
    %c0_43 = arith.constant 0 : index
    %41 = vector.load %arg4[%c4, %c0_42, %c0_43] : memref<9x8x4xbf16, #tpu.memory_space<vmem>>, vector<1x8x4xbf16>
    %42 = vector.shape_cast %41 : vector<1x8x4xbf16> to vector<8x4xbf16>
    %cst_44 = arith.constant dense<0.000000e+00> : vector<256x4xf32>
    %43 = tpu.matmul %40, %42, %cst_44 {dimension_numbers = #tpu.dot_dimension_numbers<[1], [0], [0], [1], [0, 0, 1, 1], [], []>} : vector<256x8xbf16>, vector<8x4xbf16>, vector<256x4xf32> -> vector<256x4xf32>
    %44 = arith.addf %37, %43 : vector<256x4xf32>
    %c1_45 = arith.constant 1 : index
    %c2_46 = arith.constant 2 : index
    %c0_47 = arith.constant 0 : index
    %45 = vector.load %arg9[%c1_45, %c2_46, %c0_47] : memref<18x18x8xf32, #tpu.memory_space<vmem>>, vector<16x16x8xf32>
    %46 = vector.shape_cast %45 : vector<16x16x8xf32> to vector<256x8xf32>
    %47 = arith.truncf %46 : vector<256x8xf32> to vector<256x8xbf16>
    %c5 = arith.constant 5 : index
    %c0_48 = arith.constant 0 : index
    %c0_49 = arith.constant 0 : index
    %48 = vector.load %arg4[%c5, %c0_48, %c0_49] : memref<9x8x4xbf16, #tpu.memory_space<vmem>>, vector<1x8x4xbf16>
    %49 = vector.shape_cast %48 : vector<1x8x4xbf16> to vector<8x4xbf16>
    %cst_50 = arith.constant dense<0.000000e+00> : vector<256x4xf32>
    %50 = tpu.matmul %47, %49, %cst_50 {dimension_numbers = #tpu.dot_dimension_numbers<[1], [0], [0], [1], [0, 0, 1, 1], [], []>} : vector<256x8xbf16>, vector<8x4xbf16>, vector<256x4xf32> -> vector<256x4xf32>
    %51 = arith.addf %44, %50 : vector<256x4xf32>
    %c2_51 = arith.constant 2 : index
    %c0_52 = arith.constant 0 : index
    %c0_53 = arith.constant 0 : index
    %52 = vector.load %arg9[%c2_51, %c0_52, %c0_53] : memref<18x18x8xf32, #tpu.memory_space<vmem>>, vector<16x16x8xf32>
    %53 = vector.shape_cast %52 : vector<16x16x8xf32> to vector<256x8xf32>
    %54 = arith.truncf %53 : vector<256x8xf32> to vector<256x8xbf16>
    %c6 = arith.constant 6 : index
    %c0_54 = arith.constant 0 : index
    %c0_55 = arith.constant 0 : index
    %55 = vector.load %arg4[%c6, %c0_54, %c0_55] : memref<9x8x4xbf16, #tpu.memory_space<vmem>>, vector<1x8x4xbf16>
    %56 = vector.shape_cast %55 : vector<1x8x4xbf16> to vector<8x4xbf16>
    %cst_56 = arith.constant dense<0.000000e+00> : vector<256x4xf32>
    %57 = tpu.matmul %54, %56, %cst_56 {dimension_numbers = #tpu.dot_dimension_numbers<[1], [0], [0], [1], [0, 0, 1, 1], [], []>} : vector<256x8xbf16>, vector<8x4xbf16>, vector<256x4xf32> -> vector<256x4xf32>
    %58 = arith.addf %51, %57 : vector<256x4xf32>
    %c2_57 = arith.constant 2 : index
    %c1_58 = arith.constant 1 : index
    %c0_59 = arith.constant 0 : index
    %59 = vector.load %arg9[%c2_57, %c1_58, %c0_59] : memref<18x18x8xf32, #tpu.memory_space<vmem>>, vector<16x16x8xf32>
    %60 = vector.shape_cast %59 : vector<16x16x8xf32> to vector<256x8xf32>
    %61 = arith.truncf %60 : vector<256x8xf32> to vector<256x8xbf16>
    %c7 = arith.constant 7 : index
    %c0_60 = arith.constant 0 : index
    %c0_61 = arith.constant 0 : index
    %62 = vector.load %arg4[%c7, %c0_60, %c0_61] : memref<9x8x4xbf16, #tpu.memory_space<vmem>>, vector<1x8x4xbf16>
    %63 = vector.shape_cast %62 : vector<1x8x4xbf16> to vector<8x4xbf16>
    %cst_62 = arith.constant dense<0.000000e+00> : vector<256x4xf32>
    %64 = tpu.matmul %61, %63, %cst_62 {dimension_numbers = #tpu.dot_dimension_numbers<[1], [0], [0], [1], [0, 0, 1, 1], [], []>} : vector<256x8xbf16>, vector<8x4xbf16>, vector<256x4xf32> -> vector<256x4xf32>
    %65 = arith.addf %58, %64 : vector<256x4xf32>
    %c2_63 = arith.constant 2 : index
    %c2_64 = arith.constant 2 : index
    %c0_65 = arith.constant 0 : index
    %66 = vector.load %arg9[%c2_63, %c2_64, %c0_65] : memref<18x18x8xf32, #tpu.memory_space<vmem>>, vector<16x16x8xf32>
    %67 = vector.shape_cast %66 : vector<16x16x8xf32> to vector<256x8xf32>
    %68 = arith.truncf %67 : vector<256x8xf32> to vector<256x8xbf16>
    %c8 = arith.constant 8 : index
    %c0_66 = arith.constant 0 : index
    %c0_67 = arith.constant 0 : index
    %69 = vector.load %arg4[%c8, %c0_66, %c0_67] : memref<9x8x4xbf16, #tpu.memory_space<vmem>>, vector<1x8x4xbf16>
    %70 = vector.shape_cast %69 : vector<1x8x4xbf16> to vector<8x4xbf16>
    %cst_68 = arith.constant dense<0.000000e+00> : vector<256x4xf32>
    %71 = tpu.matmul %68, %70, %cst_68 {dimension_numbers = #tpu.dot_dimension_numbers<[1], [0], [0], [1], [0, 0, 1, 1], [], []>} : vector<256x8xbf16>, vector<8x4xbf16>, vector<256x4xf32> -> vector<256x4xf32>
    %72 = arith.addf %65, %71 : vector<256x4xf32>
    %c0_69 = arith.constant 0 : index
    %c0_70 = arith.constant 0 : index
    %73 = vector.load %arg5[%c0_69, %c0_70] : memref<1x4xf32, #tpu.memory_space<vmem>>, vector<1x4xf32>
    %74 = vector.broadcast %73 : vector<1x4xf32> to vector<256x4xf32>
    %75 = arith.addf %72, %74 : vector<256x4xf32>
    %cst_71 = arith.constant 0.000000e+00 : f32
    %76 = vector.broadcast %cst_71 : f32 to vector<256x4xf32>
    %77 = arith.cmpf oge, %75, %76 : vector<256x4xf32>
    %cst_72 = arith.constant 5.000000e-02 : f32
    %78 = vector.broadcast %cst_72 : f32 to vector<256x4xf32>
    %79 = arith.mulf %75, %78 : vector<256x4xf32>
    %80 = arith.select %77, %75, %79 : vector<256x4xi1>, vector<256x4xf32>
    %c0_73 = arith.constant 0 : index
    %c0_74 = arith.constant 0 : index
    %c0_75 = arith.constant 0 : index
    %81 = vector.load %arg3[%c0_73, %c0_74, %c0_75] : memref<1x256x4xf32, #tpu.memory_space<vmem>>, vector<1x256x4xf32>
    %82 = vector.shape_cast %81 : vector<1x256x4xf32> to vector<256x4xf32>
    %83 = arith.addf %80, %82 : vector<256x4xf32>
    %84 = arith.truncf %83 : vector<256x4xf32> to vector<256x4xbf16>
    %c0_76 = arith.constant 0 : index
    %c0_77 = arith.constant 0 : index
    %85 = vector.load %arg6[%c0_76, %c0_77] : memref<4x4xbf16, #tpu.memory_space<vmem>>, vector<4x4xbf16>
    %cst_78 = arith.constant dense<0.000000e+00> : vector<256x4xf32>
    %86 = tpu.matmul %84, %85, %cst_78 {dimension_numbers = #tpu.dot_dimension_numbers<[1], [0], [0], [1], [0, 0, 1, 1], [], []>} : vector<256x4xbf16>, vector<4x4xbf16>, vector<256x4xf32> -> vector<256x4xf32>
    %c0_79 = arith.constant 0 : index
    %c0_80 = arith.constant 0 : index
    %87 = vector.load %arg7[%c0_79, %c0_80] : memref<1x4xf32, #tpu.memory_space<vmem>>, vector<1x4xf32>
    %88 = vector.broadcast %87 : vector<1x4xf32> to vector<256x4xf32>
    %89 = arith.addf %86, %88 : vector<256x4xf32>
    %c0_81 = arith.constant 0 : index
    %c0_82 = arith.constant 0 : index
    %c0_83 = arith.constant 0 : index
    %90 = vector.load %arg8[%c0_81, %c0_82, %c0_83] : memref<1x256x4xf32, #tpu.memory_space<vmem>>, vector<1x256x4xf32>
    %91 = vector.shape_cast %90 : vector<1x256x4xf32> to vector<256x4xf32>
    %92 = vector.shape_cast %89 : vector<256x4xf32> to vector<1x256x4xf32>
    tpu.vector_store %arg8[%c0_81, %c0_82, %c0_83], %92 {strides = array<i32>} : memref<1x256x4xf32, #tpu.memory_space<vmem>>, vector<1x256x4xf32>,
    return
  }
  func.func @transform_0(%arg0: i32) -> (i32, i32, i32, i32) {
    %c0_i32 = arith.constant 0 : i32
    %c0_i32_0 = arith.constant 0 : i32
    %c0_i32_1 = arith.constant 0 : i32
    %c0_i32_2 = arith.constant 0 : i32
    return %arg0, %c0_i32, %c0_i32_0, %c0_i32_1 : i32, i32, i32, i32
  }
  func.func @transform_1(%arg0: i32) -> (i32, i32, i32, i32) {
    %c0_i32 = arith.constant 0 : i32
    %c0_i32_0 = arith.constant 0 : i32
    %c0_i32_1 = arith.constant 0 : i32
    %c0_i32_2 = arith.constant 0 : i32
    return %arg0, %c0_i32, %c0_i32_0, %c0_i32_1 : i32, i32, i32, i32
  }
  func.func @transform_2(%arg0: i32) -> (i32, i32, i32) {
    %c0_i32 = arith.constant 0 : i32
    %c0_i32_0 = arith.constant 0 : i32
    %c0_i32_1 = arith.constant 0 : i32
    return %arg0, %c0_i32, %c0_i32_0 : i32, i32, i32
  }
  func.func @transform_3(%arg0: i32) -> (i32, i32, i32) {
    %c0_i32 = arith.constant 0 : i32
    %c0_i32_0 = arith.constant 0 : i32
    %c0_i32_1 = arith.constant 0 : i32
    %c0_i32_2 = arith.constant 0 : i32
    return %c0_i32, %c0_i32_0, %c0_i32_1 : i32, i32, i32
  }
  func.func @transform_4(%arg0: i32) -> (i32, i32) {
    %c0_i32 = arith.constant 0 : i32
    %c0_i32_0 = arith.constant 0 : i32
    %c0_i32_1 = arith.constant 0 : i32
    return %c0_i32, %c0_i32_0 : i32, i32
  }
  func.func @transform_5(%arg0: i32) -> (i32, i32) {
    %c0_i32 = arith.constant 0 : i32
    %c0_i32_0 = arith.constant 0 : i32
    %c0_i32_1 = arith.constant 0 : i32
    return %c0_i32, %c0_i32_0 : i32, i32
  }
  func.func @transform_6(%arg0: i32) -> (i32, i32) {
    %c0_i32 = arith.constant 0 : i32
    %c0_i32_0 = arith.constant 0 : i32
    %c0_i32_1 = arith.constant 0 : i32
    return %c0_i32, %c0_i32_0 : i32, i32
  }
  func.func @transform_7(%arg0: i32) -> (i32, i32, i32) {
    %c0_i32 = arith.constant 0 : i32
    %c0_i32_0 = arith.constant 0 : i32
    %c0_i32_1 = arith.constant 0 : i32
    return %arg0, %c0_i32, %c0_i32_0 : i32, i32, i32
  }
}

module attributes {stable_mosaic.version = 11 : i64} {
  func.func @_conv3x3_s2_kernel(%arg0: i32, %arg1: memref<1x8x2x8x32xf32, #tpu.memory_space<vmem>>, %arg2: memref<9x16x16xbf16, #tpu.memory_space<vmem>>, %arg3: memref<1x16xf32, #tpu.memory_space<vmem>>, %arg4: memref<1x49x16xf32, #tpu.memory_space<vmem>>) attributes {dimension_semantics = [#tpu.dimension_semantics<parallel>], iteration_bounds = array<i64: 2>, scalar_prefetch = 0 : i64, scratch_operands = 0 : i64, tpu.core_type = #tpu.core_type<tc>, window_params = [{transform_indices = @transform_0, window_bounds = array<i64: 1, 8, 2, 8, 32>}, {pipeline_mode = #tpu.pipeline_mode<synchronous>, transform_indices = @transform_1, window_bounds = array<i64: 9, 16, 16>}, {pipeline_mode = #tpu.pipeline_mode<synchronous>, transform_indices = @transform_2, window_bounds = array<i64: 1, 16>}, {transform_indices = @transform_3, window_bounds = array<i64: 1, 49, 16>}]} {
    %c0 = arith.constant 0 : index
    %c0_0 = arith.constant 0 : index
    %c0_1 = arith.constant 0 : index
    %c0_2 = arith.constant 0 : index
    %c0_3 = arith.constant 0 : index
    %0 = vector.load %arg1[%c0, %c0_0, %c0_1, %c0_2, %c0_3] : memref<1x8x2x8x32xf32, #tpu.memory_space<vmem>>, vector<1x8x2x8x32xf32>
    %1 = vector.shape_cast %0 : vector<1x8x2x8x32xf32> to vector<8x2x8x32xf32>
    %2 = vector.extract_strided_slice %1 {offsets = [0, 0, 0, 0], sizes = [7, 1, 7, 16], strides = [1, 1, 1, 1]} : vector<8x2x8x32xf32> to vector<7x1x7x16xf32>
    %3 = vector.shape_cast %2 : vector<7x1x7x16xf32> to vector<7x7x16xf32>
    %4 = vector.shape_cast %3 : vector<7x7x16xf32> to vector<49x16xf32>
    %5 = arith.truncf %4 : vector<49x16xf32> to vector<49x16xbf16>
    %c0_4 = arith.constant 0 : index
    %c0_5 = arith.constant 0 : index
    %c0_6 = arith.constant 0 : index
    %6 = vector.load %arg2[%c0_4, %c0_5, %c0_6] : memref<9x16x16xbf16, #tpu.memory_space<vmem>>, vector<1x16x16xbf16>
    %7 = vector.shape_cast %6 : vector<1x16x16xbf16> to vector<16x16xbf16>
    %cst = arith.constant dense<0.000000e+00> : vector<49x16xf32>
    %8 = tpu.matmul %5, %7, %cst {dimension_numbers = #tpu.dot_dimension_numbers<[1], [0], [0], [1], [0, 0, 1, 1], [], []>} : vector<49x16xbf16>, vector<16x16xbf16>, vector<49x16xf32> -> vector<49x16xf32>
    %9 = vector.extract_strided_slice %1 {offsets = [0, 0, 0, 16], sizes = [7, 1, 7, 16], strides = [1, 1, 1, 1]} : vector<8x2x8x32xf32> to vector<7x1x7x16xf32>
    %10 = vector.shape_cast %9 : vector<7x1x7x16xf32> to vector<7x7x16xf32>
    %11 = vector.shape_cast %10 : vector<7x7x16xf32> to vector<49x16xf32>
    %12 = arith.truncf %11 : vector<49x16xf32> to vector<49x16xbf16>
    %c1 = arith.constant 1 : index
    %c0_7 = arith.constant 0 : index
    %c0_8 = arith.constant 0 : index
    %13 = vector.load %arg2[%c1, %c0_7, %c0_8] : memref<9x16x16xbf16, #tpu.memory_space<vmem>>, vector<1x16x16xbf16>
    %14 = vector.shape_cast %13 : vector<1x16x16xbf16> to vector<16x16xbf16>
    %cst_9 = arith.constant dense<0.000000e+00> : vector<49x16xf32>
    %15 = tpu.matmul %12, %14, %cst_9 {dimension_numbers = #tpu.dot_dimension_numbers<[1], [0], [0], [1], [0, 0, 1, 1], [], []>} : vector<49x16xbf16>, vector<16x16xbf16>, vector<49x16xf32> -> vector<49x16xf32>
    %16 = arith.addf %8, %15 : vector<49x16xf32>
    %17 = vector.extract_strided_slice %1 {offsets = [0, 0, 1, 0], sizes = [7, 1, 7, 16], strides = [1, 1, 1, 1]} : vector<8x2x8x32xf32> to vector<7x1x7x16xf32>
    %18 = vector.shape_cast %17 : vector<7x1x7x16xf32> to vector<7x7x16xf32>
    %19 = vector.shape_cast %18 : vector<7x7x16xf32> to vector<49x16xf32>
    %20 = arith.truncf %19 : vector<49x16xf32> to vector<49x16xbf16>
    %c2 = arith.constant 2 : index
    %c0_10 = arith.constant 0 : index
    %c0_11 = arith.constant 0 : index
    %21 = vector.load %arg2[%c2, %c0_10, %c0_11] : memref<9x16x16xbf16, #tpu.memory_space<vmem>>, vector<1x16x16xbf16>
    %22 = vector.shape_cast %21 : vector<1x16x16xbf16> to vector<16x16xbf16>
    %cst_12 = arith.constant dense<0.000000e+00> : vector<49x16xf32>
    %23 = tpu.matmul %20, %22, %cst_12 {dimension_numbers = #tpu.dot_dimension_numbers<[1], [0], [0], [1], [0, 0, 1, 1], [], []>} : vector<49x16xbf16>, vector<16x16xbf16>, vector<49x16xf32> -> vector<49x16xf32>
    %24 = arith.addf %16, %23 : vector<49x16xf32>
    %25 = vector.extract_strided_slice %1 {offsets = [0, 1, 0, 0], sizes = [7, 1, 7, 16], strides = [1, 1, 1, 1]} : vector<8x2x8x32xf32> to vector<7x1x7x16xf32>
    %26 = vector.shape_cast %25 : vector<7x1x7x16xf32> to vector<7x7x16xf32>
    %27 = vector.shape_cast %26 : vector<7x7x16xf32> to vector<49x16xf32>
    %28 = arith.truncf %27 : vector<49x16xf32> to vector<49x16xbf16>
    %c3 = arith.constant 3 : index
    %c0_13 = arith.constant 0 : index
    %c0_14 = arith.constant 0 : index
    %29 = vector.load %arg2[%c3, %c0_13, %c0_14] : memref<9x16x16xbf16, #tpu.memory_space<vmem>>, vector<1x16x16xbf16>
    %30 = vector.shape_cast %29 : vector<1x16x16xbf16> to vector<16x16xbf16>
    %cst_15 = arith.constant dense<0.000000e+00> : vector<49x16xf32>
    %31 = tpu.matmul %28, %30, %cst_15 {dimension_numbers = #tpu.dot_dimension_numbers<[1], [0], [0], [1], [0, 0, 1, 1], [], []>} : vector<49x16xbf16>, vector<16x16xbf16>, vector<49x16xf32> -> vector<49x16xf32>
    %32 = arith.addf %24, %31 : vector<49x16xf32>
    %33 = vector.extract_strided_slice %1 {offsets = [0, 1, 0, 16], sizes = [7, 1, 7, 16], strides = [1, 1, 1, 1]} : vector<8x2x8x32xf32> to vector<7x1x7x16xf32>
    %34 = vector.shape_cast %33 : vector<7x1x7x16xf32> to vector<7x7x16xf32>
    %35 = vector.shape_cast %34 : vector<7x7x16xf32> to vector<49x16xf32>
    %36 = arith.truncf %35 : vector<49x16xf32> to vector<49x16xbf16>
    %c4 = arith.constant 4 : index
    %c0_16 = arith.constant 0 : index
    %c0_17 = arith.constant 0 : index
    %37 = vector.load %arg2[%c4, %c0_16, %c0_17] : memref<9x16x16xbf16, #tpu.memory_space<vmem>>, vector<1x16x16xbf16>
    %38 = vector.shape_cast %37 : vector<1x16x16xbf16> to vector<16x16xbf16>
    %cst_18 = arith.constant dense<0.000000e+00> : vector<49x16xf32>
    %39 = tpu.matmul %36, %38, %cst_18 {dimension_numbers = #tpu.dot_dimension_numbers<[1], [0], [0], [1], [0, 0, 1, 1], [], []>} : vector<49x16xbf16>, vector<16x16xbf16>, vector<49x16xf32> -> vector<49x16xf32>
    %40 = arith.addf %32, %39 : vector<49x16xf32>
    %41 = vector.extract_strided_slice %1 {offsets = [0, 1, 1, 0], sizes = [7, 1, 7, 16], strides = [1, 1, 1, 1]} : vector<8x2x8x32xf32> to vector<7x1x7x16xf32>
    %42 = vector.shape_cast %41 : vector<7x1x7x16xf32> to vector<7x7x16xf32>
    %43 = vector.shape_cast %42 : vector<7x7x16xf32> to vector<49x16xf32>
    %44 = arith.truncf %43 : vector<49x16xf32> to vector<49x16xbf16>
    %c5 = arith.constant 5 : index
    %c0_19 = arith.constant 0 : index
    %c0_20 = arith.constant 0 : index
    %45 = vector.load %arg2[%c5, %c0_19, %c0_20] : memref<9x16x16xbf16, #tpu.memory_space<vmem>>, vector<1x16x16xbf16>
    %46 = vector.shape_cast %45 : vector<1x16x16xbf16> to vector<16x16xbf16>
    %cst_21 = arith.constant dense<0.000000e+00> : vector<49x16xf32>
    %47 = tpu.matmul %44, %46, %cst_21 {dimension_numbers = #tpu.dot_dimension_numbers<[1], [0], [0], [1], [0, 0, 1, 1], [], []>} : vector<49x16xbf16>, vector<16x16xbf16>, vector<49x16xf32> -> vector<49x16xf32>
    %48 = arith.addf %40, %47 : vector<49x16xf32>
    %49 = vector.extract_strided_slice %1 {offsets = [1, 0, 0, 0], sizes = [7, 1, 7, 16], strides = [1, 1, 1, 1]} : vector<8x2x8x32xf32> to vector<7x1x7x16xf32>
    %50 = vector.shape_cast %49 : vector<7x1x7x16xf32> to vector<7x7x16xf32>
    %51 = vector.shape_cast %50 : vector<7x7x16xf32> to vector<49x16xf32>
    %52 = arith.truncf %51 : vector<49x16xf32> to vector<49x16xbf16>
    %c6 = arith.constant 6 : index
    %c0_22 = arith.constant 0 : index
    %c0_23 = arith.constant 0 : index
    %53 = vector.load %arg2[%c6, %c0_22, %c0_23] : memref<9x16x16xbf16, #tpu.memory_space<vmem>>, vector<1x16x16xbf16>
    %54 = vector.shape_cast %53 : vector<1x16x16xbf16> to vector<16x16xbf16>
    %cst_24 = arith.constant dense<0.000000e+00> : vector<49x16xf32>
    %55 = tpu.matmul %52, %54, %cst_24 {dimension_numbers = #tpu.dot_dimension_numbers<[1], [0], [0], [1], [0, 0, 1, 1], [], []>} : vector<49x16xbf16>, vector<16x16xbf16>, vector<49x16xf32> -> vector<49x16xf32>
    %56 = arith.addf %48, %55 : vector<49x16xf32>
    %57 = vector.extract_strided_slice %1 {offsets = [1, 0, 0, 16], sizes = [7, 1, 7, 16], strides = [1, 1, 1, 1]} : vector<8x2x8x32xf32> to vector<7x1x7x16xf32>
    %58 = vector.shape_cast %57 : vector<7x1x7x16xf32> to vector<7x7x16xf32>
    %59 = vector.shape_cast %58 : vector<7x7x16xf32> to vector<49x16xf32>
    %60 = arith.truncf %59 : vector<49x16xf32> to vector<49x16xbf16>
    %c7 = arith.constant 7 : index
    %c0_25 = arith.constant 0 : index
    %c0_26 = arith.constant 0 : index
    %61 = vector.load %arg2[%c7, %c0_25, %c0_26] : memref<9x16x16xbf16, #tpu.memory_space<vmem>>, vector<1x16x16xbf16>
    %62 = vector.shape_cast %61 : vector<1x16x16xbf16> to vector<16x16xbf16>
    %cst_27 = arith.constant dense<0.000000e+00> : vector<49x16xf32>
    %63 = tpu.matmul %60, %62, %cst_27 {dimension_numbers = #tpu.dot_dimension_numbers<[1], [0], [0], [1], [0, 0, 1, 1], [], []>} : vector<49x16xbf16>, vector<16x16xbf16>, vector<49x16xf32> -> vector<49x16xf32>
    %64 = arith.addf %56, %63 : vector<49x16xf32>
    %65 = vector.extract_strided_slice %1 {offsets = [1, 0, 1, 0], sizes = [7, 1, 7, 16], strides = [1, 1, 1, 1]} : vector<8x2x8x32xf32> to vector<7x1x7x16xf32>
    %66 = vector.shape_cast %65 : vector<7x1x7x16xf32> to vector<7x7x16xf32>
    %67 = vector.shape_cast %66 : vector<7x7x16xf32> to vector<49x16xf32>
    %68 = arith.truncf %67 : vector<49x16xf32> to vector<49x16xbf16>
    %c8 = arith.constant 8 : index
    %c0_28 = arith.constant 0 : index
    %c0_29 = arith.constant 0 : index
    %69 = vector.load %arg2[%c8, %c0_28, %c0_29] : memref<9x16x16xbf16, #tpu.memory_space<vmem>>, vector<1x16x16xbf16>
    %70 = vector.shape_cast %69 : vector<1x16x16xbf16> to vector<16x16xbf16>
    %cst_30 = arith.constant dense<0.000000e+00> : vector<49x16xf32>
    %71 = tpu.matmul %68, %70, %cst_30 {dimension_numbers = #tpu.dot_dimension_numbers<[1], [0], [0], [1], [0, 0, 1, 1], [], []>} : vector<49x16xbf16>, vector<16x16xbf16>, vector<49x16xf32> -> vector<49x16xf32>
    %72 = arith.addf %64, %71 : vector<49x16xf32>
    %c0_31 = arith.constant 0 : index
    %c0_32 = arith.constant 0 : index
    %73 = vector.load %arg3[%c0_31, %c0_32] : memref<1x16xf32, #tpu.memory_space<vmem>>, vector<1x16xf32>
    %74 = vector.broadcast %73 : vector<1x16xf32> to vector<49x16xf32>
    %75 = arith.addf %72, %74 : vector<49x16xf32>
    %c0_33 = arith.constant 0 : index
    %c0_34 = arith.constant 0 : index
    %c0_35 = arith.constant 0 : index
    %76 = vector.load %arg4[%c0_33, %c0_34, %c0_35] : memref<1x49x16xf32, #tpu.memory_space<vmem>>, vector<1x49x16xf32>
    %77 = vector.shape_cast %76 : vector<1x49x16xf32> to vector<49x16xf32>
    %78 = vector.shape_cast %75 : vector<49x16xf32> to vector<1x49x16xf32>
    tpu.vector_store %arg4[%c0_33, %c0_34, %c0_35], %78 {strides = array<i32>} : memref<1x49x16xf32, #tpu.memory_space<vmem>>, vector<1x49x16xf32>,
    return
  }
  func.func @transform_0(%arg0: i32) -> (i32, i32, i32, i32, i32) {
    %c0_i32 = arith.constant 0 : i32
    %c0_i32_0 = arith.constant 0 : i32
    %c0_i32_1 = arith.constant 0 : i32
    %c0_i32_2 = arith.constant 0 : i32
    %c0_i32_3 = arith.constant 0 : i32
    return %arg0, %c0_i32, %c0_i32_0, %c0_i32_1, %c0_i32_2 : i32, i32, i32, i32, i32
  }
  func.func @transform_1(%arg0: i32) -> (i32, i32, i32) {
    %c0_i32 = arith.constant 0 : i32
    %c0_i32_0 = arith.constant 0 : i32
    %c0_i32_1 = arith.constant 0 : i32
    %c0_i32_2 = arith.constant 0 : i32
    return %c0_i32, %c0_i32_0, %c0_i32_1 : i32, i32, i32
  }
  func.func @transform_2(%arg0: i32) -> (i32, i32) {
    %c0_i32 = arith.constant 0 : i32
    %c0_i32_0 = arith.constant 0 : i32
    %c0_i32_1 = arith.constant 0 : i32
    return %c0_i32, %c0_i32_0 : i32, i32
  }
  func.func @transform_3(%arg0: i32) -> (i32, i32, i32) {
    %c0_i32 = arith.constant 0 : i32
    %c0_i32_0 = arith.constant 0 : i32
    %c0_i32_1 = arith.constant 0 : i32
    return %arg0, %c0_i32, %c0_i32_0 : i32, i32, i32
  }
}

module attributes {stable_mosaic.version = 11 : i64} {
  func.func @_maxpool_kernel(%arg0: i32, %arg1: memref<1x7x7x16xf32, #tpu.memory_space<vmem>>, %arg2: memref<1x1x1x16xf32, #tpu.memory_space<vmem>>) attributes {dimension_semantics = [#tpu.dimension_semantics<parallel>], iteration_bounds = array<i64: 2>, scalar_prefetch = 0 : i64, scratch_operands = 0 : i64, tpu.core_type = #tpu.core_type<tc>, window_params = [{transform_indices = @transform_0, window_bounds = array<i64: 1, 7, 7, 16>}, {transform_indices = @transform_1, window_bounds = array<i64: 1, 1, 1, 16>}]} {
    %c0 = arith.constant 0 : index
    %c0_0 = arith.constant 0 : index
    %c0_1 = arith.constant 0 : index
    %c0_2 = arith.constant 0 : index
    %0 = vector.load %arg1[%c0, %c0_0, %c0_1, %c0_2] : memref<1x7x7x16xf32, #tpu.memory_space<vmem>>, vector<1x7x7x16xf32>
    %1 = vector.extract_strided_slice %0 {offsets = [0, 0, 0, 0], sizes = [1, 1, 7, 16], strides = [1, 1, 1, 1]} : vector<1x7x7x16xf32> to vector<1x1x7x16xf32>
    %2 = vector.extract_strided_slice %0 {offsets = [0, 1, 0, 0], sizes = [1, 1, 7, 16], strides = [1, 1, 1, 1]} : vector<1x7x7x16xf32> to vector<1x1x7x16xf32>
    %3 = arith.maximumf %1, %2 : vector<1x1x7x16xf32>
    %4 = vector.extract_strided_slice %0 {offsets = [0, 2, 0, 0], sizes = [1, 1, 7, 16], strides = [1, 1, 1, 1]} : vector<1x7x7x16xf32> to vector<1x1x7x16xf32>
    %5 = arith.maximumf %3, %4 : vector<1x1x7x16xf32>
    %6 = vector.extract_strided_slice %0 {offsets = [0, 3, 0, 0], sizes = [1, 1, 7, 16], strides = [1, 1, 1, 1]} : vector<1x7x7x16xf32> to vector<1x1x7x16xf32>
    %7 = arith.maximumf %5, %6 : vector<1x1x7x16xf32>
    %8 = vector.extract_strided_slice %0 {offsets = [0, 4, 0, 0], sizes = [1, 1, 7, 16], strides = [1, 1, 1, 1]} : vector<1x7x7x16xf32> to vector<1x1x7x16xf32>
    %9 = arith.maximumf %7, %8 : vector<1x1x7x16xf32>
    %10 = vector.extract_strided_slice %0 {offsets = [0, 5, 0, 0], sizes = [1, 1, 7, 16], strides = [1, 1, 1, 1]} : vector<1x7x7x16xf32> to vector<1x1x7x16xf32>
    %11 = arith.maximumf %9, %10 : vector<1x1x7x16xf32>
    %12 = vector.extract_strided_slice %0 {offsets = [0, 6, 0, 0], sizes = [1, 1, 7, 16], strides = [1, 1, 1, 1]} : vector<1x7x7x16xf32> to vector<1x1x7x16xf32>
    %13 = arith.maximumf %11, %12 : vector<1x1x7x16xf32>
    %14 = vector.extract_strided_slice %13 {offsets = [0, 0, 0, 0], sizes = [1, 1, 1, 16], strides = [1, 1, 1, 1]} : vector<1x1x7x16xf32> to vector<1x1x1x16xf32>
    %15 = vector.extract_strided_slice %13 {offsets = [0, 0, 1, 0], sizes = [1, 1, 1, 16], strides = [1, 1, 1, 1]} : vector<1x1x7x16xf32> to vector<1x1x1x16xf32>
    %16 = arith.maximumf %14, %15 : vector<1x1x1x16xf32>
    %17 = vector.extract_strided_slice %13 {offsets = [0, 0, 2, 0], sizes = [1, 1, 1, 16], strides = [1, 1, 1, 1]} : vector<1x1x7x16xf32> to vector<1x1x1x16xf32>
    %18 = arith.maximumf %16, %17 : vector<1x1x1x16xf32>
    %19 = vector.extract_strided_slice %13 {offsets = [0, 0, 3, 0], sizes = [1, 1, 1, 16], strides = [1, 1, 1, 1]} : vector<1x1x7x16xf32> to vector<1x1x1x16xf32>
    %20 = arith.maximumf %18, %19 : vector<1x1x1x16xf32>
    %21 = vector.extract_strided_slice %13 {offsets = [0, 0, 4, 0], sizes = [1, 1, 1, 16], strides = [1, 1, 1, 1]} : vector<1x1x7x16xf32> to vector<1x1x1x16xf32>
    %22 = arith.maximumf %20, %21 : vector<1x1x1x16xf32>
    %23 = vector.extract_strided_slice %13 {offsets = [0, 0, 5, 0], sizes = [1, 1, 1, 16], strides = [1, 1, 1, 1]} : vector<1x1x7x16xf32> to vector<1x1x1x16xf32>
    %24 = arith.maximumf %22, %23 : vector<1x1x1x16xf32>
    %25 = vector.extract_strided_slice %13 {offsets = [0, 0, 6, 0], sizes = [1, 1, 1, 16], strides = [1, 1, 1, 1]} : vector<1x1x7x16xf32> to vector<1x1x1x16xf32>
    %26 = arith.maximumf %24, %25 : vector<1x1x1x16xf32>
    %c0_3 = arith.constant 0 : index
    %c0_4 = arith.constant 0 : index
    %c0_5 = arith.constant 0 : index
    %c0_6 = arith.constant 0 : index
    %27 = vector.load %arg2[%c0_3, %c0_4, %c0_5, %c0_6] : memref<1x1x1x16xf32, #tpu.memory_space<vmem>>, vector<1x1x1x16xf32>
    tpu.vector_store %arg2[%c0_3, %c0_4, %c0_5, %c0_6], %26 {strides = array<i32>} : memref<1x1x1x16xf32, #tpu.memory_space<vmem>>, vector<1x1x1x16xf32>,
    return
  }
  func.func @transform_0(%arg0: i32) -> (i32, i32, i32, i32) {
    %c0_i32 = arith.constant 0 : i32
    %c0_i32_0 = arith.constant 0 : i32
    %c0_i32_1 = arith.constant 0 : i32
    %c0_i32_2 = arith.constant 0 : i32
    return %arg0, %c0_i32, %c0_i32_0, %c0_i32_1 : i32, i32, i32, i32
  }
  func.func @transform_1(%arg0: i32) -> (i32, i32, i32, i32) {
    %c0_i32 = arith.constant 0 : i32
    %c0_i32_0 = arith.constant 0 : i32
    %c0_i32_1 = arith.constant 0 : i32
    %c0_i32_2 = arith.constant 0 : i32
    return %arg0, %c0_i32, %c0_i32_0, %c0_i32_1 : i32, i32, i32, i32
  }
}

module attributes {stable_mosaic.version = 11 : i64} {
  func.func @_conv3x3_p1_kernel(%arg0: i32, %arg1: memref<1x1x1x16xf32, #tpu.memory_space<vmem>>, %arg2: memref<9x16x16xbf16, #tpu.memory_space<vmem>>, %arg3: memref<1x16xf32, #tpu.memory_space<vmem>>, %arg4: memref<1x1x16xf32, #tpu.memory_space<vmem>>, %arg5: memref<3x3x16xf32, #tpu.memory_space<vmem>>) attributes {dimension_semantics = [#tpu.dimension_semantics<parallel>], iteration_bounds = array<i64: 2>, scalar_prefetch = 0 : i64, scratch_operands = 1 : i64, tpu.core_type = #tpu.core_type<tc>, window_params = [{transform_indices = @transform_0, window_bounds = array<i64: 1, 1, 1, 16>}, {pipeline_mode = #tpu.pipeline_mode<synchronous>, transform_indices = @transform_1, window_bounds = array<i64: 9, 16, 16>}, {pipeline_mode = #tpu.pipeline_mode<synchronous>, transform_indices = @transform_2, window_bounds = array<i64: 1, 16>}, {transform_indices = @transform_3, window_bounds = array<i64: 1, 1, 16>}]} {
    %cst = arith.constant 0.000000e+00 : f32
    %0 = vector.broadcast %cst : f32 to vector<3x3x16xf32>
    %c0 = arith.constant 0 : index
    %c0_0 = arith.constant 0 : index
    %c0_1 = arith.constant 0 : index
    %1 = vector.load %arg5[%c0, %c0_0, %c0_1] : memref<3x3x16xf32, #tpu.memory_space<vmem>>, vector<3x3x16xf32>
    tpu.vector_store %arg5[%c0, %c0_0, %c0_1], %0 {strides = array<i32>} : memref<3x3x16xf32, #tpu.memory_space<vmem>>, vector<3x3x16xf32>,
    %c0_2 = arith.constant 0 : index
    %c0_3 = arith.constant 0 : index
    %c0_4 = arith.constant 0 : index
    %c0_5 = arith.constant 0 : index
    %2 = vector.load %arg1[%c0_2, %c0_3, %c0_4, %c0_5] : memref<1x1x1x16xf32, #tpu.memory_space<vmem>>, vector<1x1x1x16xf32>
    %3 = vector.shape_cast %2 : vector<1x1x1x16xf32> to vector<1x1x16xf32>
    %c1 = arith.constant 1 : index
    %c1_6 = arith.constant 1 : index
    %c0_7 = arith.constant 0 : index
    %4 = vector.load %arg5[%c1, %c1_6, %c0_7] : memref<3x3x16xf32, #tpu.memory_space<vmem>>, vector<1x1x16xf32>
    tpu.vector_store %arg5[%c1, %c1_6, %c0_7], %3 {strides = array<i32>} : memref<3x3x16xf32, #tpu.memory_space<vmem>>, vector<1x1x16xf32>,
    %c0_8 = arith.constant 0 : index
    %c0_9 = arith.constant 0 : index
    %c0_10 = arith.constant 0 : index
    %5 = vector.load %arg5[%c0_8, %c0_9, %c0_10] : memref<3x3x16xf32, #tpu.memory_space<vmem>>, vector<1x1x16xf32>
    %6 = vector.shape_cast %5 : vector<1x1x16xf32> to vector<1x16xf32>
    %7 = arith.truncf %6 : vector<1x16xf32> to vector<1x16xbf16>
    %c0_11 = arith.constant 0 : index
    %c0_12 = arith.constant 0 : index
    %c0_13 = arith.constant 0 : index
    %8 = vector.load %arg2[%c0_11, %c0_12, %c0_13] : memref<9x16x16xbf16, #tpu.memory_space<vmem>>, vector<1x16x16xbf16>
    %9 = vector.shape_cast %8 : vector<1x16x16xbf16> to vector<16x16xbf16>
    %cst_14 = arith.constant dense<0.000000e+00> : vector<1x16xf32>
    %10 = tpu.matmul %7, %9, %cst_14 {dimension_numbers = #tpu.dot_dimension_numbers<[1], [0], [0], [1], [0, 0, 1, 1], [], []>} : vector<1x16xbf16>, vector<16x16xbf16>, vector<1x16xf32> -> vector<1x16xf32>
    %c0_15 = arith.constant 0 : index
    %c1_16 = arith.constant 1 : index
    %c0_17 = arith.constant 0 : index
    %11 = vector.load %arg5[%c0_15, %c1_16, %c0_17] : memref<3x3x16xf32, #tpu.memory_space<vmem>>, vector<1x1x16xf32>
    %12 = vector.shape_cast %11 : vector<1x1x16xf32> to vector<1x16xf32>
    %13 = arith.truncf %12 : vector<1x16xf32> to vector<1x16xbf16>
    %c1_18 = arith.constant 1 : index
    %c0_19 = arith.constant 0 : index
    %c0_20 = arith.constant 0 : index
    %14 = vector.load %arg2[%c1_18, %c0_19, %c0_20] : memref<9x16x16xbf16, #tpu.memory_space<vmem>>, vector<1x16x16xbf16>
    %15 = vector.shape_cast %14 : vector<1x16x16xbf16> to vector<16x16xbf16>
    %cst_21 = arith.constant dense<0.000000e+00> : vector<1x16xf32>
    %16 = tpu.matmul %13, %15, %cst_21 {dimension_numbers = #tpu.dot_dimension_numbers<[1], [0], [0], [1], [0, 0, 1, 1], [], []>} : vector<1x16xbf16>, vector<16x16xbf16>, vector<1x16xf32> -> vector<1x16xf32>
    %17 = arith.addf %10, %16 : vector<1x16xf32>
    %c0_22 = arith.constant 0 : index
    %c2 = arith.constant 2 : index
    %c0_23 = arith.constant 0 : index
    %18 = vector.load %arg5[%c0_22, %c2, %c0_23] : memref<3x3x16xf32, #tpu.memory_space<vmem>>, vector<1x1x16xf32>
    %19 = vector.shape_cast %18 : vector<1x1x16xf32> to vector<1x16xf32>
    %20 = arith.truncf %19 : vector<1x16xf32> to vector<1x16xbf16>
    %c2_24 = arith.constant 2 : index
    %c0_25 = arith.constant 0 : index
    %c0_26 = arith.constant 0 : index
    %21 = vector.load %arg2[%c2_24, %c0_25, %c0_26] : memref<9x16x16xbf16, #tpu.memory_space<vmem>>, vector<1x16x16xbf16>
    %22 = vector.shape_cast %21 : vector<1x16x16xbf16> to vector<16x16xbf16>
    %cst_27 = arith.constant dense<0.000000e+00> : vector<1x16xf32>
    %23 = tpu.matmul %20, %22, %cst_27 {dimension_numbers = #tpu.dot_dimension_numbers<[1], [0], [0], [1], [0, 0, 1, 1], [], []>} : vector<1x16xbf16>, vector<16x16xbf16>, vector<1x16xf32> -> vector<1x16xf32>
    %24 = arith.addf %17, %23 : vector<1x16xf32>
    %c1_28 = arith.constant 1 : index
    %c0_29 = arith.constant 0 : index
    %c0_30 = arith.constant 0 : index
    %25 = vector.load %arg5[%c1_28, %c0_29, %c0_30] : memref<3x3x16xf32, #tpu.memory_space<vmem>>, vector<1x1x16xf32>
    %26 = vector.shape_cast %25 : vector<1x1x16xf32> to vector<1x16xf32>
    %27 = arith.truncf %26 : vector<1x16xf32> to vector<1x16xbf16>
    %c3 = arith.constant 3 : index
    %c0_31 = arith.constant 0 : index
    %c0_32 = arith.constant 0 : index
    %28 = vector.load %arg2[%c3, %c0_31, %c0_32] : memref<9x16x16xbf16, #tpu.memory_space<vmem>>, vector<1x16x16xbf16>
    %29 = vector.shape_cast %28 : vector<1x16x16xbf16> to vector<16x16xbf16>
    %cst_33 = arith.constant dense<0.000000e+00> : vector<1x16xf32>
    %30 = tpu.matmul %27, %29, %cst_33 {dimension_numbers = #tpu.dot_dimension_numbers<[1], [0], [0], [1], [0, 0, 1, 1], [], []>} : vector<1x16xbf16>, vector<16x16xbf16>, vector<1x16xf32> -> vector<1x16xf32>
    %31 = arith.addf %24, %30 : vector<1x16xf32>
    %c1_34 = arith.constant 1 : index
    %c1_35 = arith.constant 1 : index
    %c0_36 = arith.constant 0 : index
    %32 = vector.load %arg5[%c1_34, %c1_35, %c0_36] : memref<3x3x16xf32, #tpu.memory_space<vmem>>, vector<1x1x16xf32>
    %33 = vector.shape_cast %32 : vector<1x1x16xf32> to vector<1x16xf32>
    %34 = arith.truncf %33 : vector<1x16xf32> to vector<1x16xbf16>
    %c4 = arith.constant 4 : index
    %c0_37 = arith.constant 0 : index
    %c0_38 = arith.constant 0 : index
    %35 = vector.load %arg2[%c4, %c0_37, %c0_38] : memref<9x16x16xbf16, #tpu.memory_space<vmem>>, vector<1x16x16xbf16>
    %36 = vector.shape_cast %35 : vector<1x16x16xbf16> to vector<16x16xbf16>
    %cst_39 = arith.constant dense<0.000000e+00> : vector<1x16xf32>
    %37 = tpu.matmul %34, %36, %cst_39 {dimension_numbers = #tpu.dot_dimension_numbers<[1], [0], [0], [1], [0, 0, 1, 1], [], []>} : vector<1x16xbf16>, vector<16x16xbf16>, vector<1x16xf32> -> vector<1x16xf32>
    %38 = arith.addf %31, %37 : vector<1x16xf32>
    %c1_40 = arith.constant 1 : index
    %c2_41 = arith.constant 2 : index
    %c0_42 = arith.constant 0 : index
    %39 = vector.load %arg5[%c1_40, %c2_41, %c0_42] : memref<3x3x16xf32, #tpu.memory_space<vmem>>, vector<1x1x16xf32>
    %40 = vector.shape_cast %39 : vector<1x1x16xf32> to vector<1x16xf32>
    %41 = arith.truncf %40 : vector<1x16xf32> to vector<1x16xbf16>
    %c5 = arith.constant 5 : index
    %c0_43 = arith.constant 0 : index
    %c0_44 = arith.constant 0 : index
    %42 = vector.load %arg2[%c5, %c0_43, %c0_44] : memref<9x16x16xbf16, #tpu.memory_space<vmem>>, vector<1x16x16xbf16>
    %43 = vector.shape_cast %42 : vector<1x16x16xbf16> to vector<16x16xbf16>
    %cst_45 = arith.constant dense<0.000000e+00> : vector<1x16xf32>
    %44 = tpu.matmul %41, %43, %cst_45 {dimension_numbers = #tpu.dot_dimension_numbers<[1], [0], [0], [1], [0, 0, 1, 1], [], []>} : vector<1x16xbf16>, vector<16x16xbf16>, vector<1x16xf32> -> vector<1x16xf32>
    %45 = arith.addf %38, %44 : vector<1x16xf32>
    %c2_46 = arith.constant 2 : index
    %c0_47 = arith.constant 0 : index
    %c0_48 = arith.constant 0 : index
    %46 = vector.load %arg5[%c2_46, %c0_47, %c0_48] : memref<3x3x16xf32, #tpu.memory_space<vmem>>, vector<1x1x16xf32>
    %47 = vector.shape_cast %46 : vector<1x1x16xf32> to vector<1x16xf32>
    %48 = arith.truncf %47 : vector<1x16xf32> to vector<1x16xbf16>
    %c6 = arith.constant 6 : index
    %c0_49 = arith.constant 0 : index
    %c0_50 = arith.constant 0 : index
    %49 = vector.load %arg2[%c6, %c0_49, %c0_50] : memref<9x16x16xbf16, #tpu.memory_space<vmem>>, vector<1x16x16xbf16>
    %50 = vector.shape_cast %49 : vector<1x16x16xbf16> to vector<16x16xbf16>
    %cst_51 = arith.constant dense<0.000000e+00> : vector<1x16xf32>
    %51 = tpu.matmul %48, %50, %cst_51 {dimension_numbers = #tpu.dot_dimension_numbers<[1], [0], [0], [1], [0, 0, 1, 1], [], []>} : vector<1x16xbf16>, vector<16x16xbf16>, vector<1x16xf32> -> vector<1x16xf32>
    %52 = arith.addf %45, %51 : vector<1x16xf32>
    %c2_52 = arith.constant 2 : index
    %c1_53 = arith.constant 1 : index
    %c0_54 = arith.constant 0 : index
    %53 = vector.load %arg5[%c2_52, %c1_53, %c0_54] : memref<3x3x16xf32, #tpu.memory_space<vmem>>, vector<1x1x16xf32>
    %54 = vector.shape_cast %53 : vector<1x1x16xf32> to vector<1x16xf32>
    %55 = arith.truncf %54 : vector<1x16xf32> to vector<1x16xbf16>
    %c7 = arith.constant 7 : index
    %c0_55 = arith.constant 0 : index
    %c0_56 = arith.constant 0 : index
    %56 = vector.load %arg2[%c7, %c0_55, %c0_56] : memref<9x16x16xbf16, #tpu.memory_space<vmem>>, vector<1x16x16xbf16>
    %57 = vector.shape_cast %56 : vector<1x16x16xbf16> to vector<16x16xbf16>
    %cst_57 = arith.constant dense<0.000000e+00> : vector<1x16xf32>
    %58 = tpu.matmul %55, %57, %cst_57 {dimension_numbers = #tpu.dot_dimension_numbers<[1], [0], [0], [1], [0, 0, 1, 1], [], []>} : vector<1x16xbf16>, vector<16x16xbf16>, vector<1x16xf32> -> vector<1x16xf32>
    %59 = arith.addf %52, %58 : vector<1x16xf32>
    %c2_58 = arith.constant 2 : index
    %c2_59 = arith.constant 2 : index
    %c0_60 = arith.constant 0 : index
    %60 = vector.load %arg5[%c2_58, %c2_59, %c0_60] : memref<3x3x16xf32, #tpu.memory_space<vmem>>, vector<1x1x16xf32>
    %61 = vector.shape_cast %60 : vector<1x1x16xf32> to vector<1x16xf32>
    %62 = arith.truncf %61 : vector<1x16xf32> to vector<1x16xbf16>
    %c8 = arith.constant 8 : index
    %c0_61 = arith.constant 0 : index
    %c0_62 = arith.constant 0 : index
    %63 = vector.load %arg2[%c8, %c0_61, %c0_62] : memref<9x16x16xbf16, #tpu.memory_space<vmem>>, vector<1x16x16xbf16>
    %64 = vector.shape_cast %63 : vector<1x16x16xbf16> to vector<16x16xbf16>
    %cst_63 = arith.constant dense<0.000000e+00> : vector<1x16xf32>
    %65 = tpu.matmul %62, %64, %cst_63 {dimension_numbers = #tpu.dot_dimension_numbers<[1], [0], [0], [1], [0, 0, 1, 1], [], []>} : vector<1x16xbf16>, vector<16x16xbf16>, vector<1x16xf32> -> vector<1x16xf32>
    %66 = arith.addf %59, %65 : vector<1x16xf32>
    %c0_64 = arith.constant 0 : index
    %c0_65 = arith.constant 0 : index
    %67 = vector.load %arg3[%c0_64, %c0_65] : memref<1x16xf32, #tpu.memory_space<vmem>>, vector<1x16xf32>
    %68 = arith.addf %66, %67 : vector<1x16xf32>
    %c0_66 = arith.constant 0 : index
    %c0_67 = arith.constant 0 : index
    %c0_68 = arith.constant 0 : index
    %69 = vector.load %arg4[%c0_66, %c0_67, %c0_68] : memref<1x1x16xf32, #tpu.memory_space<vmem>>, vector<1x1x16xf32>
    %70 = vector.shape_cast %69 : vector<1x1x16xf32> to vector<1x16xf32>
    %71 = vector.shape_cast %68 : vector<1x16xf32> to vector<1x1x16xf32>
    tpu.vector_store %arg4[%c0_66, %c0_67, %c0_68], %71 {strides = array<i32>} : memref<1x1x16xf32, #tpu.memory_space<vmem>>, vector<1x1x16xf32>,
    return
  }
  func.func @transform_0(%arg0: i32) -> (i32, i32, i32, i32) {
    %c0_i32 = arith.constant 0 : i32
    %c0_i32_0 = arith.constant 0 : i32
    %c0_i32_1 = arith.constant 0 : i32
    %c0_i32_2 = arith.constant 0 : i32
    return %arg0, %c0_i32, %c0_i32_0, %c0_i32_1 : i32, i32, i32, i32
  }
  func.func @transform_1(%arg0: i32) -> (i32, i32, i32) {
    %c0_i32 = arith.constant 0 : i32
    %c0_i32_0 = arith.constant 0 : i32
    %c0_i32_1 = arith.constant 0 : i32
    %c0_i32_2 = arith.constant 0 : i32
    return %c0_i32, %c0_i32_0, %c0_i32_1 : i32, i32, i32
  }
  func.func @transform_2(%arg0: i32) -> (i32, i32) {
    %c0_i32 = arith.constant 0 : i32
    %c0_i32_0 = arith.constant 0 : i32
    %c0_i32_1 = arith.constant 0 : i32
    return %c0_i32, %c0_i32_0 : i32, i32
  }
  func.func @transform_3(%arg0: i32) -> (i32, i32, i32) {
    %c0_i32 = arith.constant 0 : i32
    %c0_i32_0 = arith.constant 0 : i32
    %c0_i32_1 = arith.constant 0 : i32
    return %arg0, %c0_i32, %c0_i32_0 : i32, i32, i32
  }
}

module attributes {stable_mosaic.version = 11 : i64} {
  func.func @_esa_tail_kernel(%arg0: i32, %arg1: memref<1x1x1x16xf32, #tpu.memory_space<vmem>>, %arg2: memref<1x256x16xf32, #tpu.memory_space<vmem>>, %arg3: memref<1x256x4xf32, #tpu.memory_space<vmem>>, %arg4: memref<256x1xf32, #tpu.memory_space<vmem>>, %arg5: memref<16x16xbf16, #tpu.memory_space<vmem>>, %arg6: memref<1x16xf32, #tpu.memory_space<vmem>>, %arg7: memref<16x4xbf16, #tpu.memory_space<vmem>>, %arg8: memref<1x4xf32, #tpu.memory_space<vmem>>, %arg9: memref<1x256x4xf32, #tpu.memory_space<vmem>>) attributes {dimension_semantics = [#tpu.dimension_semantics<parallel>], iteration_bounds = array<i64: 2>, scalar_prefetch = 0 : i64, scratch_operands = 0 : i64, tpu.core_type = #tpu.core_type<tc>, window_params = [{transform_indices = @transform_0, window_bounds = array<i64: 1, 1, 1, 16>}, {transform_indices = @transform_1, window_bounds = array<i64: 1, 256, 16>}, {transform_indices = @transform_2, window_bounds = array<i64: 1, 256, 4>}, {pipeline_mode = #tpu.pipeline_mode<synchronous>, transform_indices = @transform_3, window_bounds = array<i64: 256, 1>}, {pipeline_mode = #tpu.pipeline_mode<synchronous>, transform_indices = @transform_4, window_bounds = array<i64: 16, 16>}, {pipeline_mode = #tpu.pipeline_mode<synchronous>, transform_indices = @transform_5, window_bounds = array<i64: 1, 16>}, {pipeline_mode = #tpu.pipeline_mode<synchronous>, transform_indices = @transform_6, window_bounds = array<i64: 16, 4>}, {pipeline_mode = #tpu.pipeline_mode<synchronous>, transform_indices = @transform_7, window_bounds = array<i64: 1, 4>}, {transform_indices = @transform_8, window_bounds = array<i64: 1, 256, 4>}]} {
    %c0 = arith.constant 0 : index
    %c0_0 = arith.constant 0 : index
    %c0_1 = arith.constant 0 : index
    %c0_2 = arith.constant 0 : index
    %0 = vector.load %arg1[%c0, %c0_0, %c0_1, %c0_2] : memref<1x1x1x16xf32, #tpu.memory_space<vmem>>, vector<1x1x1x16xf32>
    %1 = vector.shape_cast %0 : vector<1x1x1x16xf32> to vector<1x1x16xf32>
    %2 = vector.shape_cast %1 : vector<1x1x16xf32> to vector<1x16xf32>
    %c0_3 = arith.constant 0 : index
    %c0_4 = arith.constant 0 : index
    %3 = vector.load %arg4[%c0_3, %c0_4] : memref<256x1xf32, #tpu.memory_space<vmem>>, vector<256x1xf32>
    %cst = arith.constant dense<0.000000e+00> : vector<256x16xf32>
    %4 = tpu.matmul %3, %2, %cst {dimension_numbers = #tpu.dot_dimension_numbers<[1], [0], [0], [1], [0, 0, 1, 1], [], []>} : vector<256x1xf32>, vector<1x16xf32>, vector<256x16xf32> -> vector<256x16xf32>
    %c0_5 = arith.constant 0 : index
    %c0_6 = arith.constant 0 : index
    %c0_7 = arith.constant 0 : index
    %5 = vector.load %arg2[%c0_5, %c0_6, %c0_7] : memref<1x256x16xf32, #tpu.memory_space<vmem>>, vector<1x256x16xf32>
    %6 = vector.shape_cast %5 : vector<1x256x16xf32> to vector<256x16xf32>
    %7 = arith.truncf %6 : vector<256x16xf32> to vector<256x16xbf16>
    %c0_8 = arith.constant 0 : index
    %c0_9 = arith.constant 0 : index
    %8 = vector.load %arg5[%c0_8, %c0_9] : memref<16x16xbf16, #tpu.memory_space<vmem>>, vector<16x16xbf16>
    %cst_10 = arith.constant dense<0.000000e+00> : vector<256x16xf32>
    %9 = tpu.matmul %7, %8, %cst_10 {dimension_numbers = #tpu.dot_dimension_numbers<[1], [0], [0], [1], [0, 0, 1, 1], [], []>} : vector<256x16xbf16>, vector<16x16xbf16>, vector<256x16xf32> -> vector<256x16xf32>
    %c0_11 = arith.constant 0 : index
    %c0_12 = arith.constant 0 : index
    %10 = vector.load %arg6[%c0_11, %c0_12] : memref<1x16xf32, #tpu.memory_space<vmem>>, vector<1x16xf32>
    %11 = vector.broadcast %10 : vector<1x16xf32> to vector<256x16xf32>
    %12 = arith.addf %9, %11 : vector<256x16xf32>
    %13 = arith.addf %4, %12 : vector<256x16xf32>
    %14 = arith.truncf %13 : vector<256x16xf32> to vector<256x16xbf16>
    %c0_13 = arith.constant 0 : index
    %c0_14 = arith.constant 0 : index
    %15 = vector.load %arg7[%c0_13, %c0_14] : memref<16x4xbf16, #tpu.memory_space<vmem>>, vector<16x4xbf16>
    %cst_15 = arith.constant dense<0.000000e+00> : vector<256x4xf32>
    %16 = tpu.matmul %14, %15, %cst_15 {dimension_numbers = #tpu.dot_dimension_numbers<[1], [0], [0], [1], [0, 0, 1, 1], [], []>} : vector<256x16xbf16>, vector<16x4xbf16>, vector<256x4xf32> -> vector<256x4xf32>
    %c0_16 = arith.constant 0 : index
    %c0_17 = arith.constant 0 : index
    %17 = vector.load %arg8[%c0_16, %c0_17] : memref<1x4xf32, #tpu.memory_space<vmem>>, vector<1x4xf32>
    %18 = vector.broadcast %17 : vector<1x4xf32> to vector<256x4xf32>
    %19 = arith.addf %16, %18 : vector<256x4xf32>
    %c0_18 = arith.constant 0 : index
    %c0_19 = arith.constant 0 : index
    %c0_20 = arith.constant 0 : index
    %20 = vector.load %arg3[%c0_18, %c0_19, %c0_20] : memref<1x256x4xf32, #tpu.memory_space<vmem>>, vector<1x256x4xf32>
    %21 = vector.shape_cast %20 : vector<1x256x4xf32> to vector<256x4xf32>
    %22 = arith.negf %19 : vector<256x4xf32>
    %23 = math.exp %22 : vector<256x4xf32>
    %cst_21 = arith.constant 1.000000e+00 : f32
    %24 = vector.broadcast %cst_21 : f32 to vector<256x4xf32>
    %25 = arith.addf %24, %23 : vector<256x4xf32>
    %26 = arith.divf %24, %25 : vector<256x4xf32>
    %27 = arith.mulf %21, %26 : vector<256x4xf32>
    %c0_22 = arith.constant 0 : index
    %c0_23 = arith.constant 0 : index
    %c0_24 = arith.constant 0 : index
    %28 = vector.load %arg9[%c0_22, %c0_23, %c0_24] : memref<1x256x4xf32, #tpu.memory_space<vmem>>, vector<1x256x4xf32>
    %29 = vector.shape_cast %28 : vector<1x256x4xf32> to vector<256x4xf32>
    %30 = vector.shape_cast %27 : vector<256x4xf32> to vector<1x256x4xf32>
    tpu.vector_store %arg9[%c0_22, %c0_23, %c0_24], %30 {strides = array<i32>} : memref<1x256x4xf32, #tpu.memory_space<vmem>>, vector<1x256x4xf32>,
    return
  }
  func.func @transform_0(%arg0: i32) -> (i32, i32, i32, i32) {
    %c0_i32 = arith.constant 0 : i32
    %c0_i32_0 = arith.constant 0 : i32
    %c0_i32_1 = arith.constant 0 : i32
    %c0_i32_2 = arith.constant 0 : i32
    return %arg0, %c0_i32, %c0_i32_0, %c0_i32_1 : i32, i32, i32, i32
  }
  func.func @transform_1(%arg0: i32) -> (i32, i32, i32) {
    %c0_i32 = arith.constant 0 : i32
    %c0_i32_0 = arith.constant 0 : i32
    %c0_i32_1 = arith.constant 0 : i32
    return %arg0, %c0_i32, %c0_i32_0 : i32, i32, i32
  }
  func.func @transform_2(%arg0: i32) -> (i32, i32, i32) {
    %c0_i32 = arith.constant 0 : i32
    %c0_i32_0 = arith.constant 0 : i32
    %c0_i32_1 = arith.constant 0 : i32
    return %arg0, %c0_i32, %c0_i32_0 : i32, i32, i32
  }
  func.func @transform_3(%arg0: i32) -> (i32, i32) {
    %c0_i32 = arith.constant 0 : i32
    %c0_i32_0 = arith.constant 0 : i32
    %c0_i32_1 = arith.constant 0 : i32
    return %c0_i32, %c0_i32_0 : i32, i32
  }
  func.func @transform_4(%arg0: i32) -> (i32, i32) {
    %c0_i32 = arith.constant 0 : i32
    %c0_i32_0 = arith.constant 0 : i32
    %c0_i32_1 = arith.constant 0 : i32
    return %c0_i32, %c0_i32_0 : i32, i32
  }
  func.func @transform_5(%arg0: i32) -> (i32, i32) {
    %c0_i32 = arith.constant 0 : i32
    %c0_i32_0 = arith.constant 0 : i32
    %c0_i32_1 = arith.constant 0 : i32
    return %c0_i32, %c0_i32_0 : i32, i32
  }
  func.func @transform_6(%arg0: i32) -> (i32, i32) {
    %c0_i32 = arith.constant 0 : i32
    %c0_i32_0 = arith.constant 0 : i32
    %c0_i32_1 = arith.constant 0 : i32
    return %c0_i32, %c0_i32_0 : i32, i32
  }
  func.func @transform_7(%arg0: i32) -> (i32, i32) {
    %c0_i32 = arith.constant 0 : i32
    %c0_i32_0 = arith.constant 0 : i32
    %c0_i32_1 = arith.constant 0 : i32
    return %c0_i32, %c0_i32_0 : i32, i32
  }
  func.func @transform_8(%arg0: i32) -> (i32, i32, i32) {
    %c0_i32 = arith.constant 0 : i32
    %c0_i32_0 = arith.constant 0 : i32
    %c0_i32_1 = arith.constant 0 : i32
    return %arg0, %c0_i32, %c0_i32_0 : i32, i32, i32
  }
}

</mosaic_0001>

<bundles_post_ra>
// kernel: rlfb_forward.11
= control target key start
LH: loop header
LB: loop body
LE: loop exit
PB: predicated region body
PF: predicated region fallthrough
CT: control target
= control target key end

     0   :  { %8 = vsyncpa [#allocation3], 0  ;;  %s1115_s0 = inlined_call_operand.hbm [shape: f32[512,4], index: 0, kind: input, shape index: {}]   ;;  %s1116_s1 = inlined_call_operand.hbm [shape: bf16[4,16], index: 1, kind: input, shape index: {}]   ;;  %s1117_s2 = inlined_call_operand.hbm [shape: f32[1,16], index: 2, kind: input, shape index: {}]   ;;  %s1118_s3 = inlined_call_operand.hbm [shape: f32[512,16], index: 3, kind: output, shape index: {}]  }
   0x1   :  { %9 = vsyncpa [#allocation6], 0 }
   0x2   :  { %10 = vsyncpa [#allocation4], 0  ;;  %s866_s12 = smov [#allocation5]   ;;  %s867_s14 = smov [#allocation2]  }
   0x3   :  { %s29_s13 = sshll.u32 %s866_s12, 4  ;;  %s16_s15 = sshll.u32 %s867_s14, 4  ;;  %s30_s13 = int_to_ptr.vmem [resolvable:$true] %s29_s13  ;;  %s892_s15 = int_to_ptr.vmem [resolvable:$true] %s16_s15 }
   0x4   :  { %s772_s18 = scalar_lea.hbm %s1116_s1, 32 }
   0x5   :  { %p773_p0 = scmp.ne.s32.totalorder %s1116_s1, %s772_s18  ;;  %p776_p1 = scmp.lt.u32.totalorder %s772_s18, %s1116_s1 }
   0x7   :  { %p778_p2 = pnand %p776_p1, %p773_p0 }
   0x9   :  { %781 = shalt.err (!%p778_p2)
}
   0xa   :  { %s782_s23 = scalar_lea.vmem %s30_s13, 32  ;;  %p787_p4 = scmp.lt.s32.totalorder %s30_s13, %s30_s13 }
   0xb   :  { %p783_p3 = scmp.ne.s32.totalorder %s30_s13, %s782_s23  ;;  %p788_p5 = scmp.lt.s32.totalorder %s782_s23, %s782_s23 }
   0xd   :  { %p789_p6 = por %p788_p5, %p787_p4 }
   0xf   :  { %p790_p7 = pnand %p789_p6, %p783_p3 }
  0x11   :  { %793 = shalt.err (!%p790_p7)
}
  0x12   :  { %32 = dma.hbm_to_vmem [thread:$0]  %s1116_s1, 32, %s30_s13, [#allocation6]  }
  0x13   :  { %s794_s28 = scalar_lea.hbm %s1115_s0, 8192 }
  0x14   :  { %p795_p8 = scmp.ne.s32.totalorder %s1115_s0, %s794_s28  ;;  %p798_p9 = scmp.lt.u32.totalorder %s794_s28, %s1115_s0 }
  0x16   :  { %p800_p10 = pnand %p798_p9, %p795_p8 }
  0x18   :  { %803 = shalt.err (!%p800_p10)
}
  0x19   :  { %s804_s6 = scalar_lea.vmem %s892_s15, 8192  ;;  %p809_p12 = scmp.lt.s32.totalorder %s892_s15, %s892_s15 }
  0x1a   :  { %p805_p11 = scmp.ne.s32.totalorder %s892_s15, %s804_s6  ;;  %p810_p13 = scmp.lt.s32.totalorder %s804_s6, %s804_s6 }
  0x1c   :  { %p811_p0 = por %p810_p13, %p809_p12 }
  0x1e   :  { %p812_p1 = pnand %p811_p0, %p805_p11 }
  0x20   :  { %815 = shalt.err (!%p812_p1)
}
  0x21   :  { %s868_s1 = smov 128   ;;  %s869_s7 = smov 8  }
  0x22   :  { %22 = dma.hbm_to_vmem [thread:$0]  %s1115_s0, 8192, %s892_s15, [#allocation3], %s868_s1, %s868_s1, %s869_s7  }
  0x23   :  { %s870_s10 = smov [#allocation7]   ;;  %s816_s14 = scalar_lea.hbm %s1117_s2, 16 }
  0x24   :  { %s39_s11 = sshll.u32 %s870_s10, 4  ;;  %p817_p2 = scmp.ne.s32.totalorder %s1117_s2, %s816_s14  ;;  %s40_s11 = int_to_ptr.vmem [resolvable:$true] %s39_s11 }
  0x25   :  { %p820_p3 = scmp.lt.u32.totalorder %s816_s14, %s1117_s2 }
  0x27   :  { %p822_p4 = pnand %p820_p3, %p817_p2 }
  0x29   :  { %825 = shalt.err (!%p822_p4)
}
  0x2a   :  { %s826_s20 = scalar_lea.vmem %s40_s11, 16  ;;  %s830_s0 = scalar_lea.vmem %s40_s11, 32 }
  0x2b   :  { %p827_p5 = scmp.ne.s32.totalorder %s40_s11, %s826_s20  ;;  %p831_p6 = scmp.lt.s32.totalorder %s40_s11, %s40_s11 }
  0x2c   :  { %p832_p7 = scmp.lt.s32.totalorder %s830_s0, %s826_s20 }
  0x2e   :  { %p833_p8 = por %p832_p7, %p831_p6 }
  0x30   :  { %p834_p9 = pnand %p833_p8, %p827_p5 }
  0x32   :  { %837 = shalt.err (!%p834_p9)
}
  0x33   :  { %42 = dma.hbm_to_vmem [thread:$0]  %s1117_s2, 16, %s40_s11, [#allocation6]  }
  0x34   :  { %860 = dma.done.wait [#allocation3], 8192  }
  0x35   :  { %861 = vsyncadd [#allocation3], 4294959104 }
  0x36   :  { %862 = dma.done.wait [#allocation6], 48  }
  0x37   :  { %863 = vsyncadd [#allocation6], 4294967248  ;;  %vm254_vm0 = vcmask 1041408   ;;  %v149_v0 = vld [vmem:[#allocation5] sm:$0x3]  ;;  %v54_v2 = vld [vmem:[#allocation2 + $0x8] sm:$0xff] }
  0x38   :  { %v53_v1 = vld [vmem:[#allocation2] sm:$0xff]  ;;  %vm157_vm1 = vcmask 31744   ;;  %764 = vmatprep.subr.msk.bf16.mxu0 %vm254_vm0, %v149_v0  ;;  %765 = vmatprep.subr.msk.bf16.mxu1 %vm254_vm0, %v149_v0  ;;  %v256_v3 = vsel %vm254_vm0, %v149_v0, 0  ;;  %v86_v6 = vld [vmem:[#allocation2 + $0x108] sm:$0xff]  ;;  %v55_v7 = vld [vmem:[#allocation2 + $0x10] sm:$0xff]  ;;  %vm547_vm2 = vcmask 130048  }
  0x39   :  { %v117_v4 = vpack.c.bf16 %v54_v2, %v53_v1  ;;  %v85_v5 = vld [vmem:[#allocation2 + $0x100] sm:$0xff]  ;;  %697 = vmatpush3.bf16.msra.mxu0 %v256_v3  ;;  %763 = vmatpush3.bf16.msra.mxu1 %v256_v3  ;;  %v56_v9 = vld [vmem:[#allocation2 + $0x18] sm:$0xff]  ;;  %v87_v10 = vld [vmem:[#allocation2 + $0x110] sm:$0xff]  ;;  %s871_s2 = smov [#allocation8]  }
  0x3a   :  { %v133_v8 = vpack.c.bf16 %v86_v6, %v85_v5  ;;  %v88_v11 = vld [vmem:[#allocation2 + $0x118] sm:$0xff]  ;;  %v118_v12 = vpack.c.bf16 %v56_v9, %v55_v7  ;;  %v57_v14 = vld [vmem:[#allocation2 + $0x20] sm:$0xff]  ;;  %v58_v15 = vld [vmem:[#allocation2 + $0x28] sm:$0xff]  ;;  %s617_s22 = sshll.u32 %s871_s2, 4  ;;  %s618_s22 = int_to_ptr.vmem [resolvable:$true] %s617_s22 }
  0x3b   :  { %698 = vmatprep.mubr.msk.bf16.mxu0 %vm157_vm1, %v117_v4  ;;  %v134_v13 = vpack.c.bf16 %v88_v11, %v87_v10  ;;  %v89_v16 = vld [vmem:[#allocation2 + $0x120] sm:$0xff]  ;;  %v119_v17 = vpack.c.bf16 %v58_v15, %v57_v14  ;;  %v90_v18 = vld [vmem:[#allocation2 + $0x128] sm:$0xff]  ;;  %v59_v20 = vld [vmem:[#allocation2 + $0x30] sm:$0xff]  ;;  %s838_s23 = scalar_lea.vmem %s618_s22, 8192  ;;  %p843_p11 = scmp.lt.s32.totalorder %s618_s22, %s618_s22 }
  0x3c   :  { %730 = vmatprep.mubr.msk.bf16.mxu1 %vm157_vm1, %v133_v8  ;;  %699 = vmatmul.mubr.msk.bf16.vlgmr.msra.gmra.mrb[0].mxu0 %vm157_vm1, %v118_v12  ;;  %v135_v19 = vpack.c.bf16 %v90_v18, %v89_v16  ;;  %v60_v21 = vld [vmem:[#allocation2 + $0x38] sm:$0xff]  ;;  %v91_v22 = vld [vmem:[#allocation2 + $0x130] sm:$0xff]  ;;  %v61_v24 = vld [vmem:[#allocation2 + $0x40] sm:$0xff]  ;;  %p839_p10 = scmp.ne.s32.totalorder %s618_s22, %s838_s23  ;;  %p844_p12 = scmp.lt.s32.totalorder %s838_s23, %s838_s23 }
  0x3d   :  { %731 = vmatmul.mubr.msk.bf16.vlgmr.msra.gmra.mrb[0].mxu1 %vm157_vm1, %v134_v13  ;;  %702 = vmatprep.mubr.msk.bf16.mxu0 %vm157_vm1, %v119_v17  ;;  %v92_v23 = vld [vmem:[#allocation2 + $0x138] sm:$0xff]  ;;  %v62_v25 = vld [vmem:[#allocation2 + $0x48] sm:$0xff]  ;;  %v93_v26 = vld [vmem:[#allocation2 + $0x140] sm:$0xff]  ;;  %v120_v28 = vpack.c.bf16 %v60_v21, %v59_v20 }
  0x3e   :  { %734 = vmatprep.mubr.msk.bf16.mxu1 %vm157_vm1, %v135_v19  ;;  %v94_v27 = vld [vmem:[#allocation2 + $0x148] sm:$0xff]  ;;  %v136_v29 = vpack.c.bf16 %v92_v23, %v91_v22  ;;  %v121_v30 = vpack.c.bf16 %v62_v25, %v61_v24  ;;  %v63_v32 = vld [vmem:[#allocation2 + $0x50] sm:$0xff]  ;;  %v64_v33 = vld [vmem:[#allocation2 + $0x58] sm:$0xff]  ;;  %p845_p13 = por %p844_p12, %p843_p11 }
  0x3f   :  { %v137_v31 = vpack.c.bf16 %v94_v27, %v93_v26  ;;  %v95_v34 = vld [vmem:[#allocation2 + $0x150] sm:$0xff]  ;;  %v96_v35 = vld [vmem:[#allocation2 + $0x158] sm:$0xff]  ;;  %v65_v36 = vld [vmem:[#allocation2 + $0x60] sm:$0xff]  ;;  %v122_v40 = vpack.c.bf16 %v64_v33, %v63_v32 }
  0x40   :  { %v66_v37 = vld [vmem:[#allocation2 + $0x68] sm:$0xff]  ;;  %v97_v38 = vld [vmem:[#allocation2 + $0x160] sm:$0xff]  ;;  %v138_v41 = vpack.c.bf16 %v96_v35, %v95_v34  ;;  %v67_v44 = vld [vmem:[#allocation2 + $0x70] sm:$0xff]  ;;  %p846_p0 = pnand %p845_p13, %p839_p10 }
  0x41   :  { %v98_v39 = vld [vmem:[#allocation2 + $0x168] sm:$0xff]  ;;  %v123_v42 = vpack.c.bf16 %v66_v37, %v65_v36  ;;  %v68_v45 = vld [vmem:[#allocation2 + $0x78] sm:$0xff]  ;;  %v99_v46 = vld [vmem:[#allocation2 + $0x170] sm:$0xff] }
  0x42   :  { %v139_v43 = vpack.c.bf16 %v98_v39, %v97_v38  ;;  %v100_v47 = vld [vmem:[#allocation2 + $0x178] sm:$0xff]  ;;  %v69_v48 = vld [vmem:[#allocation2 + $0x80] sm:$0xff]  ;;  %v70_v49 = vld [vmem:[#allocation2 + $0x88] sm:$0xff]  ;;  %v124_v52 = vpack.c.bf16 %v68_v45, %v67_v44 }
  0x43   :  { %v101_v50 = vld [vmem:[#allocation2 + $0x180] sm:$0xff]  ;;  %v102_v51 = vld [vmem:[#allocation2 + $0x188] sm:$0xff]  ;;  %v140_v53 = vpack.c.bf16 %v100_v47, %v99_v46  ;;  %v125_v54 = vpack.c.bf16 %v70_v49, %v69_v48  ;;  %v71_v56 = vld [vmem:[#allocation2 + $0x90] sm:$0xff] }
  0x44   :  { %703 = vmatmul.mubr.msk.bf16.gmra.mrb[4].mxu0 %vm157_vm1, %v120_v28  ;;  %v141_v55 = vpack.c.bf16 %v102_v51, %v101_v50  ;;  %v72_v57 = vld [vmem:[#allocation2 + $0x98] sm:$0xff]  ;;  %v103_v58 = vld [vmem:[#allocation2 + $0x190] sm:$0xff]  ;;  %v73_v60 = vld [vmem:[#allocation2 + $0xa0] sm:$0xff] }
  0x45   :  { %735 = vmatmul.mubr.msk.bf16.gmra.mrb[4].mxu1 %vm157_vm1, %v136_v29  ;;  %706 = vmatprep.mubr.msk.bf16.mxu0 %vm157_vm1, %v121_v30  ;;  %v104_v59 = vld [vmem:[#allocation2 + $0x198] sm:$0xff]  ;;  %v74_v61 = vld [vmem:[#allocation2 + $0xa8] sm:$0xff]  ;;  %v105_v62 = vld [vmem:[#allocation2 + $0x1a0] sm:$0xff]  ;;  %v126_v0 = vpack.c.bf16 %v72_v57, %v71_v56 }
  0x46   :  { %738 = vmatprep.mubr.msk.bf16.mxu1 %vm157_vm1, %v137_v31  ;;  %v106_v63 = vld [vmem:[#allocation2 + $0x1a8] sm:$0xff]  ;;  %v142_v1 = vpack.c.bf16 %v104_v59, %v103_v58  ;;  %v127_v2 = vpack.c.bf16 %v74_v61, %v73_v60  ;;  %v75_v4 = vld [vmem:[#allocation2 + $0xb0] sm:$0xff]  ;;  %v76_v5 = vld [vmem:[#allocation2 + $0xb8] sm:$0xff] }
  0x47   :  { %v143_v3 = vpack.c.bf16 %v106_v63, %v105_v62  ;;  %v107_v6 = vld [vmem:[#allocation2 + $0x1b0] sm:$0xff]  ;;  %v108_v7 = vld [vmem:[#allocation2 + $0x1b8] sm:$0xff]  ;;  %v77_v8 = vld [vmem:[#allocation2 + $0xc0] sm:$0xff]  ;;  %v128_v12 = vpack.c.bf16 %v76_v5, %v75_v4 }
  0x48   :  { %v78_v9 = vld [vmem:[#allocation2 + $0xc8] sm:$0xff]  ;;  %v109_v10 = vld [vmem:[#allocation2 + $0x1c0] sm:$0xff]  ;;  %v144_v13 = vpack.c.bf16 %v108_v7, %v107_v6  ;;  %v79_v16 = vld [vmem:[#allocation2 + $0xd0] sm:$0xff] }
  0x49   :  { %v110_v11 = vld [vmem:[#allocation2 + $0x1c8] sm:$0xff]  ;;  %v129_v14 = vpack.c.bf16 %v78_v9, %v77_v8  ;;  %v80_v17 = vld [vmem:[#allocation2 + $0xd8] sm:$0xff]  ;;  %v111_v18 = vld [vmem:[#allocation2 + $0x1d0] sm:$0xff] }
  0x4a   :  { %v145_v15 = vpack.c.bf16 %v110_v11, %v109_v10  ;;  %v112_v19 = vld [vmem:[#allocation2 + $0x1d8] sm:$0xff]  ;;  %v81_v20 = vld [vmem:[#allocation2 + $0xe0] sm:$0xff]  ;;  %v82_v21 = vld [vmem:[#allocation2 + $0xe8] sm:$0xff]  ;;  %v130_v24 = vpack.c.bf16 %v80_v17, %v79_v16 }
  0x4b   :  { %v113_v22 = vld [vmem:[#allocation2 + $0x1e0] sm:$0xff]  ;;  %v114_v23 = vld [vmem:[#allocation2 + $0x1e8] sm:$0xff]  ;;  %v146_v25 = vpack.c.bf16 %v112_v19, %v111_v18  ;;  %v131_v26 = vpack.c.bf16 %v82_v21, %v81_v20  ;;  %v83_v28 = vld [vmem:[#allocation2 + $0xf0] sm:$0xff] }
  0x4c   :  { %707 = vmatmul.mubr.msk.bf16.gmra.mrb[8].mxu0 %vm157_vm1, %v122_v40  ;;  %v147_v27 = vpack.c.bf16 %v114_v23, %v113_v22  ;;  %v84_v29 = vld [vmem:[#allocation2 + $0xf8] sm:$0xff]  ;;  %v115_v30 = vld [vmem:[#allocation2 + $0x1f0] sm:$0xff]  ;;  %v970_v34 = vld [vmem:[#allocation7] ss:$0 sm:$0xff] }
  0x4d   :  { %739 = vmatmul.mubr.msk.bf16.gmra.mrb[8].mxu1 %vm157_vm1, %v138_v41  ;;  %710 = vmatprep.mubr.msk.bf16.mxu0 %vm157_vm1, %v123_v42  ;;  %v116_v31 = vld [vmem:[#allocation2 + $0x1f8] sm:$0xff]  ;;  %v132_v32 = vpack.c.bf16 %v84_v29, %v83_v28 }
  0x4e   :  { %742 = vmatprep.mubr.msk.bf16.mxu1 %vm157_vm1, %v139_v43  ;;  %v148_v33 = vpack.c.bf16 %v116_v31, %v115_v30 }
  0x54   :  { %711 = vmatmul.mubr.msk.bf16.gmra.mrb[12].mxu0 %vm157_vm1, %v124_v52 }
  0x55   :  { %743 = vmatmul.mubr.msk.bf16.gmra.mrb[12].mxu1 %vm157_vm1, %v140_v53  ;;  %714 = vmatprep.mubr.msk.bf16.mxu0 %vm157_vm1, %v125_v54 }
  0x56   :  { %746 = vmatprep.mubr.msk.bf16.mxu1 %vm157_vm1, %v141_v55 }
  0x5c   :  { %715 = vmatmul.mubr.msk.bf16.gmra.mrb[16].mxu0 %vm157_vm1, %v126_v0 }
  0x5d   :  { %747 = vmatmul.mubr.msk.bf16.gmra.mrb[16].mxu1 %vm157_vm1, %v142_v1  ;;  %718 = vmatprep.mubr.msk.bf16.mxu0 %vm157_vm1, %v127_v2 }
  0x5e   :  { %750 = vmatprep.mubr.msk.bf16.mxu1 %vm157_vm1, %v143_v3 }
  0x64   :  { %719 = vmatmul.mubr.msk.bf16.gmra.mrb[20].mxu0 %vm157_vm1, %v128_v12 }
  0x65   :  { %751 = vmatmul.mubr.msk.bf16.gmra.mrb[20].mxu1 %vm157_vm1, %v144_v13  ;;  %722 = vmatprep.mubr.msk.bf16.mxu0 %vm157_vm1, %v129_v14 }
  0x66   :  { %754 = vmatprep.mubr.msk.bf16.mxu1 %vm157_vm1, %v145_v15 }
  0x6c   :  { %723 = vmatmul.mubr.msk.bf16.gmra.mrb[24].mxu0 %vm157_vm1, %v130_v24 }
  0x6d   :  { %755 = vmatmul.mubr.msk.bf16.gmra.mrb[24].mxu1 %vm157_vm1, %v146_v25  ;;  %726 = vmatprep.mubr.msk.bf16.mxu0 %vm157_vm1, %v131_v26 }
  0x6e   :  { %758 = vmatprep.mubr.msk.bf16.mxu1 %vm157_vm1, %v147_v27 }
  0x74   :  { %727 = vmatmul.mubr.msk.bf16.gmra.mrb[28].mxu0 %vm157_vm1, %v132_v32 }
  0x75   :  { %759 = vmatmul.mubr.msk.bf16.gmra.mrb[28].mxu1 %vm157_vm1, %v148_v33 }
 0x10f   :  { %v700_v35 = vpop.f32.mrb[0].mxu0 }
 0x110   :  { %v732_v36 = vpop.f32.mrb[0].mxu1  ;;  %v301_v37 = vadd.f32 %v700_v35, %v970_v34  ;;  %v292_v39 = vpop.f32.mrb[1].mxu0 }
 0x111   :  { %v429_v38 = vadd.f32 %v732_v36, %v970_v34  ;;  %v420_v40 = vpop.f32.mrb[1].mxu1  ;;  %v293_v41 = vadd.f32 %v970_v34, %v292_v39  ;;  %v701_v43 = vpop.f32.mrb[2].mxu0 }
 0x112   :  { %v421_v42 = vadd.f32 %v970_v34, %v420_v40  ;;  %v733_v44 = vpop.f32.mrb[2].mxu1  ;;  %550 = vst.msk [vmem:[#allocation8 + $0x10] sm:$0xff] %vm547_vm2, %v301_v37  ;;  %v304_v45 = vadd.f32 %v701_v43, %v970_v34  ;;  %v295_v47 = vpop.f32.mrb[3].mxu0 }
 0x113   :  { %582 = vst.msk [vmem:[#allocation8 + $0x110] sm:$0xff] %vm547_vm2, %v429_v38  ;;  %v432_v46 = vadd.f32 %v733_v44, %v970_v34  ;;  %v423_v48 = vpop.f32.mrb[3].mxu1  ;;  %548 = vst.msk [vmem:[#allocation8] sm:$0xff] %vm547_vm2, %v293_v41  ;;  %v296_v49 = vadd.f32 %v970_v34, %v295_v47 }
 0x114   :  { %580 = vst.msk [vmem:[#allocation8 + $0x100] sm:$0xff] %vm547_vm2, %v421_v42  ;;  %v424_v50 = vadd.f32 %v970_v34, %v423_v48  ;;  %551 = vst.msk [vmem:[#allocation8 + $0x18] sm:$0xff] %vm547_vm2, %v304_v45 }
 0x115   :  { %583 = vst.msk [vmem:[#allocation8 + $0x118] sm:$0xff] %vm547_vm2, %v432_v46  ;;  %549 = vst.msk [vmem:[#allocation8 + $0x8] sm:$0xff] %vm547_vm2, %v296_v49 }
 0x116   :  { %581 = vst.msk [vmem:[#allocation8 + $0x108] sm:$0xff] %vm547_vm2, %v424_v50 }
 0x117   :  { %v704_v51 = vpop.f32.mrb[4].mxu0 }
 0x118   :  { %v736_v52 = vpop.f32.mrb[4].mxu1  ;;  %v317_v53 = vadd.f32 %v704_v51, %v970_v34  ;;  %v308_v55 = vpop.f32.mrb[5].mxu0 }
 0x119   :  { %v445_v54 = vadd.f32 %v736_v52, %v970_v34  ;;  %v436_v56 = vpop.f32.mrb[5].mxu1  ;;  %v309_v57 = vadd.f32 %v970_v34, %v308_v55  ;;  %v705_v59 = vpop.f32.mrb[6].mxu0 }
 0x11a   :  { %v437_v58 = vadd.f32 %v970_v34, %v436_v56  ;;  %v737_v60 = vpop.f32.mrb[6].mxu1  ;;  %554 = vst.msk [vmem:[#allocation8 + $0x30] sm:$0xff] %vm547_vm2, %v317_v53  ;;  %v320_v61 = vadd.f32 %v705_v59, %v970_v34  ;;  %v311_v63 = vpop.f32.mrb[7].mxu0 }
 0x11b   :  { %586 = vst.msk [vmem:[#allocation8 + $0x130] sm:$0xff] %vm547_vm2, %v445_v54  ;;  %v448_v62 = vadd.f32 %v737_v60, %v970_v34  ;;  %v439_v0 = vpop.f32.mrb[7].mxu1  ;;  %552 = vst.msk [vmem:[#allocation8 + $0x20] sm:$0xff] %vm547_vm2, %v309_v57  ;;  %v312_v1 = vadd.f32 %v970_v34, %v311_v63 }
 0x11c   :  { %584 = vst.msk [vmem:[#allocation8 + $0x120] sm:$0xff] %vm547_vm2, %v437_v58  ;;  %v440_v2 = vadd.f32 %v970_v34, %v439_v0  ;;  %555 = vst.msk [vmem:[#allocation8 + $0x38] sm:$0xff] %vm547_vm2, %v320_v61 }
 0x11d   :  { %587 = vst.msk [vmem:[#allocation8 + $0x138] sm:$0xff] %vm547_vm2, %v448_v62  ;;  %553 = vst.msk [vmem:[#allocation8 + $0x28] sm:$0xff] %vm547_vm2, %v312_v1 }
 0x11e   :  { %585 = vst.msk [vmem:[#allocation8 + $0x128] sm:$0xff] %vm547_vm2, %v440_v2 }
 0x11f   :  { %v708_v3 = vpop.f32.mrb[8].mxu0 }
 0x120   :  { %v740_v4 = vpop.f32.mrb[8].mxu1  ;;  %v333_v5 = vadd.f32 %v708_v3, %v970_v34  ;;  %v324_v7 = vpop.f32.mrb[9].mxu0 }
 0x121   :  { %v461_v6 = vadd.f32 %v740_v4, %v970_v34  ;;  %v452_v8 = vpop.f32.mrb[9].mxu1  ;;  %v325_v9 = vadd.f32 %v970_v34, %v324_v7  ;;  %v709_v11 = vpop.f32.mrb[10].mxu0 }
 0x122   :  { %v453_v10 = vadd.f32 %v970_v34, %v452_v8  ;;  %v741_v12 = vpop.f32.mrb[10].mxu1  ;;  %558 = vst.msk [vmem:[#allocation8 + $0x50] sm:$0xff] %vm547_vm2, %v333_v5  ;;  %v336_v13 = vadd.f32 %v709_v11, %v970_v34  ;;  %v327_v15 = vpop.f32.mrb[11].mxu0 }
 0x123   :  { %590 = vst.msk [vmem:[#allocation8 + $0x150] sm:$0xff] %vm547_vm2, %v461_v6  ;;  %v464_v14 = vadd.f32 %v741_v12, %v970_v34  ;;  %v455_v16 = vpop.f32.mrb[11].mxu1  ;;  %556 = vst.msk [vmem:[#allocation8 + $0x40] sm:$0xff] %vm547_vm2, %v325_v9  ;;  %v328_v17 = vadd.f32 %v970_v34, %v327_v15 }
 0x124   :  { %588 = vst.msk [vmem:[#allocation8 + $0x140] sm:$0xff] %vm547_vm2, %v453_v10  ;;  %v456_v18 = vadd.f32 %v970_v34, %v455_v16  ;;  %559 = vst.msk [vmem:[#allocation8 + $0x58] sm:$0xff] %vm547_vm2, %v336_v13 }
 0x125   :  { %591 = vst.msk [vmem:[#allocation8 + $0x158] sm:$0xff] %vm547_vm2, %v464_v14  ;;  %557 = vst.msk [vmem:[#allocation8 + $0x48] sm:$0xff] %vm547_vm2, %v328_v17 }
 0x126   :  { %589 = vst.msk [vmem:[#allocation8 + $0x148] sm:$0xff] %vm547_vm2, %v456_v18 }
 0x127   :  { %v712_v19 = vpop.f32.mrb[12].mxu0 }
 0x128   :  { %v744_v20 = vpop.f32.mrb[12].mxu1  ;;  %v349_v21 = vadd.f32 %v712_v19, %v970_v34  ;;  %v340_v23 = vpop.f32.mrb[13].mxu0 }
 0x129   :  { %v477_v22 = vadd.f32 %v744_v20, %v970_v34  ;;  %v468_v24 = vpop.f32.mrb[13].mxu1  ;;  %v341_v25 = vadd.f32 %v970_v34, %v340_v23  ;;  %v713_v27 = vpop.f32.mrb[14].mxu0 }
 0x12a   :  { %v469_v26 = vadd.f32 %v970_v34, %v468_v24  ;;  %v745_v28 = vpop.f32.mrb[14].mxu1  ;;  %562 = vst.msk [vmem:[#allocation8 + $0x70] sm:$0xff] %vm547_vm2, %v349_v21  ;;  %v352_v29 = vadd.f32 %v713_v27, %v970_v34  ;;  %v343_v31 = vpop.f32.mrb[15].mxu0 }
 0x12b   :  { %594 = vst.msk [vmem:[#allocation8 + $0x170] sm:$0xff] %vm547_vm2, %v477_v22  ;;  %v480_v30 = vadd.f32 %v745_v28, %v970_v34  ;;  %v471_v32 = vpop.f32.mrb[15].mxu1  ;;  %560 = vst.msk [vmem:[#allocation8 + $0x60] sm:$0xff] %vm547_vm2, %v341_v25  ;;  %v344_v33 = vadd.f32 %v970_v34, %v343_v31 }
 0x12c   :  { %592 = vst.msk [vmem:[#allocation8 + $0x160] sm:$0xff] %vm547_vm2, %v469_v26  ;;  %v472_v35 = vadd.f32 %v970_v34, %v471_v32  ;;  %563 = vst.msk [vmem:[#allocation8 + $0x78] sm:$0xff] %vm547_vm2, %v352_v29 }
 0x12d   :  { %595 = vst.msk [vmem:[#allocation8 + $0x178] sm:$0xff] %vm547_vm2, %v480_v30  ;;  %561 = vst.msk [vmem:[#allocation8 + $0x68] sm:$0xff] %vm547_vm2, %v344_v33 }
 0x12e   :  { %593 = vst.msk [vmem:[#allocation8 + $0x168] sm:$0xff] %vm547_vm2, %v472_v35 }
 0x12f   :  { %v716_v36 = vpop.f32.mrb[16].mxu0 }
 0x130   :  { %v748_v37 = vpop.f32.mrb[16].mxu1  ;;  %v365_v38 = vadd.f32 %v716_v36, %v970_v34  ;;  %v356_v40 = vpop.f32.mrb[17].mxu0 }
 0x131   :  { %v493_v39 = vadd.f32 %v748_v37, %v970_v34  ;;  %v484_v41 = vpop.f32.mrb[17].mxu1  ;;  %v357_v42 = vadd.f32 %v970_v34, %v356_v40  ;;  %v717_v44 = vpop.f32.mrb[18].mxu0 }
 0x132   :  { %v485_v43 = vadd.f32 %v970_v34, %v484_v41  ;;  %v749_v45 = vpop.f32.mrb[18].mxu1  ;;  %566 = vst.msk [vmem:[#allocation8 + $0x90] sm:$0xff] %vm547_vm2, %v365_v38  ;;  %v368_v46 = vadd.f32 %v717_v44, %v970_v34  ;;  %v359_v48 = vpop.f32.mrb[19].mxu0 }
 0x133   :  { %598 = vst.msk [vmem:[#allocation8 + $0x190] sm:$0xff] %vm547_vm2, %v493_v39  ;;  %v496_v47 = vadd.f32 %v749_v45, %v970_v34  ;;  %v487_v49 = vpop.f32.mrb[19].mxu1  ;;  %564 = vst.msk [vmem:[#allocation8 + $0x80] sm:$0xff] %vm547_vm2, %v357_v42  ;;  %v360_v50 = vadd.f32 %v970_v34, %v359_v48 }
 0x134   :  { %596 = vst.msk [vmem:[#allocation8 + $0x180] sm:$0xff] %vm547_vm2, %v485_v43  ;;  %v488_v51 = vadd.f32 %v970_v34, %v487_v49  ;;  %567 = vst.msk [vmem:[#allocation8 + $0x98] sm:$0xff] %vm547_vm2, %v368_v46 }
 0x135   :  { %599 = vst.msk [vmem:[#allocation8 + $0x198] sm:$0xff] %vm547_vm2, %v496_v47  ;;  %565 = vst.msk [vmem:[#allocation8 + $0x88] sm:$0xff] %vm547_vm2, %v360_v50 }
 0x136   :  { %597 = vst.msk [vmem:[#allocation8 + $0x188] sm:$0xff] %vm547_vm2, %v488_v51 }
 0x137   :  { %v720_v52 = vpop.f32.mrb[20].mxu0 }
 0x138   :  { %v752_v53 = vpop.f32.mrb[20].mxu1  ;;  %v381_v54 = vadd.f32 %v720_v52, %v970_v34  ;;  %v372_v56 = vpop.f32.mrb[21].mxu0 }
 0x139   :  { %v509_v55 = vadd.f32 %v752_v53, %v970_v34  ;;  %v500_v57 = vpop.f32.mrb[21].mxu1  ;;  %v373_v58 = vadd.f32 %v970_v34, %v372_v56  ;;  %v721_v60 = vpop.f32.mrb[22].mxu0 }
 0x13a   :  { %v501_v59 = vadd.f32 %v970_v34, %v500_v57  ;;  %v753_v61 = vpop.f32.mrb[22].mxu1  ;;  %570 = vst.msk [vmem:[#allocation8 + $0xb0] sm:$0xff] %vm547_vm2, %v381_v54  ;;  %v384_v62 = vadd.f32 %v721_v60, %v970_v34  ;;  %v375_v0 = vpop.f32.mrb[23].mxu0 }
 0x13b   :  { %602 = vst.msk [vmem:[#allocation8 + $0x1b0] sm:$0xff] %vm547_vm2, %v509_v55  ;;  %v512_v63 = vadd.f32 %v753_v61, %v970_v34  ;;  %v503_v1 = vpop.f32.mrb[23].mxu1  ;;  %568 = vst.msk [vmem:[#allocation8 + $0xa0] sm:$0xff] %vm547_vm2, %v373_v58  ;;  %v376_v2 = vadd.f32 %v970_v34, %v375_v0 }
 0x13c   :  { %600 = vst.msk [vmem:[#allocation8 + $0x1a0] sm:$0xff] %vm547_vm2, %v501_v59  ;;  %v504_v3 = vadd.f32 %v970_v34, %v503_v1  ;;  %571 = vst.msk [vmem:[#allocation8 + $0xb8] sm:$0xff] %vm547_vm2, %v384_v62 }
 0x13d   :  { %603 = vst.msk [vmem:[#allocation8 + $0x1b8] sm:$0xff] %vm547_vm2, %v512_v63  ;;  %569 = vst.msk [vmem:[#allocation8 + $0xa8] sm:$0xff] %vm547_vm2, %v376_v2 }
 0x13e   :  { %601 = vst.msk [vmem:[#allocation8 + $0x1a8] sm:$0xff] %vm547_vm2, %v504_v3 }
 0x13f   :  { %v724_v4 = vpop.f32.mrb[24].mxu0 }
 0x140   :  { %v756_v5 = vpop.f32.mrb[24].mxu1  ;;  %v397_v6 = vadd.f32 %v724_v4, %v970_v34  ;;  %v388_v8 = vpop.f32.mrb[25].mxu0 }
 0x141   :  { %v525_v7 = vadd.f32 %v756_v5, %v970_v34  ;;  %v516_v9 = vpop.f32.mrb[25].mxu1  ;;  %v389_v10 = vadd.f32 %v970_v34, %v388_v8  ;;  %v725_v12 = vpop.f32.mrb[26].mxu0 }
 0x142   :  { %v517_v11 = vadd.f32 %v970_v34, %v516_v9  ;;  %v757_v13 = vpop.f32.mrb[26].mxu1  ;;  %574 = vst.msk [vmem:[#allocation8 + $0xd0] sm:$0xff] %vm547_vm2, %v397_v6  ;;  %v400_v14 = vadd.f32 %v725_v12, %v970_v34  ;;  %v391_v16 = vpop.f32.mrb[27].mxu0 }
 0x143   :  { %606 = vst.msk [vmem:[#allocation8 + $0x1d0] sm:$0xff] %vm547_vm2, %v525_v7  ;;  %v528_v15 = vadd.f32 %v757_v13, %v970_v34  ;;  %v519_v17 = vpop.f32.mrb[27].mxu1  ;;  %572 = vst.msk [vmem:[#allocation8 + $0xc0] sm:$0xff] %vm547_vm2, %v389_v10  ;;  %v392_v18 = vadd.f32 %v970_v34, %v391_v16 }
 0x144   :  { %604 = vst.msk [vmem:[#allocation8 + $0x1c0] sm:$0xff] %vm547_vm2, %v517_v11  ;;  %v520_v19 = vadd.f32 %v970_v34, %v519_v17  ;;  %575 = vst.msk [vmem:[#allocation8 + $0xd8] sm:$0xff] %vm547_vm2, %v400_v14 }
 0x145   :  { %607 = vst.msk [vmem:[#allocation8 + $0x1d8] sm:$0xff] %vm547_vm2, %v528_v15  ;;  %573 = vst.msk [vmem:[#allocation8 + $0xc8] sm:$0xff] %vm547_vm2, %v392_v18 }
 0x146   :  { %605 = vst.msk [vmem:[#allocation8 + $0x1c8] sm:$0xff] %vm547_vm2, %v520_v19 }
 0x147   :  { %v728_v20 = vpop.f32.mrb[28].mxu0 }
 0x148   :  { %v760_v21 = vpop.f32.mrb[28].mxu1  ;;  %v413_v22 = vadd.f32 %v728_v20, %v970_v34  ;;  %v404_v24 = vpop.f32.mrb[29].mxu0 }
 0x149   :  { %v541_v23 = vadd.f32 %v760_v21, %v970_v34  ;;  %v532_v25 = vpop.f32.mrb[29].mxu1  ;;  %v405_v26 = vadd.f32 %v970_v34, %v404_v24  ;;  %v729_v28 = vpop.f32.mrb[30].mxu0 }
 0x14a   :  { %v533_v27 = vadd.f32 %v970_v34, %v532_v25  ;;  %v761_v29 = vpop.f32.mrb[30].mxu1  ;;  %578 = vst.msk [vmem:[#allocation8 + $0xf0] sm:$0xff] %vm547_vm2, %v413_v22  ;;  %v416_v30 = vadd.f32 %v729_v28, %v970_v34  ;;  %v407_v32 = vpop.f32.mrb[31].mxu0 }
 0x14b   :  { %610 = vst.msk [vmem:[#allocation8 + $0x1f0] sm:$0xff] %vm547_vm2, %v541_v23  ;;  %v544_v31 = vadd.f32 %v761_v29, %v970_v34  ;;  %v535_v33 = vpop.f32.mrb[31].mxu1  ;;  %576 = vst.msk [vmem:[#allocation8 + $0xe0] sm:$0xff] %vm547_vm2, %v405_v26  ;;  %v408_v35 = vadd.f32 %v970_v34, %v407_v32 }
 0x14c   :  { %608 = vst.msk [vmem:[#allocation8 + $0x1e0] sm:$0xff] %vm547_vm2, %v533_v27  ;;  %v536_v36 = vadd.f32 %v970_v34, %v535_v33  ;;  %579 = vst.msk [vmem:[#allocation8 + $0xf8] sm:$0xff] %vm547_vm2, %v416_v30 }
 0x14d   :  { %611 = vst.msk [vmem:[#allocation8 + $0x1f8] sm:$0xff] %vm547_vm2, %v544_v31  ;;  %577 = vst.msk [vmem:[#allocation8 + $0xe8] sm:$0xff] %vm547_vm2, %v408_v35 }
 0x14e   :  { %609 = vst.msk [vmem:[#allocation8 + $0x1e8] sm:$0xff] %vm547_vm2, %v536_v36 }
 0x14f   :  { %849 = shalt.err (!%p846_p0)
}
 0x150   :  { %s850_s26 = scalar_lea.hbm %s1118_s3, 8192 }
 0x151   :  { %p851_p1 = scmp.ne.s32.totalorder %s1118_s3, %s850_s26  ;;  %p854_p2 = scmp.lt.u32.totalorder %s850_s26, %s1118_s3 }
 0x153   :  { %p856_p3 = pnand %p854_p2, %p851_p1 }
 0x155   :  { %859 = shalt.err (!%p856_p3)
}
 0x156   :  { %623 = dma.vmem_to_hbm [thread:$0]  %s618_s22, 8192, %s1118_s3, [#allocation4], %s868_s1, %s868_s1, %s869_s7  }
 0x157   :  { %864 = dma.done.wait [#allocation4], 8192  }
 0x158   :  { %865 = vsyncadd [#allocation4], 4294959104 }
 0x159   :  { %627 = vsyncpa [#allocation3], 1 }
 0x15a   :  { %628 = vsyncpa [#allocation6], 1 }
 0x15b   :  { %629 = vsyncpa [#allocation4], 1 }

// kernel: rlfb_forward.13
= control target key start
LH: loop header
LB: loop body
LE: loop exit
PB: predicated region body
PF: predicated region fallthrough
CT: control target
= control target key end

     0   :  { %6 = vsyncpa [#allocation3], 0  ;;  %s573_s0 = inlined_call_operand.hbm [shape: f32[2,7,7,16], index: 0, kind: input, shape index: {}]   ;;  %s574_s1 = inlined_call_operand.hbm [shape: f32[2,1,1,16], index: 1, kind: output, shape index: {}]  }
   0x1   :  { %8 = vsyncpa [#allocation3 + $0x1], 0 }
   0x2   :  { %9 = vsyncpa [#allocation4], 0 }
   0x3   :  { %11 = vsyncpa [#allocation4 + $0x1], 0  ;;  %s418_s6 = smov 0   ;;  %s420_s7 = smov 0  }
   0x4   :  { %s422_s8 = smov 0   ;;  %s424_s9 = smov 0  }
   0x5 LB: > { %s439_s10 = sadd.s32 4294967295, %s402_s9   ;;  %s247_s11 = sadd.s32 4294967294, %s402_s9   ;;  %s402_s9 = sphi %s424_s9, %s586_s9   ;;  %s398_s8 = sphi %s422_s8, %s585_s8   ;;  %s394_s7 = sphi %s420_s7, %s584_s7   ;;  %s390_s6 = sphi %s418_s6, %s583_s6  }
   0x6   : > { %s443_s12 = sadd.s32 1, %s402_s9   ;;  %s24_s13 = sadd.s32 1, %s398_s8 }
   0x7   : > { %s21_s14 = ssub.s32 %s402_s9, %s443_s12  ;;  %p31_p0 = scmp.ne.s32.totalorder %s398_s8, %s394_s7 }
   0x8   : > { %p22_p1 = scmp.eq.s32.totalorder %s21_s14, 0  ;;  %p32_p2 = scmp.eq.s32.totalorder %s402_s9, 0 }
   0x9   : > { %p37_p3 = scmp.ne.s32.totalorder %s394_s7, %s390_s6  ;;  %p38_p4 = scmp.eq.s32.totalorder %s439_s10, 0 }
   0xa   : > { %s455_s15 = scalar_select %p22_p1, %s398_s8, %s24_s13  }
   0xb   : > { %p33_p5 = por %p32_p2, %p31_p0  ;;  %p457_p6 = por %p38_p4, %p37_p3 }
   0xc   : > { %p61_p7 = scmp.eq.s32.totalorder %s439_s10, 1  ;;  %p67_p8 = scmp.eq.s32.totalorder %s247_s11, 1 }
   0xd   : > { %p270_p10 = scmp.lt.s32.totalorder %s402_s9, 2  ;;  %s87_s19 = sand.u32 1, %s398_s8  }
   0xe   : > { %p464_p11 = por %p61_p7, %p31_p0  ;;  %p468_p12 = por %p67_p8, %p37_p3 }
   0xf   : > { %s256_s20 = smul.u32 896, %s402_s9  ;;  %p479_p13 = pnand %p270_p10, %p33_p5 }
  0x10   : > { %s577_s17 = scalar_select %p464_p11, 1, 0 }
  0x11   : > { %s578_s18 = scalar_select %p468_p12, 1, 0 }
  0x12   : > { %s255_s21 = smul.u32 56, %s87_s19  ;;  %s477_s24 = scalar_lea.hbm %s573_s0, %s256_s20 }
  0x13   : > { %s485_s28 = scalar_lea.sflag [#allocation3], %s87_s19  ;;  %s306_s29 = scalar_lea.hbm %s477_s24, 896 }
  0x14   : > { %s91_s26 = scalar_lea.vmem [#allocation2], %s255_s21  ;;  %p307_p0 = scmp.ne.s32.totalorder %s477_s24, %s306_s29 }
  0x15   : > { %s98_s27 = sshll.u32 %s91_s26, 4  ;;  %p308_p1 = pneg %p479_p13  ;;  %s483_s27 = int_to_ptr.vmem [resolvable:$true] %s98_s27 }
  0x16   : > { %s311_s3 = scalar_lea.hbm %s573_s0, 1792  ;;  %p312_p4 = scmp.lt.u32.totalorder %s477_s24, %s573_s0 }
  0x17   : > { %p309_p2 = pnand %p308_p1, %p307_p0  ;;  %p313_p5 = scmp.lt.u32.totalorder %s311_s3, %s306_s29 }
  0x18   : > { %p315_p8 = scmp.lt.u32.totalorder %s306_s29, %s477_s24 }
  0x19   : > { %p310_p3 = pneg %p309_p2  ;;  %p314_p7 = por %p313_p5, %p312_p4 }
  0x1b   : > { %p316_p10 = por %p315_p8, %p314_p7 }
  0x1d   : > { %p317_p9 = pnand %p316_p10, %p310_p3 }
  0x1f   : > { %320 = shalt.err (!%p317_p9)
}
  0x20   : > { %s321_s11 = scalar_lea.vmem %s483_s27, 896  ;;  %s404_s13 = smov [#allocation2]  }
  0x21   : > { %p322_p0 = scmp.ne.s32.totalorder %s483_s27, %s321_s11  ;;  %s326_s14 = sshll.u32 %s404_s13, 4  ;;  %s327_s14 = int_to_ptr.vmem [resolvable:$false] %s326_s14 }
  0x22   : > { %s328_s19 = scalar_lea.vmem %s327_s14, 1792  ;;  %p329_p11 = scmp.lt.s32.totalorder %s483_s27, %s327_s14 }
  0x23   : > { %p324_p2 = pnand %p322_p0, %p308_p1  ;;  %p330_p4 = scmp.lt.s32.totalorder %s328_s19, %s321_s11 }
  0x25   : > { %p325_p12 = pneg %p324_p2  ;;  %p331_p5 = por %p330_p4, %p329_p11 }
  0x27   : > { %p332_p7 = pnand %p331_p5, %p325_p12 }
  0x29   : > { %335 = shalt.err (!%p332_p7)
}
  0x2a   : > { %s405_s20 = smov 128   ;;  %s406_s21 = smov 8  }
  0x2b   : > { %265 = dma.hbm_to_vmem [thread:$0]  (!%p479_p13), %s477_s24, 896, %s483_s27, %s485_s28, %s405_s20, %s405_s20, %s406_s21  }
  0x2c   : > { %p251_p9 = scmp.ge.s32.totalorder %s402_s9, 1  ;;  %p106_p1 = scmp.lt.s32.totalorder %s402_s9, 3 }
  0x2e   : > { %p107_p3 = pnand %p251_p9, %p106_p1 }
  0x2f   : > { %s516_s22 = sand.u32 (!%p107_p3), 1, %s394_s7  }
  0x30   : > { %110 = sbr.rel (%p107_p3) target bundleno = 97 (0x61), region = 24  ;;  %s113_s26 = scalar_lea.sflag (!%p107_p3), [#allocation3], %s516_s22 }
  0x31   : > { %s257_s23 = smul.u32 (!%p107_p3), 56, %s516_s22 }
  0x33   : > { %s116_s29 = scalar_lea.vmem (!%p107_p3), [#allocation2], %s257_s23 }
  0x37   : > { %381 = dma.done.wait (%p457_p6), %s113_s26, 896  }
  0x38   : > { %383 = vsyncadd (%p457_p6), %s113_s26, 4294966400  ;;  %v134_v0 = vld [vmem:[%s116_s29] sm:$0x7f]  ;;  %v135_v1 = vld [vmem:[%s116_s29 + $0x8] sm:$0x7f]  ;;  %s133_s16 = scalar_lea.vmem [#allocation5], %s516_s22 }
  0x39   : > { %v136_v2 = vld [vmem:[%s116_s29 + $0x10] sm:$0x7f]  ;;  %v141_v3 = vmax.f32 %v134_v0, %v135_v1  ;;  %v137_v4 = vld [vmem:[%s116_s29 + $0x18] sm:$0x7f]  ;;  %v138_v6 = vld [vmem:[%s116_s29 + $0x20] sm:$0x7f] }
  0x3a   : > { %v139_v8 = vld [vmem:[%s116_s29 + $0x28] sm:$0x7f]  ;;  %v140_v10 = vld [vmem:[%s116_s29 + $0x30] sm:$0x7f]  ;;  %s181_s24 = sshll.u32 %s133_s16, 4  ;;  %s252_s25 = sshll.u32 %s439_s10, 4  ;;  %s526_s24 = int_to_ptr.vmem [resolvable:$true] %s181_s24 }
  0x3b   : > { %v142_v5 = vmax.f32 %v141_v3, %v136_v2  ;;  %vm166_vm0 = vcmask 122880   ;;  %s531_s30 = scalar_lea.hbm %s574_s1, %s252_s25  ;;  %s169_s2 = scalar_lea.sflag [#allocation4], %s516_s22 }
  0x3c   : > { %s336_s3 = scalar_lea.vmem %s526_s24, 16  ;;  %p580_p11 = scmp.ne.s32.totalorder %s577_s17, 0 }
  0x3d   : > { %v143_v7 = vmax.f32 %v142_v5, %v137_v4  ;;  %p337_p6 = scmp.ne.s32.totalorder %s526_s24, %s336_s3  ;;  %s407_s10 = smov [#allocation5]  }
  0x3e   : > { %s340_s4 = sshll.u32 %s407_s10, 4  ;;  %s341_s4 = int_to_ptr.vmem [resolvable:$false] %s340_s4 }
  0x3f   : > { %v144_v9 = vmax.f32 %v143_v7, %v138_v6  ;;  %p338_p12 = pnand %p337_p6, %p580_p11  ;;  %s342_s5 = scalar_lea.vmem %s341_s4, 32 }
  0x40   : > { %p343_p8 = scmp.lt.s32.totalorder %s526_s24, %s341_s4  ;;  %p344_p10 = scmp.lt.s32.totalorder %s342_s5, %s336_s3 }
  0x41   : > { %v145_v11 = vmax.f32 %v144_v9, %v139_v8  ;;  %p339_p13 = pneg %p338_p12 }
  0x42   : > { %p345_p0 = por %p344_p10, %p343_p8 }
  0x43   : > { %v146_v12 = vmax.f32 %v145_v11, %v140_v10 }
  0x44   : > { %p346_p2 = pnand %p345_p0, %p339_p13 }
  0x45   : > { %v148_v13 = vrot.slane %v146_v12, 1  ;;  %v151_v14 = vrot.slane %v146_v12, 2  ;;  %v154_v16 = vrot.slane %v146_v12, 3  ;;  %v157_v18 = vrot.slane %v146_v12, 4 }
  0x46   : > { %v160_v20 = vrot.slane %v146_v12, 5  ;;  %v163_v22 = vrot.slane %v146_v12, 6 }
  0x47   : > { %v150_v15 = vmax.f32 %v146_v12, %v148_v13 }
  0x49   : > { %v153_v17 = vmax.f32 %v150_v15, %v151_v14 }
  0x4b   : > { %v156_v19 = vmax.f32 %v153_v17, %v154_v16 }
  0x4d   : > { %v159_v21 = vmax.f32 %v156_v19, %v157_v18 }
  0x4f   : > { %v162_v23 = vmax.f32 %v159_v21, %v160_v20 }
  0x51   : > { %v165_v24 = vmax.f32 %v162_v23, %v163_v22 }
  0x53   : > { %167 = vst.msk [vmem:[%s133_s16] sm:$0x1] %vm166_vm0, %v165_v24 }
  0x54   : > { %349 = shalt.err (!%p346_p2)
}
  0x55   : > { %s350_s11 = scalar_lea.hbm %s531_s30, 16  ;;  %s354_s19 = scalar_lea.hbm %s574_s1, 32 }
  0x56   : > { %p351_p4 = scmp.ne.s32.totalorder %s531_s30, %s350_s11  ;;  %p355_p9 = scmp.lt.u32.totalorder %s531_s30, %s574_s1 }
  0x57   : > { %p356_p1 = scmp.lt.u32.totalorder %s354_s19, %s350_s11  ;;  %p358_p6 = scmp.lt.u32.totalorder %s350_s11, %s531_s30 }
  0x58   : > { %p352_p5 = pnand %p351_p4, %p580_p11 }
  0x59   : > { %p357_p3 = por %p356_p1, %p355_p9 }
  0x5a   : > { %p353_p7 = pneg %p352_p5 }
  0x5b   : > { %p359_p12 = por %p358_p6, %p357_p3 }
  0x5d   : > { %p360_p13 = pnand %p359_p12, %p353_p7 }
  0x5f   : > { %363 = shalt.err (!%p360_p13)
}
  0x60   : > { %260 = dma.vmem_to_hbm [thread:$0]  (%p580_p11), %s526_s24, 16, %s531_s30, %s169_s2  }
  0x61 PF: > { %s193_s22 = sand.u32 1, %s390_s6   ;;  %p581_p8 = scmp.ne.s32.totalorder %s578_s18, 0 }
  0x62   : > { %p582_p10 = scmp.ge.s32.totalorder %s402_s9, 2  ;;  %s194_s23 = scalar_lea.sflag [#allocation4], %s193_s22 }
  0x64   : > { %p267_p0 = pnand %p582_p10, %p581_p8 }
  0x66   : > { %385 = dma.done.wait (!%p267_p0), %s194_s23, 16  }
  0x67   : > { %387 = vsyncadd (!%p267_p0), %s194_s23, 4294967280  ;;  %p14_p2 = scmp.ge.s32.totalorder %s443_s12, 4   ;;  %s583_s6 = smov %s394_s7 }
  0x68   : > { %s584_s7 = smov %s398_s8  ;;  %s585_s8 = smov %s455_s15 }
  0x69   : > { %s586_s9 = smov %s443_s12  ;;  %16 = sbr.rel (!%p14_p2) target bundleno = 5 (0x5), region = 69 }
  0x70   :  { %198 = vsyncpa [#allocation3], 1 }
  0x71   :  { %200 = vsyncpa [#allocation3 + $0x1], 1 }
  0x72   :  { %201 = vsyncpa [#allocation4], 1 }
  0x73   :  { %203 = vsyncpa [#allocation4 + $0x1], 1 }

// kernel: rlfb_forward.8
= control target key start
LH: loop header
LB: loop body
LE: loop exit
PB: predicated region body
PF: predicated region fallthrough
CT: control target
= control target key end

     0   :  { %s5942_s0 = inlined_call_operand.hbm [shape: f32[2,16,16,4], index: 0, kind: input, shape index: {}]   ;;  %s5943_s1 = inlined_call_operand.hbm [shape: f32[2,16,16,4], index: 1, kind: input, shape index: {}]   ;;  %s5944_s2 = inlined_call_operand.hbm [shape: bf16[9,8,4], index: 2, kind: input, shape index: {}]   ;;  %s5945_s3 = inlined_call_operand.hbm [shape: f32[1,4], index: 3, kind: input, shape index: {}]   ;;  %s5946_s4 = inlined_call_operand.hbm [shape: f32[2,256,4], index: 4, kind: output, shape index: {}]  }
   0x1   :  { %5950 = sst [smem:[#allocation17_spill]] %s5942_s0 }
   0x2   :  { %9 = vsyncpa [#allocation4], 0 }
   0x3   :  { %11 = vsyncpa [#allocation4 + $0x1], 0 }
   0x4   :  { %12 = vsyncpa [#allocation7], 0 }
   0x5   :  { %14 = vsyncpa [#allocation7 + $0x1], 0 }
   0x6   :  { %15 = vsyncpa [#allocation10], 0 }
   0x7   :  { %16 = vsyncpa [#allocation5], 0 }
   0x8   :  { %18 = vsyncpa [#allocation5 + $0x1], 0  ;;  %s4752_s15 = smov 0   ;;  %s4754_s16 = smov 0  }
   0x9   :  { %s4756_s17 = smov 0   ;;  %s4758_s18 = smov 0  }
   0xa LB: > { %s4773_s19 = sadd.s32 4294967295, %s4712_s18   ;;  %s3541_s20 = sadd.s32 4294967294, %s4712_s18   ;;  %s4712_s18 = sphi %s4758_s18, %s5970_s18   ;;  %s4708_s17 = sphi %s4756_s17, %s5969_s17   ;;  %s4704_s16 = sphi %s4754_s16, %s5968_s16   ;;  %s4700_s15 = sphi %s4752_s15, %s5967_s15  }
   0xb   : > { %p44_p0 = scmp.ne.s32.totalorder %s4704_s16, %s4700_s15  ;;  %p5947_p1 = scmp.eq.s32.totalorder %s4773_s19, 0 }
   0xc   : > { %p142_p3 = scmp.eq.s32.totalorder %s3541_s20, 1  ;;  %p3542_p5 = scmp.ge.s32.totalorder %s4712_s18, 1 }
   0xd   : > { %p4782_p4 = por %p5947_p1, %p44_p0  ;;  %p149_p7 = scmp.lt.s32.totalorder %s4712_s18, 3 }
   0xe   : > { %p4787_p6 = por %p142_p3, %p44_p0  ;;  %s4714_s24 = smov [#allocation8]  }
   0xf   : > { %s5951_s21 = scalar_select %p4782_p4, 1, 0 }
  0x10   : > { %s5952_s22 = scalar_select %p4787_p6, 1, 0 }
  0x11   : > { %p4792_p8 = pnand %p3542_p5, %p149_p7  ;;  %s161_s25 = sshll.u32 %s4714_s24, 4  ;;  %s4796_s25 = int_to_ptr.vmem [resolvable:$true] %s161_s25 }
  0x12   : > { %s4715_s27 = smov [#allocation9]   ;;  %s4518_s5 = scalar_lea.hbm %s5944_s2, 576 }
  0x13   : > { %p4452_p9 = pneg %p4792_p8  ;;  %s175_s28 = sshll.u32 %s4715_s27, 4  ;;  %s4807_s28 = int_to_ptr.vmem [resolvable:$true] %s175_s28 }
  0x14   : > { %p4519_p12 = scmp.ne.s32.totalorder %s5944_s2, %s4518_s5  ;;  %p4525_p5 = scmp.lt.u32.totalorder %s4518_s5, %s5944_s2 }
  0x15   : > { %p4803_p11 = pnand %p4452_p9, %p5947_p1 }
  0x17   : > { %p4520_p13 = pneg %p4803_p11 }
  0x19   : > { %p4521_p0 = pnand %p4520_p13, %p4519_p12 }
  0x1b   : > { %p4522_p3 = pneg %p4521_p0 }
  0x1d   : > { %p4527_p7 = pnand %p4525_p5, %p4522_p3 }
  0x1f   : > { %4530 = shalt.err (!%p4527_p7)
}
  0x20   : > { %s4531_s10 = scalar_lea.vmem %s4796_s25, 576  ;;  %p4539_p2 = scmp.lt.s32.totalorder %s4796_s25, %s4796_s25 }
  0x21   : > { %p4532_p9 = scmp.ne.s32.totalorder %s4796_s25, %s4531_s10  ;;  %p4540_p12 = scmp.lt.s32.totalorder %s4531_s10, %s4531_s10 }
  0x23   : > { %p4534_p10 = pnand %p4532_p9, %p4520_p13  ;;  %p4541_p0 = por %p4540_p12, %p4539_p2 }
  0x25   : > { %p4535_p1 = pneg %p4534_p10 }
  0x27   : > { %p4542_p6 = pnand %p4541_p0, %p4535_p1 }
  0x29   : > { %4545 = shalt.err (!%p4542_p6)
}
  0x2a   : > { %s4716_s11 = smov 64   ;;  %s4717_s12 = smov 4  }
  0x2b   : > { %4455 = dma.hbm_to_vmem [thread:$0]  (!%p4803_p11), %s5944_s2, 576, %s4796_s25, [#allocation7], %s4716_s11, %s4716_s11, %s4717_s12  }
  0x2c   : > { %s4546_s27 = scalar_lea.hbm %s5945_s3, 16 }
  0x2d   : > { %p4547_p2 = scmp.ne.s32.totalorder %s5945_s3, %s4546_s27  ;;  %p4553_p10 = scmp.lt.u32.totalorder %s4546_s27, %s5945_s3 }
  0x2f   : > { %p4549_p1 = pnand %p4547_p2, %p4520_p13 }
  0x31   : > { %p4550_p6 = pneg %p4549_p1 }
  0x33   : > { %p4555_p3 = pnand %p4553_p10, %p4550_p6 }
  0x35   : > { %4558 = shalt.err (!%p4555_p3)
}
  0x36   : > { %s4559_s25 = scalar_lea.vmem %s4807_s28, 16  ;;  %s4566_s7 = scalar_lea.vmem %s4807_s28, 32 }
  0x37   : > { %p4560_p5 = scmp.ne.s32.totalorder %s4807_s28, %s4559_s25  ;;  %p4567_p12 = scmp.lt.s32.totalorder %s4807_s28, %s4807_s28 }
  0x38   : > { %p4568_p0 = scmp.lt.s32.totalorder %s4566_s7, %s4559_s25 }
  0x39   : > { %p4562_p7 = pnand %p4560_p5, %p4520_p13 }
  0x3a   : > { %p4569_p2 = por %p4568_p0, %p4567_p12 }
  0x3b   : > { %p4563_p9 = pneg %p4562_p7 }
  0x3d   : > { %p4570_p1 = pnand %p4569_p2, %p4563_p9 }
  0x3f   : > { %4573 = shalt.err (!%p4570_p1)
}
  0x40   : > { %4458 = dma.hbm_to_vmem [thread:$0]  (!%p4803_p11), %s5945_s3, 16, %s4807_s28, [#allocation10]  }
  0x41   : > { %s4863_s10 = sadd.s32 1, %s4712_s18   ;;  %s31_s26 = sadd.s32 1, %s4708_s17 }
  0x42   : > { %s28_s11 = ssub.s32 %s4712_s18, %s4863_s10  ;;  %p38_p13 = scmp.ne.s32.totalorder %s4708_s17, %s4704_s16 }
  0x43   : > { %p29_p6 = scmp.eq.s32.totalorder %s28_s11, 0  ;;  %p39_p10 = scmp.eq.s32.totalorder %s4712_s18, 0 }
  0x44   : > { %p5955_p3 = scmp.eq.s32.totalorder %s4773_s19, 1  ;;  %p4472_p7 = scmp.lt.s32.totalorder %s4712_s18, 2 }
  0x45   : > { %s4879_s13 = scalar_select %p29_p6, %s4708_s17, %s31_s26  }
  0x46   : > { %p4873_p5 = por %p5955_p3, %p38_p13  ;;  %p40_p9 = por %p39_p10, %p38_p13 }
  0x47   : > { %s186_s14 = sand.u32 1, %s4708_s17   ;;  %s3708_s28 = sshll.u32 %s4712_s18, 12 }
  0x48   : > { %s5956_s12 = scalar_select %p4873_p5, 1, 0 }
  0x49   : > { %s4882_s20 = sshll.u32 %s186_s14, 8  ;;  %s5957_s0 = sld [smem:[#allocation17_spill]] }
  0x4a   : > { %s190_s30 = scalar_lea.vmem [#allocation3], %s4882_s20  ;;  %p4895_p11 = pnand %p4472_p7, %p40_p9 }
  0x4b   : > { %s197_s5 = sshll.u32 %s190_s30, 4  ;;  %s4899_s25 = scalar_lea.sflag [#allocation4], %s186_s14  ;;  %s4893_s5 = int_to_ptr.vmem [resolvable:$true] %s197_s5 }
  0x4c   : > { %p4576_p0 = pneg %p4895_p11 }
  0x4f   : > { %s4890_s29 = scalar_lea.hbm %s5957_s0, %s3708_s28  ;;  %s4579_s26 = scalar_lea.hbm %s5957_s0, 8192 }
  0x50   : > { %s4574_s7 = scalar_lea.hbm %s4890_s29, 4096  ;;  %p4580_p13 = scmp.lt.u32.totalorder %s4890_s29, %s5957_s0 }
  0x51   : > { %p4575_p12 = scmp.ne.s32.totalorder %s4890_s29, %s4574_s7  ;;  %p4581_p6 = scmp.lt.u32.totalorder %s4579_s26, %s4574_s7 }
  0x52   : > { %p4583_p3 = scmp.lt.u32.totalorder %s4574_s7, %s4890_s29 }
  0x53   : > { %p4577_p2 = pnand %p4576_p0, %p4575_p12  ;;  %p4582_p10 = por %p4581_p6, %p4580_p13 }
  0x55   : > { %p4578_p1 = pneg %p4577_p2  ;;  %p4584_p7 = por %p4583_p3, %p4582_p10 }
  0x57   : > { %p4585_p9 = pnand %p4584_p7, %p4578_p1 }
  0x59   : > { %4588 = shalt.err (!%p4585_p9)
}
  0x5a   : > { %s4589_s14 = scalar_lea.vmem %s4893_s5, 4096  ;;  %s4718_s27 = smov [#allocation3]  }
  0x5b   : > { %p4590_p12 = scmp.ne.s32.totalorder %s4893_s5, %s4589_s14  ;;  %s4594_s30 = sshll.u32 %s4718_s27, 4  ;;  %s4595_s30 = int_to_ptr.vmem [resolvable:$false] %s4594_s30 }
  0x5c   : > { %s4596_s8 = scalar_lea.vmem %s4595_s30, 8192  ;;  %p4597_p4 = scmp.lt.s32.totalorder %s4893_s5, %s4595_s30 }
  0x5d   : > { %p4592_p2 = pnand %p4590_p12, %p4576_p0  ;;  %p4598_p13 = scmp.lt.s32.totalorder %s4596_s8, %s4589_s14 }
  0x5f   : > { %p4593_p5 = pneg %p4592_p2  ;;  %p4599_p6 = por %p4598_p13, %p4597_p4 }
  0x61   : > { %p4600_p10 = pnand %p4599_p6, %p4593_p5 }
  0x63   : > { %4603 = shalt.err (!%p4600_p10)
}
  0x64   : > { %s4719_s7 = smov 128   ;;  %s4720_s9 = smov 8  }
  0x65   : > { %4462 = dma.hbm_to_vmem [thread:$0]  (!%p4895_p11), %s4890_s29, 4096, %s4893_s5, %s4899_s25, %s4719_s7, %s4719_s7, %s4720_s9  }
  0x66   : > { %s4935_s24 = scalar_lea.hbm %s5943_s1, %s3708_s28  ;;  %s211_s14 = scalar_lea.vmem [#allocation6], %s4882_s20 }
  0x67   : > { %s218_s27 = sshll.u32 %s211_s14, 4  ;;  %s207_s30 = sand.u32 1, %s4712_s18   ;;  %s4938_s27 = int_to_ptr.vmem [resolvable:$true] %s218_s27 }
  0x68   : > { %s4941_s8 = scalar_lea.sflag [#allocation7], %s207_s30  ;;  %s4604_s0 = scalar_lea.hbm %s4935_s24, 4096 }
  0x69   : > { %p4605_p4 = scmp.ne.s32.totalorder %s4935_s24, %s4604_s0  ;;  %s4609_s5 = scalar_lea.hbm %s5943_s1, 8192 }
  0x6a   : > { %p4610_p3 = scmp.lt.u32.totalorder %s4935_s24, %s5943_s1  ;;  %p4611_p7 = scmp.lt.u32.totalorder %s4609_s5, %s4604_s0 }
  0x6b   : > { %p4607_p5 = pnand %p4605_p4, %p4576_p0  ;;  %p4613_p12 = scmp.lt.u32.totalorder %s4604_s0, %s4935_s24 }
  0x6c   : > { %p4612_p9 = por %p4611_p7, %p4610_p3 }
  0x6d   : > { %p4608_p1 = pneg %p4607_p5 }
  0x6e   : > { %p4614_p2 = por %p4613_p12, %p4612_p9 }
  0x70   : > { %p4615_p13 = pnand %p4614_p2, %p4608_p1 }
  0x72   : > { %4618 = shalt.err (!%p4615_p13)
}
  0x73   : > { %s4619_s20 = scalar_lea.vmem %s4938_s27, 4096  ;;  %s4721_s11 = smov [#allocation6]  }
  0x74   : > { %p4620_p6 = scmp.ne.s32.totalorder %s4938_s27, %s4619_s20  ;;  %s4624_s14 = sshll.u32 %s4721_s11, 4  ;;  %s4625_s14 = int_to_ptr.vmem [resolvable:$false] %s4624_s14 }
  0x75   : > { %s4626_s30 = scalar_lea.vmem %s4625_s14, 8192  ;;  %p4627_p5 = scmp.lt.s32.totalorder %s4938_s27, %s4625_s14 }
  0x76   : > { %p4622_p10 = pnand %p4620_p6, %p4576_p0  ;;  %p4628_p3 = scmp.lt.s32.totalorder %s4626_s30, %s4619_s20 }
  0x78   : > { %p4623_p4 = pneg %p4622_p10  ;;  %p4629_p7 = por %p4628_p3, %p4627_p5 }
  0x7a   : > { %p4630_p9 = pnand %p4629_p7, %p4623_p4 }
  0x7c   : > { %4633 = shalt.err (!%p4630_p9)
}
  0x7d   : > { %4465 = dma.hbm_to_vmem [thread:$0]  (!%p4895_p11), %s4935_s24, 4096, %s4938_s27, %s4941_s8, %s4719_s7, %s4719_s7, %s4720_s9  }
  0x7e   : > { %230 = sbr.rel (%p4792_p8) target bundleno = 794 (0x31a), region = 36  ;;  %s4973_s0 = sand.u32 (!%p4792_p8), 1, %s4704_s16  }
  0x7f   : > { %s4976_s29 = sshll.u32 (!%p4792_p8), %s4973_s0, 8  ;;  %s233_s6 = scalar_lea.sflag (!%p4792_p8), [#allocation4], %s4973_s0 }
  0x80   : > { %s4980_s28 = scalar_lea.vmem (!%p4792_p8), [#allocation3], %s4976_s29  ;;  %p5959_p0 = scmp.ne.s32.totalorder (!%p4792_p8), %s5951_s21, 0 }
  0x85   : > { %4679 = dma.done.wait (%p5959_p0), %s233_s6, 4096  }
  0x86   : > { %4681 = vsyncadd (%p5959_p0), %s233_s6, 4294963200  ;;  %s241_s23 = sand.u32 1, %s4773_s19   ;;  %s4988_s9 = scalar_lea.vmem [#allocation6], %s4976_s29 }
  0x87   : > { %s242_s7 = scalar_lea.sflag [#allocation7], %s241_s23 }
  0x88   : > { %4683 = dma.done.wait (%p5959_p0), %s242_s7, 4096  }
  0x89   : > { %4685 = vsyncadd (%p5959_p0), %s242_s7, 4294963200  ;;  %p5960_p8 = scmp.eq.s32.totalorder %s4773_s19, 0 }
  0x8b   : > { %4687 = dma.done.wait (%p5960_p8), [#allocation7], 576   ;;  %p5961_p11 = pmov %p5960_p8 }
  0x8c   : > { %p5962_p1 = pmov %p5960_p8 }
  0x8d   : > { %4689 = vsyncadd (%p5961_p11), [#allocation7], 4294966720 }
  0x8e   : > { %4691 = dma.done.wait (%p5962_p1), [#allocation10], 16   ;;  %p5963_p12 = pmov %p5962_p1 }
  0x8f   : > { %vm412_vm0 = vcmask 64512   ;;  %v4722_v0 = vmov 0.0   ;;  %vm415_vm1 = vcmask 58368   ;;  %vm809_vm2 = vcmask 1043456   ;;  %v5057_v1 = vld [vmem:[%s4988_s9 + $0x10] sm:$0xff]  ;;  %v5060_v2 = vld [vmem:[%s4988_s9] sm:$0xff] }
  0x90   : > { %4693 = vsyncadd (%p5963_p12), [#allocation10], 4294967280  ;;  %420 = vst.msk [vmem:[#allocation2 + $0x30] sm:$0xff] %vm412_vm0, %v4722_v0  ;;  %s4723_s21 = smov 4   ;;  %v760_v3 = vld [vmem:[#allocation8 + $0x4] sm:$0xf] }
  0x91   : > { %421 = vst.msk [vmem:[#allocation2 + $0x38] sm:$0xff] %vm412_vm0, %v4722_v0  ;;  %413 = vst.msk [vmem:[#allocation2] sm:$0xff] %vm412_vm0, %v4722_v0  ;;  %504 = vrot.lane.b32.xlu1 %v5057_v1, %s4723_s21  ;;  %500 = vrot.lane.b32.xlu0 %v5060_v2, %s4723_s21  ;;  %v5067_v4 = vld [vmem:[%s4988_s9 + $0x18] sm:$0xff]  ;;  %v5070_v5 = vld [vmem:[%s4988_s9 + $0x8] sm:$0xff]  ;;  %v811_v6 = vsel %vm809_vm2, %v760_v3, 0  ;;  %vm596_vm3 = vcmask 31744  }
  0x92   : > { %414 = vst.msk [vmem:[#allocation2 + $0x8] sm:$0xff] %vm412_vm0, %v4722_v0  ;;  %417 = vst.msk [vmem:[#allocation2 + $0x18] sm:$0xff] %vm412_vm0, %v4722_v0  ;;  %4428 = vmatprep.subr.msk.bf16.mxu1 %vm809_vm2, %v760_v3  ;;  %v5078_v7 = vld [vmem:[#allocation8 + $0x10] sm:$0xf]  ;;  %v5081_v8 = vld [vmem:[%s4988_s9 + $0x28] sm:$0xff]  ;;  %s5789_s24 = scalar_lea.vmem [#allocation11], %s4976_s29 }
  0x93   : > { %418 = vst.msk [vmem:[#allocation2 + $0x20] sm:$0xff] %vm412_vm0, %v4722_v0  ;;  %423 = vst.msk [vmem:[#allocation2 + $0x48] sm:$0xff] %vm412_vm0, %v4722_v0  ;;  %3865 = vmatpush3.bf16.msra.mxu1 %v811_v6  ;;  %v5084_v9 = vld [vmem:[%s4988_s9 + $0x20] sm:$0xff]  ;;  %4432 = vmatprep.subr.msk.bf16.mxu0 %vm809_vm2, %v5078_v7  ;;  %v5090_v10 = vsel %vm809_vm2, %v5078_v7, 0  ;;  %v5098_v11 = vld [vmem:[%s4988_s9 + $0x38] sm:$0xff]  ;;  %s3710_s27 = sshll.u32 %s4773_s19, 12 }
  0x94   : > { %424 = vst.msk [vmem:[#allocation2 + $0x50] sm:$0xff] %vm412_vm0, %v4722_v0  ;;  %426 = vst.msk [vmem:[#allocation2 + $0x60] sm:$0xff] %vm412_vm0, %v4722_v0  ;;  %4001 = vmatpush3.bf16.msra.mxu0 %v5090_v10  ;;  %v5101_v12 = vld [vmem:[%s4988_s9 + $0x30] sm:$0xff]  ;;  %v5108_v15 = vld [vmem:[%s4988_s9 + $0x48] sm:$0xff]  ;;  %s3426_s8 = sshll.u32 %s5789_s24, 4  ;;  %s5890_s19 = scalar_lea.hbm %s5946_s4, %s3710_s27  ;;  %s5892_s8 = int_to_ptr.vmem [resolvable:$true] %s3426_s8 }
  0x95   : > { %427 = vst.msk [vmem:[#allocation2 + $0x68] sm:$0xff] %vm412_vm0, %v4722_v0  ;;  %429 = vst.msk [vmem:[#allocation2 + $0x78] sm:$0xff] %vm412_vm0, %v4722_v0  ;;  %506 = vrot.lane.b32.xlu1 %v5067_v4, %s4723_s21  ;;  %502 = vrot.lane.b32.xlu0 %v5070_v5, %s4723_s21  ;;  %v5111_v16 = vld [vmem:[%s4988_s9 + $0x40] sm:$0xff]  ;;  %v5121_v19 = vld [vmem:[%s4988_s9 + $0x58] sm:$0xff]  ;;  %s3413_s26 = scalar_lea.sflag [#allocation5], %s4973_s0  ;;  %s4634_s20 = scalar_lea.vmem %s5892_s8, 4096 }
  0x96   : > { %430 = vst.msk [vmem:[#allocation2 + $0x80] sm:$0xff] %vm412_vm0, %v4722_v0  ;;  %432 = vst.msk [vmem:[#allocation2 + $0x90] sm:$0xff] %vm412_vm0, %v4722_v0  ;;  %v5118_v18 = vld [vmem:[#allocation8] sm:$0xf]  ;;  %v5124_v20 = vld [vmem:[%s4988_s9 + $0x50] sm:$0xff]  ;;  %p4635_p2 = scmp.ne.s32.totalorder %s5892_s8, %s4634_s20  ;;  %p5964_p13 = scmp.ne.s32.totalorder %s5956_s12, 0 }
  0x97   : > { %433 = vst.msk [vmem:[#allocation2 + $0x98] sm:$0xff] %vm412_vm0, %v4722_v0  ;;  %435 = vst.msk [vmem:[#allocation2 + $0xa8] sm:$0xff] %vm412_vm0, %v4722_v0  ;;  %4429 = vmatprep.subr.msk.bf16.mxu1 %vm809_vm2, %v5118_v18  ;;  %v5132_v21 = vld [vmem:[#allocation8 + $0x14] sm:$0xf]  ;;  %v5135_v22 = vld [vmem:[%s4988_s9 + $0x68] sm:$0xff]  ;;  %s4724_s11 = smov [#allocation11]  }
  0x98   : > { %436 = vst.msk [vmem:[#allocation2 + $0xb0] sm:$0xff] %vm412_vm0, %v4722_v0  ;;  %438 = vst.msk [vmem:[#allocation2 + $0xc0] sm:$0xff] %vm412_vm0, %v4722_v0  ;;  %v5138_v23 = vld [vmem:[%s4988_s9 + $0x60] sm:$0xff]  ;;  %4434 = vmatprep.subr.msk.bf16.mxu0 %vm809_vm2, %v5132_v21  ;;  %v5147_v24 = vld [vmem:[%s4988_s9 + $0x78] sm:$0xff]  ;;  %p4636_p6 = pnand %p4635_p2, %p5964_p13  ;;  %s4638_s14 = sshll.u32 %s4724_s11, 4  ;;  %s4639_s14 = int_to_ptr.vmem [resolvable:$false] %s4638_s14 }
  0x99   : > { %439 = vst.msk [vmem:[#allocation2 + $0xc8] sm:$0xff] %vm412_vm0, %v4722_v0  ;;  %441 = vst.msk [vmem:[#allocation2 + $0xd8] sm:$0xff] %vm412_vm0, %v4722_v0  ;;  %510 = vrot.lane.b32.xlu1 %v5081_v8, %s4723_s21  ;;  %508 = vrot.lane.b32.xlu0 %v5084_v9, %s4723_s21  ;;  %v711_v13 = vld [vmem:[#allocation2 + $0x1] sm:$0xff]  ;;  %v5157_v26 = vld [vmem:[%s4988_s9 + $0x88] sm:$0xff]  ;;  %s4640_s30 = scalar_lea.vmem %s4639_s14, 8192  ;;  %p4641_p4 = scmp.lt.s32.totalorder %s5892_s8, %s4639_s14 }
  0x9a   : > { %442 = vst.msk [vmem:[#allocation2 + $0xe0] sm:$0xff] %vm412_vm0, %v4722_v0  ;;  %444 = vst.msk [vmem:[#allocation2 + $0xf0] sm:$0xff] %vm412_vm0, %v4722_v0  ;;  %v5150_v25 = vld [vmem:[%s4988_s9 + $0x70] sm:$0xff]  ;;  %v5160_v27 = vld [vmem:[%s4988_s9 + $0x80] sm:$0xff]  ;;  %p4637_p10 = pneg %p4636_p6  ;;  %p4642_p5 = scmp.lt.s32.totalorder %s4640_s30, %s4634_s20 }
  0x9b   : > { %445 = vst.msk [vmem:[#allocation2 + $0xf8] sm:$0xff] %vm412_vm0, %v4722_v0  ;;  %447 = vst.msk [vmem:[#allocation2 + $0x108] sm:$0xff] %vm412_vm0, %v4722_v0  ;;  %v5167_v28 = vld [vmem:[%s4988_s9 + $0x98] sm:$0xff]  ;;  %v5170_v29 = vld [vmem:[%s4988_s9 + $0x90] sm:$0xff] }
  0x9c   : > { %448 = vst.msk [vmem:[#allocation2 + $0x110] sm:$0xff] %vm412_vm0, %v4722_v0  ;;  %450 = vst.msk [vmem:[#allocation2 + $0x120] sm:$0xff] %vm412_vm0, %v4722_v0  ;;  %v5177_v30 = vld [vmem:[%s4988_s9 + $0xa8] sm:$0xff]  ;;  %v5180_v31 = vld [vmem:[%s4988_s9 + $0xa0] sm:$0xff]  ;;  %p4643_p3 = por %p4642_p5, %p4641_p4 }
  0x9d   : > { %451 = vst.msk [vmem:[#allocation2 + $0x128] sm:$0xff] %vm412_vm0, %v4722_v0  ;;  %453 = vst.msk [vmem:[#allocation2 + $0x138] sm:$0xff] %vm412_vm0, %v4722_v0  ;;  %514 = vrot.lane.b32.xlu1 %v5098_v11, %s4723_s21  ;;  %512 = vrot.lane.b32.xlu0 %v5101_v12, %s4723_s21  ;;  %v5187_v32 = vld [vmem:[%s4988_s9 + $0xb8] sm:$0xff]  ;;  %v5190_v33 = vld [vmem:[%s4988_s9 + $0xb0] sm:$0xff] }
  0x9e   : > { %454 = vst.msk [vmem:[#allocation2 + $0x140] sm:$0xff] %vm412_vm0, %v4722_v0  ;;  %456 = vst.msk [vmem:[#allocation2 + $0x150] sm:$0xff] %vm412_vm0, %v4722_v0  ;;  %v5197_v34 = vld [vmem:[%s4988_s9 + $0xc8] sm:$0xff]  ;;  %v5200_v35 = vld [vmem:[%s4988_s9 + $0xc0] sm:$0xff]  ;;  %p4644_p7 = pnand %p4643_p3, %p4637_p10 }
  0x9f   : > { %457 = vst.msk [vmem:[#allocation2 + $0x158] sm:$0xff] %vm412_vm0, %v4722_v0  ;;  %459 = vst.msk [vmem:[#allocation2 + $0x168] sm:$0xff] %vm412_vm0, %v4722_v0  ;;  %v5207_v36 = vld [vmem:[%s4988_s9 + $0xd8] sm:$0xff]  ;;  %v5210_v37 = vld [vmem:[%s4988_s9 + $0xd0] sm:$0xff] }
  0xa0   : > { %460 = vst.msk [vmem:[#allocation2 + $0x170] sm:$0xff] %vm412_vm0, %v4722_v0  ;;  %462 = vst.msk [vmem:[#allocation2 + $0x180] sm:$0xff] %vm412_vm0, %v4722_v0  ;;  %v5217_v38 = vld [vmem:[%s4988_s9 + $0xe8] sm:$0xff]  ;;  %v5220_v39 = vld [vmem:[%s4988_s9 + $0xe0] sm:$0xff] }
  0xa1   : > { %463 = vst.msk [vmem:[#allocation2 + $0x188] sm:$0xff] %vm412_vm0, %v4722_v0  ;;  %465 = vst.msk [vmem:[#allocation2 + $0x198] sm:$0xff] %vm412_vm0, %v4722_v0  ;;  %518 = vrot.lane.b32.xlu1 %v5108_v15, %s4723_s21  ;;  %516 = vrot.lane.b32.xlu0 %v5111_v16, %s4723_s21  ;;  %v5227_v40 = vld [vmem:[%s4988_s9 + $0xf8] sm:$0xff]  ;;  %v5230_v41 = vld [vmem:[%s4988_s9 + $0xf0] sm:$0xff] }
  0xa2   : > { %466 = vst.msk [vmem:[#allocation2 + $0x1a0] sm:$0xff] %vm412_vm0, %v4722_v0  ;;  %v318_v42 = vld [vmem:[%s4980_s28 + $0x10] sm:$0xff]  ;;  %v316_v43 = vld [vmem:[%s4980_s28] sm:$0xff]  ;;  %v319_v46 = vld [vmem:[%s4980_s28 + $0x18] sm:$0xff] }
  0xa3   : > { %422 = vst.msk [vmem:[#allocation2 + $0x40] sm:$0x3] %vm415_vm1, %v4722_v0  ;;  %416 = vst.msk [vmem:[#allocation2 + $0x10] sm:$0x3] %vm415_vm1, %v4722_v0  ;;  %v350_v44 = vmul.f32 0.2, %v318_v42 }
  0xa4   : > { %419 = vst.msk [vmem:[#allocation2 + $0x28] sm:$0x3] %vm415_vm1, %v4722_v0  ;;  %425 = vst.msk [vmem:[#allocation2 + $0x58] sm:$0x3] %vm415_vm1, %v4722_v0  ;;  %v348_v45 = vmul.f32 0.2, %v316_v43 }
  0xa5   : > { %428 = vst.msk [vmem:[#allocation2 + $0x70] sm:$0x3] %vm415_vm1, %v4722_v0  ;;  %431 = vst.msk [vmem:[#allocation2 + $0x88] sm:$0x3] %vm415_vm1, %v4722_v0  ;;  %522 = vrot.lane.b32.xlu1 %v5121_v19, %s4723_s21  ;;  %520 = vrot.lane.b32.xlu0 %v5124_v20, %s4723_s21  ;;  %v317_v47 = vld [vmem:[%s4980_s28 + $0x8] sm:$0xff]  ;;  %v382_v49 = vadd.f32 %v350_v44, %v5057_v1  ;;  %v320_v53 = vld [vmem:[%s4980_s28 + $0x20] sm:$0xff] }
  0xa6   : > { %434 = vst.msk [vmem:[#allocation2 + $0xa0] sm:$0x3] %vm415_vm1, %v4722_v0  ;;  %437 = vst.msk [vmem:[#allocation2 + $0xb8] sm:$0x3] %vm415_vm1, %v4722_v0  ;;  %v351_v48 = vmul.f32 0.2, %v319_v46  ;;  %v380_v50 = vadd.f32 %v348_v45, %v5060_v2 }
  0xa7   : > { %440 = vst.msk [vmem:[#allocation2 + $0xd0] sm:$0x3] %vm415_vm1, %v4722_v0  ;;  %443 = vst.msk [vmem:[#allocation2 + $0xe8] sm:$0x3] %vm415_vm1, %v4722_v0  ;;  %v349_v51 = vmul.f32 0.2, %v317_v47 }
  0xa8   : > { %446 = vst.msk [vmem:[#allocation2 + $0x100] sm:$0x3] %vm415_vm1, %v4722_v0  ;;  %449 = vst.msk [vmem:[#allocation2 + $0x118] sm:$0x3] %vm415_vm1, %v4722_v0  ;;  %v321_v52 = vld [vmem:[%s4980_s28 + $0x28] sm:$0xff]  ;;  %v383_v54 = vadd.f32 %v351_v48, %v5067_v4  ;;  %v323_v60 = vld [vmem:[%s4980_s28 + $0x38] sm:$0xff] }
  0xa9   : > { %452 = vst.msk [vmem:[#allocation2 + $0x130] sm:$0x3] %vm415_vm1, %v4722_v0  ;;  %455 = vst.msk [vmem:[#allocation2 + $0x148] sm:$0x3] %vm415_vm1, %v4722_v0  ;;  %526 = vrot.lane.b32.xlu1 %v5135_v22, %s4723_s21  ;;  %524 = vrot.lane.b32.xlu0 %v5138_v23, %s4723_s21  ;;  %v353_v55 = vmul.f32 0.2, %v321_v52  ;;  %v381_v58 = vadd.f32 %v349_v51, %v5070_v5 }
  0xaa   : > { %458 = vst.msk [vmem:[#allocation2 + $0x160] sm:$0x3] %vm415_vm1, %v4722_v0  ;;  %461 = vst.msk [vmem:[#allocation2 + $0x178] sm:$0x3] %vm415_vm1, %v4722_v0  ;;  %v712_v14 = vld [vmem:[#allocation2 + $0x9] sm:$0xff]  ;;  %v322_v63 = vld [vmem:[%s4980_s28 + $0x30] sm:$0xff] }
  0xab   : > { %464 = vst.msk [vmem:[#allocation2 + $0x190] sm:$0x3] %vm415_vm1, %v4722_v0  ;;  %467 = vst.msk [vmem:[#allocation2 + $0x1a8] sm:$0x3] %vm415_vm1, %v4722_v0  ;;  %v743_v17 = vpack.c.bf16 %v712_v14, %v711_v13  ;;  %v352_v59 = vmul.f32 0.2, %v320_v53  ;;  %v385_v0 = vadd.f32 %v353_v55, %v5081_v8 }
  0xac   : > { %v355_v1 = vmul.f32 0.2, %v323_v60  ;;  %v354_v5 = vmul.f32 0.2, %v322_v63  ;;  %v325_v6 = vld [vmem:[%s4980_s28 + $0x48] sm:$0xff]  ;;  %v327_v46 = vld [vmem:[%s4980_s28 + $0x58] sm:$0xff] }
  0xad   : > { %3866 = vmatprep.mubr.msk.bf16.mxu1 %vm412_vm0, %v743_v17  ;;  %530 = vrot.lane.b32.xlu1 %v5147_v24, %s4723_s21  ;;  %v384_v4 = vadd.f32 %v352_v59, %v5084_v9  ;;  %v324_v17 = vld [vmem:[%s4980_s28 + $0x40] sm:$0xff]  ;;  %v357_v42 = vmul.f32 0.2, %v325_v6  ;;  %v329_v51 = vld [vmem:[%s4980_s28 + $0x68] sm:$0xff] }
  0xae   : > { %528 = vrot.lane.b32.xlu0 %v5150_v25, %s4723_s21  ;;  %v387_v8 = vadd.f32 %v355_v1, %v5098_v11  ;;  %v386_v9 = vadd.f32 %v354_v5, %v5101_v12  ;;  %v356_v45 = vmul.f32 0.2, %v324_v17  ;;  %v359_v11 = vmul.f32 0.2, %v327_v46  ;;  %v5280_v63 = vld [vmem:[#allocation8 + $0x8] sm:$0xf] }
  0xaf   : > { %v361_v1 = vmul.f32 0.2, %v329_v51  ;;  %v2167_v5 = vsel %vm809_vm2, %v5132_v21, 0 }
  0xb0   : > { %v388_v12 = vadd.f32 %v356_v45, %v5111_v16  ;;  %v1023_v16 = vsel %vm809_vm2, %v5118_v18, 0 }
  0xb1   : > { %534 = vrot.lane.b32.xlu1 %v5157_v26, %s4723_s21  ;;  %v393_v21 = vadd.f32 %v361_v1, %v5135_v22 }
  0xb2   : > { %532 = vrot.lane.b32.xlu0 %v5160_v27, %s4723_s21 }
  0xb5   : > { %538 = vrot.lane.b32.xlu1 %v5167_v28, %s4723_s21 }
  0xb6   : > { %536 = vrot.lane.b32.xlu0 %v5170_v29, %s4723_s21 }
  0xb9   : > { %542 = vrot.lane.b32.xlu1 %v5177_v30, %s4723_s21 }
  0xba   : > { %540 = vrot.lane.b32.xlu0 %v5180_v31, %s4723_s21 }
  0xbd   : > { %546 = vrot.lane.b32.xlu1 %v5187_v32, %s4723_s21 }
  0xbe   : > { %544 = vrot.lane.b32.xlu0 %v5190_v33, %s4723_s21 }
  0xc1   : > { %550 = vrot.lane.b32.xlu1 %v5197_v34, %s4723_s21 }
  0xc2   : > { %548 = vrot.lane.b32.xlu0 %v5200_v35, %s4723_s21 }
  0xc5   : > { %554 = vrot.lane.b32.xlu1 %v5207_v36, %s4723_s21 }
  0xc6   : > { %552 = vrot.lane.b32.xlu0 %v5210_v37, %s4723_s21 }
  0xc9   : > { %558 = vrot.lane.b32.xlu1 %v5217_v38, %s4723_s21 }
  0xca   : > { %556 = vrot.lane.b32.xlu0 %v5220_v39, %s4723_s21 }
  0xcd   : > { %562 = vrot.lane.b32.xlu1 %v5227_v40, %s4723_s21 }
  0xce   : > { %560 = vrot.lane.b32.xlu0 %v5230_v41, %s4723_s21 }
 0x103   : > { %v505_v56 = vpop.permute.xlu1 %504  ;;  %v501_v57 = vpop.permute.xlu0 %500 }
 0x104   : > { %v599_v61 = vsel %vm596_vm3, %v382_v49, %v505_v56  ;;  %v597_v62 = vsel %vm596_vm3, %v380_v50, %v501_v57  ;;  %v326_v49 = vld [vmem:[%s4980_s28 + $0x50] sm:$0xff]  ;;  %v389_v50 = vadd.f32 %v357_v42, %v5108_v15 }
 0x105   : > { %632 = vst.msk [vmem:[#allocation2 + $0x31] sm:$0xff] %vm412_vm0, %v599_v61  ;;  %630 = vst.msk [vmem:[#allocation2 + $0x19] sm:$0xff] %vm412_vm0, %v597_v62  ;;  %v358_v55 = vmul.f32 0.2, %v326_v49  ;;  %v328_v61 = vld [vmem:[%s4980_s28 + $0x60] sm:$0xff]  ;;  %v330_v42 = vld [vmem:[%s4980_s28 + $0x70] sm:$0xff] }
 0x106   : > { %v362_v46 = vmul.f32 0.2, %v330_v42 }
 0x107   : > { %v507_v2 = vpop.permute.xlu1 %506  ;;  %v503_v3 = vpop.permute.xlu0 %502  ;;  %v390_v6 = vadd.f32 %v358_v55, %v5124_v20 }
 0x108   : > { %v600_v13 = vsel %vm596_vm3, %v383_v54, %v507_v2  ;;  %v598_v14 = vsel %vm596_vm3, %v381_v58, %v503_v3  ;;  %v331_v2 = vld [vmem:[%s4980_s28 + $0x78] sm:$0xff] }
 0x109   : > { %633 = vst.msk [vmem:[#allocation2 + $0x39] sm:$0xff] %vm412_vm0, %v600_v13  ;;  %631 = vst.msk [vmem:[#allocation2 + $0x21] sm:$0xff] %vm412_vm0, %v598_v14  ;;  %v360_v13 = vmul.f32 0.2, %v328_v61 }
 0x10b   : > { %v511_v43 = vpop.permute.xlu1 %510  ;;  %v509_v44 = vpop.permute.xlu0 %508  ;;  %v392_v45 = vadd.f32 %v360_v13, %v5138_v23 }
 0x10c   : > { %v602_v47 = vsel %vm596_vm3, %v385_v0, %v511_v43  ;;  %v601_v48 = vsel %vm596_vm3, %v384_v4, %v509_v44  ;;  %v713_v54 = vld [vmem:[#allocation2 + $0x19] sm:$0xff]  ;;  %v715_v59 = vld [vmem:[#allocation2 + $0x31] sm:$0xff]  ;;  %v391_v0 = vadd.f32 %v359_v11, %v5121_v19  ;;  %v363_v43 = vmul.f32 0.2, %v331_v2 }
 0x10d   : > { %635 = vst.msk [vmem:[#allocation2 + $0x51] sm:$0xff] %vm412_vm0, %v602_v47  ;;  %634 = vst.msk [vmem:[#allocation2 + $0x49] sm:$0xff] %vm412_vm0, %v601_v48  ;;  %v333_v47 = vld [vmem:[%s4980_s28 + $0x88] sm:$0xff]  ;;  %v332_v11 = vld [vmem:[%s4980_s28 + $0x80] sm:$0xff] }
 0x10e   : > { %v365_v23 = vmul.f32 0.2, %v333_v47  ;;  %v364_v55 = vmul.f32 0.2, %v332_v11 }
 0x10f   : > { %v515_v52 = vpop.permute.xlu1 %514  ;;  %v513_v53 = vpop.permute.xlu0 %512 }
 0x110   : > { %v604_v56 = vsel %vm596_vm3, %v387_v8, %v515_v52  ;;  %v603_v57 = vsel %vm596_vm3, %v386_v9, %v513_v53  ;;  %v714_v58 = vld [vmem:[#allocation2 + $0x21] sm:$0xff]  ;;  %v716_v60 = vld [vmem:[#allocation2 + $0x39] sm:$0xff]  ;;  %v395_v52 = vadd.f32 %v363_v43, %v5147_v24  ;;  %v397_v61 = vadd.f32 %v365_v23, %v5157_v26 }
 0x111   : > { %637 = vst.msk [vmem:[#allocation2 + $0x69] sm:$0xff] %vm412_vm0, %v604_v56  ;;  %636 = vst.msk [vmem:[#allocation2 + $0x61] sm:$0xff] %vm412_vm0, %v603_v57  ;;  %v744_v15 = vpack.c.bf16 %v714_v58, %v713_v54  ;;  %v5276_v62 = vpack.c.bf16 %v716_v60, %v715_v59  ;;  %v5293_v8 = vld [vmem:[#allocation8 + $0x18] sm:$0xf]  ;;  %v334_v60 = vld [vmem:[%s4980_s28 + $0x90] sm:$0xff]  ;;  %v396_v1 = vadd.f32 %v364_v55, %v5160_v27 }
 0x112   : > { %v335_v56 = vld [vmem:[%s4980_s28 + $0x98] sm:$0xff]  ;;  %v366_v2 = vmul.f32 0.2, %v334_v60  ;;  %v340_v55 = vld [vmem:[%s4980_s28 + $0xc0] sm:$0xff] }
 0x113   : > { %3867 = vmatmul.mubr.msk.bf16.vlgmr.msra.gmra.mrb[0].mxu1 %vm412_vm0, %v744_v15  ;;  %4002 = vmatprep.mubr.msk.bf16.mxu0 %vm412_vm0, %v744_v15  ;;  %v519_v3 = vpop.permute.xlu1 %518  ;;  %v517_v4 = vpop.permute.xlu0 %516  ;;  %v367_v15 = vmul.f32 0.2, %v335_v56  ;;  %v339_v27 = vld [vmem:[%s4980_s28 + $0xb8] sm:$0xff] }
 0x114   : > { %v606_v18 = vsel %vm596_vm3, %v389_v50, %v519_v3  ;;  %v605_v14 = vsel %vm596_vm3, %v388_v12, %v517_v4  ;;  %3870 = vmatprep.mubr.msk.bf16.mxu1 %vm412_vm0, %v5276_v62  ;;  %3899 = vmatpush3.bf16.msra.mxu1 %v1023_v16  ;;  %v1778_v19 = vld [vmem:[#allocation2 + $0x49] sm:$0xff]  ;;  %v1779_v17 = vld [vmem:[#allocation2 + $0x51] sm:$0xff]  ;;  %v394_v12 = vadd.f32 %v362_v46, %v5150_v25  ;;  %v371_v47 = vmul.f32 0.2, %v339_v27 }
 0x115   : > { %639 = vst.msk [vmem:[#allocation2 + $0x81] sm:$0xff] %vm412_vm0, %v606_v18  ;;  %638 = vst.msk [vmem:[#allocation2 + $0x79] sm:$0xff] %vm412_vm0, %v605_v14  ;;  %4003 = vmatmul.mubr.msk.bf16.vlgmr.msra.gmra.mrb[0].mxu0 %vm412_vm0, %v5276_v62  ;;  %v5300_v20 = vpack.c.bf16 %v1779_v17, %v1778_v19  ;;  %4430 = vmatprep.subr.msk.bf16.mxu1 %vm809_vm2, %v5280_v63  ;;  %v337_v3 = vld [vmem:[%s4980_s28 + $0xa8] sm:$0xff]  ;;  %v336_v18 = vld [vmem:[%s4980_s28 + $0xa0] sm:$0xff]  ;;  %v399_v14 = vadd.f32 %v367_v15, %v5167_v28 }
 0x116   : > { %4035 = vmatpush3.bf16.msra.mxu0 %v2167_v5  ;;  %v369_v19 = vmul.f32 0.2, %v337_v3  ;;  %v368_v43 = vmul.f32 0.2, %v336_v18  ;;  %v343_v15 = vld [vmem:[%s4980_s28 + $0xd8] sm:$0xff] }
 0x117   : > { %v523_v44 = vpop.permute.xlu1 %522  ;;  %v521_v9 = vpop.permute.xlu0 %520  ;;  %4006 = vmatprep.mubr.msk.bf16.mxu0 %vm412_vm0, %v5300_v20  ;;  %4435 = vmatprep.subr.msk.bf16.mxu0 %vm809_vm2, %v5293_v8 }
 0x118   : > { %v608_v48 = vsel %vm596_vm3, %v391_v0, %v523_v44  ;;  %v607_v49 = vsel %vm596_vm3, %v390_v6, %v521_v9  ;;  %v719_v50 = vld [vmem:[#allocation2 + $0x61] sm:$0xff]  ;;  %v720_v22 = vld [vmem:[#allocation2 + $0x69] sm:$0xff]  ;;  %v400_v11 = vadd.f32 %v368_v43, %v5180_v31  ;;  %v403_v31 = vadd.f32 %v371_v47, %v5187_v32 }
 0x119   : > { %641 = vst.msk [vmem:[#allocation2 + $0x99] sm:$0xff] %vm412_vm0, %v608_v48  ;;  %640 = vst.msk [vmem:[#allocation2 + $0x91] sm:$0xff] %vm412_vm0, %v607_v49  ;;  %v5316_v51 = vpack.c.bf16 %v720_v22, %v719_v50  ;;  %v338_v44 = vld [vmem:[%s4980_s28 + $0xb0] sm:$0xff]  ;;  %v401_v22 = vadd.f32 %v369_v19, %v5177_v30  ;;  %v2070_v19 = vld [vmem:[#allocation2 + $0x32] sm:$0xff] }
 0x11a   : > { %v370_v48 = vmul.f32 0.2, %v338_v44  ;;  %v2069_v30 = vld [vmem:[#allocation2 + $0x22] sm:$0xff]  ;;  %v2071_v43 = vld [vmem:[#allocation2 + $0x3a] sm:$0xff] }
 0x11b   : > { %3871 = vmatmul.mubr.msk.bf16.gmra.mrb[4].mxu1 %vm412_vm0, %v5300_v20  ;;  %v527_v53 = vpop.permute.xlu1 %526  ;;  %v525_v54 = vpop.permute.xlu0 %524 }
 0x11c   : > { %v610_v57 = vsel %vm596_vm3, %v393_v21, %v527_v53  ;;  %v609_v58 = vsel %vm596_vm3, %v392_v45, %v525_v54  ;;  %3874 = vmatprep.mubr.msk.bf16.mxu1 %vm412_vm0, %v5316_v51  ;;  %v1782_v59 = vld [vmem:[#allocation2 + $0x79] sm:$0xff]  ;;  %v1783_v24 = vld [vmem:[#allocation2 + $0x81] sm:$0xff]  ;;  %v398_v21 = vadd.f32 %v366_v2, %v5170_v29 }
 0x11d   : > { %643 = vst.msk [vmem:[#allocation2 + $0xb1] sm:$0xff] %vm412_vm0, %v610_v57  ;;  %642 = vst.msk [vmem:[#allocation2 + $0xa9] sm:$0xff] %vm412_vm0, %v609_v58  ;;  %4007 = vmatmul.mubr.msk.bf16.gmra.mrb[4].mxu0 %vm412_vm0, %v5316_v51  ;;  %v5332_v25 = vpack.c.bf16 %v1783_v24, %v1782_v59  ;;  %v2068_v57 = vld [vmem:[#allocation2 + $0x1a] sm:$0xff]  ;;  %v402_v58 = vadd.f32 %v370_v48, %v5190_v33  ;;  %v347_v48 = vld [vmem:[%s4980_s28 + $0xf8] sm:$0xff] }
 0x11e   : > { %v342_v2 = vld [vmem:[%s4980_s28 + $0xd0] sm:$0xff] }
 0x11f   : > { %v531_v16 = vpop.permute.xlu1 %530  ;;  %4010 = vmatprep.mubr.msk.bf16.mxu0 %vm412_vm0, %v5332_v25 }
 0x120   : > { %v529_v0 = vpop.permute.xlu0 %528  ;;  %v612_v4 = vsel %vm596_vm3, %v395_v52, %v531_v16  ;;  %v723_v6 = vld [vmem:[#allocation2 + $0x91] sm:$0xff]  ;;  %v724_v13 = vld [vmem:[#allocation2 + $0x99] sm:$0xff]  ;;  %v5381_v16 = vpack.c.bf16 %v2069_v30, %v2068_v57 }
 0x121   : > { %v611_v5 = vsel %vm596_vm3, %v394_v12, %v529_v0  ;;  %645 = vst.msk [vmem:[#allocation2 + $0xc9] sm:$0xff] %vm412_vm0, %v612_v4  ;;  %v5344_v26 = vpack.c.bf16 %v724_v13, %v723_v6  ;;  %v341_v52 = vld [vmem:[%s4980_s28 + $0xc8] sm:$0xff]  ;;  %v375_v4 = vmul.f32 0.2, %v343_v15  ;;  %v344_v6 = vld [vmem:[%s4980_s28 + $0xe0] sm:$0xff]  ;;  %v346_v57 = vld [vmem:[%s4980_s28 + $0xf0] sm:$0xff] }
 0x122   : > { %644 = vst.msk [vmem:[#allocation2 + $0xc1] sm:$0xff] %vm412_vm0, %v611_v5  ;;  %v373_v59 = vmul.f32 0.2, %v341_v52  ;;  %v345_v5 = vld [vmem:[%s4980_s28 + $0xe8] sm:$0xff] }
 0x123   : > { %3875 = vmatmul.mubr.msk.bf16.gmra.mrb[8].mxu1 %vm412_vm0, %v5332_v25  ;;  %v535_v17 = vpop.permute.xlu1 %534  ;;  %v407_v47 = vadd.f32 %v375_v4, %v5207_v36 }
 0x124   : > { %v533_v42 = vpop.permute.xlu0 %532  ;;  %3878 = vmatprep.mubr.msk.bf16.mxu1 %vm412_vm0, %v5344_v26  ;;  %v614_v9 = vsel %vm596_vm3, %v397_v61, %v535_v17  ;;  %v1786_v28 = vld [vmem:[#allocation2 + $0xa9] sm:$0xff]  ;;  %v1787_v46 = vld [vmem:[#allocation2 + $0xb1] sm:$0xff]  ;;  %v372_v61 = vmul.f32 0.2, %v340_v55  ;;  %v405_v3 = vadd.f32 %v373_v59, %v5197_v34  ;;  %v374_v17 = vmul.f32 0.2, %v342_v2 }
 0x125   : > { %v613_v45 = vsel %vm596_vm3, %v396_v1, %v533_v42  ;;  %4011 = vmatmul.mubr.msk.bf16.gmra.mrb[8].mxu0 %vm412_vm0, %v5344_v26  ;;  %647 = vst.msk [vmem:[#allocation2 + $0xe1] sm:$0xff] %vm412_vm0, %v614_v9  ;;  %v5360_v29 = vpack.c.bf16 %v1787_v46, %v1786_v28  ;;  %v2072_v34 = vld [vmem:[#allocation2 + $0x4a] sm:$0xff]  ;;  %v377_v46 = vmul.f32 0.2, %v345_v5  ;;  %v2074_v59 = vld [vmem:[#allocation2 + $0x62] sm:$0xff] }
 0x126   : > { %646 = vst.msk [vmem:[#allocation2 + $0xd9] sm:$0xff] %vm412_vm0, %v613_v45  ;;  %v404_v27 = vadd.f32 %v372_v61, %v5200_v35  ;;  %v2073_v45 = vld [vmem:[#allocation2 + $0x52] sm:$0xff]  ;;  %v376_v35 = vmul.f32 0.2, %v344_v6  ;;  %v406_v52 = vadd.f32 %v374_v17, %v5210_v37  ;;  %v5419_v55 = vld [vmem:[#allocation8 + $0x1c] sm:$0xf] }
 0x127   : > { %4014 = vmatprep.mubr.msk.bf16.mxu0 %vm412_vm0, %v5360_v29  ;;  %v539_v49 = vpop.permute.xlu1 %538  ;;  %v409_v37 = vadd.f32 %v377_v46, %v5217_v38  ;;  %v2076_v38 = vld [vmem:[#allocation2 + $0x7a] sm:$0xff]  ;;  %v2078_v17 = vld [vmem:[#allocation2 + $0x92] sm:$0xff]  ;;  %v2080_v46 = vld [vmem:[#allocation2 + $0xaa] sm:$0xff] }
 0x128   : > { %v537_v50 = vpop.permute.xlu0 %536  ;;  %v616_v23 = vsel %vm596_vm3, %v399_v14, %v539_v49  ;;  %v728_v12 = vld [vmem:[#allocation2 + $0xc9] sm:$0xff]  ;;  %v5408_v49 = vpack.c.bf16 %v2071_v43, %v2070_v19  ;;  %v2079_v43 = vld [vmem:[#allocation2 + $0x9a] sm:$0xff] }
 0x129   : > { %v615_v53 = vsel %vm596_vm3, %v398_v21, %v537_v50  ;;  %v727_v54 = vld [vmem:[#allocation2 + $0xc1] sm:$0xff]  ;;  %649 = vst.msk [vmem:[#allocation2 + $0xf9] sm:$0xff] %vm412_vm0, %v616_v23  ;;  %v2462_v50 = vsel %vm809_vm2, %v5293_v8, 0  ;;  %v5413_v23 = vpack.c.bf16 %v2073_v45, %v2072_v34  ;;  %v379_v8 = vmul.f32 0.2, %v347_v48 }
 0x12a   : > { %648 = vst.msk [vmem:[#allocation2 + $0xf1] sm:$0xff] %vm412_vm0, %v615_v53  ;;  %v5372_v56 = vpack.c.bf16 %v728_v12, %v727_v54  ;;  %v5468_v48 = vpack.c.bf16 %v2079_v43, %v2078_v17 }
 0x12b   : > { %3879 = vmatmul.mubr.msk.bf16.gmra.mrb[12].mxu1 %vm412_vm0, %v5360_v29  ;;  %v543_v24 = vpop.permute.xlu1 %542 }
 0x12c   : > { %v541_v60 = vpop.permute.xlu0 %540  ;;  %3882 = vmatprep.mubr.msk.bf16.mxu1 %vm412_vm0, %v5372_v56  ;;  %v618_v0 = vsel %vm596_vm3, %v401_v22, %v543_v24  ;;  %v730_v1 = vld [vmem:[#allocation2 + $0xe1] sm:$0xff]  ;;  %v408_v24 = vadd.f32 %v376_v35, %v5220_v39 }
 0x12d   : > { %v617_v32 = vsel %vm596_vm3, %v400_v11, %v541_v60  ;;  %v729_v33 = vld [vmem:[#allocation2 + $0xd9] sm:$0xff]  ;;  %4015 = vmatmul.mubr.msk.bf16.gmra.mrb[12].mxu0 %vm412_vm0, %v5372_v56  ;;  %651 = vst.msk [vmem:[#allocation2 + $0x111] sm:$0xff] %vm412_vm0, %v618_v0  ;;  %v378_v60 = vmul.f32 0.2, %v346_v57  ;;  %v2075_v0 = vld [vmem:[#allocation2 + $0x6a] sm:$0xff] }
 0x12e   : > { %650 = vst.msk [vmem:[#allocation2 + $0x109] sm:$0xff] %vm412_vm0, %v617_v32  ;;  %4036 = vmatprep.mubr.msk.bf16.mxu0 %vm412_vm0, %v5381_v16  ;;  %v5395_v14 = vpack.c.bf16 %v730_v1, %v729_v33  ;;  %v2077_v1 = vld [vmem:[#allocation2 + $0x82] sm:$0xff]  ;;  %v5443_v39 = vpack.c.bf16 %v2075_v0, %v2074_v59 }
 0x12f   : > { %v547_v13 = vpop.permute.xlu1 %546  ;;  %v410_v6 = vadd.f32 %v378_v60, %v5230_v41  ;;  %v665_v59 = vld [vmem:[#allocation2 + $0x20] sm:$0xff]  ;;  %v664_v60 = vld [vmem:[#allocation2 + $0x18] sm:$0xff] }
 0x130   : > { %v545_v18 = vpop.permute.xlu0 %544  ;;  %v620_v42 = vsel %vm596_vm3, %v403_v31, %v547_v13  ;;  %v732_v9 = vld [vmem:[#allocation2 + $0xf9] sm:$0xff]  ;;  %v5446_v13 = vpack.c.bf16 %v2077_v1, %v2076_v38  ;;  %v5491_v0 = vpack.c.bf16 %v665_v59, %v664_v60  ;;  %v676_v59 = vld [vmem:[#allocation2 + $0xa8] sm:$0xff] }
 0x131   : > { %v619_v21 = vsel %vm596_vm3, %v402_v58, %v545_v18  ;;  %v731_v44 = vld [vmem:[#allocation2 + $0xf1] sm:$0xff]  ;;  %653 = vst.msk [vmem:[#allocation2 + $0x129] sm:$0xff] %vm412_vm0, %v620_v42 }
 0x132   : > { %652 = vst.msk [vmem:[#allocation2 + $0x121] sm:$0xff] %vm412_vm0, %v619_v21  ;;  %v5402_v28 = vpack.c.bf16 %v732_v9, %v731_v44 }
 0x133   : > { %3883 = vmatmul.mubr.msk.bf16.gmra.mrb[16].mxu1 %vm412_vm0, %v5395_v14  ;;  %v551_v22 = vpop.permute.xlu1 %550 }
 0x134   : > { %v549_v11 = vpop.permute.xlu0 %548  ;;  %v622_v53 = vsel %vm596_vm3, %v405_v3, %v551_v22  ;;  %3886 = vmatprep.mubr.msk.bf16.mxu1 %vm412_vm0, %v5402_v28  ;;  %v734_v12 = vld [vmem:[#allocation2 + $0x111] sm:$0xff]  ;;  %v411_v3 = vadd.f32 %v379_v8, %v5227_v40  ;;  %v2085_v8 = vld [vmem:[#allocation2 + $0xe2] sm:$0xff] }
 0x135   : > { %v621_v36 = vsel %vm596_vm3, %v404_v27, %v549_v11  ;;  %v733_v54 = vld [vmem:[#allocation2 + $0x109] sm:$0xff]  ;;  %4037 = vmatmul.mubr.msk.bf16.vlgmr.msra.gmra.mrb[0].mxu0 %vm412_vm0, %v5408_v49  ;;  %655 = vst.msk [vmem:[#allocation2 + $0x141] sm:$0xff] %vm412_vm0, %v622_v53  ;;  %v2089_v1 = vld [vmem:[#allocation2 + $0x112] sm:$0xff] }
 0x136   : > { %654 = vst.msk [vmem:[#allocation2 + $0x139] sm:$0xff] %vm412_vm0, %v621_v36  ;;  %4069 = vmatpush3.bf16.msra.mxu0 %v2462_v50  ;;  %4040 = vmatprep.mubr.msk.bf16.mxu0 %vm412_vm0, %v5413_v23  ;;  %v5429_v58 = vpack.c.bf16 %v734_v12, %v733_v54  ;;  %v663_v53 = vld [vmem:[#allocation2 + $0x8] sm:$0xff] }
 0x137   : > { %v555_v30 = vpop.permute.xlu1 %554  ;;  %4436 = vmatprep.subr.msk.bf16.mxu0 %vm809_vm2, %v5419_v55  ;;  %v2082_v54 = vld [vmem:[#allocation2 + $0xc2] sm:$0xff]  ;;  %v2083_v12 = vld [vmem:[#allocation2 + $0xca] sm:$0xff] }
 0x138   : > { %v553_v31 = vpop.permute.xlu0 %552  ;;  %v624_v61 = vsel %vm596_vm3, %v407_v47, %v555_v30  ;;  %v736_v33 = vld [vmem:[#allocation2 + $0x129] sm:$0xff]  ;;  %v2081_v47 = vld [vmem:[#allocation2 + $0xb2] sm:$0xff]  ;;  %v5482_v30 = vpack.c.bf16 %v2083_v12, %v2082_v54 }
 0x139   : > { %v623_v15 = vsel %vm596_vm3, %v406_v52, %v553_v31  ;;  %v735_v32 = vld [vmem:[#allocation2 + $0x121] sm:$0xff]  ;;  %657 = vst.msk [vmem:[#allocation2 + $0x159] sm:$0xff] %vm412_vm0, %v624_v61  ;;  %v5470_v50 = vpack.c.bf16 %v2081_v47, %v2080_v46  ;;  %v2086_v61 = vld [vmem:[#allocation2 + $0xf2] sm:$0xff]  ;;  %v2088_v38 = vld [vmem:[#allocation2 + $0x10a] sm:$0xff] }
 0x13a   : > { %656 = vst.msk [vmem:[#allocation2 + $0x151] sm:$0xff] %vm412_vm0, %v623_v15  ;;  %v5438_v2 = vpack.c.bf16 %v736_v33, %v735_v32  ;;  %v662_v52 = vld [vmem:[#allocation2] sm:$0xff]  ;;  %v666_v32 = vld [vmem:[#allocation2 + $0x30] sm:$0xff]  ;;  %v1285_v33 = vsel %vm809_vm2, %v5280_v63, 0  ;;  %v668_v63 = vld [vmem:[#allocation2 + $0x48] sm:$0xff] }
 0x13b   : > { %3887 = vmatmul.mubr.msk.bf16.gmra.mrb[20].mxu1 %vm412_vm0, %v5429_v58  ;;  %v559_v4 = vpop.permute.xlu1 %558  ;;  %v694_v57 = vpack.c.bf16 %v663_v53, %v662_v52  ;;  %v2087_v15 = vld [vmem:[#allocation2 + $0xfa] sm:$0xff]  ;;  %v2091_v17 = vld [vmem:[#allocation2 + $0x12a] sm:$0xff] }
 0x13c   : > { %v557_v5 = vpop.permute.xlu0 %556  ;;  %v626_v18 = vsel %vm596_vm3, %v409_v37, %v559_v4  ;;  %3890 = vmatprep.mubr.msk.bf16.mxu1 %vm412_vm0, %v5438_v2  ;;  %v738_v40 = vld [vmem:[#allocation2 + $0x141] sm:$0xff]  ;;  %v5497_v4 = vld [vmem:[#allocation8 + $0xc] sm:$0xf]  ;;  %v674_v47 = vld [vmem:[#allocation2 + $0x90] sm:$0xff] }
 0x13d   : > { %v625_v19 = vsel %vm596_vm3, %v408_v24, %v557_v5  ;;  %v737_v27 = vld [vmem:[#allocation2 + $0x139] sm:$0xff]  ;;  %4041 = vmatmul.mubr.msk.bf16.gmra.mrb[4].mxu0 %vm412_vm0, %v5443_v39  ;;  %659 = vst.msk [vmem:[#allocation2 + $0x171] sm:$0xff] %vm412_vm0, %v626_v18  ;;  %v5501_v5 = vpack.c.bf16 %v2087_v15, %v2086_v61  ;;  %v669_v18 = vld [vmem:[#allocation2 + $0x50] sm:$0xff]  ;;  %v2093_v43 = vld [vmem:[#allocation2 + $0x142] sm:$0xff] }
 0x13e   : > { %658 = vst.msk [vmem:[#allocation2 + $0x169] sm:$0xff] %vm412_vm0, %v625_v19  ;;  %4044 = vmatprep.mubr.msk.bf16.mxu0 %vm412_vm0, %v5446_v13  ;;  %v5458_v41 = vpack.c.bf16 %v738_v40, %v737_v27  ;;  %v2084_v37 = vld [vmem:[#allocation2 + $0xda] sm:$0xff]  ;;  %v671_v27 = vld [vmem:[#allocation2 + $0x68] sm:$0xff] }
 0x13f   : > { %v563_v42 = vpop.permute.xlu1 %562  ;;  %v5484_v31 = vpack.c.bf16 %v2085_v8, %v2084_v37  ;;  %v667_v24 = vld [vmem:[#allocation2 + $0x38] sm:$0xff]  ;;  %v670_v19 = vld [vmem:[#allocation2 + $0x60] sm:$0xff] }
 0x140   : > { %v561_v21 = vpop.permute.xlu0 %560  ;;  %v740_v9 = vld [vmem:[#allocation2 + $0x159] sm:$0xff]  ;;  %v628_v34 = vsel %vm596_vm3, %v411_v3, %v563_v42  ;;  %v5495_v3 = vpack.c.bf16 %v667_v24, %v666_v32  ;;  %v2090_v40 = vld [vmem:[#allocation2 + $0x122] sm:$0xff]  ;;  %v5513_v42 = vpack.c.bf16 %v669_v18, %v668_v63  ;;  %v677_v24 = vld [vmem:[#allocation2 + $0xb0] sm:$0xff] }
 0x141   : > { %v739_v44 = vld [vmem:[#allocation2 + $0x151] sm:$0xff]  ;;  %v627_v45 = vsel %vm596_vm3, %v410_v6, %v561_v21  ;;  %661 = vst.msk [vmem:[#allocation2 + $0x189] sm:$0xff] %vm412_vm0, %v628_v34  ;;  %v5505_v6 = vpack.c.bf16 %v2089_v1, %v2088_v38  ;;  %v2092_v21 = vld [vmem:[#allocation2 + $0x13a] sm:$0xff]  ;;  %v679_v32 = vld [vmem:[#allocation2 + $0xc8] sm:$0xff] }
 0x142   : > { %v5462_v35 = vpack.c.bf16 %v740_v9, %v739_v44  ;;  %660 = vst.msk [vmem:[#allocation2 + $0x181] sm:$0xff] %vm412_vm0, %v627_v45  ;;  %v5515_v44 = vpack.c.bf16 %v671_v27, %v670_v19  ;;  %v5519_v9 = vpack.c.bf16 %v2091_v17, %v2090_v40  ;;  %v5523_v34 = vpack.c.bf16 %v2093_v43, %v2092_v21  ;;  %v672_v45 = vld [vmem:[#allocation2 + $0x78] sm:$0xff]  ;;  %v673_v46 = vld [vmem:[#allocation2 + $0x80] sm:$0xff]  ;;  %v682_v19 = vld [vmem:[#allocation2 + $0xf0] sm:$0xff] }
 0x143   : > { %3891 = vmatmul.mubr.msk.bf16.gmra.mrb[24].mxu1 %vm412_vm0, %v5458_v41  ;;  %v2095_v52 = vld [vmem:[#allocation2 + $0x15a] sm:$0xff]  ;;  %v5529_v53 = vpack.c.bf16 %v673_v46, %v672_v45  ;;  %v2756_v21 = vsel %vm809_vm2, %v5419_v55, 0  ;;  %v3000_v43 = vld [vmem:[#allocation8 + $0x20] sm:$0xf]  ;;  %v684_v45 = vld [vmem:[#allocation2 + $0x108] sm:$0xff] }
 0x144   : > { %3894 = vmatprep.mubr.msk.bf16.mxu1 %vm412_vm0, %v5462_v35  ;;  %v742_v11 = vld [vmem:[#allocation2 + $0x171] sm:$0xff]  ;;  %v678_v15 = vld [vmem:[#allocation2 + $0xc0] sm:$0xff] }
 0x145   : > { %v741_v22 = vld [vmem:[#allocation2 + $0x169] sm:$0xff]  ;;  %4045 = vmatmul.mubr.msk.bf16.gmra.mrb[8].mxu0 %vm412_vm0, %v5468_v48  ;;  %v2097_v12 = vld [vmem:[#allocation2 + $0x172] sm:$0xff]  ;;  %v5549_v1 = vpack.c.bf16 %v679_v32, %v678_v15  ;;  %v681_v18 = vld [vmem:[#allocation2 + $0xe0] sm:$0xff] }
 0x146   : > { %4048 = vmatprep.mubr.msk.bf16.mxu0 %vm412_vm0, %v5470_v50  ;;  %v5478_v36 = vpack.c.bf16 %v742_v11, %v741_v22  ;;  %v675_v22 = vld [vmem:[#allocation2 + $0x98] sm:$0xff]  ;;  %v2096_v54 = vld [vmem:[#allocation2 + $0x16a] sm:$0xff] }
 0x147   : > { %v2094_v11 = vld [vmem:[#allocation2 + $0x152] sm:$0xff]  ;;  %v5539_v8 = vpack.c.bf16 %v2097_v12, %v2096_v54  ;;  %v689_v54 = vld [vmem:[#allocation2 + $0x140] sm:$0xff]  ;;  %v1187_v15 = vld [vmem:[#allocation2 + $0xa] sm:$0xff] }
 0x148   : > { %v5535_v37 = vpack.c.bf16 %v2095_v52, %v2094_v11  ;;  %v2099_v61 = vld [vmem:[#allocation2 + $0x18a] sm:$0xff]  ;;  %v680_v63 = vld [vmem:[#allocation2 + $0xd8] sm:$0xff] }
 0x149   : > { %v2098_v60 = vld [vmem:[#allocation2 + $0x182] sm:$0xff]  ;;  %v683_v27 = vld [vmem:[#allocation2 + $0xf8] sm:$0xff]  ;;  %v5559_v40 = vpack.c.bf16 %v681_v18, %v680_v63  ;;  %v685_v46 = vld [vmem:[#allocation2 + $0x110] sm:$0xff] }
 0x14a   : > { %v5547_v38 = vpack.c.bf16 %v2099_v61, %v2098_v60  ;;  %v5561_v17 = vpack.c.bf16 %v683_v27, %v682_v19  ;;  %v5574_v11 = vpack.c.bf16 %v685_v46, %v684_v45  ;;  %v688_v52 = vld [vmem:[#allocation2 + $0x138] sm:$0xff]  ;;  %v690_v12 = vld [vmem:[#allocation2 + $0x150] sm:$0xff]  ;;  %v1186_v61 = vld [vmem:[#allocation2 + $0x2] sm:$0xff]  ;;  %v1579_v27 = vsel %vm809_vm2, %v5497_v4, 0 }
 0x14b   : > { %3895 = vmatmul.mubr.msk.bf16.gmra.mrb[28].mxu1 %vm412_vm0, %v5478_v36  ;;  %v692_v32 = vld [vmem:[#allocation2 + $0x168] sm:$0xff]  ;;  %v693_v63 = vld [vmem:[#allocation2 + $0x170] sm:$0xff]  ;;  %v1218_v18 = vpack.c.bf16 %v1187_v15, %v1186_v61  ;;  %v2394_v45 = vld [vmem:[#allocation2 + $0x1a0] sm:$0xff] }
 0x14c   : > { %3900 = vmatprep.mubr.msk.bf16.mxu1 %vm412_vm0, %v694_v57  ;;  %v5531_v57 = vpack.c.bf16 %v675_v22, %v674_v47  ;;  %v686_v47 = vld [vmem:[#allocation2 + $0x120] sm:$0xff]  ;;  %v687_v22 = vld [vmem:[#allocation2 + $0x128] sm:$0xff]  ;;  %v5598_v19 = vpack.c.bf16 %v693_v63, %v692_v32 }
 0x14d   : > { %4049 = vmatmul.mubr.msk.bf16.gmra.mrb[12].mxu0 %vm412_vm0, %v5482_v30  ;;  %v5576_v55 = vpack.c.bf16 %v687_v22, %v686_v47  ;;  %v3050_v47 = vsel %vm809_vm2, %v3000_v43, 0 }
 0x14e   : > { %4052 = vmatprep.mubr.msk.bf16.mxu0 %vm412_vm0, %v5484_v31 }
 0x153   : > { %3901 = vmatmul.mubr.msk.bf16.vlgmr.msra.gmra.mrb[0].mxu1 %vm412_vm0, %v5491_v0 }
 0x154   : > { %3904 = vmatprep.mubr.msk.bf16.mxu1 %vm412_vm0, %v5495_v3  ;;  %3933 = vmatpush3.bf16.msra.mxu1 %v1285_v33  ;;  %v5545_v33 = vpack.c.bf16 %v677_v24, %v676_v59  ;;  %v691_v59 = vld [vmem:[#allocation2 + $0x158] sm:$0xff]  ;;  %v5586_v24 = vpack.c.bf16 %v689_v54, %v688_v52 }
 0x155   : > { %4053 = vmatmul.mubr.msk.bf16.gmra.mrb[16].mxu0 %vm412_vm0, %v5501_v5  ;;  %4431 = vmatprep.subr.msk.bf16.mxu1 %vm809_vm2, %v5497_v4  ;;  %v5588_v60 = vpack.c.bf16 %v691_v59, %v690_v12  ;;  %v2392_v4 = vld [vmem:[#allocation2 + $0x188] sm:$0xff] }
 0x156   : > { %4056 = vmatprep.mubr.msk.bf16.mxu0 %vm412_vm0, %v5505_v6 }
 0x15b   : > { %3905 = vmatmul.mubr.msk.bf16.gmra.mrb[4].mxu1 %vm412_vm0, %v5513_v42 }
 0x15c   : > { %3908 = vmatprep.mubr.msk.bf16.mxu1 %vm412_vm0, %v5515_v44 }
 0x15d   : > { %4057 = vmatmul.mubr.msk.bf16.gmra.mrb[20].mxu0 %vm412_vm0, %v5519_v9 }
 0x15e   : > { %4060 = vmatprep.mubr.msk.bf16.mxu0 %vm412_vm0, %v5523_v34 }
 0x163   : > { %3909 = vmatmul.mubr.msk.bf16.gmra.mrb[8].mxu1 %vm412_vm0, %v5529_v53 }
 0x164   : > { %3912 = vmatprep.mubr.msk.bf16.mxu1 %vm412_vm0, %v5531_v57 }
 0x165   : > { %4061 = vmatmul.mubr.msk.bf16.gmra.mrb[24].mxu0 %vm412_vm0, %v5535_v37 }
 0x166   : > { %4064 = vmatprep.mubr.msk.bf16.mxu0 %vm412_vm0, %v5539_v8 }
 0x16b   : > { %3913 = vmatmul.mubr.msk.bf16.gmra.mrb[12].mxu1 %vm412_vm0, %v5545_v33 }
 0x16c   : > { %3916 = vmatprep.mubr.msk.bf16.mxu1 %vm412_vm0, %v5549_v1 }
 0x16d   : > { %4065 = vmatmul.mubr.msk.bf16.gmra.mrb[28].mxu0 %vm412_vm0, %v5547_v38 }
 0x16e   : > { %4070 = vmatprep.mubr.msk.bf16.mxu0 %vm412_vm0, %v5495_v3 }
 0x173   : > { %3917 = vmatmul.mubr.msk.bf16.gmra.mrb[16].mxu1 %vm412_vm0, %v5559_v40 }
 0x174   : > { %3920 = vmatprep.mubr.msk.bf16.mxu1 %vm412_vm0, %v5561_v17 }
 0x175   : > { %4071 = vmatmul.mubr.msk.bf16.vlgmr.msra.gmra.mrb[0].mxu0 %vm412_vm0, %v5513_v42 }
 0x176   : > { %4103 = vmatpush3.bf16.msra.mxu0 %v2756_v21  ;;  %4074 = vmatprep.mubr.msk.bf16.mxu0 %vm412_vm0, %v5515_v44  ;;  %v2393_v21 = vld [vmem:[#allocation2 + $0x198] sm:$0xff] }
 0x177   : > { %4437 = vmatprep.subr.msk.bf16.mxu0 %vm809_vm2, %v3000_v43  ;;  %v2410_v46 = vpack.c.bf16 %v2394_v45, %v2393_v21 }
 0x17b   : > { %3921 = vmatmul.mubr.msk.bf16.gmra.mrb[20].mxu1 %vm412_vm0, %v5574_v11 }
 0x17c   : > { %3924 = vmatprep.mubr.msk.bf16.mxu1 %vm412_vm0, %v5576_v55 }
 0x17d   : > { %4075 = vmatmul.mubr.msk.bf16.gmra.mrb[4].mxu0 %vm412_vm0, %v5529_v53 }
 0x17e   : > { %4078 = vmatprep.mubr.msk.bf16.mxu0 %vm412_vm0, %v5531_v57 }
 0x183   : > { %3925 = vmatmul.mubr.msk.bf16.gmra.mrb[24].mxu1 %vm412_vm0, %v5586_v24 }
 0x184   : > { %3928 = vmatprep.mubr.msk.bf16.mxu1 %vm412_vm0, %v5588_v60 }
 0x185   : > { %4079 = vmatmul.mubr.msk.bf16.gmra.mrb[8].mxu0 %vm412_vm0, %v5545_v33 }
 0x186   : > { %4082 = vmatprep.mubr.msk.bf16.mxu0 %vm412_vm0, %v5549_v1 }
 0x18b   : > { %3929 = vmatmul.mubr.msk.bf16.gmra.mrb[28].mxu1 %vm412_vm0, %v5598_v19 }
 0x18c   : > { %3934 = vmatprep.mubr.msk.bf16.mxu1 %vm412_vm0, %v1218_v18 }
 0x18d   : > { %4083 = vmatmul.mubr.msk.bf16.gmra.mrb[12].mxu0 %vm412_vm0, %v5559_v40 }
 0x18e   : > { %4086 = vmatprep.mubr.msk.bf16.mxu0 %vm412_vm0, %v5561_v17 }
 0x193   : > { %3935 = vmatmul.mubr.msk.bf16.vlgmr.msra.gmra.mrb[0].mxu1 %vm412_vm0, %v5381_v16  ;;  %v2391_v16 = vld [vmem:[#allocation2 + $0x180] sm:$0xff] }
 0x194   : > { %3938 = vmatprep.mubr.msk.bf16.mxu1 %vm412_vm0, %v5408_v49  ;;  %3967 = vmatpush3.bf16.msra.mxu1 %v1579_v27 }
 0x195   : > { %4087 = vmatmul.mubr.msk.bf16.gmra.mrb[16].mxu0 %vm412_vm0, %v5574_v11  ;;  %4433 = vmatprep.subr.msk.bf16.mxu1 %vm809_vm2, %v5078_v7  ;;  %v5631_v7 = vpack.c.bf16 %v2392_v4, %v2391_v16 }
 0x196   : > { %4090 = vmatprep.mubr.msk.bf16.mxu0 %vm412_vm0, %v5576_v55 }
 0x19b   : > { %3939 = vmatmul.mubr.msk.bf16.gmra.mrb[4].mxu1 %vm412_vm0, %v5413_v23 }
 0x19c   : > { %3942 = vmatprep.mubr.msk.bf16.mxu1 %vm412_vm0, %v5443_v39 }
 0x19d   : > { %4091 = vmatmul.mubr.msk.bf16.gmra.mrb[20].mxu0 %vm412_vm0, %v5586_v24 }
 0x19e   : > { %4094 = vmatprep.mubr.msk.bf16.mxu0 %vm412_vm0, %v5588_v60 }
 0x1a3   : > { %3943 = vmatmul.mubr.msk.bf16.gmra.mrb[8].mxu1 %vm412_vm0, %v5446_v13 }
 0x1a4   : > { %3946 = vmatprep.mubr.msk.bf16.mxu1 %vm412_vm0, %v5468_v48 }
 0x1a5   : > { %4095 = vmatmul.mubr.msk.bf16.gmra.mrb[24].mxu0 %vm412_vm0, %v5598_v19 }
 0x1a6   : > { %4098 = vmatprep.mubr.msk.bf16.mxu0 %vm412_vm0, %v5631_v7 }
 0x1ab   : > { %3947 = vmatmul.mubr.msk.bf16.gmra.mrb[12].mxu1 %vm412_vm0, %v5470_v50 }
 0x1ac   : > { %3950 = vmatprep.mubr.msk.bf16.mxu1 %vm412_vm0, %v5482_v30 }
 0x1ad   : > { %4099 = vmatmul.mubr.msk.bf16.gmra.mrb[28].mxu0 %vm412_vm0, %v2410_v46 }
 0x1ae   : > { %4104 = vmatprep.mubr.msk.bf16.mxu0 %vm412_vm0, %v5276_v62  ;;  %v2685_v62 = vld [vmem:[#allocation2 + $0x181] sm:$0xff] }
 0x1b3   : > { %3951 = vmatmul.mubr.msk.bf16.gmra.mrb[16].mxu1 %vm412_vm0, %v5484_v31 }
 0x1b4   : > { %3954 = vmatprep.mubr.msk.bf16.mxu1 %vm412_vm0, %v5501_v5 }
 0x1b5   : > { %4105 = vmatmul.mubr.msk.bf16.vlgmr.msra.gmra.mrb[0].mxu0 %vm412_vm0, %v5300_v20 }
 0x1b6   : > { %4137 = vmatpush3.bf16.msra.mxu0 %v3050_v47  ;;  %4108 = vmatprep.mubr.msk.bf16.mxu0 %vm412_vm0, %v5316_v51  ;;  %v2687_v51 = vld [vmem:[#allocation2 + $0x199] sm:$0xff] }
 0x1bb   : > { %3955 = vmatmul.mubr.msk.bf16.gmra.mrb[20].mxu1 %vm412_vm0, %v5505_v6 }
 0x1bc   : > { %3958 = vmatprep.mubr.msk.bf16.mxu1 %vm412_vm0, %v5519_v9 }
 0x1bd   : > { %4109 = vmatmul.mubr.msk.bf16.gmra.mrb[4].mxu0 %vm412_vm0, %v5332_v25  ;;  %v2688_v25 = vld [vmem:[#allocation2 + $0x1a1] sm:$0xff] }
 0x1be   : > { %4112 = vmatprep.mubr.msk.bf16.mxu0 %vm412_vm0, %v5344_v26  ;;  %v2704_v26 = vpack.c.bf16 %v2688_v25, %v2687_v51 }
 0x1c3   : > { %3959 = vmatmul.mubr.msk.bf16.gmra.mrb[24].mxu1 %vm412_vm0, %v5523_v34 }
 0x1c4   : > { %3962 = vmatprep.mubr.msk.bf16.mxu1 %vm412_vm0, %v5535_v37 }
 0x1c5   : > { %4113 = vmatmul.mubr.msk.bf16.gmra.mrb[8].mxu0 %vm412_vm0, %v5360_v29  ;;  %v2981_v29 = vld [vmem:[#allocation2 + $0x19a] sm:$0xff] }
 0x1c6   : > { %4116 = vmatprep.mubr.msk.bf16.mxu0 %vm412_vm0, %v5372_v56  ;;  %v2982_v56 = vld [vmem:[#allocation2 + $0x1a2] sm:$0xff] }
 0x1cb   : > { %3963 = vmatmul.mubr.msk.bf16.gmra.mrb[28].mxu1 %vm412_vm0, %v5539_v8 }
 0x1cc   : > { %3968 = vmatprep.mubr.msk.bf16.mxu1 %vm412_vm0, %v5491_v0 }
 0x1cd   : > { %4117 = vmatmul.mubr.msk.bf16.gmra.mrb[12].mxu0 %vm412_vm0, %v5395_v14 }
 0x1ce   : > { %4120 = vmatprep.mubr.msk.bf16.mxu0 %vm412_vm0, %v5402_v28 }
 0x1d3   : > { %3969 = vmatmul.mubr.msk.bf16.vlgmr.msra.gmra.mrb[0].mxu1 %vm412_vm0, %v5495_v3 }
 0x1d4   : > { %3972 = vmatprep.mubr.msk.bf16.mxu1 %vm412_vm0, %v5513_v42  ;;  %4171 = vmatpush3.bf16.msra.mxu1 %v5090_v10  ;;  %v2686_v10 = vld [vmem:[#allocation2 + $0x189] sm:$0xff] }
 0x1d5   : > { %4121 = vmatmul.mubr.msk.bf16.gmra.mrb[16].mxu0 %vm412_vm0, %v5429_v58  ;;  %v2703_v20 = vpack.c.bf16 %v2686_v10, %v2685_v62 }
 0x1d6   : > { %4124 = vmatprep.mubr.msk.bf16.mxu0 %vm412_vm0, %v5438_v2 }
 0x1db   : > { %3973 = vmatmul.mubr.msk.bf16.gmra.mrb[4].mxu1 %vm412_vm0, %v5515_v44 }
 0x1dc   : > { %3976 = vmatprep.mubr.msk.bf16.mxu1 %vm412_vm0, %v5529_v53 }
 0x1dd   : > { %4125 = vmatmul.mubr.msk.bf16.gmra.mrb[20].mxu0 %vm412_vm0, %v5458_v41 }
 0x1de   : > { %4128 = vmatprep.mubr.msk.bf16.mxu0 %vm412_vm0, %v5462_v35 }
 0x1e3   : > { %3977 = vmatmul.mubr.msk.bf16.gmra.mrb[8].mxu1 %vm412_vm0, %v5531_v57 }
 0x1e4   : > { %3980 = vmatprep.mubr.msk.bf16.mxu1 %vm412_vm0, %v5545_v33 }
 0x1e5   : > { %4129 = vmatmul.mubr.msk.bf16.gmra.mrb[24].mxu0 %vm412_vm0, %v5478_v36 }
 0x1e6   : > { %4132 = vmatprep.mubr.msk.bf16.mxu0 %vm412_vm0, %v2703_v20 }
 0x1eb   : > { %3981 = vmatmul.mubr.msk.bf16.gmra.mrb[12].mxu1 %vm412_vm0, %v5549_v1 }
 0x1ec   : > { %3984 = vmatprep.mubr.msk.bf16.mxu1 %vm412_vm0, %v5559_v40 }
 0x1ed   : > { %4133 = vmatmul.mubr.msk.bf16.gmra.mrb[28].mxu0 %vm412_vm0, %v2704_v26 }
 0x1ee   : > { %4138 = vmatprep.mubr.msk.bf16.mxu0 %vm412_vm0, %v5408_v49 }
 0x1f3   : > { %3985 = vmatmul.mubr.msk.bf16.gmra.mrb[16].mxu1 %vm412_vm0, %v5561_v17 }
 0x1f4   : > { %3988 = vmatprep.mubr.msk.bf16.mxu1 %vm412_vm0, %v5574_v11 }
 0x1f5   : > { %4139 = vmatmul.mubr.msk.bf16.vlgmr.msra.gmra.mrb[0].mxu0 %vm412_vm0, %v5413_v23 }
 0x1f6   : > { %4142 = vmatprep.mubr.msk.bf16.mxu0 %vm412_vm0, %v5443_v39 }
 0x1fb   : > { %3989 = vmatmul.mubr.msk.bf16.gmra.mrb[20].mxu1 %vm412_vm0, %v5576_v55 }
 0x1fc   : > { %3992 = vmatprep.mubr.msk.bf16.mxu1 %vm412_vm0, %v5586_v24 }
 0x1fd   : > { %4143 = vmatmul.mubr.msk.bf16.gmra.mrb[4].mxu0 %vm412_vm0, %v5446_v13 }
 0x1fe   : > { %4146 = vmatprep.mubr.msk.bf16.mxu0 %vm412_vm0, %v5468_v48 }
 0x203   : > { %3993 = vmatmul.mubr.msk.bf16.gmra.mrb[24].mxu1 %vm412_vm0, %v5588_v60 }
 0x204   : > { %3996 = vmatprep.mubr.msk.bf16.mxu1 %vm412_vm0, %v5598_v19 }
 0x205   : > { %4147 = vmatmul.mubr.msk.bf16.gmra.mrb[8].mxu0 %vm412_vm0, %v5470_v50 }
 0x206   : > { %4150 = vmatprep.mubr.msk.bf16.mxu0 %vm412_vm0, %v5482_v30 }
 0x20b   : > { %3997 = vmatmul.mubr.msk.bf16.gmra.mrb[28].mxu1 %vm412_vm0, %v5631_v7 }
 0x20c   : > { %4018 = vmatprep.mubr.msk.bf16.mxu1 %vm412_vm0, %v5395_v14  ;;  %v2998_v14 = vpack.c.bf16 %v2982_v56, %v2981_v29 }
 0x20d   : > { %4151 = vmatmul.mubr.msk.bf16.gmra.mrb[12].mxu0 %vm412_vm0, %v5484_v31 }
 0x20e   : > { %4154 = vmatprep.mubr.msk.bf16.mxu0 %vm412_vm0, %v5501_v5 }
 0x213   : > { %4019 = vmatmul.mubr.msk.bf16.vlgmr.msra.gmra.mrb[16].mxu1 %vm412_vm0, %v5402_v28 }
 0x214   : > { %4022 = vmatprep.mubr.msk.bf16.mxu1 %vm412_vm0, %v5429_v58 }
 0x215   : > { %4155 = vmatmul.mubr.msk.bf16.gmra.mrb[16].mxu0 %vm412_vm0, %v5505_v6  ;;  %v5782_v6 = vld [vmem:[#allocation9] ss:$0 sm:$0xff] }
 0x216   : > { %4158 = vmatprep.mubr.msk.bf16.mxu0 %vm412_vm0, %v5519_v9 }
 0x21b   : > { %4023 = vmatmul.mubr.msk.bf16.gmra.mrb[20].mxu1 %vm412_vm0, %v5438_v2 }
 0x21c   : > { %4026 = vmatprep.mubr.msk.bf16.mxu1 %vm412_vm0, %v5458_v41 }
 0x21d   : > { %4159 = vmatmul.mubr.msk.bf16.gmra.mrb[20].mxu0 %vm412_vm0, %v5523_v34 }
 0x21e   : > { %4162 = vmatprep.mubr.msk.bf16.mxu0 %vm412_vm0, %v5535_v37 }
 0x223   : > { %4027 = vmatmul.mubr.msk.bf16.gmra.mrb[24].mxu1 %vm412_vm0, %v5462_v35 }
 0x224   : > { %4030 = vmatprep.mubr.msk.bf16.mxu1 %vm412_vm0, %v5478_v36 }
 0x225   : > { %4163 = vmatmul.mubr.msk.bf16.gmra.mrb[24].mxu0 %vm412_vm0, %v5539_v8 }
 0x226   : > { %4166 = vmatprep.mubr.msk.bf16.mxu0 %vm412_vm0, %v5547_v38 }
 0x22b   : > { %4031 = vmatmul.mubr.msk.bf16.gmra.mrb[28].mxu1 %vm412_vm0, %v2703_v20 }
 0x22d   : > { %4167 = vmatmul.mubr.msk.bf16.gmra.mrb[28].mxu0 %vm412_vm0, %v2998_v14 }
 0x2a6   : > { %v3970_v28 = vpop.f32.mrb[0].mxu1 }
 0x2a7   : > { %v1615_v49 = vpop.f32.mrb[1].mxu1 }
 0x2a8   : > { %v3971_v23 = vpop.f32.mrb[2].mxu1 }
 0x2a9   : > { %v1618_v58 = vpop.f32.mrb[3].mxu1 }
 0x2ae   : > { %v3974_v2 = vpop.f32.mrb[4].mxu1 }
 0x2af   : > { %v1631_v39 = vpop.f32.mrb[5].mxu1 }
 0x2b0   : > { %v3975_v13 = vpop.f32.mrb[6].mxu1 }
 0x2b1   : > { %v1634_v41 = vpop.f32.mrb[7].mxu1 }
 0x2b6   : > { %v5766_v35 = vpop.f32.mrb[8].mxu1 }
 0x2b7   : > { %v5768_v48 = vpop.f32.mrb[9].mxu1 }
 0x2b8   : > { %v5770_v50 = vpop.f32.mrb[10].mxu1 }
 0x2b9   : > { %v5772_v36 = vpop.f32.mrb[11].mxu1 }
 0x2be   : > { %v5774_v30 = vpop.f32.mrb[12].mxu1 }
 0x2bf   : > { %v5776_v31 = vpop.f32.mrb[13].mxu1 }
 0x2c0   : > { %v5778_v0 = vpop.f32.mrb[14].mxu1 }
 0x2c1   : > { %v5780_v3 = vpop.f32.mrb[15].mxu1 }
 0x2c8   : > { %v4140_v5 = vpop.f32.mrb[0].mxu0 }
 0x2c9   : > { %v4172_v42 = vadd.f32 %v4140_v5, %v3970_v28  ;;  %v3086_v44 = vpop.f32.mrb[1].mxu0 }
 0x2ca   : > { %v4173_v9 = vadd.f32 %v3086_v44, %v1615_v49  ;;  %v4141_v34 = vpop.f32.mrb[2].mxu0 }
 0x2cb   : > { %v3254_v53 = vadd.f32 %v4172_v42, %v5782_v6  ;;  %v4174_v57 = vadd.f32 %v4141_v34, %v3971_v23  ;;  %v3089_v37 = vpop.f32.mrb[3].mxu0 }
 0x2cc   : > { %v3252_v8 = vadd.f32 %v4173_v9, %v5782_v6  ;;  %v4175_v33 = vadd.f32 %v3089_v37, %v1618_v58 }
 0x2cd   : > { %vm3286_vm4 = vcmp.ge.f32.partialorder %v3254_v53, 0.0  ;;  %v3318_v38 = vmul.f32 0.05, %v3254_v53  ;;  %v3255_v1 = vadd.f32 %v4174_v57, %v5782_v6 }
 0x2ce   : > { %vm3284_vm5 = vcmp.ge.f32.partialorder %v3252_v8, 0.0  ;;  %v3316_v40 = vmul.f32 0.05, %v3252_v8  ;;  %v3253_v17 = vadd.f32 %v4175_v33, %v5782_v6 }
 0x2cf   : > { %v3350_v43 = vsel %vm3286_vm4, %v3254_v53, %v3318_v38  ;;  %vm3287_vm6 = vcmp.ge.f32.partialorder %v3255_v1, 0.0  ;;  %v3319_v22 = vmul.f32 0.05, %v3255_v1 }
 0x2d0   : > { %3382 = vst.msk [vmem:[%s5789_s24 + $0x10] sm:$0xff] %vm596_vm3, %v3350_v43  ;;  %v3348_v11 = vsel %vm3284_vm5, %v3252_v8, %v3316_v40  ;;  %vm3285_vm7 = vcmp.ge.f32.partialorder %v3253_v17, 0.0  ;;  %v3317_v55 = vmul.f32 0.05, %v3253_v17  ;;  %v4144_v52 = vpop.f32.mrb[4].mxu0 }
 0x2d1   : > { %3380 = vst.msk [vmem:[%s5789_s24] sm:$0xff] %vm596_vm3, %v3348_v11  ;;  %v3351_v54 = vsel %vm3287_vm6, %v3255_v1, %v3319_v22  ;;  %v4176_v12 = vadd.f32 %v4144_v52, %v3974_v2  ;;  %v3102_v59 = vpop.f32.mrb[5].mxu0 }
 0x2d2   : > { %3383 = vst.msk [vmem:[%s5789_s24 + $0x18] sm:$0xff] %vm596_vm3, %v3351_v54  ;;  %v3349_v24 = vsel %vm3285_vm7, %v3253_v17, %v3317_v55  ;;  %v4177_v60 = vadd.f32 %v3102_v59, %v1631_v39  ;;  %v4145_v61 = vpop.f32.mrb[6].mxu0 }
 0x2d3   : > { %3381 = vst.msk [vmem:[%s5789_s24 + $0x8] sm:$0xff] %vm596_vm3, %v3349_v24  ;;  %v3258_v15 = vadd.f32 %v4176_v12, %v5782_v6  ;;  %v4178_v32 = vadd.f32 %v4145_v61, %v3975_v13  ;;  %v3105_v63 = vpop.f32.mrb[7].mxu0 }
 0x2d4   : > { %v3256_v18 = vadd.f32 %v4177_v60, %v5782_v6  ;;  %v4179_v19 = vadd.f32 %v3105_v63, %v1634_v41 }
 0x2d5   : > { %vm3290_vm8 = vcmp.ge.f32.partialorder %v3258_v15, 0.0  ;;  %v3322_v27 = vmul.f32 0.05, %v3258_v15  ;;  %v3259_v16 = vadd.f32 %v4178_v32, %v5782_v6 }
 0x2d6   : > { %vm3288_vm9 = vcmp.ge.f32.partialorder %v3256_v18, 0.0  ;;  %v3320_v4 = vmul.f32 0.05, %v3256_v18  ;;  %v3257_v7 = vadd.f32 %v4179_v19, %v5782_v6 }
 0x2d7   : > { %v3354_v21 = vsel %vm3290_vm8, %v3258_v15, %v3322_v27  ;;  %vm3291_vm10 = vcmp.ge.f32.partialorder %v3259_v16, 0.0  ;;  %v3323_v45 = vmul.f32 0.05, %v3259_v16 }
 0x2d8   : > { %3386 = vst.msk [vmem:[%s5789_s24 + $0x30] sm:$0xff] %vm596_vm3, %v3354_v21  ;;  %v3352_v46 = vsel %vm3288_vm9, %v3256_v18, %v3320_v4  ;;  %vm3289_vm11 = vcmp.ge.f32.partialorder %v3257_v7, 0.0  ;;  %v3321_v47 = vmul.f32 0.05, %v3257_v7  ;;  %v4148_v62 = vpop.f32.mrb[8].mxu0 }
 0x2d9   : > { %3384 = vst.msk [vmem:[%s5789_s24 + $0x20] sm:$0xff] %vm596_vm3, %v3352_v46  ;;  %v3355_v10 = vsel %vm3291_vm10, %v3259_v16, %v3323_v45  ;;  %v4180_v20 = vadd.f32 %v4148_v62, %v5766_v35  ;;  %v3118_v51 = vpop.f32.mrb[9].mxu0 }
 0x2da   : > { %3387 = vst.msk [vmem:[%s5789_s24 + $0x38] sm:$0xff] %vm596_vm3, %v3355_v10  ;;  %v3353_v25 = vsel %vm3289_vm11, %v3257_v7, %v3321_v47  ;;  %v4181_v26 = vadd.f32 %v3118_v51, %v5768_v48  ;;  %v4149_v29 = vpop.f32.mrb[10].mxu0 }
 0x2db   : > { %3385 = vst.msk [vmem:[%s5789_s24 + $0x28] sm:$0xff] %vm596_vm3, %v3353_v25  ;;  %v3262_v56 = vadd.f32 %v4180_v20, %v5782_v6  ;;  %v4182_v14 = vadd.f32 %v4149_v29, %v5770_v50  ;;  %v3121_v28 = vpop.f32.mrb[11].mxu0 }
 0x2dc   : > { %v3260_v49 = vadd.f32 %v4181_v26, %v5782_v6  ;;  %v4183_v23 = vadd.f32 %v3121_v28, %v5772_v36 }
 0x2dd   : > { %vm3294_vm12 = vcmp.ge.f32.partialorder %v3262_v56, 0.0  ;;  %v3326_v58 = vmul.f32 0.05, %v3262_v56  ;;  %v3263_v2 = vadd.f32 %v4182_v14, %v5782_v6 }
 0x2de   : > { %vm3292_vm13 = vcmp.ge.f32.partialorder %v3260_v49, 0.0  ;;  %v3324_v39 = vmul.f32 0.05, %v3260_v49  ;;  %v3261_v13 = vadd.f32 %v4183_v23, %v5782_v6 }
 0x2df   : > { %v3358_v41 = vsel %vm3294_vm12, %v3262_v56, %v3326_v58  ;;  %vm3295_vm14 = vcmp.ge.f32.partialorder %v3263_v2, 0.0  ;;  %v3327_v35 = vmul.f32 0.05, %v3263_v2 }
 0x2e0   : > { %3390 = vst.msk [vmem:[%s5789_s24 + $0x50] sm:$0xff] %vm596_vm3, %v3358_v41  ;;  %v3356_v48 = vsel %vm3292_vm13, %v3260_v49, %v3324_v39  ;;  %vm3293_vm15 = vcmp.ge.f32.partialorder %v3261_v13, 0.0  ;;  %v3325_v50 = vmul.f32 0.05, %v3261_v13  ;;  %v4152_v5 = vpop.f32.mrb[12].mxu0 }
 0x2e1   : > { %3388 = vst.msk [vmem:[%s5789_s24 + $0x40] sm:$0xff] %vm596_vm3, %v3356_v48  ;;  %v3359_v36 = vsel %vm3295_vm14, %v3263_v2, %v3327_v35  ;;  %v4184_v42 = vadd.f32 %v4152_v5, %v5774_v30  ;;  %v3134_v44 = vpop.f32.mrb[13].mxu0 }
 0x2e2   : > { %3391 = vst.msk [vmem:[%s5789_s24 + $0x58] sm:$0xff] %vm596_vm3, %v3359_v36  ;;  %v3357_v9 = vsel %vm3293_vm15, %v3261_v13, %v3325_v50  ;;  %v4185_v34 = vadd.f32 %v3134_v44, %v5776_v31  ;;  %v4153_v53 = vpop.f32.mrb[14].mxu0 }
 0x2e3   : > { %3389 = vst.msk [vmem:[%s5789_s24 + $0x48] sm:$0xff] %vm596_vm3, %v3357_v9  ;;  %v3266_v57 = vadd.f32 %v4184_v42, %v5782_v6  ;;  %v4186_v37 = vadd.f32 %v4153_v53, %v5778_v0  ;;  %v3137_v8 = vpop.f32.mrb[15].mxu0 }
 0x2e4   : > { %v3264_v33 = vadd.f32 %v4185_v34, %v5782_v6  ;;  %v4187_v38 = vadd.f32 %v3137_v8, %v5780_v3 }
 0x2e5   : > { %vm3298_vm0 = vcmp.ge.f32.partialorder %v3266_v57, 0.0  ;;  %v3330_v30 = vmul.f32 0.05, %v3266_v57  ;;  %v3267_v1 = vadd.f32 %v4186_v37, %v5782_v6 }
 0x2e6   : > { %vm3296_vm1 = vcmp.ge.f32.partialorder %v3264_v33, 0.0  ;;  %v3328_v31 = vmul.f32 0.05, %v3264_v33  ;;  %v3265_v40 = vadd.f32 %v4187_v38, %v5782_v6  ;;  %v4020_v17 = vpop.f32.mrb[16].mxu1 }
 0x2e7   : > { %v3362_v43 = vsel %vm3298_vm0, %v3266_v57, %v3330_v30  ;;  %vm3299_vm2 = vcmp.ge.f32.partialorder %v3267_v1, 0.0  ;;  %v3331_v22 = vmul.f32 0.05, %v3267_v1  ;;  %v1973_v0 = vpop.f32.mrb[17].mxu1 }
 0x2e8   : > { %3394 = vst.msk [vmem:[%s5789_s24 + $0x70] sm:$0xff] %vm596_vm3, %v3362_v43  ;;  %v3360_v11 = vsel %vm3296_vm1, %v3264_v33, %v3328_v31  ;;  %vm3297_vm4 = vcmp.ge.f32.partialorder %v3265_v40, 0.0  ;;  %v3329_v3 = vmul.f32 0.05, %v3265_v40  ;;  %v4156_v55 = vpop.f32.mrb[16].mxu0  ;;  %v4021_v52 = vpop.f32.mrb[18].mxu1 }
 0x2e9   : > { %3392 = vst.msk [vmem:[%s5789_s24 + $0x60] sm:$0xff] %vm596_vm3, %v3360_v11  ;;  %v3363_v54 = vsel %vm3299_vm2, %v3267_v1, %v3331_v22  ;;  %v4188_v12 = vadd.f32 %v4156_v55, %v4020_v17  ;;  %v3150_v59 = vpop.f32.mrb[17].mxu0  ;;  %v1976_v24 = vpop.f32.mrb[19].mxu1 }
 0x2ea   : > { %3395 = vst.msk [vmem:[%s5789_s24 + $0x78] sm:$0xff] %vm596_vm3, %v3363_v54  ;;  %v3361_v60 = vsel %vm3297_vm4, %v3265_v40, %v3329_v3  ;;  %v4189_v61 = vadd.f32 %v3150_v59, %v1973_v0  ;;  %v4157_v15 = vpop.f32.mrb[18].mxu0 }
 0x2eb   : > { %3393 = vst.msk [vmem:[%s5789_s24 + $0x68] sm:$0xff] %vm596_vm3, %v3361_v60  ;;  %v3270_v32 = vadd.f32 %v4188_v12, %v5782_v6  ;;  %v4190_v63 = vadd.f32 %v4157_v15, %v4021_v52  ;;  %v3153_v18 = vpop.f32.mrb[19].mxu0 }
 0x2ec   : > { %v3268_v19 = vadd.f32 %v4189_v61, %v5782_v6  ;;  %v4191_v27 = vadd.f32 %v3153_v18, %v1976_v24 }
 0x2ed   : > { %vm3302_vm5 = vcmp.ge.f32.partialorder %v3270_v32, 0.0  ;;  %v3334_v16 = vmul.f32 0.05, %v3270_v32  ;;  %v3271_v4 = vadd.f32 %v4190_v63, %v5782_v6 }
 0x2ee   : > { %vm3300_vm6 = vcmp.ge.f32.partialorder %v3268_v19, 0.0  ;;  %v3332_v7 = vmul.f32 0.05, %v3268_v19  ;;  %v3269_v21 = vadd.f32 %v4191_v27, %v5782_v6  ;;  %v4024_v45 = vpop.f32.mrb[20].mxu1 }
 0x2ef   : > { %v3366_v46 = vsel %vm3302_vm5, %v3270_v32, %v3334_v16  ;;  %vm3303_vm7 = vcmp.ge.f32.partialorder %v3271_v4, 0.0  ;;  %v3335_v47 = vmul.f32 0.05, %v3271_v4  ;;  %v1989_v62 = vpop.f32.mrb[21].mxu1 }
 0x2f0   : > { %3398 = vst.msk [vmem:[%s5789_s24 + $0x90] sm:$0xff] %vm596_vm3, %v3366_v46  ;;  %v3364_v10 = vsel %vm3300_vm6, %v3268_v19, %v3332_v7  ;;  %vm3301_vm8 = vcmp.ge.f32.partialorder %v3269_v21, 0.0  ;;  %v3333_v20 = vmul.f32 0.05, %v3269_v21  ;;  %v4160_v51 = vpop.f32.mrb[20].mxu0  ;;  %v4025_v25 = vpop.f32.mrb[22].mxu1 }
 0x2f1   : > { %3396 = vst.msk [vmem:[%s5789_s24 + $0x80] sm:$0xff] %vm596_vm3, %v3364_v10  ;;  %v3367_v26 = vsel %vm3303_vm7, %v3271_v4, %v3335_v47  ;;  %v4192_v29 = vadd.f32 %v4160_v51, %v4024_v45  ;;  %v3166_v56 = vpop.f32.mrb[21].mxu0  ;;  %v1992_v14 = vpop.f32.mrb[23].mxu1 }
 0x2f2   : > { %3399 = vst.msk [vmem:[%s5789_s24 + $0x98] sm:$0xff] %vm596_vm3, %v3367_v26  ;;  %v3365_v28 = vsel %vm3301_vm8, %v3269_v21, %v3333_v20  ;;  %v4193_v49 = vadd.f32 %v3166_v56, %v1989_v62  ;;  %v4161_v23 = vpop.f32.mrb[22].mxu0 }
 0x2f3   : > { %3397 = vst.msk [vmem:[%s5789_s24 + $0x88] sm:$0xff] %vm596_vm3, %v3365_v28  ;;  %v3274_v58 = vadd.f32 %v4192_v29, %v5782_v6  ;;  %v4194_v2 = vadd.f32 %v4161_v23, %v4025_v25  ;;  %v3169_v39 = vpop.f32.mrb[23].mxu0 }
 0x2f4   : > { %v3272_v13 = vadd.f32 %v4193_v49, %v5782_v6  ;;  %v4195_v41 = vadd.f32 %v3169_v39, %v1992_v14 }
 0x2f5   : > { %vm3306_vm9 = vcmp.ge.f32.partialorder %v3274_v58, 0.0  ;;  %v3338_v35 = vmul.f32 0.05, %v3274_v58  ;;  %v3275_v48 = vadd.f32 %v4194_v2, %v5782_v6 }
 0x2f6   : > { %vm3304_vm10 = vcmp.ge.f32.partialorder %v3272_v13, 0.0  ;;  %v3336_v50 = vmul.f32 0.05, %v3272_v13  ;;  %v3273_v5 = vadd.f32 %v4195_v41, %v5782_v6  ;;  %v4028_v36 = vpop.f32.mrb[24].mxu1 }
 0x2f7   : > { %v3370_v42 = vsel %vm3306_vm9, %v3274_v58, %v3338_v35  ;;  %vm3307_vm11 = vcmp.ge.f32.partialorder %v3275_v48, 0.0  ;;  %v3339_v44 = vmul.f32 0.05, %v3275_v48  ;;  %v2005_v9 = vpop.f32.mrb[25].mxu1 }
 0x2f8   : > { %3402 = vst.msk [vmem:[%s5789_s24 + $0xb0] sm:$0xff] %vm596_vm3, %v3370_v42  ;;  %v3368_v34 = vsel %vm3304_vm10, %v3272_v13, %v3336_v50  ;;  %vm3305_vm12 = vcmp.ge.f32.partialorder %v3273_v5, 0.0  ;;  %v3337_v53 = vmul.f32 0.05, %v3273_v5  ;;  %v4164_v57 = vpop.f32.mrb[24].mxu0  ;;  %v4029_v37 = vpop.f32.mrb[26].mxu1 }
 0x2f9   : > { %3400 = vst.msk [vmem:[%s5789_s24 + $0xa0] sm:$0xff] %vm596_vm3, %v3368_v34  ;;  %v3371_v8 = vsel %vm3307_vm11, %v3275_v48, %v3339_v44  ;;  %v4196_v33 = vadd.f32 %v4164_v57, %v4028_v36  ;;  %v3182_v38 = vpop.f32.mrb[25].mxu0  ;;  %v2008_v30 = vpop.f32.mrb[27].mxu1 }
 0x2fa   : > { %3403 = vst.msk [vmem:[%s5789_s24 + $0xb8] sm:$0xff] %vm596_vm3, %v3371_v8  ;;  %v3369_v1 = vsel %vm3305_vm12, %v3273_v5, %v3337_v53  ;;  %v4197_v31 = vadd.f32 %v3182_v38, %v2005_v9  ;;  %v4165_v40 = vpop.f32.mrb[26].mxu0 }
 0x2fb   : > { %3401 = vst.msk [vmem:[%s5789_s24 + $0xa8] sm:$0xff] %vm596_vm3, %v3369_v1  ;;  %v3278_v17 = vadd.f32 %v4196_v33, %v5782_v6  ;;  %v4198_v43 = vadd.f32 %v4165_v40, %v4029_v37  ;;  %v3185_v22 = vpop.f32.mrb[27].mxu0 }
 0x2fc   : > { %v3276_v0 = vadd.f32 %v4197_v31, %v5782_v6  ;;  %v4199_v11 = vadd.f32 %v3185_v22, %v2008_v30 }
 0x2fd   : > { %vm3310_vm13 = vcmp.ge.f32.partialorder %v3278_v17, 0.0  ;;  %v3342_v3 = vmul.f32 0.05, %v3278_v17  ;;  %v3279_v55 = vadd.f32 %v4198_v43, %v5782_v6 }
 0x2fe   : > { %vm3308_vm14 = vcmp.ge.f32.partialorder %v3276_v0, 0.0  ;;  %v3340_v52 = vmul.f32 0.05, %v3276_v0  ;;  %v3277_v54 = vadd.f32 %v4199_v11, %v5782_v6  ;;  %v4032_v12 = vpop.f32.mrb[28].mxu1 }
 0x2ff   : > { %v3374_v59 = vsel %vm3310_vm13, %v3278_v17, %v3342_v3  ;;  %vm3311_vm15 = vcmp.ge.f32.partialorder %v3279_v55, 0.0  ;;  %v3343_v24 = vmul.f32 0.05, %v3279_v55  ;;  %v2021_v60 = vpop.f32.mrb[29].mxu1 }
 0x300   : > { %3406 = vst.msk [vmem:[%s5789_s24 + $0xd0] sm:$0xff] %vm596_vm3, %v3374_v59  ;;  %v3372_v61 = vsel %vm3308_vm14, %v3276_v0, %v3340_v52  ;;  %vm3309_vm0 = vcmp.ge.f32.partialorder %v3277_v54, 0.0  ;;  %v3341_v15 = vmul.f32 0.05, %v3277_v54  ;;  %v4168_v32 = vpop.f32.mrb[28].mxu0  ;;  %v4033_v63 = vpop.f32.mrb[30].mxu1 }
 0x301   : > { %3404 = vst.msk [vmem:[%s5789_s24 + $0xc0] sm:$0xff] %vm596_vm3, %v3372_v61  ;;  %v3375_v18 = vsel %vm3311_vm15, %v3279_v55, %v3343_v24  ;;  %v4200_v19 = vadd.f32 %v4168_v32, %v4032_v12  ;;  %v3198_v27 = vpop.f32.mrb[29].mxu0  ;;  %v2024_v16 = vpop.f32.mrb[31].mxu1 }
 0x302   : > { %3407 = vst.msk [vmem:[%s5789_s24 + $0xd8] sm:$0xff] %vm596_vm3, %v3375_v18  ;;  %v3373_v4 = vsel %vm3309_vm0, %v3277_v54, %v3341_v15  ;;  %v4201_v7 = vadd.f32 %v3198_v27, %v2021_v60  ;;  %v4169_v21 = vpop.f32.mrb[30].mxu0 }
 0x303   : > { %3405 = vst.msk [vmem:[%s5789_s24 + $0xc8] sm:$0xff] %vm596_vm3, %v3373_v4  ;;  %v3282_v45 = vadd.f32 %v4200_v19, %v5782_v6  ;;  %v4202_v46 = vadd.f32 %v4169_v21, %v4033_v63  ;;  %v3201_v47 = vpop.f32.mrb[31].mxu0 }
 0x304   : > { %v3280_v62 = vadd.f32 %v4201_v7, %v5782_v6  ;;  %v4203_v10 = vadd.f32 %v3201_v47, %v2024_v16 }
 0x305   : > { %vm3314_vm1 = vcmp.ge.f32.partialorder %v3282_v45, 0.0  ;;  %v3346_v20 = vmul.f32 0.05, %v3282_v45  ;;  %v3283_v51 = vadd.f32 %v4202_v46, %v5782_v6 }
 0x306   : > { %vm3312_vm2 = vcmp.ge.f32.partialorder %v3280_v62, 0.0  ;;  %v3344_v25 = vmul.f32 0.05, %v3280_v62  ;;  %v3281_v26 = vadd.f32 %v4203_v10, %v5782_v6 }
 0x307   : > { %v3378_v29 = vsel %vm3314_vm1, %v3282_v45, %v3346_v20  ;;  %vm3315_vm4 = vcmp.ge.f32.partialorder %v3283_v51, 0.0  ;;  %v3347_v56 = vmul.f32 0.05, %v3283_v51 }
 0x308   : > { %3410 = vst.msk [vmem:[%s5789_s24 + $0xf0] sm:$0xff] %vm596_vm3, %v3378_v29  ;;  %v3376_v14 = vsel %vm3312_vm2, %v3280_v62, %v3344_v25  ;;  %vm3313_vm5 = vcmp.ge.f32.partialorder %v3281_v26, 0.0  ;;  %v3345_v28 = vmul.f32 0.05, %v3281_v26 }
 0x309   : > { %3408 = vst.msk [vmem:[%s5789_s24 + $0xe0] sm:$0xff] %vm596_vm3, %v3376_v14  ;;  %v3379_v6 = vsel %vm3315_vm4, %v3283_v51, %v3347_v56 }
 0x30a   : > { %3411 = vst.msk [vmem:[%s5789_s24 + $0xf8] sm:$0xff] %vm596_vm3, %v3379_v6  ;;  %v3377_v49 = vsel %vm3313_vm5, %v3281_v26, %v3345_v28 }
 0x30b   : > { %3409 = vst.msk [vmem:[%s5789_s24 + $0xe8] sm:$0xff] %vm596_vm3, %v3377_v49 }
 0x30c   : > { %4647 = shalt.err (!%p4644_p7)
}
 0x30d   : > { %s4648_s29 = scalar_lea.hbm %s5890_s19, 4096  ;;  %s4652_s23 = scalar_lea.hbm %s5946_s4, 8192 }
 0x30e   : > { %p4649_p9 = scmp.ne.s32.totalorder %s5890_s19, %s4648_s29  ;;  %p4653_p11 = scmp.lt.u32.totalorder %s5890_s19, %s5946_s4 }
 0x30f   : > { %p4654_p1 = scmp.lt.u32.totalorder %s4652_s23, %s4648_s29  ;;  %p4656_p2 = scmp.lt.u32.totalorder %s4648_s29, %s5890_s19 }
 0x310   : > { %p4650_p0 = pnand %p4649_p9, %p5964_p13 }
 0x311   : > { %p4655_p12 = por %p4654_p1, %p4653_p11 }
 0x312   : > { %p4651_p8 = pneg %p4650_p0 }
 0x313   : > { %p4657_p6 = por %p4656_p2, %p4655_p12 }
 0x315   : > { %p4658_p10 = pnand %p4657_p6, %p4651_p8 }
 0x317   : > { %4661 = shalt.err (!%p4658_p10)
}
 0x318   : > { %s4725_s21 = smov 128   ;;  %s4726_s24 = smov 8  }
 0x319   : > { %4450 = dma.vmem_to_hbm [thread:$0]  (%p5964_p13), %s5892_s8, 4096, %s5890_s19, %s3413_s26, %s4725_s21, %s4725_s21, %s4726_s24  }
 0x31a PF: > { %s3441_s27 = sand.u32 1, %s4700_s15   ;;  %p5965_p4 = scmp.ne.s32.totalorder %s5952_s22, 0 }
 0x31b   : > { %p5966_p5 = scmp.ge.s32.totalorder %s4712_s18, 2  ;;  %s3442_s5 = scalar_lea.sflag [#allocation5], %s3441_s27 }
 0x31d   : > { %p4467_p3 = pnand %p5966_p5, %p5965_p4 }
 0x31f   : > { %4695 = dma.done.wait (!%p4467_p3), %s3442_s5, 4096  }
 0x320   : > { %4697 = vsyncadd (!%p4467_p3), %s3442_s5, 4294963200  ;;  %p21_p7 = scmp.ge.s32.totalorder %s4863_s10, 4   ;;  %s5967_s15 = smov %s4704_s16 }
 0x321   : > { %s5968_s16 = smov %s4708_s17  ;;  %s5969_s17 = smov %s4879_s13 }
 0x322   : > { %s5970_s18 = smov %s4863_s10  ;;  %23 = sbr.rel (!%p21_p7) target bundleno = 10 (0xa), region = 112 }
 0x329   :  { %3447 = vsyncpa [#allocation4], 1 }
 0x32a   :  { %3449 = vsyncpa [#allocation4 + $0x1], 1 }
 0x32b   :  { %3450 = vsyncpa [#allocation7], 1 }
 0x32c   :  { %3452 = vsyncpa [#allocation7 + $0x1], 1 }
 0x32d   :  { %3453 = vsyncpa [#allocation10], 1 }
 0x32e   :  { %3454 = vsyncpa [#allocation5], 1 }
 0x32f   :  { %3456 = vsyncpa [#allocation5 + $0x1], 1 }

// kernel: rlfb_forward.10
= control target key start
LH: loop header
LB: loop body
LE: loop exit
PB: predicated region body
PF: predicated region fallthrough
CT: control target
= control target key end

     0   :  { %s6834_s0 = inlined_call_operand.hbm [shape: f32[2,16,16,4], index: 0, kind: input, shape index: {}]   ;;  %s6835_s1 = inlined_call_operand.hbm [shape: f32[2,16,16,4], index: 1, kind: input, shape index: {}]   ;;  %s6836_s2 = inlined_call_operand.hbm [shape: f32[2,256,4], index: 2, kind: input, shape index: {}]   ;;  %s6837_s3 = inlined_call_operand.hbm [shape: bf16[9,8,4], index: 3, kind: input, shape index: {}]   ;;  %s6838_s4 = inlined_call_operand.hbm [shape: f32[1,4], index: 4, kind: input, shape index: {}]   ;;  %s6839_s5 = inlined_call_operand.hbm [shape: bf16[4,4], index: 5, kind: input, shape index: {}]   ;;  %s6840_s6 = inlined_call_operand.hbm [shape: f32[1,4], index: 6, kind: input, shape index: {}]   ;;  %s6841_s7 = inlined_call_operand.hbm [shape: f32[2,256,4], index: 7, kind: output, shape index: {}]  }
   0x1   :  { %6862 = sst [smem:[#allocation26_spill]] %s6835_s1 }
   0x2   :  { %6863 = sst [smem:[#allocation27_spill]] %s6837_s3 }
   0x3   :  { %6864 = sst [smem:[#allocation28_spill]] %s6839_s5 }
   0x4   :  { %12 = vsyncpa [#allocation4], 0 }
   0x5   :  { %14 = vsyncpa [#allocation4 + $0x1], 0 }
   0x6   :  { %15 = vsyncpa [#allocation7], 0 }
   0x7   :  { %17 = vsyncpa [#allocation7 + $0x1], 0 }
   0x8   :  { %18 = vsyncpa [#allocation10], 0 }
   0x9   :  { %19 = vsyncpa [#allocation13], 0 }
   0xa   :  { %20 = vsyncpa [#allocation5], 0 }
   0xb   :  { %22 = vsyncpa [#allocation5 + $0x1], 0  ;;  %s5439_s24 = smov 0   ;;  %s5441_s25 = smov 0  }
   0xc   :  { %s5443_s26 = smov 0   ;;  %s5445_s27 = smov 0  }
   0xd LB: > { %6865 = sst [smem:[#allocation21_spill]] %s5369_s24  ;;  %s5460_s28 = sadd.s32 4294967295, %s5381_s27   ;;  %s5381_s27 = sphi %s5445_s27, %s6900_s27   ;;  %s5377_s26 = sphi %s5443_s26, %s6904_s26   ;;  %s5373_s25 = sphi %s5441_s25, %s6903_s25   ;;  %s5369_s24 = sphi %s5439_s24, %s6902_s24  }
   0xe   : > { %6866 = sst [smem:[#allocation22_spill]] %s5381_s27  ;;  %s4024_s29 = sadd.s32 4294967294, %s5381_s27  }
   0xf   : > { %p48_p0 = scmp.ne.s32.totalorder %s5373_s25, %s5369_s24  ;;  %p6842_p1 = scmp.eq.s32.totalorder %s5460_s28, 0 }
  0x10   : > { %p214_p3 = scmp.eq.s32.totalorder %s4024_s29, 1  ;;  %p4025_p5 = scmp.ge.s32.totalorder %s5381_s27, 1 }
  0x11   : > { %p5469_p4 = por %p6842_p1, %p48_p0  ;;  %p221_p7 = scmp.lt.s32.totalorder %s5381_s27, 3 }
  0x12   : > { %p5474_p6 = por %p214_p3, %p48_p0  ;;  %s5383_s10 = smov [#allocation9]  }
  0x13   : > { %s6867_s30 = scalar_select %p5469_p4, 1, 0 }
  0x14   : > { %s6868_s8 = scalar_select %p5474_p6, 1, 0 }
  0x15   : > { %p5479_p8 = pnand %p4025_p5, %p221_p7  ;;  %s233_s11 = sshll.u32 %s5383_s10, 4  ;;  %s5483_s11 = int_to_ptr.vmem [resolvable:$true] %s233_s11 }
  0x16   : > { %6869 = sst [smem:[#allocation23_spill]] %s6868_s8  ;;  %s5384_s13 = smov [#allocation12]  }
  0x17   : > { %s6870_s9 = scalar_select %p5479_p8, 1, 0 }
  0x18   : > { %p5020_p9 = pneg %p5479_p8  ;;  %s258_s14 = sshll.u32 %s5384_s13, 4  ;;  %s5494_s14 = int_to_ptr.vmem [resolvable:$true] %s258_s14 }
  0x19   : > { %s6872_s3 = sld [smem:[#allocation27_spill]] }
  0x1a   : > { %p5490_p11 = pnand %p5020_p9, %p6842_p1 }
  0x1c   : > { %s6871_s12 = scalar_select %p5490_p11, 1, 0 }
  0x1d   : > { %p5504_p13 = pneg %p5490_p11 }
  0x1f   : > { %s5101_s17 = scalar_lea.hbm %s6872_s3, 576 }
  0x20   : > { %p5102_p12 = scmp.ne.s32.totalorder %s6872_s3, %s5101_s17  ;;  %p5108_p5 = scmp.lt.u32.totalorder %s5101_s17, %s6872_s3 }
  0x21   : > { %s6873_s20 = scalar_select %p5504_p13, 1, 0 }
  0x22   : > { %p5104_p0 = pnand %p5504_p13, %p5102_p12 }
  0x24   : > { %p5105_p3 = pneg %p5104_p0 }
  0x26   : > { %p5110_p7 = pnand %p5108_p5, %p5105_p3 }
  0x28   : > { %5113 = shalt.err (!%p5110_p7)
}
  0x29   : > { %s5114_s23 = scalar_lea.vmem %s5483_s11, 576  ;;  %p5122_p2 = scmp.lt.s32.totalorder %s5483_s11, %s5483_s11 }
  0x2a   : > { %p5115_p9 = scmp.ne.s32.totalorder %s5483_s11, %s5114_s23  ;;  %p5123_p6 = scmp.lt.s32.totalorder %s5114_s23, %s5114_s23 }
  0x2c   : > { %p5117_p10 = pnand %p5115_p9, %p5504_p13  ;;  %p5124_p12 = por %p5123_p6, %p5122_p2 }
  0x2e   : > { %p5118_p1 = pneg %p5117_p10 }
  0x30   : > { %p5125_p0 = pnand %p5124_p12, %p5118_p1 }
  0x32   : > { %5128 = shalt.err (!%p5125_p0)
}
  0x33   : > { %s5385_s29 = smov 64   ;;  %s5386_s10 = smov 4  }
  0x34   : > { %5023 = dma.hbm_to_vmem [thread:$0]  (!%p5490_p11), %s6872_s3, 576, %s5483_s11, [#allocation10], %s5385_s29, %s5385_s29, %s5386_s10  }
  0x35   : > { %s6874_s5 = sld [smem:[#allocation28_spill]] }
  0x3b   : > { %s5129_s18 = scalar_lea.hbm %s6874_s5, 32 }
  0x3c   : > { %p5130_p2 = scmp.ne.s32.totalorder %s6874_s5, %s5129_s18  ;;  %p5136_p10 = scmp.lt.u32.totalorder %s5129_s18, %s6874_s5 }
  0x3e   : > { %p5132_p1 = pnand %p5130_p2, %p5504_p13 }
  0x40   : > { %p5133_p6 = pneg %p5132_p1 }
  0x42   : > { %p5138_p3 = pnand %p5136_p10, %p5133_p6 }
  0x44   : > { %5141 = shalt.err (!%p5138_p3)
}
  0x45   : > { %s5142_s11 = scalar_lea.vmem %s5494_s14, 32  ;;  %p5150_p12 = scmp.lt.s32.totalorder %s5494_s14, %s5494_s14 }
  0x46   : > { %p5143_p5 = scmp.ne.s32.totalorder %s5494_s14, %s5142_s11  ;;  %p5151_p0 = scmp.lt.s32.totalorder %s5142_s11, %s5142_s11 }
  0x48   : > { %p5145_p7 = pnand %p5143_p5, %p5504_p13  ;;  %p5152_p2 = por %p5151_p0, %p5150_p12 }
  0x4a   : > { %p5146_p9 = pneg %p5145_p7 }
  0x4c   : > { %p5153_p1 = pnand %p5152_p2, %p5146_p9 }
  0x4e   : > { %5156 = shalt.err (!%p5153_p1)
}
  0x4f   : > { %5029 = dma.hbm_to_vmem [thread:$0]  (!%p5490_p11), %s6874_s5, 32, %s5494_s14, [#allocation13]  }
  0x50   : > { %s5549_s13 = sadd.s32 1, %s5381_s27   ;;  %s35_s15 = sadd.s32 1, %s5377_s26 }
  0x51   : > { %6875 = sst [smem:[#allocation24_spill]] %s5549_s13  ;;  %s32_s16 = ssub.s32 %s5381_s27, %s5549_s13 }
  0x52   : > { %p42_p6 = scmp.ne.s32.totalorder %s5377_s26, %s5373_s25  ;;  %p33_p10 = scmp.eq.s32.totalorder %s32_s16, 0 }
  0x53   : > { %p43_p3 = scmp.eq.s32.totalorder %s5381_s27, 0  ;;  %p6876_p5 = scmp.eq.s32.totalorder %s5460_s28, 1 }
  0x54   : > { %p5051_p9 = scmp.lt.s32.totalorder %s5381_s27, 2  ;;  %s6843_s19 = sand.u32 1, %s5377_s26  }
  0x55   : > { %p5559_p7 = por %p6876_p5, %p42_p6  ;;  %p44_p12 = por %p43_p3, %p42_p6 }
  0x56   : > { %s5565_s18 = scalar_select %p33_p10, %s5377_s26, %s35_s15  }
  0x57   : > { %s6877_s17 = scalar_select %p5559_p7, 1, 0 }
  0x58   : > { %6878 = sst [smem:[#allocation25_spill]] %s5565_s18  ;;  %s5570_s14 = sshll.u32 %s6843_s19, 8 }
  0x59   : > { %s5573_s21 = sshll.u32 %s5381_s27, 12  ;;  %p5575_p0 = pnand %p5051_p9, %p44_p12 }
  0x5a   : > { %s301_s23 = sand.u32 1, %s5381_s27   ;;  %s6880_s1 = sld [smem:[#allocation26_spill]] }
  0x5b   : > { %s6879_s22 = scalar_select %p5575_p0, 1, 0 }
  0x5c   : > { %s305_s15 = scalar_lea.vmem [#allocation6], %s5570_s14  ;;  %s5387_s19 = smov [#allocation11]  }
  0x5d   : > { %s312_s16 = sshll.u32 %s305_s15, 4  ;;  %s5589_s3 = sshll.u32 %s5387_s19, 4  ;;  %s5587_s16 = int_to_ptr.vmem [resolvable:$true] %s312_s16  ;;  %s248_s3 = int_to_ptr.vmem [resolvable:$true] %s5589_s3 }
  0x5e   : > { %s5591_s5 = scalar_lea.sflag [#allocation7], %s301_s23  ;;  %p5597_p1 = pneg %p5575_p0 }
  0x60   : > { %s5584_s10 = scalar_lea.hbm %s6880_s1, %s5573_s21  ;;  %s5162_s13 = scalar_lea.hbm %s6880_s1, 8192 }
  0x61   : > { %s5157_s18 = scalar_lea.hbm %s5584_s10, 4096  ;;  %p5163_p3 = scmp.lt.u32.totalorder %s5584_s10, %s6880_s1 }
  0x62   : > { %p5158_p2 = scmp.ne.s32.totalorder %s5584_s10, %s5157_s18  ;;  %p5164_p5 = scmp.lt.u32.totalorder %s5162_s13, %s5157_s18 }
  0x63   : > { %s6881_s11 = scalar_select %p5597_p1, 1, 0 }
  0x64   : > { %p5160_p6 = pnand %p5597_p1, %p5158_p2  ;;  %p5165_p9 = por %p5164_p5, %p5163_p3 }
  0x65   : > { %p5166_p12 = scmp.lt.u32.totalorder %s5157_s18, %s5584_s10 }
  0x66   : > { %p5161_p10 = pneg %p5160_p6 }
  0x67   : > { %p5167_p7 = por %p5166_p12, %p5165_p9 }
  0x69   : > { %p5168_p4 = pnand %p5167_p7, %p5161_p10 }
  0x6b   : > { %5171 = shalt.err (!%p5168_p4)
}
  0x6c   : > { %s5172_s23 = scalar_lea.vmem %s5587_s16, 4096  ;;  %s5388_s29 = smov [#allocation6]  }
  0x6d   : > { %p5173_p2 = scmp.ne.s32.totalorder %s5587_s16, %s5172_s23  ;;  %s5177_s15 = sshll.u32 %s5388_s29, 4  ;;  %s5178_s15 = int_to_ptr.vmem [resolvable:$false] %s5177_s15 }
  0x6e   : > { %s5179_s27 = scalar_lea.vmem %s5178_s15, 8192  ;;  %p5180_p11 = scmp.lt.s32.totalorder %s5587_s16, %s5178_s15 }
  0x6f   : > { %p5175_p6 = pnand %p5173_p2, %p5597_p1  ;;  %p5181_p13 = scmp.lt.s32.totalorder %s5179_s27, %s5172_s23 }
  0x71   : > { %p5176_p8 = pneg %p5175_p6  ;;  %p5182_p3 = por %p5181_p13, %p5180_p11 }
  0x73   : > { %p5183_p5 = pnand %p5182_p3, %p5176_p8 }
  0x75   : > { %5186 = shalt.err (!%p5183_p5)
}
  0x76   : > { %s6858_s13 = smov 128   ;;  %s5390_s18 = smov 8  }
  0x77   : > { %5039 = dma.hbm_to_vmem [thread:$0]  (!%p5575_p0), %s5584_s10, 4096, %s5587_s16, %s5591_s5, %s6858_s13, %s6858_s13, %s5390_s18  }
  0x78   : > { %s5187_s23 = scalar_lea.hbm %s6838_s4, 16  ;;  %p6882_p8 = scmp.ne.s32.totalorder %s6873_s20, 0 }
  0x79   : > { %p5188_p4 = scmp.ne.s32.totalorder %s6838_s4, %s5187_s23  ;;  %p5194_p7 = scmp.lt.u32.totalorder %s5187_s23, %s6838_s4 }
  0x7b   : > { %p5190_p11 = pnand %p5188_p4, %p6882_p8 }
  0x7d   : > { %p5191_p13 = pneg %p5190_p11 }
  0x7f   : > { %p5196_p10 = pnand %p5194_p7, %p5191_p13 }
  0x81   : > { %5199 = shalt.err (!%p5196_p10)
}
  0x82   : > { %s5200_s24 = scalar_lea.vmem %s248_s3, 16  ;;  %s5207_s10 = scalar_lea.vmem %s248_s3, 32 }
  0x83   : > { %p5201_p9 = scmp.ne.s32.totalorder %s248_s3, %s5200_s24  ;;  %p5208_p6 = scmp.lt.s32.totalorder %s248_s3, %s248_s3 }
  0x84   : > { %p5209_p3 = scmp.lt.s32.totalorder %s5207_s10, %s5200_s24 }
  0x85   : > { %p5203_p12 = pnand %p5201_p9, %p6882_p8 }
  0x86   : > { %p5210_p5 = por %p5209_p3, %p5208_p6 }
  0x87   : > { %p5204_p2 = pneg %p5203_p12 }
  0x89   : > { %p5211_p0 = pnand %p5210_p5, %p5204_p2 }
  0x8b   : > { %5214 = shalt.err (!%p5211_p0)
}
  0x8c   : > { %p6883_p4 = scmp.ne.s32.totalorder %s6871_s12, 0  ;;  %s5391_s1 = smov [#allocation14]  }
  0x8d   : > { %s269_s8 = sshll.u32 %s5391_s1, 4  ;;  %s5215_s15 = scalar_lea.hbm %s6840_s6, 16  ;;  %s270_s8 = int_to_ptr.vmem [resolvable:$true] %s269_s8 }
  0x8e   : > { %5026 = dma.hbm_to_vmem [thread:$0]  (!%p6883_p4), %s6838_s4, 16, %s248_s3, [#allocation10]  }
  0x8f   : > { %p5216_p11 = scmp.ne.s32.totalorder %s6840_s6, %s5215_s15  ;;  %p5222_p7 = scmp.lt.u32.totalorder %s5215_s15, %s6840_s6 }
  0x91   : > { %p5218_p0 = pnand %p5216_p11, %p6882_p8 }
  0x93   : > { %p5219_p13 = pneg %p5218_p0 }
  0x95   : > { %p5224_p10 = pnand %p5222_p7, %p5219_p13 }
  0x97   : > { %5227 = shalt.err (!%p5224_p10)
}
  0x98   : > { %s5228_s3 = scalar_lea.vmem %s270_s8, 16  ;;  %s5235_s16 = scalar_lea.vmem %s270_s8, 32 }
  0x99   : > { %p5229_p9 = scmp.ne.s32.totalorder %s270_s8, %s5228_s3  ;;  %p5236_p6 = scmp.lt.s32.totalorder %s270_s8, %s270_s8 }
  0x9a   : > { %p5237_p3 = scmp.lt.s32.totalorder %s5235_s16, %s5228_s3 }
  0x9b   : > { %p5231_p12 = pnand %p5229_p9, %p6882_p8 }
  0x9c   : > { %p5238_p5 = por %p5237_p3, %p5236_p6 }
  0x9d   : > { %p5232_p2 = pneg %p5231_p12 }
  0x9f   : > { %p5239_p1 = pnand %p5238_p5, %p5232_p2 }
  0xa1   : > { %5242 = shalt.err (!%p5239_p1)
}
  0xa2   : > { %5032 = dma.hbm_to_vmem [thread:$0]  (!%p6883_p4), %s6840_s6, 16, %s270_s8, [#allocation13]  }
  0xa3   : > { %s5665_s29 = scalar_lea.hbm %s6834_s0, %s5573_s21  ;;  %s284_s23 = scalar_lea.vmem [#allocation3], %s5570_s14 }
  0xa4   : > { %s291_s15 = sshll.u32 %s284_s23, 4  ;;  %s6884_s12 = sand.u32 1, %s5377_s26   ;;  %s5668_s15 = int_to_ptr.vmem [resolvable:$true] %s291_s15 }
  0xa5   : > { %s5672_s27 = scalar_lea.sflag [#allocation4], %s6884_s12  ;;  %s5243_s24 = scalar_lea.hbm %s5665_s29, 4096 }
  0xa6   : > { %p5244_p1 = scmp.ne.s32.totalorder %s5665_s29, %s5243_s24  ;;  %p6885_p8 = scmp.ne.s32.totalorder %s6881_s11, 0 }
  0xa7   : > { %s5248_s3 = scalar_lea.hbm %s6834_s0, 8192  ;;  %p5249_p0 = scmp.lt.u32.totalorder %s5665_s29, %s6834_s0 }
  0xa8   : > { %p5246_p4 = pnand %p5244_p1, %p6885_p8  ;;  %p5250_p13 = scmp.lt.u32.totalorder %s5248_s3, %s5243_s24 }
  0xa9   : > { %p5252_p10 = scmp.lt.u32.totalorder %s5243_s24, %s5665_s29 }
  0xaa   : > { %p5247_p11 = pneg %p5246_p4  ;;  %p5251_p7 = por %p5250_p13, %p5249_p0 }
  0xac   : > { %p5253_p9 = por %p5252_p10, %p5251_p7 }
  0xae   : > { %p5254_p12 = pnand %p5253_p9, %p5247_p11 }
  0xb0   : > { %5257 = shalt.err (!%p5254_p12)
}
  0xb1   : > { %s5258_s19 = scalar_lea.vmem %s5668_s15, 4096  ;;  %s5392_s1 = smov [#allocation3]  }
  0xb2   : > { %p5259_p2 = scmp.ne.s32.totalorder %s5668_s15, %s5258_s19  ;;  %s5263_s20 = sshll.u32 %s5392_s1, 4  ;;  %s5264_s20 = int_to_ptr.vmem [resolvable:$false] %s5263_s20 }
  0xb3   : > { %s5265_s23 = scalar_lea.vmem %s5264_s20, 8192  ;;  %p5266_p5 = scmp.lt.s32.totalorder %s5668_s15, %s5264_s20 }
  0xb4   : > { %p5261_p6 = pnand %p5259_p2, %p6885_p8  ;;  %p5267_p1 = scmp.lt.s32.totalorder %s5265_s23, %s5258_s19 }
  0xb6   : > { %p5262_p3 = pneg %p5261_p6  ;;  %p5268_p4 = por %p5267_p1, %p5266_p5 }
  0xb8   : > { %p5269_p0 = pnand %p5268_p4, %p5262_p3 }
  0xba   : > { %5272 = shalt.err (!%p5269_p0)
}
  0xbb   : > { %p6886_p11 = scmp.ne.s32.totalorder %s6879_s22, 0  ;;  %s6887_s12 = smov 128  }
  0xbc   : > { %s5703_s10 = scalar_lea.hbm %s6836_s2, %s5573_s21  ;;  %s326_s3 = scalar_lea.vmem [#allocation8], %s5570_s14 }
  0xbd   : > { %5036 = dma.hbm_to_vmem [thread:$0]  (!%p6886_p11), %s5665_s29, 4096, %s5668_s15, %s5672_s27, %s6887_s12, %s6887_s12, %s5390_s18  }
  0xbe   : > { %s333_s16 = sshll.u32 %s326_s3, 4  ;;  %s5273_s13 = scalar_lea.hbm %s5703_s10, 4096  ;;  %s5706_s16 = int_to_ptr.vmem [resolvable:$true] %s333_s16 }
  0xbf   : > { %p5274_p13 = scmp.ne.s32.totalorder %s5703_s10, %s5273_s13  ;;  %s5278_s15 = scalar_lea.hbm %s6836_s2, 8192 }
  0xc0   : > { %p5279_p9 = scmp.lt.u32.totalorder %s5703_s10, %s6836_s2  ;;  %p5280_p12 = scmp.lt.u32.totalorder %s5278_s15, %s5273_s13 }
  0xc1   : > { %p5276_p7 = pnand %p5274_p13, %p6885_p8  ;;  %p5282_p6 = scmp.lt.u32.totalorder %s5273_s13, %s5703_s10 }
  0xc2   : > { %p5281_p2 = por %p5280_p12, %p5279_p9 }
  0xc3   : > { %p5277_p10 = pneg %p5276_p7 }
  0xc4   : > { %p5283_p3 = por %p5282_p6, %p5281_p2 }
  0xc6   : > { %p5284_p5 = pnand %p5283_p3, %p5277_p10 }
  0xc8   : > { %5287 = shalt.err (!%p5284_p5)
}
  0xc9   : > { %s5288_s14 = scalar_lea.vmem %s5706_s16, 4096  ;;  %s5393_s1 = smov [#allocation8]  }
  0xca   : > { %p5289_p1 = scmp.ne.s32.totalorder %s5706_s16, %s5288_s14  ;;  %s5293_s20 = sshll.u32 %s5393_s1, 4  ;;  %s5294_s20 = int_to_ptr.vmem [resolvable:$false] %s5293_s20 }
  0xcb   : > { %s5295_s23 = scalar_lea.vmem %s5294_s20, 8192  ;;  %p5296_p13 = scmp.lt.s32.totalorder %s5706_s16, %s5294_s20 }
  0xcc   : > { %p5291_p4 = pnand %p5289_p1, %p6885_p8  ;;  %p5297_p7 = scmp.lt.s32.totalorder %s5295_s23, %s5288_s14 }
  0xce   : > { %p5292_p0 = pneg %p5291_p4  ;;  %p5298_p9 = por %p5297_p7, %p5296_p13 }
  0xd0   : > { %p5299_p12 = pnand %p5298_p9, %p5292_p0 }
  0xd2   : > { %5302 = shalt.err (!%p5299_p12)
}
  0xd3   : > { %5042 = dma.hbm_to_vmem [thread:$0]  (!%p6886_p11), %s5703_s10, 4096, %s5706_s16, %s5591_s5, %s6887_s12, %s6887_s12, %s5390_s18  }
  0xd4   : > { %p6888_p8 = scmp.ne.s32.totalorder %s6870_s9, 0 }
  0xd5   : > { %s5736_s11 = sand.u32 (!%p6888_p8), 1, %s5373_s25   ;;  %p6889_p10 = scmp.ne.s32.totalorder (!%p6888_p8), %s6867_s30, 0 }
  0xd6   : > { %345 = sbr.rel (%p6888_p8) target bundleno = 1136 (0x470), region = 48  ;;  %s5739_s24 = sshll.u32 (!%p6888_p8), %s5736_s11, 8 }
  0xd7   : > { %s348_s22 = scalar_lea.sflag (!%p6888_p8), [#allocation4], %s5736_s11  ;;  %s5743_s8 = scalar_lea.vmem (!%p6888_p8), [#allocation3], %s5739_s24 }
  0xdd   : > { %5348 = dma.done.wait (%p6889_p10), %s348_s22, 4096  }
  0xde   : > { %5350 = vsyncadd (%p6889_p10), %s348_s22, 4294963200  ;;  %s356_s5 = sand.u32 1, %s5460_s28   ;;  %s5751_s18 = scalar_lea.vmem [#allocation6], %s5739_s24 }
  0xdf   : > { %s357_s9 = scalar_lea.sflag [#allocation7], %s356_s5 }
  0xe0   : > { %5352 = dma.done.wait (%p6889_p10), %s357_s9, 8192  }
  0xe1   : > { %5354 = vsyncadd (%p6889_p10), %s357_s9, 4294959104  ;;  %s5758_s12 = scalar_lea.vmem [#allocation8], %s5739_s24  ;;  %p6890_p11 = scmp.eq.s32.totalorder %s5460_s28, 0 }
  0xe3   : > { %5356 = dma.done.wait (%p6890_p11), [#allocation10], 592   ;;  %p6891_p2 = pmov %p6890_p11 }
  0xe5   : > { %5358 = vsyncadd (%p6891_p2), [#allocation10], 4294966704  ;;  %p6892_p6 = pmov %p6891_p2 }
  0xe6   : > { %p6893_p3 = pmov %p6891_p2 }
  0xe7   : > { %5360 = dma.done.wait (%p6892_p6), [#allocation13], 48  }
  0xe8   : > { %5362 = vsyncadd (%p6893_p3), [#allocation13], 4294967248  ;;  %vm555_vm0 = vcmask 64512   ;;  %v5394_v0 = vmov 0.0   ;;  %vm558_vm1 = vcmask 58368   ;;  %vm952_vm2 = vcmask 1043456  }
  0xe9   : > { %563 = vst.msk [vmem:[#allocation2 + $0x30] sm:$0xff] %vm555_vm0, %v5394_v0  ;;  %564 = vst.msk [vmem:[#allocation2 + $0x38] sm:$0xff] %vm555_vm0, %v5394_v0  ;;  %v5823_v1 = vld [vmem:[%s5751_s18 + $0x10] sm:$0xff]  ;;  %v5826_v2 = vld [vmem:[%s5751_s18] sm:$0xff]  ;;  %s5395_s30 = smov 4   ;;  %vm739_vm3 = vcmask 31744  }
  0xea   : > { %556 = vst.msk [vmem:[#allocation2] sm:$0xff] %vm555_vm0, %v5394_v0  ;;  %557 = vst.msk [vmem:[#allocation2 + $0x8] sm:$0xff] %vm555_vm0, %v5394_v0  ;;  %647 = vrot.lane.b32.xlu1 %v5823_v1, %s5395_s30  ;;  %643 = vrot.lane.b32.xlu0 %v5826_v2, %s5395_s30  ;;  %v903_v3 = vld [vmem:[#allocation9 + $0x4] sm:$0xf]  ;;  %v5833_v4 = vld [vmem:[%s5751_s18 + $0x18] sm:$0xff]  ;;  %vm3659_vm4 = vcmask 1041408  }
  0xeb   : > { %560 = vst.msk [vmem:[#allocation2 + $0x18] sm:$0xff] %vm555_vm0, %v5394_v0  ;;  %561 = vst.msk [vmem:[#allocation2 + $0x20] sm:$0xff] %vm555_vm0, %v5394_v0  ;;  %v5836_v5 = vld [vmem:[%s5751_s18 + $0x8] sm:$0xff]  ;;  %4986 = vmatprep.subr.msk.bf16.mxu1 %vm952_vm2, %v903_v3  ;;  %v954_v6 = vsel %vm952_vm2, %v903_v3, 0  ;;  %v1966_v7 = vld [vmem:[#allocation9 + $0x10] sm:$0xf] }
  0xec   : > { %566 = vst.msk [vmem:[#allocation2 + $0x48] sm:$0xff] %vm555_vm0, %v5394_v0  ;;  %567 = vst.msk [vmem:[#allocation2 + $0x50] sm:$0xff] %vm555_vm0, %v5394_v0  ;;  %4391 = vmatpush3.bf16.msra.mxu1 %v954_v6  ;;  %v5845_v8 = vld [vmem:[%s5751_s18 + $0x28] sm:$0xff]  ;;  %v5848_v9 = vld [vmem:[%s5751_s18 + $0x20] sm:$0xff]  ;;  %4990 = vmatprep.subr.msk.bf16.mxu0 %vm952_vm2, %v1966_v7  ;;  %v2016_v10 = vsel %vm952_vm2, %v1966_v7, 0  ;;  %s6687_s10 = scalar_lea.vmem [#allocation15], %s5739_s24 }
  0xed   : > { %569 = vst.msk [vmem:[#allocation2 + $0x60] sm:$0xff] %vm555_vm0, %v5394_v0  ;;  %570 = vst.msk [vmem:[#allocation2 + $0x68] sm:$0xff] %vm555_vm0, %v5394_v0  ;;  %4527 = vmatpush3.bf16.msra.mxu0 %v2016_v10  ;;  %v5857_v11 = vld [vmem:[%s5751_s18 + $0x38] sm:$0xff]  ;;  %v5860_v12 = vld [vmem:[%s5751_s18 + $0x30] sm:$0xff]  ;;  %s4219_s3 = sshll.u32 %s5460_s28, 12  ;;  %s3870_s16 = sshll.u32 %s6687_s10, 4  ;;  %s6783_s16 = int_to_ptr.vmem [resolvable:$true] %s3870_s16 }
  0xee   : > { %572 = vst.msk [vmem:[#allocation2 + $0x78] sm:$0xff] %vm555_vm0, %v5394_v0  ;;  %573 = vst.msk [vmem:[#allocation2 + $0x80] sm:$0xff] %vm555_vm0, %v5394_v0  ;;  %649 = vrot.lane.b32.xlu1 %v5833_v4, %s5395_s30  ;;  %645 = vrot.lane.b32.xlu0 %v5836_v5, %s5395_s30  ;;  %v5867_v15 = vld [vmem:[%s5751_s18 + $0x48] sm:$0xff]  ;;  %v5870_v16 = vld [vmem:[%s5751_s18 + $0x40] sm:$0xff]  ;;  %s6781_s29 = scalar_lea.hbm %s6841_s7, %s4219_s3  ;;  %s3857_s28 = scalar_lea.sflag [#allocation5], %s5736_s11 }
  0xef   : > { %575 = vst.msk [vmem:[#allocation2 + $0x90] sm:$0xff] %vm555_vm0, %v5394_v0  ;;  %576 = vst.msk [vmem:[#allocation2 + $0x98] sm:$0xff] %vm555_vm0, %v5394_v0  ;;  %v5877_v18 = vld [vmem:[#allocation9 + $0x14] sm:$0xf]  ;;  %v5880_v19 = vld [vmem:[%s5751_s18 + $0x58] sm:$0xff]  ;;  %s5303_s15 = scalar_lea.vmem %s6783_s16, 4096 }
  0xf0   : > { %578 = vst.msk [vmem:[#allocation2 + $0xa8] sm:$0xff] %vm555_vm0, %v5394_v0  ;;  %579 = vst.msk [vmem:[#allocation2 + $0xb0] sm:$0xff] %vm555_vm0, %v5394_v0  ;;  %v5883_v20 = vld [vmem:[%s5751_s18 + $0x50] sm:$0xff]  ;;  %4991 = vmatprep.subr.msk.bf16.mxu0 %vm952_vm2, %v5877_v18  ;;  %v5892_v21 = vld [vmem:[%s5751_s18 + $0x68] sm:$0xff]  ;;  %p5304_p5 = scmp.ne.s32.totalorder %s6783_s16, %s5303_s15  ;;  %p6894_p1 = scmp.ne.s32.totalorder %s6877_s17, 0 }
  0xf1   : > { %581 = vst.msk [vmem:[#allocation2 + $0xc0] sm:$0xff] %vm555_vm0, %v5394_v0  ;;  %582 = vst.msk [vmem:[#allocation2 + $0xc8] sm:$0xff] %vm555_vm0, %v5394_v0  ;;  %v854_v13 = vld [vmem:[#allocation2 + $0x1] sm:$0xff]  ;;  %v5895_v22 = vld [vmem:[%s5751_s18 + $0x60] sm:$0xff]  ;;  %s5396_s27 = smov [#allocation15]  }
  0xf2   : > { %584 = vst.msk [vmem:[#allocation2 + $0xd8] sm:$0xff] %vm555_vm0, %v5394_v0  ;;  %585 = vst.msk [vmem:[#allocation2 + $0xe0] sm:$0xff] %vm555_vm0, %v5394_v0  ;;  %653 = vrot.lane.b32.xlu1 %v5845_v8, %s5395_s30  ;;  %651 = vrot.lane.b32.xlu0 %v5848_v9, %s5395_s30  ;;  %v5902_v23 = vld [vmem:[%s5751_s18 + $0x78] sm:$0xff]  ;;  %v5905_v24 = vld [vmem:[%s5751_s18 + $0x70] sm:$0xff]  ;;  %p5305_p4 = pnand %p5304_p5, %p6894_p1  ;;  %s5307_s21 = sshll.u32 %s5396_s27, 4  ;;  %s5308_s21 = int_to_ptr.vmem [resolvable:$false] %s5307_s21 }
  0xf3   : > { %587 = vst.msk [vmem:[#allocation2 + $0xf0] sm:$0xff] %vm555_vm0, %v5394_v0  ;;  %588 = vst.msk [vmem:[#allocation2 + $0xf8] sm:$0xff] %vm555_vm0, %v5394_v0  ;;  %v5912_v25 = vld [vmem:[%s5751_s18 + $0x88] sm:$0xff]  ;;  %v5915_v26 = vld [vmem:[%s5751_s18 + $0x80] sm:$0xff]  ;;  %s5309_s14 = scalar_lea.vmem %s5308_s21, 8192  ;;  %p5310_p13 = scmp.lt.s32.totalorder %s6783_s16, %s5308_s21 }
  0xf4   : > { %590 = vst.msk [vmem:[#allocation2 + $0x108] sm:$0xff] %vm555_vm0, %v5394_v0  ;;  %591 = vst.msk [vmem:[#allocation2 + $0x110] sm:$0xff] %vm555_vm0, %v5394_v0  ;;  %v5922_v27 = vld [vmem:[%s5751_s18 + $0x98] sm:$0xff]  ;;  %v5925_v28 = vld [vmem:[%s5751_s18 + $0x90] sm:$0xff]  ;;  %p5306_p0 = pneg %p5305_p4  ;;  %p5311_p7 = scmp.lt.s32.totalorder %s5309_s14, %s5303_s15 }
  0xf5   : > { %593 = vst.msk [vmem:[#allocation2 + $0x120] sm:$0xff] %vm555_vm0, %v5394_v0  ;;  %594 = vst.msk [vmem:[#allocation2 + $0x128] sm:$0xff] %vm555_vm0, %v5394_v0  ;;  %v5932_v29 = vld [vmem:[%s5751_s18 + $0xa8] sm:$0xff]  ;;  %v5935_v30 = vld [vmem:[%s5751_s18 + $0xa0] sm:$0xff] }
  0xf6   : > { %596 = vst.msk [vmem:[#allocation2 + $0x138] sm:$0xff] %vm555_vm0, %v5394_v0  ;;  %597 = vst.msk [vmem:[#allocation2 + $0x140] sm:$0xff] %vm555_vm0, %v5394_v0  ;;  %657 = vrot.lane.b32.xlu1 %v5857_v11, %s5395_s30  ;;  %655 = vrot.lane.b32.xlu0 %v5860_v12, %s5395_s30  ;;  %v5942_v31 = vld [vmem:[%s5751_s18 + $0xb8] sm:$0xff]  ;;  %v5945_v32 = vld [vmem:[%s5751_s18 + $0xb0] sm:$0xff]  ;;  %p5312_p9 = por %p5311_p7, %p5310_p13 }
  0xf7   : > { %599 = vst.msk [vmem:[#allocation2 + $0x150] sm:$0xff] %vm555_vm0, %v5394_v0  ;;  %600 = vst.msk [vmem:[#allocation2 + $0x158] sm:$0xff] %vm555_vm0, %v5394_v0  ;;  %v5952_v33 = vld [vmem:[%s5751_s18 + $0xc8] sm:$0xff]  ;;  %v5955_v34 = vld [vmem:[%s5751_s18 + $0xc0] sm:$0xff] }
  0xf8   : > { %602 = vst.msk [vmem:[#allocation2 + $0x168] sm:$0xff] %vm555_vm0, %v5394_v0  ;;  %603 = vst.msk [vmem:[#allocation2 + $0x170] sm:$0xff] %vm555_vm0, %v5394_v0  ;;  %v5962_v35 = vld [vmem:[%s5751_s18 + $0xd8] sm:$0xff]  ;;  %v5965_v36 = vld [vmem:[%s5751_s18 + $0xd0] sm:$0xff]  ;;  %p5313_p12 = pnand %p5312_p9, %p5306_p0 }
  0xf9   : > { %605 = vst.msk [vmem:[#allocation2 + $0x180] sm:$0xff] %vm555_vm0, %v5394_v0  ;;  %606 = vst.msk [vmem:[#allocation2 + $0x188] sm:$0xff] %vm555_vm0, %v5394_v0  ;;  %v5972_v37 = vld [vmem:[%s5751_s18 + $0xe8] sm:$0xff]  ;;  %v5975_v38 = vld [vmem:[%s5751_s18 + $0xe0] sm:$0xff] }
  0xfa   : > { %608 = vst.msk [vmem:[#allocation2 + $0x198] sm:$0xff] %vm555_vm0, %v5394_v0  ;;  %609 = vst.msk [vmem:[#allocation2 + $0x1a0] sm:$0xff] %vm555_vm0, %v5394_v0  ;;  %661 = vrot.lane.b32.xlu1 %v5867_v15, %s5395_s30  ;;  %659 = vrot.lane.b32.xlu0 %v5870_v16, %s5395_s30  ;;  %v5982_v39 = vld [vmem:[%s5751_s18 + $0xf8] sm:$0xff]  ;;  %v5985_v40 = vld [vmem:[%s5751_s18 + $0xf0] sm:$0xff] }
  0xfb   : > { %565 = vst.msk [vmem:[#allocation2 + $0x40] sm:$0x3] %vm558_vm1, %v5394_v0  ;;  %559 = vst.msk [vmem:[#allocation2 + $0x10] sm:$0x3] %vm558_vm1, %v5394_v0  ;;  %v5991_v41 = vld [vmem:[#allocation9] sm:$0xf] }
  0xfc   : > { %562 = vst.msk [vmem:[#allocation2 + $0x28] sm:$0x3] %vm558_vm1, %v5394_v0  ;;  %568 = vst.msk [vmem:[#allocation2 + $0x58] sm:$0x3] %vm558_vm1, %v5394_v0  ;;  %4987 = vmatprep.subr.msk.bf16.mxu1 %vm952_vm2, %v5991_v41  ;;  %v461_v42 = vld [vmem:[%s5743_s8 + $0x10] sm:$0xff]  ;;  %v459_v43 = vld [vmem:[%s5743_s8] sm:$0xff] }
  0xfd   : > { %571 = vst.msk [vmem:[#allocation2 + $0x70] sm:$0x3] %vm558_vm1, %v5394_v0  ;;  %574 = vst.msk [vmem:[#allocation2 + $0x88] sm:$0x3] %vm558_vm1, %v5394_v0  ;;  %v493_v44 = vmul.f32 0.2, %v461_v42 }
  0xfe   : > { %577 = vst.msk [vmem:[#allocation2 + $0xa0] sm:$0x3] %vm558_vm1, %v5394_v0  ;;  %580 = vst.msk [vmem:[#allocation2 + $0xb8] sm:$0x3] %vm558_vm1, %v5394_v0  ;;  %665 = vrot.lane.b32.xlu1 %v5880_v19, %s5395_s30  ;;  %663 = vrot.lane.b32.xlu0 %v5883_v20, %s5395_s30  ;;  %v491_v45 = vmul.f32 0.2, %v459_v43 }
  0xff   : > { %583 = vst.msk [vmem:[#allocation2 + $0xd0] sm:$0x3] %vm558_vm1, %v5394_v0  ;;  %586 = vst.msk [vmem:[#allocation2 + $0xe8] sm:$0x3] %vm558_vm1, %v5394_v0  ;;  %v462_v46 = vld [vmem:[%s5743_s8 + $0x18] sm:$0xff]  ;;  %v460_v47 = vld [vmem:[%s5743_s8 + $0x8] sm:$0xff]  ;;  %v525_v49 = vadd.f32 %v493_v44, %v5823_v1 }
 0x100   : > { %589 = vst.msk [vmem:[#allocation2 + $0x100] sm:$0x3] %vm558_vm1, %v5394_v0  ;;  %592 = vst.msk [vmem:[#allocation2 + $0x118] sm:$0x3] %vm558_vm1, %v5394_v0  ;;  %v494_v48 = vmul.f32 0.2, %v462_v46  ;;  %v523_v50 = vadd.f32 %v491_v45, %v5826_v2 }
 0x101   : > { %595 = vst.msk [vmem:[#allocation2 + $0x130] sm:$0x3] %vm558_vm1, %v5394_v0  ;;  %598 = vst.msk [vmem:[#allocation2 + $0x148] sm:$0x3] %vm558_vm1, %v5394_v0  ;;  %v492_v51 = vmul.f32 0.2, %v460_v47 }
 0x102   : > { %601 = vst.msk [vmem:[#allocation2 + $0x160] sm:$0x3] %vm558_vm1, %v5394_v0  ;;  %604 = vst.msk [vmem:[#allocation2 + $0x178] sm:$0x3] %vm558_vm1, %v5394_v0  ;;  %v855_v14 = vld [vmem:[#allocation2 + $0x9] sm:$0xff]  ;;  %669 = vrot.lane.b32.xlu1 %v5892_v21, %s5395_s30  ;;  %667 = vrot.lane.b32.xlu0 %v5895_v22, %s5395_s30  ;;  %v464_v52 = vld [vmem:[%s5743_s8 + $0x28] sm:$0xff]  ;;  %v526_v54 = vadd.f32 %v494_v48, %v5833_v4 }
 0x103   : > { %607 = vst.msk [vmem:[#allocation2 + $0x190] sm:$0x3] %vm558_vm1, %v5394_v0  ;;  %610 = vst.msk [vmem:[#allocation2 + $0x1a8] sm:$0x3] %vm558_vm1, %v5394_v0  ;;  %v886_v17 = vpack.c.bf16 %v855_v14, %v854_v13  ;;  %v463_v53 = vld [vmem:[%s5743_s8 + $0x20] sm:$0xff]  ;;  %v524_v58 = vadd.f32 %v492_v51, %v5836_v5  ;;  %v466_v60 = vld [vmem:[%s5743_s8 + $0x38] sm:$0xff] }
 0x104   : > { %v496_v55 = vmul.f32 0.2, %v464_v52  ;;  %v495_v59 = vmul.f32 0.2, %v463_v53  ;;  %v465_v63 = vld [vmem:[%s5743_s8 + $0x30] sm:$0xff]  ;;  %v468_v6 = vld [vmem:[%s5743_s8 + $0x48] sm:$0xff] }
 0x105   : > { %4392 = vmatprep.mubr.msk.bf16.mxu1 %vm555_vm0, %v886_v17  ;;  %v498_v1 = vmul.f32 0.2, %v466_v60  ;;  %v497_v5 = vmul.f32 0.2, %v465_v63  ;;  %v467_v13 = vld [vmem:[%s5743_s8 + $0x40] sm:$0xff]  ;;  %v470_v44 = vld [vmem:[%s5743_s8 + $0x58] sm:$0xff] }
 0x106   : > { %673 = vrot.lane.b32.xlu1 %v5902_v23, %s5395_s30  ;;  %671 = vrot.lane.b32.xlu0 %v5905_v24, %s5395_s30  ;;  %v528_v0 = vadd.f32 %v496_v55, %v5845_v8  ;;  %v527_v4 = vadd.f32 %v495_v59, %v5848_v9  ;;  %v500_v14 = vmul.f32 0.2, %v468_v6  ;;  %v499_v43 = vmul.f32 0.2, %v467_v13  ;;  %v469_v47 = vld [vmem:[%s5743_s8 + $0x50] sm:$0xff]  ;;  %v471_v59 = vld [vmem:[%s5743_s8 + $0x60] sm:$0xff] }
 0x107   : > { %v530_v8 = vadd.f32 %v498_v1, %v5857_v11  ;;  %v529_v9 = vadd.f32 %v497_v5, %v5860_v12  ;;  %v502_v11 = vmul.f32 0.2, %v470_v44  ;;  %v501_v53 = vmul.f32 0.2, %v469_v47  ;;  %v474_v5 = vld [vmem:[%s5743_s8 + $0x78] sm:$0xff] }
 0x108   : > { %v532_v48 = vadd.f32 %v500_v14, %v5867_v15  ;;  %v531_v12 = vadd.f32 %v499_v43, %v5870_v16  ;;  %v2310_v16 = vsel %vm952_vm2, %v5877_v18, 0  ;;  %v503_v18 = vmul.f32 0.2, %v471_v59  ;;  %v476_v43 = vld [vmem:[%s5743_s8 + $0x88] sm:$0xff] }
 0x10a   : > { %677 = vrot.lane.b32.xlu1 %v5912_v25, %s5395_s30  ;;  %675 = vrot.lane.b32.xlu0 %v5915_v26, %s5395_s30 }
 0x10e   : > { %681 = vrot.lane.b32.xlu1 %v5922_v27, %s5395_s30  ;;  %679 = vrot.lane.b32.xlu0 %v5925_v28, %s5395_s30 }
 0x112   : > { %685 = vrot.lane.b32.xlu1 %v5932_v29, %s5395_s30  ;;  %683 = vrot.lane.b32.xlu0 %v5935_v30, %s5395_s30 }
 0x116   : > { %689 = vrot.lane.b32.xlu1 %v5942_v31, %s5395_s30  ;;  %687 = vrot.lane.b32.xlu0 %v5945_v32, %s5395_s30 }
 0x11a   : > { %693 = vrot.lane.b32.xlu1 %v5952_v33, %s5395_s30  ;;  %691 = vrot.lane.b32.xlu0 %v5955_v34, %s5395_s30 }
 0x11e   : > { %697 = vrot.lane.b32.xlu1 %v5962_v35, %s5395_s30  ;;  %695 = vrot.lane.b32.xlu0 %v5965_v36, %s5395_s30 }
 0x122   : > { %701 = vrot.lane.b32.xlu1 %v5972_v37, %s5395_s30  ;;  %699 = vrot.lane.b32.xlu0 %v5975_v38, %s5395_s30 }
 0x126   : > { %705 = vrot.lane.b32.xlu1 %v5982_v39, %s5395_s30  ;;  %703 = vrot.lane.b32.xlu0 %v5985_v40, %s5395_s30 }
 0x15c   : > { %v648_v56 = vpop.permute.xlu1 %647  ;;  %v644_v57 = vpop.permute.xlu0 %643 }
 0x15d   : > { %v742_v61 = vsel %vm739_vm3, %v525_v49, %v648_v56  ;;  %v740_v62 = vsel %vm739_vm3, %v523_v50, %v644_v57  ;;  %v472_v49 = vld [vmem:[%s5743_s8 + $0x68] sm:$0xff] }
 0x15e   : > { %775 = vst.msk [vmem:[#allocation2 + $0x31] sm:$0xff] %vm555_vm0, %v742_v61  ;;  %773 = vst.msk [vmem:[#allocation2 + $0x19] sm:$0xff] %vm555_vm0, %v740_v62  ;;  %v1166_v61 = vsel %vm952_vm2, %v5991_v41, 0  ;;  %v534_v62 = vadd.f32 %v502_v11, %v5880_v19  ;;  %v504_v63 = vmul.f32 0.2, %v472_v49 }
 0x160   : > { %v650_v2 = vpop.permute.xlu1 %649  ;;  %v646_v3 = vpop.permute.xlu0 %645  ;;  %v536_v13 = vadd.f32 %v504_v63, %v5892_v21 }
 0x161   : > { %v743_v7 = vsel %vm739_vm3, %v526_v54, %v650_v2  ;;  %v741_v10 = vsel %vm739_vm3, %v524_v58, %v646_v3  ;;  %v6044_v2 = vld [vmem:[#allocation9 + $0x18] sm:$0xf]  ;;  %v6046_v3 = vld [vmem:[#allocation9 + $0x8] sm:$0xf] }
 0x162   : > { %776 = vst.msk [vmem:[#allocation2 + $0x39] sm:$0xff] %vm555_vm0, %v743_v7  ;;  %774 = vst.msk [vmem:[#allocation2 + $0x21] sm:$0xff] %vm555_vm0, %v741_v10  ;;  %v473_v10 = vld [vmem:[%s5743_s8 + $0x70] sm:$0xff] }
 0x164   : > { %v654_v17 = vpop.permute.xlu1 %653  ;;  %v652_v42 = vpop.permute.xlu0 %651 }
 0x165   : > { %v745_v45 = vsel %vm739_vm3, %v528_v0, %v654_v17  ;;  %v744_v46 = vsel %vm739_vm3, %v527_v4, %v652_v42  ;;  %v856_v52 = vld [vmem:[#allocation2 + $0x19] sm:$0xff]  ;;  %v858_v57 = vld [vmem:[#allocation2 + $0x31] sm:$0xff]  ;;  %v533_v4 = vadd.f32 %v501_v53, %v5883_v20  ;;  %v535_v42 = vadd.f32 %v503_v18, %v5895_v22 }
 0x166   : > { %778 = vst.msk [vmem:[#allocation2 + $0x51] sm:$0xff] %vm555_vm0, %v745_v45  ;;  %777 = vst.msk [vmem:[#allocation2 + $0x49] sm:$0xff] %vm555_vm0, %v744_v46  ;;  %v508_v22 = vmul.f32 0.2, %v476_v43  ;;  %v479_v18 = vld [vmem:[%s5743_s8 + $0xa0] sm:$0xff] }
 0x168   : > { %v658_v50 = vpop.permute.xlu1 %657  ;;  %v656_v51 = vpop.permute.xlu0 %655 }
 0x169   : > { %v747_v54 = vsel %vm739_vm3, %v530_v8, %v658_v50  ;;  %v746_v55 = vsel %vm739_vm3, %v529_v9, %v656_v51  ;;  %v857_v56 = vld [vmem:[#allocation2 + $0x21] sm:$0xff]  ;;  %v859_v58 = vld [vmem:[#allocation2 + $0x39] sm:$0xff]  ;;  %v506_v8 = vmul.f32 0.2, %v474_v5  ;;  %v505_v9 = vmul.f32 0.2, %v473_v10 }
 0x16a   : > { %780 = vst.msk [vmem:[#allocation2 + $0x69] sm:$0xff] %vm555_vm0, %v747_v54  ;;  %779 = vst.msk [vmem:[#allocation2 + $0x61] sm:$0xff] %vm555_vm0, %v746_v55  ;;  %v887_v15 = vpack.c.bf16 %v857_v56, %v856_v52  ;;  %v6035_v60 = vpack.c.bf16 %v859_v58, %v858_v57  ;;  %v477_v56 = vld [vmem:[%s5743_s8 + $0x90] sm:$0xff]  ;;  %v540_v57 = vadd.f32 %v508_v22, %v5912_v25  ;;  %v482_v10 = vld [vmem:[%s5743_s8 + $0xb8] sm:$0xff] }
 0x16b   : > { %v538_v11 = vadd.f32 %v506_v8, %v5902_v23  ;;  %v537_v51 = vadd.f32 %v505_v9, %v5905_v24  ;;  %v514_v9 = vmul.f32 0.2, %v482_v10 }
 0x16c   : > { %4393 = vmatmul.mubr.msk.bf16.vlgmr.msra.gmra.mrb[0].mxu1 %vm555_vm0, %v887_v15  ;;  %4528 = vmatprep.mubr.msk.bf16.mxu0 %vm555_vm0, %v887_v15  ;;  %v662_v0 = vpop.permute.xlu1 %661  ;;  %v660_v1 = vpop.permute.xlu0 %659 }
 0x16d   : > { %v749_v41 = vsel %vm739_vm3, %v532_v48, %v662_v0  ;;  %v748_v19 = vsel %vm739_vm3, %v531_v12, %v660_v1  ;;  %4396 = vmatprep.mubr.msk.bf16.mxu1 %vm555_vm0, %v6035_v60  ;;  %4529 = vmatmul.mubr.msk.bf16.vlgmr.msra.gmra.mrb[0].mxu0 %vm555_vm0, %v6035_v60  ;;  %v1921_v6 = vld [vmem:[#allocation2 + $0x49] sm:$0xff]  ;;  %v1922_v7 = vld [vmem:[#allocation2 + $0x51] sm:$0xff] }
 0x16e   : > { %782 = vst.msk [vmem:[#allocation2 + $0x81] sm:$0xff] %vm555_vm0, %v749_v41  ;;  %781 = vst.msk [vmem:[#allocation2 + $0x79] sm:$0xff] %vm555_vm0, %v748_v19  ;;  %4561 = vmatpush3.bf16.msra.mxu0 %v2310_v16  ;;  %v6059_v20 = vpack.c.bf16 %v1922_v7, %v1921_v6  ;;  %4425 = vmatpush3.bf16.msra.mxu1 %v1166_v61  ;;  %v475_v48 = vld [vmem:[%s5743_s8 + $0x80] sm:$0xff]  ;;  %v478_v12 = vld [vmem:[%s5743_s8 + $0x98] sm:$0xff]  ;;  %v509_v61 = vmul.f32 0.2, %v477_v56 }
 0x16f   : > { %4992 = vmatprep.subr.msk.bf16.mxu0 %vm952_vm2, %v6044_v2  ;;  %4988 = vmatprep.subr.msk.bf16.mxu1 %vm952_vm2, %v6046_v3  ;;  %v507_v52 = vmul.f32 0.2, %v475_v48  ;;  %v510_v58 = vmul.f32 0.2, %v478_v12  ;;  %v511_v7 = vmul.f32 0.2, %v479_v18 }
 0x170   : > { %v666_v14 = vpop.permute.xlu1 %665  ;;  %v664_v17 = vpop.permute.xlu0 %663  ;;  %4532 = vmatprep.mubr.msk.bf16.mxu0 %vm555_vm0, %v6059_v20  ;;  %v541_v6 = vadd.f32 %v509_v61, %v5925_v28 }
 0x171   : > { %v751_v44 = vsel %vm739_vm3, %v534_v62, %v666_v14  ;;  %v750_v45 = vsel %vm739_vm3, %v533_v4, %v664_v17  ;;  %v862_v46 = vld [vmem:[#allocation2 + $0x61] sm:$0xff]  ;;  %v863_v47 = vld [vmem:[#allocation2 + $0x69] sm:$0xff]  ;;  %v539_v16 = vadd.f32 %v507_v52, %v5915_v26  ;;  %v480_v62 = vld [vmem:[%s5743_s8 + $0xa8] sm:$0xff]  ;;  %v542_v5 = vadd.f32 %v510_v58, %v5922_v27 }
 0x172   : > { %784 = vst.msk [vmem:[#allocation2 + $0x99] sm:$0xff] %vm555_vm0, %v751_v44  ;;  %783 = vst.msk [vmem:[#allocation2 + $0x91] sm:$0xff] %vm555_vm0, %v750_v45  ;;  %v6075_v21 = vpack.c.bf16 %v863_v47, %v862_v46  ;;  %v512_v26 = vmul.f32 0.2, %v480_v62  ;;  %v481_v17 = vld [vmem:[%s5743_s8 + $0xb0] sm:$0xff]  ;;  %v543_v45 = vadd.f32 %v511_v7, %v5935_v30  ;;  %v484_v47 = vld [vmem:[%s5743_s8 + $0xc8] sm:$0xff] }
 0x173   : > { %v513_v46 = vmul.f32 0.2, %v481_v17  ;;  %v516_v30 = vmul.f32 0.2, %v484_v47  ;;  %v485_v58 = vld [vmem:[%s5743_s8 + $0xd0] sm:$0xff] }
 0x174   : > { %4397 = vmatmul.mubr.msk.bf16.gmra.mrb[4].mxu1 %vm555_vm0, %v6059_v20  ;;  %v670_v49 = vpop.permute.xlu1 %669  ;;  %v668_v50 = vpop.permute.xlu0 %667  ;;  %v489_v17 = vld [vmem:[%s5743_s8 + $0xf0] sm:$0xff] }
 0x175   : > { %v753_v53 = vsel %vm739_vm3, %v536_v13, %v670_v49  ;;  %v752_v54 = vsel %vm739_vm3, %v535_v42, %v668_v50  ;;  %4400 = vmatprep.mubr.msk.bf16.mxu1 %vm555_vm0, %v6075_v21  ;;  %4533 = vmatmul.mubr.msk.bf16.gmra.mrb[4].mxu0 %vm555_vm0, %v6075_v21  ;;  %v1925_v23 = vld [vmem:[#allocation2 + $0x79] sm:$0xff]  ;;  %v1926_v55 = vld [vmem:[#allocation2 + $0x81] sm:$0xff]  ;;  %v544_v42 = vadd.f32 %v512_v26, %v5932_v29  ;;  %v483_v50 = vld [vmem:[%s5743_s8 + $0xc0] sm:$0xff] }
 0x176   : > { %786 = vst.msk [vmem:[#allocation2 + $0xb1] sm:$0xff] %vm555_vm0, %v753_v53  ;;  %785 = vst.msk [vmem:[#allocation2 + $0xa9] sm:$0xff] %vm555_vm0, %v752_v54  ;;  %v6091_v24 = vpack.c.bf16 %v1926_v55, %v1925_v23  ;;  %v545_v53 = vadd.f32 %v513_v46, %v5945_v32  ;;  %v515_v54 = vmul.f32 0.2, %v483_v50  ;;  %v486_v23 = vld [vmem:[%s5743_s8 + $0xd8] sm:$0xff]  ;;  %v487_v26 = vld [vmem:[%s5743_s8 + $0xe0] sm:$0xff] }
 0x177   : > { %v519_v10 = vmul.f32 0.2, %v487_v26  ;;  %v521_v46 = vmul.f32 0.2, %v489_v17  ;;  %v808_v26 = vld [vmem:[#allocation2 + $0x20] sm:$0xff] }
 0x178   : > { %v674_v59 = vpop.permute.xlu1 %673  ;;  %v672_v15 = vpop.permute.xlu0 %671  ;;  %4536 = vmatprep.mubr.msk.bf16.mxu0 %vm555_vm0, %v6091_v24  ;;  %v547_v62 = vadd.f32 %v515_v54, %v5955_v34 }
 0x179   : > { %v755_v63 = vsel %vm739_vm3, %v538_v11, %v674_v59  ;;  %v754_v0 = vsel %vm739_vm3, %v537_v51, %v672_v15  ;;  %v866_v1 = vld [vmem:[#allocation2 + $0x91] sm:$0xff]  ;;  %v867_v4 = vld [vmem:[#allocation2 + $0x99] sm:$0xff]  ;;  %v546_v51 = vadd.f32 %v514_v9, %v5942_v31  ;;  %v548_v59 = vadd.f32 %v516_v30, %v5952_v33 }
 0x17a   : > { %788 = vst.msk [vmem:[#allocation2 + $0xc9] sm:$0xff] %vm555_vm0, %v755_v63  ;;  %787 = vst.msk [vmem:[#allocation2 + $0xc1] sm:$0xff] %vm555_vm0, %v754_v0  ;;  %v6103_v25 = vpack.c.bf16 %v867_v4, %v866_v1  ;;  %v518_v15 = vmul.f32 0.2, %v486_v23  ;;  %v517_v63 = vmul.f32 0.2, %v485_v58 }
 0x17b   : > { %v488_v0 = vld [vmem:[%s5743_s8 + $0xe8] sm:$0xff] }
 0x17c   : > { %4401 = vmatmul.mubr.msk.bf16.gmra.mrb[8].mxu1 %vm555_vm0, %v6091_v24  ;;  %v678_v41 = vpop.permute.xlu1 %677  ;;  %v676_v19 = vpop.permute.xlu0 %675  ;;  %v520_v34 = vmul.f32 0.2, %v488_v0  ;;  %v549_v7 = vadd.f32 %v517_v63, %v5965_v36 }
 0x17d   : > { %v757_v13 = vsel %vm739_vm3, %v540_v57, %v678_v41  ;;  %v756_v8 = vsel %vm739_vm3, %v539_v16, %v676_v19  ;;  %4404 = vmatprep.mubr.msk.bf16.mxu1 %vm555_vm0, %v6103_v25  ;;  %4537 = vmatmul.mubr.msk.bf16.gmra.mrb[8].mxu0 %vm555_vm0, %v6103_v25  ;;  %v1929_v27 = vld [vmem:[#allocation2 + $0xa9] sm:$0xff]  ;;  %v1930_v14 = vld [vmem:[#allocation2 + $0xb1] sm:$0xff]  ;;  %v550_v41 = vadd.f32 %v518_v15, %v5962_v35 }
 0x17e   : > { %790 = vst.msk [vmem:[#allocation2 + $0xe1] sm:$0xff] %vm555_vm0, %v757_v13  ;;  %789 = vst.msk [vmem:[#allocation2 + $0xd9] sm:$0xff] %vm555_vm0, %v756_v8  ;;  %v6119_v28 = vpack.c.bf16 %v1930_v14, %v1929_v27  ;;  %v490_v13 = vld [vmem:[%s5743_s8 + $0xf8] sm:$0xff] }
 0x17f   : > { %v522_v9 = vmul.f32 0.2, %v490_v13 }
 0x180   : > { %v682_v43 = vpop.permute.xlu1 %681  ;;  %v680_v44 = vpop.permute.xlu0 %679  ;;  %4540 = vmatprep.mubr.msk.bf16.mxu0 %vm555_vm0, %v6119_v28 }
 0x181   : > { %v759_v48 = vsel %vm739_vm3, %v542_v5, %v682_v43  ;;  %v758_v11 = vsel %vm739_vm3, %v541_v6, %v680_v44  ;;  %v870_v22 = vld [vmem:[#allocation2 + $0xc1] sm:$0xff]  ;;  %v871_v49 = vld [vmem:[#allocation2 + $0xc9] sm:$0xff] }
 0x182   : > { %792 = vst.msk [vmem:[#allocation2 + $0xf9] sm:$0xff] %vm555_vm0, %v759_v48  ;;  %791 = vst.msk [vmem:[#allocation2 + $0xf1] sm:$0xff] %vm555_vm0, %v758_v11  ;;  %v6131_v29 = vpack.c.bf16 %v871_v49, %v870_v22  ;;  %v554_v49 = vadd.f32 %v522_v9, %v5982_v39  ;;  %v6244_v9 = vld [vmem:[#allocation9 + $0x1c] sm:$0xf] }
 0x184   : > { %4405 = vmatmul.mubr.msk.bf16.gmra.mrb[12].mxu1 %vm555_vm0, %v6119_v28  ;;  %v686_v52 = vpop.permute.xlu1 %685  ;;  %v684_v12 = vpop.permute.xlu0 %683 }
 0x185   : > { %v761_v55 = vsel %vm739_vm3, %v544_v42, %v686_v52  ;;  %v760_v56 = vsel %vm739_vm3, %v543_v45, %v684_v12  ;;  %4408 = vmatprep.mubr.msk.bf16.mxu1 %vm555_vm0, %v6131_v29  ;;  %4541 = vmatmul.mubr.msk.bf16.gmra.mrb[12].mxu0 %vm555_vm0, %v6131_v29  ;;  %v1933_v31 = vld [vmem:[#allocation2 + $0xd9] sm:$0xff]  ;;  %v1934_v57 = vld [vmem:[#allocation2 + $0xe1] sm:$0xff]  ;;  %v552_v42 = vadd.f32 %v520_v34, %v5972_v37 }
 0x186   : > { %794 = vst.msk [vmem:[#allocation2 + $0x111] sm:$0xff] %vm555_vm0, %v761_v55  ;;  %793 = vst.msk [vmem:[#allocation2 + $0x109] sm:$0xff] %vm555_vm0, %v760_v56  ;;  %v6147_v32 = vpack.c.bf16 %v1934_v57, %v1933_v31  ;;  %v551_v45 = vadd.f32 %v519_v10, %v5975_v38  ;;  %v2213_v34 = vld [vmem:[#allocation2 + $0x32] sm:$0xff] }
 0x187   : > { %v2216_v10 = vld [vmem:[#allocation2 + $0x52] sm:$0xff] }
 0x188   : > { %v690_v16 = vpop.permute.xlu1 %689  ;;  %v688_v61 = vpop.permute.xlu0 %687  ;;  %4544 = vmatprep.mubr.msk.bf16.mxu0 %vm555_vm0, %v6147_v32 }
 0x189   : > { %v763_v1 = vsel %vm739_vm3, %v546_v51, %v690_v16  ;;  %v762_v4 = vsel %vm739_vm3, %v545_v53, %v688_v61  ;;  %v874_v18 = vld [vmem:[#allocation2 + $0xf1] sm:$0xff]  ;;  %v875_v5 = vld [vmem:[#allocation2 + $0xf9] sm:$0xff]  ;;  %v553_v51 = vadd.f32 %v521_v46, %v5985_v40  ;;  %v806_v61 = vld [vmem:[#allocation2 + $0x8] sm:$0xff] }
 0x18a   : > { %796 = vst.msk [vmem:[#allocation2 + $0x129] sm:$0xff] %vm555_vm0, %v763_v1  ;;  %795 = vst.msk [vmem:[#allocation2 + $0x121] sm:$0xff] %vm555_vm0, %v762_v4  ;;  %v6159_v33 = vpack.c.bf16 %v875_v5, %v874_v18  ;;  %v805_v16 = vld [vmem:[#allocation2] sm:$0xff] }
 0x18b   : > { %v2212_v1 = vld [vmem:[#allocation2 + $0x22] sm:$0xff]  ;;  %v837_v4 = vpack.c.bf16 %v806_v61, %v805_v16  ;;  %v820_v16 = vld [vmem:[#allocation2 + $0xb0] sm:$0xff] }
 0x18c   : > { %4409 = vmatmul.mubr.msk.bf16.gmra.mrb[16].mxu1 %vm555_vm0, %v6147_v32  ;;  %v694_v19 = vpop.permute.xlu1 %693  ;;  %v692_v6 = vpop.permute.xlu0 %691  ;;  %v2217_v46 = vld [vmem:[#allocation2 + $0x62] sm:$0xff] }
 0x18d   : > { %v765_v8 = vsel %vm739_vm3, %v548_v59, %v694_v19  ;;  %v764_v27 = vsel %vm739_vm3, %v547_v62, %v692_v6  ;;  %4412 = vmatprep.mubr.msk.bf16.mxu1 %vm555_vm0, %v6159_v33  ;;  %4545 = vmatmul.mubr.msk.bf16.gmra.mrb[16].mxu0 %vm555_vm0, %v6159_v33  ;;  %v1937_v35 = vld [vmem:[#allocation2 + $0x109] sm:$0xff]  ;;  %v1938_v14 = vld [vmem:[#allocation2 + $0x111] sm:$0xff]  ;;  %v2211_v62 = vld [vmem:[#allocation2 + $0x1a] sm:$0xff] }
 0x18e   : > { %798 = vst.msk [vmem:[#allocation2 + $0x141] sm:$0xff] %vm555_vm0, %v765_v8  ;;  %797 = vst.msk [vmem:[#allocation2 + $0x139] sm:$0xff] %vm555_vm0, %v764_v27  ;;  %v6175_v36 = vpack.c.bf16 %v1938_v14, %v1937_v35  ;;  %v6223_v5 = vpack.c.bf16 %v2212_v1, %v2211_v62  ;;  %v2214_v19 = vld [vmem:[#allocation2 + $0x3a] sm:$0xff]  ;;  %v809_v8 = vld [vmem:[#allocation2 + $0x30] sm:$0xff]  ;;  %v2605_v14 = vsel %vm952_vm2, %v6044_v2, 0 }
 0x18f   : > { %v807_v6 = vld [vmem:[#allocation2 + $0x18] sm:$0xff]  ;;  %v6234_v35 = vpack.c.bf16 %v2214_v19, %v2213_v34  ;;  %v811_v2 = vld [vmem:[#allocation2 + $0x48] sm:$0xff]  ;;  %v821_v61 = vld [vmem:[#allocation2 + $0xc0] sm:$0xff] }
 0x190   : > { %v698_v43 = vpop.permute.xlu1 %697  ;;  %v696_v44 = vpop.permute.xlu0 %695  ;;  %4548 = vmatprep.mubr.msk.bf16.mxu0 %vm555_vm0, %v6175_v36  ;;  %v6230_v13 = vpack.c.bf16 %v808_v26, %v807_v6  ;;  %v822_v62 = vld [vmem:[#allocation2 + $0xc8] sm:$0xff]  ;;  %v2227_v1 = vld [vmem:[#allocation2 + $0xda] sm:$0xff] }
 0x191   : > { %v767_v47 = vsel %vm739_vm3, %v550_v41, %v698_v43  ;;  %v766_v48 = vsel %vm739_vm3, %v549_v7, %v696_v44  ;;  %v878_v11 = vld [vmem:[#allocation2 + $0x121] sm:$0xff]  ;;  %v879_v22 = vld [vmem:[#allocation2 + $0x129] sm:$0xff]  ;;  %v810_v41 = vld [vmem:[#allocation2 + $0x38] sm:$0xff] }
 0x192   : > { %800 = vst.msk [vmem:[#allocation2 + $0x159] sm:$0xff] %vm555_vm0, %v767_v47  ;;  %799 = vst.msk [vmem:[#allocation2 + $0x151] sm:$0xff] %vm555_vm0, %v766_v48  ;;  %v6185_v37 = vpack.c.bf16 %v879_v22, %v878_v11  ;;  %v2215_v7 = vld [vmem:[#allocation2 + $0x4a] sm:$0xff]  ;;  %v6232_v27 = vpack.c.bf16 %v810_v41, %v809_v8  ;;  %v6250_v43 = vld [vmem:[#allocation9 + $0xc] sm:$0xf]  ;;  %v6292_v41 = vpack.c.bf16 %v822_v62, %v821_v61 }
 0x193   : > { %v6240_v17 = vpack.c.bf16 %v2216_v10, %v2215_v7  ;;  %v812_v44 = vld [vmem:[#allocation2 + $0x50] sm:$0xff]  ;;  %v2219_v48 = vld [vmem:[#allocation2 + $0x7a] sm:$0xff]  ;;  %v2220_v11 = vld [vmem:[#allocation2 + $0x82] sm:$0xff] }
 0x194   : > { %4413 = vmatmul.mubr.msk.bf16.gmra.mrb[20].mxu1 %vm555_vm0, %v6175_v36  ;;  %v702_v50 = vpop.permute.xlu1 %701  ;;  %v700_v38 = vpop.permute.xlu0 %699  ;;  %v2218_v47 = vld [vmem:[#allocation2 + $0x6a] sm:$0xff]  ;;  %v6258_v22 = vpack.c.bf16 %v812_v44, %v811_v2  ;;  %v823_v6 = vld [vmem:[#allocation2 + $0xd8] sm:$0xff]  ;;  %v824_v7 = vld [vmem:[#allocation2 + $0xe0] sm:$0xff] }
 0x195   : > { %v769_v30 = vsel %vm739_vm3, %v552_v42, %v702_v50  ;;  %v768_v52 = vsel %vm739_vm3, %v551_v45, %v700_v38  ;;  %4416 = vmatprep.mubr.msk.bf16.mxu1 %vm555_vm0, %v6185_v37  ;;  %4549 = vmatmul.mubr.msk.bf16.gmra.mrb[20].mxu0 %vm555_vm0, %v6185_v37  ;;  %v1941_v12 = vld [vmem:[#allocation2 + $0x139] sm:$0xff]  ;;  %v1942_v53 = vld [vmem:[#allocation2 + $0x141] sm:$0xff]  ;;  %v1428_v42 = vsel %vm952_vm2, %v6046_v3, 0  ;;  %v6262_v50 = vpack.c.bf16 %v2218_v47, %v2217_v46  ;;  %v825_v10 = vld [vmem:[#allocation2 + $0xf0] sm:$0xff] }
 0x196   : > { %802 = vst.msk [vmem:[#allocation2 + $0x171] sm:$0xff] %vm555_vm0, %v769_v30  ;;  %801 = vst.msk [vmem:[#allocation2 + $0x169] sm:$0xff] %vm555_vm0, %v768_v52  ;;  %v6199_v39 = vpack.c.bf16 %v1942_v53, %v1941_v12  ;;  %v813_v45 = vld [vmem:[#allocation2 + $0x60] sm:$0xff]  ;;  %v814_v3 = vld [vmem:[#allocation2 + $0x68] sm:$0xff]  ;;  %v6266_v38 = vpack.c.bf16 %v2220_v11, %v2219_v48 }
 0x197   : > { %v816_v30 = vld [vmem:[#allocation2 + $0x80] sm:$0xff]  ;;  %v817_v52 = vld [vmem:[#allocation2 + $0x90] sm:$0xff]  ;;  %v818_v12 = vld [vmem:[#allocation2 + $0x98] sm:$0xff] }
 0x198   : > { %v706_v54 = vpop.permute.xlu1 %705  ;;  %v704_v40 = vpop.permute.xlu0 %703  ;;  %4552 = vmatprep.mubr.msk.bf16.mxu0 %vm555_vm0, %v6199_v39  ;;  %v2221_v53 = vld [vmem:[#allocation2 + $0x92] sm:$0xff]  ;;  %v2231_v2 = vld [vmem:[#allocation2 + $0x10a] sm:$0xff]  ;;  %v832_v62 = vld [vmem:[#allocation2 + $0x140] sm:$0xff] }
 0x199   : > { %v771_v23 = vsel %vm739_vm3, %v554_v49, %v706_v54  ;;  %v770_v55 = vsel %vm739_vm3, %v553_v51, %v704_v40  ;;  %v882_v56 = vld [vmem:[#allocation2 + $0x151] sm:$0xff]  ;;  %v883_v31 = vld [vmem:[#allocation2 + $0x159] sm:$0xff]  ;;  %v6260_v49 = vpack.c.bf16 %v814_v3, %v813_v45  ;;  %v6306_v45 = vpack.c.bf16 %v824_v7, %v823_v6  ;;  %v827_v48 = vld [vmem:[#allocation2 + $0x108] sm:$0xff] }
 0x19a   : > { %804 = vst.msk [vmem:[#allocation2 + $0x189] sm:$0xff] %vm555_vm0, %v771_v23  ;;  %803 = vst.msk [vmem:[#allocation2 + $0x181] sm:$0xff] %vm555_vm0, %v770_v55  ;;  %v6207_v57 = vpack.c.bf16 %v883_v31, %v882_v56  ;;  %v815_v51 = vld [vmem:[#allocation2 + $0x78] sm:$0xff]  ;;  %v2223_v40 = vld [vmem:[#allocation2 + $0xaa] sm:$0xff]  ;;  %v6276_v56 = vpack.c.bf16 %v818_v12, %v817_v52 }
 0x19b   : > { %v2222_v54 = vld [vmem:[#allocation2 + $0x9a] sm:$0xff]  ;;  %v2224_v23 = vld [vmem:[#allocation2 + $0xb2] sm:$0xff]  ;;  %v6274_v55 = vpack.c.bf16 %v816_v30, %v815_v51  ;;  %v830_v30 = vld [vmem:[#allocation2 + $0x128] sm:$0xff] }
 0x19c   : > { %4417 = vmatmul.mubr.msk.bf16.gmra.mrb[24].mxu1 %vm555_vm0, %v6199_v39  ;;  %v6278_v31 = vpack.c.bf16 %v2222_v54, %v2221_v53  ;;  %v826_v8 = vld [vmem:[#allocation2 + $0xf8] sm:$0xff]  ;;  %v828_v11 = vld [vmem:[#allocation2 + $0x110] sm:$0xff]  ;;  %v829_v51 = vld [vmem:[#allocation2 + $0x120] sm:$0xff] }
 0x19d   : > { %4420 = vmatprep.mubr.msk.bf16.mxu1 %vm555_vm0, %v6207_v57  ;;  %4553 = vmatmul.mubr.msk.bf16.gmra.mrb[24].mxu0 %vm555_vm0, %v6207_v57  ;;  %v1945_v58 = vld [vmem:[#allocation2 + $0x169] sm:$0xff]  ;;  %v1946_v59 = vld [vmem:[#allocation2 + $0x171] sm:$0xff]  ;;  %v6308_v3 = vpack.c.bf16 %v826_v8, %v825_v10  ;;  %v2235_v53 = vld [vmem:[#allocation2 + $0x13a] sm:$0xff] }
 0x19e   : > { %v6215_v15 = vpack.c.bf16 %v1946_v59, %v1945_v58  ;;  %v6282_v58 = vpack.c.bf16 %v2224_v23, %v2223_v40  ;;  %v819_v59 = vld [vmem:[#allocation2 + $0xa8] sm:$0xff]  ;;  %v2232_v44 = vld [vmem:[#allocation2 + $0x112] sm:$0xff]  ;;  %v6322_v40 = vpack.c.bf16 %v828_v11, %v827_v48  ;;  %v6324_v23 = vpack.c.bf16 %v830_v30, %v829_v51 }
 0x19f   : > { %v6290_v26 = vpack.c.bf16 %v820_v16, %v819_v59  ;;  %v6314_v47 = vpack.c.bf16 %v2232_v44, %v2231_v2  ;;  %v2233_v52 = vld [vmem:[#allocation2 + $0x122] sm:$0xff]  ;;  %v2234_v12 = vld [vmem:[#allocation2 + $0x12a] sm:$0xff]  ;;  %v831_v61 = vld [vmem:[#allocation2 + $0x138] sm:$0xff] }
 0x1a0   : > { %4556 = vmatprep.mubr.msk.bf16.mxu0 %vm555_vm0, %v6215_v15  ;;  %v2236_v54 = vld [vmem:[#allocation2 + $0x142] sm:$0xff]  ;;  %v6326_v59 = vpack.c.bf16 %v2234_v12, %v2233_v52  ;;  %v2239_v6 = vld [vmem:[#allocation2 + $0x16a] sm:$0xff]  ;;  %v2240_v7 = vld [vmem:[#allocation2 + $0x172] sm:$0xff]  ;;  %v6338_v10 = vpack.c.bf16 %v832_v62, %v831_v61  ;;  %v1722_v61 = vsel %vm952_vm2, %v6250_v43, 0 }
 0x1a1   : > { %v1947_v63 = vld [vmem:[#allocation2 + $0x181] sm:$0xff]  ;;  %v1948_v0 = vld [vmem:[#allocation2 + $0x189] sm:$0xff]  ;;  %v6330_v16 = vpack.c.bf16 %v2236_v54, %v2235_v53  ;;  %v2899_v54 = vsel %vm952_vm2, %v6244_v9, 0 }
 0x1a2   : > { %v6219_v18 = vpack.c.bf16 %v1948_v0, %v1947_v63  ;;  %v2225_v63 = vld [vmem:[#allocation2 + $0xc2] sm:$0xff]  ;;  %v2226_v0 = vld [vmem:[#allocation2 + $0xca] sm:$0xff] }
 0x1a3   : > { %v6294_v34 = vpack.c.bf16 %v2226_v0, %v2225_v63  ;;  %v833_v63 = vld [vmem:[#allocation2 + $0x150] sm:$0xff]  ;;  %v834_v0 = vld [vmem:[#allocation2 + $0x158] sm:$0xff]  ;;  %v1329_v2 = vld [vmem:[#allocation2 + $0x2] sm:$0xff] }
 0x1a4   : > { %4421 = vmatmul.mubr.msk.bf16.gmra.mrb[28].mxu1 %vm555_vm0, %v6215_v15  ;;  %v6340_v8 = vpack.c.bf16 %v834_v0, %v833_v63  ;;  %v1330_v44 = vld [vmem:[#allocation2 + $0xa] sm:$0xff]  ;;  %v2241_v51 = vld [vmem:[#allocation2 + $0x182] sm:$0xff]  ;;  %v2536_v63 = vld [vmem:[#allocation2 + $0x198] sm:$0xff] }
 0x1a5   : > { %4557 = vmatmul.mubr.msk.bf16.gmra.mrb[28].mxu0 %vm555_vm0, %v6219_v18  ;;  %4426 = vmatprep.mubr.msk.bf16.mxu1 %vm555_vm0, %v837_v4  ;;  %v2228_v4 = vld [vmem:[#allocation2 + $0xe2] sm:$0xff]  ;;  %v836_v11 = vld [vmem:[#allocation2 + $0x170] sm:$0xff]  ;;  %v1361_v52 = vpack.c.bf16 %v1330_v44, %v1329_v2 }
 0x1a6   : > { %4562 = vmatprep.mubr.msk.bf16.mxu0 %vm555_vm0, %v6223_v5  ;;  %v6298_v19 = vpack.c.bf16 %v2228_v4, %v2227_v1  ;;  %v2237_v1 = vld [vmem:[#allocation2 + $0x152] sm:$0xff]  ;;  %v2238_v4 = vld [vmem:[#allocation2 + $0x15a] sm:$0xff]  ;;  %v835_v48 = vld [vmem:[#allocation2 + $0x168] sm:$0xff] }
 0x1a7   : > { %v2242_v30 = vld [vmem:[#allocation2 + $0x18a] sm:$0xff]  ;;  %v6354_v12 = vpack.c.bf16 %v836_v11, %v835_v48  ;;  %v2537_v0 = vld [vmem:[#allocation2 + $0x1a0] sm:$0xff] }
 0x1a8   : > { %v6356_v53 = vpack.c.bf16 %v2242_v30, %v2241_v51  ;;  %v3143_v62 = vld [vmem:[#allocation9 + $0x20] sm:$0xf] }
 0x1ac   : > { %4427 = vmatmul.mubr.msk.bf16.vlgmr.msra.gmra.mrb[0].mxu1 %vm555_vm0, %v6230_v13 }
 0x1ad   : > { %4430 = vmatprep.mubr.msk.bf16.mxu1 %vm555_vm0, %v6232_v27  ;;  %4563 = vmatmul.mubr.msk.bf16.vlgmr.msra.gmra.mrb[0].mxu0 %vm555_vm0, %v6234_v35 }
 0x1ae   : > { %4595 = vmatpush3.bf16.msra.mxu0 %v2605_v14  ;;  %4566 = vmatprep.mubr.msk.bf16.mxu0 %vm555_vm0, %v6240_v17  ;;  %v2229_v14 = vld [vmem:[#allocation2 + $0xf2] sm:$0xff] }
 0x1af   : > { %4459 = vmatpush3.bf16.msra.mxu1 %v1428_v42  ;;  %4993 = vmatprep.subr.msk.bf16.mxu0 %vm952_vm2, %v6244_v9  ;;  %v2230_v42 = vld [vmem:[#allocation2 + $0xfa] sm:$0xff]  ;;  %v2535_v9 = vld [vmem:[#allocation2 + $0x188] sm:$0xff] }
 0x1b0   : > { %4989 = vmatprep.subr.msk.bf16.mxu1 %vm952_vm2, %v6250_v43  ;;  %v6310_v46 = vpack.c.bf16 %v2230_v42, %v2229_v14  ;;  %v6342_v14 = vpack.c.bf16 %v2238_v4, %v2237_v1  ;;  %v6346_v42 = vpack.c.bf16 %v2240_v7, %v2239_v6  ;;  %v2553_v1 = vpack.c.bf16 %v2537_v0, %v2536_v63  ;;  %v3523_v63 = vld [vmem:[%s5758_s12] sm:$0xff] }
 0x1b1   : > { %v3193_v4 = vsel %vm952_vm2, %v3143_v62, 0 }
 0x1b4   : > { %4431 = vmatmul.mubr.msk.bf16.gmra.mrb[4].mxu1 %vm555_vm0, %v6258_v22 }
 0x1b5   : > { %4434 = vmatprep.mubr.msk.bf16.mxu1 %vm555_vm0, %v6260_v49  ;;  %4567 = vmatmul.mubr.msk.bf16.gmra.mrb[4].mxu0 %vm555_vm0, %v6262_v50 }
 0x1b6   : > { %4570 = vmatprep.mubr.msk.bf16.mxu0 %vm555_vm0, %v6266_v38 }
 0x1bc   : > { %4435 = vmatmul.mubr.msk.bf16.gmra.mrb[8].mxu1 %vm555_vm0, %v6274_v55 }
 0x1bd   : > { %4438 = vmatprep.mubr.msk.bf16.mxu1 %vm555_vm0, %v6276_v56  ;;  %4571 = vmatmul.mubr.msk.bf16.gmra.mrb[8].mxu0 %vm555_vm0, %v6278_v31 }
 0x1be   : > { %4574 = vmatprep.mubr.msk.bf16.mxu0 %vm555_vm0, %v6282_v58 }
 0x1c4   : > { %4439 = vmatmul.mubr.msk.bf16.gmra.mrb[12].mxu1 %vm555_vm0, %v6290_v26 }
 0x1c5   : > { %4442 = vmatprep.mubr.msk.bf16.mxu1 %vm555_vm0, %v6292_v41  ;;  %4575 = vmatmul.mubr.msk.bf16.gmra.mrb[12].mxu0 %vm555_vm0, %v6294_v34 }
 0x1c6   : > { %4578 = vmatprep.mubr.msk.bf16.mxu0 %vm555_vm0, %v6298_v19 }
 0x1cc   : > { %4443 = vmatmul.mubr.msk.bf16.gmra.mrb[16].mxu1 %vm555_vm0, %v6306_v45 }
 0x1cd   : > { %4446 = vmatprep.mubr.msk.bf16.mxu1 %vm555_vm0, %v6308_v3  ;;  %4579 = vmatmul.mubr.msk.bf16.gmra.mrb[16].mxu0 %vm555_vm0, %v6310_v46 }
 0x1ce   : > { %4582 = vmatprep.mubr.msk.bf16.mxu0 %vm555_vm0, %v6314_v47 }
 0x1d4   : > { %4447 = vmatmul.mubr.msk.bf16.gmra.mrb[20].mxu1 %vm555_vm0, %v6322_v40 }
 0x1d5   : > { %4450 = vmatprep.mubr.msk.bf16.mxu1 %vm555_vm0, %v6324_v23  ;;  %4583 = vmatmul.mubr.msk.bf16.gmra.mrb[20].mxu0 %vm555_vm0, %v6326_v59 }
 0x1d6   : > { %4586 = vmatprep.mubr.msk.bf16.mxu0 %vm555_vm0, %v6330_v16 }
 0x1dc   : > { %4451 = vmatmul.mubr.msk.bf16.gmra.mrb[24].mxu1 %vm555_vm0, %v6338_v10 }
 0x1dd   : > { %4454 = vmatprep.mubr.msk.bf16.mxu1 %vm555_vm0, %v6340_v8  ;;  %4587 = vmatmul.mubr.msk.bf16.gmra.mrb[24].mxu0 %vm555_vm0, %v6342_v14 }
 0x1de   : > { %4590 = vmatprep.mubr.msk.bf16.mxu0 %vm555_vm0, %v6346_v42 }
 0x1e4   : > { %4455 = vmatmul.mubr.msk.bf16.gmra.mrb[28].mxu1 %vm555_vm0, %v6354_v12 }
 0x1e5   : > { %4591 = vmatmul.mubr.msk.bf16.gmra.mrb[28].mxu0 %vm555_vm0, %v6356_v53  ;;  %4460 = vmatprep.mubr.msk.bf16.mxu1 %vm555_vm0, %v1361_v52 }
 0x1e6   : > { %4596 = vmatprep.mubr.msk.bf16.mxu0 %vm555_vm0, %v6232_v27 }
 0x1ec   : > { %4461 = vmatmul.mubr.msk.bf16.vlgmr.msra.gmra.mrb[0].mxu1 %vm555_vm0, %v6223_v5  ;;  %v2534_v5 = vld [vmem:[#allocation2 + $0x180] sm:$0xff] }
 0x1ed   : > { %4464 = vmatprep.mubr.msk.bf16.mxu1 %vm555_vm0, %v6234_v35  ;;  %4597 = vmatmul.mubr.msk.bf16.vlgmr.msra.gmra.mrb[0].mxu0 %vm555_vm0, %v6258_v22  ;;  %v2552_v43 = vpack.c.bf16 %v2535_v9, %v2534_v5  ;;  %v3526_v9 = vld [vmem:[%s5758_s12 + $0x18] sm:$0xff] }
 0x1ee   : > { %4629 = vmatpush3.bf16.msra.mxu0 %v2899_v54  ;;  %4600 = vmatprep.mubr.msk.bf16.mxu0 %vm555_vm0, %v6260_v49 }
 0x1ef   : > { %4493 = vmatpush3.bf16.msra.mxu1 %v1722_v61  ;;  %4994 = vmatprep.subr.msk.bf16.mxu0 %vm952_vm2, %v3143_v62  ;;  %v3525_v62 = vld [vmem:[%s5758_s12 + $0x10] sm:$0xff] }
 0x1f4   : > { %4465 = vmatmul.mubr.msk.bf16.gmra.mrb[4].mxu1 %vm555_vm0, %v6240_v17 }
 0x1f5   : > { %4468 = vmatprep.mubr.msk.bf16.mxu1 %vm555_vm0, %v6262_v50  ;;  %4601 = vmatmul.mubr.msk.bf16.gmra.mrb[4].mxu0 %vm555_vm0, %v6274_v55 }
 0x1f6   : > { %4604 = vmatprep.mubr.msk.bf16.mxu0 %vm555_vm0, %v6276_v56 }
 0x1fc   : > { %4469 = vmatmul.mubr.msk.bf16.gmra.mrb[8].mxu1 %vm555_vm0, %v6266_v38 }
 0x1fd   : > { %4472 = vmatprep.mubr.msk.bf16.mxu1 %vm555_vm0, %v6278_v31  ;;  %4605 = vmatmul.mubr.msk.bf16.gmra.mrb[8].mxu0 %vm555_vm0, %v6290_v26 }
 0x1fe   : > { %4608 = vmatprep.mubr.msk.bf16.mxu0 %vm555_vm0, %v6292_v41 }
 0x204   : > { %4473 = vmatmul.mubr.msk.bf16.gmra.mrb[12].mxu1 %vm555_vm0, %v6282_v58 }
 0x205   : > { %4476 = vmatprep.mubr.msk.bf16.mxu1 %vm555_vm0, %v6294_v34  ;;  %4609 = vmatmul.mubr.msk.bf16.gmra.mrb[12].mxu0 %vm555_vm0, %v6306_v45 }
 0x206   : > { %4612 = vmatprep.mubr.msk.bf16.mxu0 %vm555_vm0, %v6308_v3 }
 0x20c   : > { %4477 = vmatmul.mubr.msk.bf16.gmra.mrb[16].mxu1 %vm555_vm0, %v6298_v19 }
 0x20d   : > { %4480 = vmatprep.mubr.msk.bf16.mxu1 %vm555_vm0, %v6310_v46  ;;  %4613 = vmatmul.mubr.msk.bf16.gmra.mrb[16].mxu0 %vm555_vm0, %v6322_v40 }
 0x20e   : > { %4616 = vmatprep.mubr.msk.bf16.mxu0 %vm555_vm0, %v6324_v23 }
 0x214   : > { %4481 = vmatmul.mubr.msk.bf16.gmra.mrb[20].mxu1 %vm555_vm0, %v6314_v47 }
 0x215   : > { %4484 = vmatprep.mubr.msk.bf16.mxu1 %vm555_vm0, %v6326_v59  ;;  %4617 = vmatmul.mubr.msk.bf16.gmra.mrb[20].mxu0 %vm555_vm0, %v6338_v10 }
 0x216   : > { %4620 = vmatprep.mubr.msk.bf16.mxu0 %vm555_vm0, %v6340_v8 }
 0x21c   : > { %4485 = vmatmul.mubr.msk.bf16.gmra.mrb[24].mxu1 %vm555_vm0, %v6330_v16 }
 0x21d   : > { %4488 = vmatprep.mubr.msk.bf16.mxu1 %vm555_vm0, %v6342_v14  ;;  %4621 = vmatmul.mubr.msk.bf16.gmra.mrb[24].mxu0 %vm555_vm0, %v6354_v12 }
 0x21e   : > { %4624 = vmatprep.mubr.msk.bf16.mxu0 %vm555_vm0, %v2552_v43 }
 0x224   : > { %4489 = vmatmul.mubr.msk.bf16.gmra.mrb[28].mxu1 %vm555_vm0, %v6346_v42 }
 0x225   : > { %4494 = vmatprep.mubr.msk.bf16.mxu1 %vm555_vm0, %v6230_v13  ;;  %4625 = vmatmul.mubr.msk.bf16.gmra.mrb[28].mxu0 %vm555_vm0, %v2553_v1  ;;  %v3524_v1 = vld [vmem:[%s5758_s12 + $0x8] sm:$0xff] }
 0x226   : > { %4630 = vmatprep.mubr.msk.bf16.mxu0 %vm555_vm0, %v6035_v60  ;;  %v2830_v60 = vld [vmem:[#allocation2 + $0x199] sm:$0xff] }
 0x22c   : > { %4495 = vmatmul.mubr.msk.bf16.vlgmr.msra.gmra.mrb[0].mxu1 %vm555_vm0, %v6232_v27 }
 0x22d   : > { %4498 = vmatprep.mubr.msk.bf16.mxu1 %vm555_vm0, %v6258_v22  ;;  %4631 = vmatmul.mubr.msk.bf16.vlgmr.msra.gmra.mrb[0].mxu0 %vm555_vm0, %v6059_v20  ;;  %v2831_v20 = vld [vmem:[#allocation2 + $0x1a1] sm:$0xff] }
 0x22e   : > { %4663 = vmatpush3.bf16.msra.mxu0 %v3193_v4  ;;  %4634 = vmatprep.mubr.msk.bf16.mxu0 %vm555_vm0, %v6075_v21  ;;  %v2847_v21 = vpack.c.bf16 %v2831_v20, %v2830_v60 }
 0x234   : > { %4499 = vmatmul.mubr.msk.bf16.gmra.mrb[4].mxu1 %vm555_vm0, %v6260_v49 }
 0x235   : > { %4502 = vmatprep.mubr.msk.bf16.mxu1 %vm555_vm0, %v6274_v55  ;;  %4635 = vmatmul.mubr.msk.bf16.gmra.mrb[4].mxu0 %vm555_vm0, %v6091_v24  ;;  %v3603_v24 = vld [vmem:[#allocation12] sm:$0x3] }
 0x236   : > { %4638 = vmatprep.mubr.msk.bf16.mxu0 %vm555_vm0, %v6103_v25  ;;  %4995 = vmatprep.subr.msk.bf16.mxu1 %vm3659_vm4, %v3603_v24  ;;  %v3661_v25 = vsel %vm3659_vm4, %v3603_v24, 0 }
 0x237   : > { %4697 = vmatpush3.bf16.msra.mxu1 %v3661_v25 }
 0x23c   : > { %4503 = vmatmul.mubr.msk.bf16.gmra.mrb[8].mxu1 %vm555_vm0, %v6276_v56 }
 0x23d   : > { %4506 = vmatprep.mubr.msk.bf16.mxu1 %vm555_vm0, %v6290_v26  ;;  %4639 = vmatmul.mubr.msk.bf16.gmra.mrb[8].mxu0 %vm555_vm0, %v6119_v28  ;;  %v3124_v28 = vld [vmem:[#allocation2 + $0x19a] sm:$0xff] }
 0x23e   : > { %4642 = vmatprep.mubr.msk.bf16.mxu0 %vm555_vm0, %v6131_v29  ;;  %v3125_v29 = vld [vmem:[#allocation2 + $0x1a2] sm:$0xff] }
 0x244   : > { %4507 = vmatmul.mubr.msk.bf16.gmra.mrb[12].mxu1 %vm555_vm0, %v6292_v41 }
 0x245   : > { %4510 = vmatprep.mubr.msk.bf16.mxu1 %vm555_vm0, %v6306_v45  ;;  %4643 = vmatmul.mubr.msk.bf16.gmra.mrb[12].mxu0 %vm555_vm0, %v6147_v32  ;;  %v3141_v32 = vpack.c.bf16 %v3125_v29, %v3124_v28 }
 0x246   : > { %4646 = vmatprep.mubr.msk.bf16.mxu0 %vm555_vm0, %v6159_v33 }
 0x24c   : > { %4511 = vmatmul.mubr.msk.bf16.gmra.mrb[16].mxu1 %vm555_vm0, %v6308_v3 }
 0x24d   : > { %4514 = vmatprep.mubr.msk.bf16.mxu1 %vm555_vm0, %v6322_v40  ;;  %4647 = vmatmul.mubr.msk.bf16.gmra.mrb[16].mxu0 %vm555_vm0, %v6175_v36 }
 0x24e   : > { %4650 = vmatprep.mubr.msk.bf16.mxu0 %vm555_vm0, %v6185_v37 }
 0x254   : > { %4515 = vmatmul.mubr.msk.bf16.gmra.mrb[20].mxu1 %vm555_vm0, %v6324_v23 }
 0x255   : > { %4518 = vmatprep.mubr.msk.bf16.mxu1 %vm555_vm0, %v6338_v10  ;;  %4651 = vmatmul.mubr.msk.bf16.gmra.mrb[20].mxu0 %vm555_vm0, %v6199_v39  ;;  %v6574_v10 = vld [vmem:[#allocation11] ss:$0 sm:$0xff] }
 0x256   : > { %4654 = vmatprep.mubr.msk.bf16.mxu0 %vm555_vm0, %v6207_v57 }
 0x25c   : > { %4519 = vmatmul.mubr.msk.bf16.gmra.mrb[24].mxu1 %vm555_vm0, %v6340_v8 }
 0x25d   : > { %4522 = vmatprep.mubr.msk.bf16.mxu1 %vm555_vm0, %v6354_v12  ;;  %4655 = vmatmul.mubr.msk.bf16.gmra.mrb[24].mxu0 %vm555_vm0, %v6215_v15 }
 0x25e   : > { %4658 = vmatprep.mubr.msk.bf16.mxu0 %vm555_vm0, %v6219_v18 }
 0x264   : > { %4523 = vmatmul.mubr.msk.bf16.gmra.mrb[28].mxu1 %vm555_vm0, %v2552_v43 }
 0x265   : > { %4659 = vmatmul.mubr.msk.bf16.gmra.mrb[28].mxu0 %vm555_vm0, %v2847_v21 }
 0x266   : > { %4664 = vmatprep.mubr.msk.bf16.mxu0 %vm555_vm0, %v6234_v35 }
 0x26d   : > { %4665 = vmatmul.mubr.msk.bf16.vlgmr.msra.gmra.mrb[0].mxu0 %vm555_vm0, %v6240_v17 }
 0x26e   : > { %4668 = vmatprep.mubr.msk.bf16.mxu0 %vm555_vm0, %v6262_v50 }
 0x275   : > { %4669 = vmatmul.mubr.msk.bf16.gmra.mrb[4].mxu0 %vm555_vm0, %v6266_v38 }
 0x276   : > { %4672 = vmatprep.mubr.msk.bf16.mxu0 %vm555_vm0, %v6278_v31 }
 0x27d   : > { %4673 = vmatmul.mubr.msk.bf16.gmra.mrb[8].mxu0 %vm555_vm0, %v6282_v58 }
 0x27e   : > { %4676 = vmatprep.mubr.msk.bf16.mxu0 %vm555_vm0, %v6294_v34 }
 0x285   : > { %4677 = vmatmul.mubr.msk.bf16.gmra.mrb[12].mxu0 %vm555_vm0, %v6298_v19 }
 0x286   : > { %4680 = vmatprep.mubr.msk.bf16.mxu0 %vm555_vm0, %v6310_v46 }
 0x28d   : > { %4681 = vmatmul.mubr.msk.bf16.gmra.mrb[16].mxu0 %vm555_vm0, %v6314_v47 }
 0x28e   : > { %4684 = vmatprep.mubr.msk.bf16.mxu0 %vm555_vm0, %v6326_v59 }
 0x295   : > { %4685 = vmatmul.mubr.msk.bf16.gmra.mrb[20].mxu0 %vm555_vm0, %v6330_v16 }
 0x296   : > { %4688 = vmatprep.mubr.msk.bf16.mxu0 %vm555_vm0, %v6342_v14 }
 0x29d   : > { %4689 = vmatmul.mubr.msk.bf16.gmra.mrb[24].mxu0 %vm555_vm0, %v6346_v42 }
 0x29e   : > { %4692 = vmatprep.mubr.msk.bf16.mxu0 %vm555_vm0, %v6356_v53 }
 0x2a5   : > { %4693 = vmatmul.mubr.msk.bf16.gmra.mrb[28].mxu0 %vm555_vm0, %v3141_v32 }
 0x2ff   : > { %v4496_v33 = vpop.f32.mrb[0].mxu1 }
 0x300   : > { %v1758_v36 = vpop.f32.mrb[1].mxu1 }
 0x301   : > { %v4497_v37 = vpop.f32.mrb[2].mxu1 }
 0x302   : > { %v1761_v39 = vpop.f32.mrb[3].mxu1 }
 0x307   : > { %v4500_v57 = vpop.f32.mrb[4].mxu1 }
 0x308   : > { %v1774_v15 = vpop.f32.mrb[5].mxu1 }
 0x309   : > { %v6522_v18 = vpop.f32.mrb[6].mxu1 }
 0x30a   : > { %v6524_v13 = vpop.f32.mrb[7].mxu1 }
 0x30f   : > { %v6526_v27 = vpop.f32.mrb[8].mxu1 }
 0x310   : > { %v6528_v35 = vpop.f32.mrb[9].mxu1 }
 0x311   : > { %v6530_v17 = vpop.f32.mrb[10].mxu1 }
 0x312   : > { %v6532_v22 = vpop.f32.mrb[11].mxu1 }
 0x317   : > { %v6534_v49 = vpop.f32.mrb[12].mxu1 }
 0x318   : > { %v6536_v50 = vpop.f32.mrb[13].mxu1 }
 0x319   : > { %v6538_v38 = vpop.f32.mrb[14].mxu1 }
 0x31a   : > { %v6540_v55 = vpop.f32.mrb[15].mxu1 }
 0x31f   : > { %v6542_v56 = vpop.f32.mrb[16].mxu1 }
 0x320   : > { %v6544_v31 = vpop.f32.mrb[17].mxu1 }
 0x321   : > { %v6546_v58 = vpop.f32.mrb[18].mxu1 }
 0x322   : > { %v6548_v26 = vpop.f32.mrb[19].mxu1 }
 0x327   : > { %v6550_v41 = vpop.f32.mrb[20].mxu1 }
 0x328   : > { %v6552_v34 = vpop.f32.mrb[21].mxu1 }
 0x329   : > { %v6554_v19 = vpop.f32.mrb[22].mxu1 }
 0x32a   : > { %v6556_v45 = vpop.f32.mrb[23].mxu1 }
 0x32f   : > { %v6558_v3 = vpop.f32.mrb[24].mxu1 }
 0x330   : > { %v6560_v46 = vpop.f32.mrb[25].mxu1 }
 0x331   : > { %v6562_v47 = vpop.f32.mrb[26].mxu1 }
 0x332   : > { %v6564_v40 = vpop.f32.mrb[27].mxu1 }
 0x337   : > { %v6566_v23 = vpop.f32.mrb[28].mxu1 }
 0x338   : > { %v6568_v59 = vpop.f32.mrb[29].mxu1 }
 0x339   : > { %v6570_v16 = vpop.f32.mrb[30].mxu1 }
 0x33a   : > { %v6572_v6 = vpop.f32.mrb[31].mxu1 }
 0x340   : > { %v4666_v7 = vpop.f32.mrb[0].mxu0 }
 0x341   : > { %v4730_v8 = vadd.f32 %v4666_v7, %v4496_v33  ;;  %v3229_v14 = vpop.f32.mrb[1].mxu0 }
 0x342   : > { %v4731_v42 = vadd.f32 %v3229_v14, %v1758_v36  ;;  %v4667_v2 = vpop.f32.mrb[2].mxu0 }
 0x343   : > { %v3397_v44 = vadd.f32 %v4730_v8, %v6574_v10  ;;  %v4732_v48 = vadd.f32 %v4667_v2, %v4497_v37  ;;  %v3232_v11 = vpop.f32.mrb[3].mxu0 }
 0x344   : > { %v3395_v51 = vadd.f32 %v4731_v42, %v6574_v10  ;;  %v4733_v30 = vadd.f32 %v3232_v11, %v1761_v39 }
 0x345   : > { %vm3429_vm5 = vcmp.ge.f32.partialorder %v3397_v44, 0.0  ;;  %v3461_v52 = vmul.f32 0.05, %v3397_v44  ;;  %v3398_v12 = vadd.f32 %v4732_v48, %v6574_v10 }
 0x346   : > { %vm3427_vm6 = vcmp.ge.f32.partialorder %v3395_v51, 0.0  ;;  %v3459_v53 = vmul.f32 0.05, %v3395_v51  ;;  %v3396_v54 = vadd.f32 %v4733_v30, %v6574_v10  ;;  %v3530_v30 = vld [vmem:[%s5758_s12 + $0x38] sm:$0xff] }
 0x347   : > { %v3493_v61 = vsel %vm3429_vm5, %v3397_v44, %v3461_v52  ;;  %vm3430_vm7 = vcmp.ge.f32.partialorder %v3398_v12, 0.0  ;;  %v3462_v5 = vmul.f32 0.05, %v3398_v12 }
 0x348   : > { %v3491_v43 = vsel %vm3427_vm6, %v3395_v51, %v3459_v53  ;;  %vm3428_vm8 = vcmp.ge.f32.partialorder %v3396_v54, 0.0  ;;  %v3460_v0 = vmul.f32 0.05, %v3396_v54  ;;  %v4670_v4 = vpop.f32.mrb[4].mxu0  ;;  %v3557_v24 = vadd.f32 %v3525_v62, %v3493_v61  ;;  %v3528_v53 = vld [vmem:[%s5758_s12 + $0x28] sm:$0xff] }
 0x349   : > { %v3494_v60 = vsel %vm3430_vm7, %v3398_v12, %v3462_v5  ;;  %v4734_v20 = vadd.f32 %v4670_v4, %v4500_v57  ;;  %v3245_v21 = vpop.f32.mrb[5].mxu0  ;;  %v3555_v33 = vadd.f32 %v3523_v63, %v3491_v43  ;;  %v3527_v12 = vld [vmem:[%s5758_s12 + $0x20] sm:$0xff] }
 0x34a   : > { %v3558_v25 = vadd.f32 %v3526_v9, %v3494_v60  ;;  %v3492_v28 = vsel %vm3428_vm8, %v3396_v54, %v3460_v0  ;;  %v4735_v29 = vadd.f32 %v3245_v21, %v1774_v15  ;;  %v4671_v32 = vpop.f32.mrb[6].mxu0 }
 0x34b   : > { %v3556_v36 = vadd.f32 %v3524_v1, %v3492_v28  ;;  %v3401_v37 = vadd.f32 %v4734_v20, %v6574_v10  ;;  %v4736_v39 = vadd.f32 %v4671_v32, %v6522_v18  ;;  %v3248_v7 = vpop.f32.mrb[7].mxu0  ;;  %v3529_v18 = vld [vmem:[%s5758_s12 + $0x30] sm:$0xff] }
 0x34c   : > { %v3588_v8 = vpack.c.bf16 %v3558_v25, %v3557_v24  ;;  %v3399_v14 = vadd.f32 %v4735_v29, %v6574_v10  ;;  %v4737_v57 = vadd.f32 %v3248_v7, %v6524_v13  ;;  %v3534_v7 = vld [vmem:[%s5758_s12 + $0x58] sm:$0xff] }
 0x34d   : > { %vm3433_vm9 = vcmp.ge.f32.partialorder %v3401_v37, 0.0  ;;  %v3465_v42 = vmul.f32 0.05, %v3401_v37  ;;  %v3402_v15 = vadd.f32 %v4736_v39, %v6574_v10  ;;  %v3587_v2 = vpack.c.bf16 %v3556_v36, %v3555_v33 }
 0x34e   : > { %vm3431_vm10 = vcmp.ge.f32.partialorder %v3399_v14, 0.0  ;;  %v3463_v44 = vmul.f32 0.05, %v3399_v14  ;;  %v3400_v48 = vadd.f32 %v4737_v57, %v6574_v10  ;;  %v3532_v57 = vld [vmem:[%s5758_s12 + $0x48] sm:$0xff] }
 0x34f   : > { %v3497_v11 = vsel %vm3433_vm9, %v3401_v37, %v3465_v42  ;;  %vm3434_vm11 = vcmp.ge.f32.partialorder %v3402_v15, 0.0  ;;  %v3466_v51 = vmul.f32 0.05, %v3402_v15  ;;  %4698 = vmatprep.mubr.msk.bf16.mxu1 %vm739_vm3, %v3587_v2 }
 0x350   : > { %v3495_v52 = vsel %vm3431_vm10, %v3399_v14, %v3463_v44  ;;  %vm3432_vm12 = vcmp.ge.f32.partialorder %v3400_v48, 0.0  ;;  %v3464_v13 = vmul.f32 0.05, %v3400_v48  ;;  %v4674_v54 = vpop.f32.mrb[8].mxu0  ;;  %4699 = vmatmul.mubr.msk.bf16.vlgmr.msra.gmra.mrb[32].mxu1 %vm739_vm3, %v3588_v8  ;;  %v3561_v9 = vadd.f32 %v3529_v18, %v3497_v11  ;;  %v3531_v8 = vld [vmem:[%s5758_s12 + $0x40] sm:$0xff] }
 0x351   : > { %v3498_v61 = vsel %vm3434_vm11, %v3402_v15, %v3466_v51  ;;  %v4738_v62 = vadd.f32 %v4674_v54, %v6526_v27  ;;  %v3261_v5 = vpop.f32.mrb[9].mxu0  ;;  %v3559_v4 = vadd.f32 %v3527_v12, %v3495_v52 }
 0x352   : > { %v3562_v43 = vadd.f32 %v3530_v30, %v3498_v61  ;;  %v3496_v63 = vsel %vm3432_vm12, %v3400_v48, %v3464_v13  ;;  %v4739_v0 = vadd.f32 %v3261_v5, %v6528_v35  ;;  %v4675_v1 = vpop.f32.mrb[10].mxu0 }
 0x353   : > { %v3560_v60 = vadd.f32 %v3528_v53, %v3496_v63  ;;  %v3405_v20 = vadd.f32 %v4738_v62, %v6574_v10  ;;  %v4740_v21 = vadd.f32 %v4675_v1, %v6530_v17  ;;  %v3264_v24 = vpop.f32.mrb[11].mxu0  ;;  %v3533_v17 = vld [vmem:[%s5758_s12 + $0x50] sm:$0xff] }
 0x354   : > { %v3403_v25 = vadd.f32 %v4739_v0, %v6574_v10  ;;  %v4741_v27 = vadd.f32 %v3264_v24, %v6532_v22  ;;  %v3590_v28 = vpack.c.bf16 %v3562_v43, %v3561_v9 }
 0x355   : > { %vm3437_vm13 = vcmp.ge.f32.partialorder %v3405_v20, 0.0  ;;  %v3469_v29 = vmul.f32 0.05, %v3405_v20  ;;  %v3406_v35 = vadd.f32 %v4740_v21, %v6574_v10  ;;  %v3589_v32 = vpack.c.bf16 %v3560_v60, %v3559_v4  ;;  %v3538_v4 = vld [vmem:[%s5758_s12 + $0x78] sm:$0xff]  ;;  %v3535_v60 = vld [vmem:[%s5758_s12 + $0x60] sm:$0xff]  ;;  %v3536_v21 = vld [vmem:[%s5758_s12 + $0x68] sm:$0xff] }
 0x356   : > { %vm3435_vm14 = vcmp.ge.f32.partialorder %v3403_v25, 0.0  ;;  %v3467_v33 = vmul.f32 0.05, %v3403_v25  ;;  %v3404_v36 = vadd.f32 %v4741_v27, %v6574_v10 }
 0x357   : > { %v3501_v37 = vsel %vm3437_vm13, %v3405_v20, %v3469_v29  ;;  %vm3438_vm15 = vcmp.ge.f32.partialorder %v3406_v35, 0.0  ;;  %v3470_v39 = vmul.f32 0.05, %v3406_v35  ;;  %4702 = vmatprep.mubr.msk.bf16.mxu1 %vm739_vm3, %v3589_v32 }
 0x358   : > { %v3499_v22 = vsel %vm3435_vm14, %v3403_v25, %v3467_v33  ;;  %vm3436_vm0 = vcmp.ge.f32.partialorder %v3404_v36, 0.0  ;;  %v3468_v14 = vmul.f32 0.05, %v3404_v36  ;;  %v4678_v42 = vpop.f32.mrb[12].mxu0  ;;  %4703 = vmatmul.mubr.msk.bf16.gmra.mrb[36].mxu1 %vm739_vm3, %v3590_v28  ;;  %v3565_v48 = vadd.f32 %v3533_v17, %v3501_v37 }
 0x359   : > { %v3502_v15 = vsel %vm3438_vm15, %v3406_v35, %v3470_v39  ;;  %v4742_v2 = vadd.f32 %v4678_v42, %v6534_v49  ;;  %v3277_v44 = vpop.f32.mrb[13].mxu0  ;;  %v3563_v52 = vadd.f32 %v3531_v8, %v3499_v22 }
 0x35a   : > { %v3566_v11 = vadd.f32 %v3534_v7, %v3502_v15  ;;  %v3500_v18 = vsel %vm3436_vm0, %v3404_v36, %v3468_v14  ;;  %v4743_v51 = vadd.f32 %v3277_v44, %v6536_v50  ;;  %v4679_v30 = vpop.f32.mrb[14].mxu0 }
 0x35b   : > { %v3564_v12 = vadd.f32 %v3532_v57, %v3500_v18  ;;  %v3409_v13 = vadd.f32 %v4742_v2, %v6574_v10  ;;  %v4744_v53 = vadd.f32 %v4679_v30, %v6538_v38  ;;  %v3280_v54 = vpop.f32.mrb[15].mxu0  ;;  %v3537_v38 = vld [vmem:[%s5758_s12 + $0x70] sm:$0xff]  ;;  %v3539_v18 = vld [vmem:[%s5758_s12 + $0x80] sm:$0xff]  ;;  %v3540_v30 = vld [vmem:[%s5758_s12 + $0x88] sm:$0xff] }
 0x35c   : > { %v3407_v61 = vadd.f32 %v4743_v51, %v6574_v10  ;;  %v4745_v49 = vadd.f32 %v3280_v54, %v6540_v55  ;;  %v3592_v62 = vpack.c.bf16 %v3566_v11, %v3565_v48  ;;  %v3542_v11 = vld [vmem:[%s5758_s12 + $0x98] sm:$0xff] }
 0x35d   : > { %vm3441_vm1 = vcmp.ge.f32.partialorder %v3409_v13, 0.0  ;;  %v3473_v5 = vmul.f32 0.05, %v3409_v13  ;;  %v3410_v50 = vadd.f32 %v4744_v53, %v6574_v10  ;;  %v3591_v9 = vpack.c.bf16 %v3564_v12, %v3563_v52 }
 0x35e   : > { %vm3439_vm2 = vcmp.ge.f32.partialorder %v3407_v61, 0.0  ;;  %v3471_v43 = vmul.f32 0.05, %v3407_v61  ;;  %v3408_v63 = vadd.f32 %v4745_v49, %v6574_v10 }
 0x35f   : > { %v3505_v0 = vsel %vm3441_vm1, %v3409_v13, %v3473_v5  ;;  %vm3442_vm4 = vcmp.ge.f32.partialorder %v3410_v50, 0.0  ;;  %v3474_v1 = vmul.f32 0.05, %v3410_v50  ;;  %4706 = vmatprep.mubr.msk.bf16.mxu1 %vm739_vm3, %v3591_v9 }
 0x360   : > { %v3503_v55 = vsel %vm3439_vm2, %v3407_v61, %v3471_v43  ;;  %vm3440_vm5 = vcmp.ge.f32.partialorder %v3408_v63, 0.0  ;;  %v3472_v20 = vmul.f32 0.05, %v3408_v63  ;;  %v4682_v24 = vpop.f32.mrb[16].mxu0  ;;  %4707 = vmatmul.mubr.msk.bf16.gmra.mrb[40].mxu1 %vm739_vm3, %v3592_v62  ;;  %v3569_v29 = vadd.f32 %v3537_v38, %v3505_v0 }
 0x361   : > { %v3506_v25 = vsel %vm3442_vm4, %v3410_v50, %v3474_v1  ;;  %v4746_v27 = vadd.f32 %v4682_v24, %v6542_v56  ;;  %v3293_v28 = vpop.f32.mrb[17].mxu0  ;;  %v3567_v37 = vadd.f32 %v3535_v60, %v3503_v55 }
 0x362   : > { %v3570_v35 = vadd.f32 %v3538_v4, %v3506_v25  ;;  %v3504_v32 = vsel %vm3440_vm5, %v3408_v63, %v3472_v20  ;;  %v4747_v33 = vadd.f32 %v3293_v28, %v6544_v31  ;;  %v4683_v36 = vpop.f32.mrb[18].mxu0  ;;  %v3546_v25 = vld [vmem:[%s5758_s12 + $0xb8] sm:$0xff] }
 0x363   : > { %v3568_v17 = vadd.f32 %v3536_v21, %v3504_v32  ;;  %v3413_v39 = vadd.f32 %v4746_v27, %v6574_v10  ;;  %v4748_v7 = vadd.f32 %v4683_v36, %v6546_v58  ;;  %v3296_v22 = vpop.f32.mrb[19].mxu0  ;;  %v3541_v58 = vld [vmem:[%s5758_s12 + $0x90] sm:$0xff]  ;;  %v3543_v27 = vld [vmem:[%s5758_s12 + $0xa0] sm:$0xff] }
 0x364   : > { %v3411_v8 = vadd.f32 %v4747_v33, %v6574_v10  ;;  %v4749_v56 = vadd.f32 %v3296_v22, %v6548_v26  ;;  %v3594_v14 = vpack.c.bf16 %v3570_v35, %v3569_v29  ;;  %v3544_v29 = vld [vmem:[%s5758_s12 + $0xa8] sm:$0xff] }
 0x365   : > { %vm3445_vm6 = vcmp.ge.f32.partialorder %v3413_v39, 0.0  ;;  %v3477_v57 = vmul.f32 0.05, %v3413_v39  ;;  %v3414_v31 = vadd.f32 %v4748_v7, %v6574_v10  ;;  %v3593_v42 = vpack.c.bf16 %v3568_v17, %v3567_v37 }
 0x366   : > { %vm3443_vm7 = vcmp.ge.f32.partialorder %v3411_v8, 0.0  ;;  %v3475_v15 = vmul.f32 0.05, %v3411_v8  ;;  %v3412_v2 = vadd.f32 %v4749_v56, %v6574_v10 }
 0x367   : > { %v3509_v44 = vsel %vm3445_vm6, %v3413_v39, %v3477_v57  ;;  %vm3446_vm8 = vcmp.ge.f32.partialorder %v3414_v31, 0.0  ;;  %v3478_v48 = vmul.f32 0.05, %v3414_v31  ;;  %4710 = vmatprep.mubr.msk.bf16.mxu1 %vm739_vm3, %v3593_v42 }
 0x368   : > { %v3507_v26 = vsel %vm3443_vm7, %v3411_v8, %v3475_v15  ;;  %vm3444_vm9 = vcmp.ge.f32.partialorder %v3412_v2, 0.0  ;;  %v3476_v51 = vmul.f32 0.05, %v3412_v2  ;;  %v4686_v52 = vpop.f32.mrb[20].mxu0  ;;  %4711 = vmatmul.mubr.msk.bf16.gmra.mrb[44].mxu1 %vm739_vm3, %v3594_v14  ;;  %v3573_v54 = vadd.f32 %v3541_v58, %v3509_v44 }
 0x369   : > { %v3510_v12 = vsel %vm3446_vm8, %v3414_v31, %v3478_v48  ;;  %v4750_v13 = vadd.f32 %v4686_v52, %v6550_v41  ;;  %v3309_v53 = vpop.f32.mrb[21].mxu0  ;;  %v3571_v50 = vadd.f32 %v3539_v18, %v3507_v26  ;;  %v3550_v18 = vld [vmem:[%s5758_s12 + $0xd8] sm:$0xff]  ;;  %v3548_v52 = vld [vmem:[%s5758_s12 + $0xc8] sm:$0xff] }
 0x36a   : > { %v3574_v61 = vadd.f32 %v3542_v11, %v3510_v12  ;;  %v3508_v49 = vsel %vm3444_vm9, %v3412_v2, %v3476_v51  ;;  %v4751_v62 = vadd.f32 %v3309_v53, %v6552_v34  ;;  %v4687_v5 = vpop.f32.mrb[22].mxu0  ;;  %v3547_v51 = vld [vmem:[%s5758_s12 + $0xc0] sm:$0xff] }
 0x36b   : > { %v3572_v9 = vadd.f32 %v3540_v30, %v3508_v49  ;;  %v3417_v43 = vadd.f32 %v4750_v13, %v6574_v10  ;;  %v4752_v63 = vadd.f32 %v4687_v5, %v6554_v19  ;;  %v3312_v0 = vpop.f32.mrb[23].mxu0  ;;  %v3545_v19 = vld [vmem:[%s5758_s12 + $0xb0] sm:$0xff] }
 0x36c   : > { %v3415_v38 = vadd.f32 %v4751_v62, %v6574_v10  ;;  %v4753_v41 = vadd.f32 %v3312_v0, %v6556_v45  ;;  %v3596_v1 = vpack.c.bf16 %v3574_v61, %v3573_v54 }
 0x36d   : > { %vm3449_vm10 = vcmp.ge.f32.partialorder %v3417_v43, 0.0  ;;  %v3481_v4 = vmul.f32 0.05, %v3417_v43  ;;  %v3418_v34 = vadd.f32 %v4752_v63, %v6574_v10  ;;  %v3595_v55 = vpack.c.bf16 %v3572_v9, %v3571_v50 }
 0x36e   : > { %vm3447_vm11 = vcmp.ge.f32.partialorder %v3415_v38, 0.0  ;;  %v3479_v60 = vmul.f32 0.05, %v3415_v38  ;;  %v3416_v20 = vadd.f32 %v4753_v41, %v6574_v10 }
 0x36f   : > { %v3513_v21 = vsel %vm3449_vm10, %v3417_v43, %v3481_v4  ;;  %vm3450_vm12 = vcmp.ge.f32.partialorder %v3418_v34, 0.0  ;;  %v3482_v24 = vmul.f32 0.05, %v3418_v34  ;;  %4714 = vmatprep.mubr.msk.bf16.mxu1 %vm739_vm3, %v3595_v55 }
 0x370   : > { %v3511_v45 = vsel %vm3447_vm11, %v3415_v38, %v3479_v60  ;;  %vm3448_vm13 = vcmp.ge.f32.partialorder %v3416_v20, 0.0  ;;  %v3480_v28 = vmul.f32 0.05, %v3416_v20  ;;  %v4690_v35 = vpop.f32.mrb[24].mxu0  ;;  %4715 = vmatmul.mubr.msk.bf16.gmra.mrb[48].mxu1 %vm739_vm3, %v3596_v1  ;;  %v3577_v37 = vadd.f32 %v3545_v19, %v3513_v21  ;;  %v3554_v19 = vld [vmem:[%s5758_s12 + $0xf8] sm:$0xff] }
 0x371   : > { %v3514_v32 = vsel %vm3450_vm12, %v3418_v34, %v3482_v24  ;;  %v4754_v33 = vadd.f32 %v4690_v35, %v6558_v3  ;;  %v3325_v36 = vpop.f32.mrb[25].mxu0  ;;  %v3575_v8 = vadd.f32 %v3543_v27, %v3511_v45  ;;  %v3551_v24 = vld [vmem:[%s5758_s12 + $0xe0] sm:$0xff]  ;;  %v3552_v45 = vld [vmem:[%s5758_s12 + $0xe8] sm:$0xff] }
 0x372   : > { %v3578_v17 = vadd.f32 %v3546_v25, %v3514_v32  ;;  %v3512_v39 = vsel %vm3448_vm13, %v3416_v20, %v3480_v28  ;;  %v4755_v7 = vadd.f32 %v3325_v36, %v6560_v46  ;;  %v4691_v22 = vpop.f32.mrb[26].mxu0 }
 0x373   : > { %v3576_v56 = vadd.f32 %v3544_v29, %v3512_v39  ;;  %v3421_v14 = vadd.f32 %v4754_v33, %v6574_v10  ;;  %v4756_v57 = vadd.f32 %v4691_v22, %v6562_v47  ;;  %v3328_v31 = vpop.f32.mrb[27].mxu0  ;;  %v3549_v47 = vld [vmem:[%s5758_s12 + $0xd0] sm:$0xff] }
 0x374   : > { %v3419_v42 = vadd.f32 %v4755_v7, %v6574_v10  ;;  %v4757_v3 = vadd.f32 %v3328_v31, %v6564_v40  ;;  %v3598_v15 = vpack.c.bf16 %v3578_v17, %v3577_v37  ;;  %v6682_v37 = vld [vmem:[#allocation14] ss:$0 sm:$0xff] }
 0x375   : > { %vm3453_vm14 = vcmp.ge.f32.partialorder %v3421_v14, 0.0  ;;  %v3485_v2 = vmul.f32 0.05, %v3421_v14  ;;  %v3422_v46 = vadd.f32 %v4756_v57, %v6574_v10  ;;  %v3597_v44 = vpack.c.bf16 %v3576_v56, %v3575_v8 }
 0x376   : > { %vm3451_vm15 = vcmp.ge.f32.partialorder %v3419_v42, 0.0  ;;  %v3483_v58 = vmul.f32 0.05, %v3419_v42  ;;  %v3420_v48 = vadd.f32 %v4757_v3, %v6574_v10 }
 0x377   : > { %v3517_v11 = vsel %vm3453_vm14, %v3421_v14, %v3485_v2  ;;  %vm3454_vm0 = vcmp.ge.f32.partialorder %v3422_v46, 0.0  ;;  %v3486_v26 = vmul.f32 0.05, %v3422_v46  ;;  %4718 = vmatprep.mubr.msk.bf16.mxu1 %vm739_vm3, %v3597_v44 }
 0x378   : > { %v3515_v40 = vsel %vm3451_vm15, %v3419_v42, %v3483_v58  ;;  %vm3452_vm1 = vcmp.ge.f32.partialorder %v3420_v48, 0.0  ;;  %v3484_v30 = vmul.f32 0.05, %v3420_v48  ;;  %v4694_v12 = vpop.f32.mrb[28].mxu0  ;;  %4719 = vmatmul.mubr.msk.bf16.gmra.mrb[52].mxu1 %vm739_vm3, %v3598_v15  ;;  %v3581_v61 = vadd.f32 %v3549_v47, %v3517_v11 }
 0x379   : > { %v3518_v13 = vsel %vm3454_vm0, %v3422_v46, %v3486_v26  ;;  %v4758_v53 = vadd.f32 %v4694_v12, %v6566_v23  ;;  %v3341_v54 = vpop.f32.mrb[29].mxu0  ;;  %v3579_v9 = vadd.f32 %v3547_v51, %v3515_v40 }
 0x37a   : > { %v3582_v49 = vadd.f32 %v3550_v18, %v3518_v13  ;;  %v3516_v62 = vsel %vm3452_vm1, %v3420_v48, %v3484_v30  ;;  %v4759_v5 = vadd.f32 %v3341_v54, %v6568_v59  ;;  %v4695_v50 = vpop.f32.mrb[30].mxu0 }
 0x37b   : > { %v3580_v43 = vadd.f32 %v3548_v52, %v3516_v62  ;;  %v3425_v63 = vadd.f32 %v4758_v53, %v6574_v10  ;;  %v4760_v0 = vadd.f32 %v4695_v50, %v6570_v16  ;;  %v3344_v38 = vpop.f32.mrb[31].mxu0  ;;  %v3553_v16 = vld [vmem:[%s5758_s12 + $0xf0] sm:$0xff] }
 0x37c   : > { %v3423_v41 = vadd.f32 %v4759_v5, %v6574_v10  ;;  %v4761_v23 = vadd.f32 %v3344_v38, %v6572_v6  ;;  %v3600_v1 = vpack.c.bf16 %v3582_v49, %v3581_v61 }
 0x37d   : > { %vm3457_vm2 = vcmp.ge.f32.partialorder %v3425_v63, 0.0  ;;  %v3489_v4 = vmul.f32 0.05, %v3425_v63  ;;  %v3426_v59 = vadd.f32 %v4760_v0, %v6574_v10  ;;  %v3599_v34 = vpack.c.bf16 %v3580_v43, %v3579_v9 }
 0x37e   : > { %vm3455_vm4 = vcmp.ge.f32.partialorder %v3423_v41, 0.0  ;;  %v3487_v55 = vmul.f32 0.05, %v3423_v41  ;;  %v3424_v60 = vadd.f32 %v4761_v23, %v6574_v10 }
 0x37f   : > { %v3521_v20 = vsel %vm3457_vm2, %v3425_v63, %v3489_v4  ;;  %vm3458_vm5 = vcmp.ge.f32.partialorder %v3426_v59, 0.0  ;;  %v3490_v21 = vmul.f32 0.05, %v3426_v59  ;;  %4722 = vmatprep.mubr.msk.bf16.mxu1 %vm739_vm3, %v3599_v34 }
 0x380   : > { %v3519_v6 = vsel %vm3455_vm4, %v3423_v41, %v3487_v55  ;;  %vm3456_vm6 = vcmp.ge.f32.partialorder %v3424_v60, 0.0  ;;  %v3488_v25 = vmul.f32 0.05, %v3424_v60  ;;  %4723 = vmatmul.mubr.msk.bf16.gmra.mrb[56].mxu1 %vm739_vm3, %v3600_v1  ;;  %v3585_v28 = vadd.f32 %v3553_v16, %v3521_v20 }
 0x381   : > { %v3522_v27 = vsel %vm3458_vm5, %v3426_v59, %v3490_v21  ;;  %v3583_v10 = vadd.f32 %v3551_v24, %v3519_v6 }
 0x382   : > { %v3586_v29 = vadd.f32 %v3554_v19, %v3522_v27  ;;  %v3520_v35 = vsel %vm3456_vm6, %v3424_v60, %v3488_v25 }
 0x383   : > { %v3584_v32 = vadd.f32 %v3552_v45, %v3520_v35 }
 0x384   : > { %v3602_v33 = vpack.c.bf16 %v3586_v29, %v3585_v28 }
 0x385   : > { %v3601_v36 = vpack.c.bf16 %v3584_v32, %v3583_v10 }
 0x387   : > { %4726 = vmatprep.mubr.msk.bf16.mxu1 %vm739_vm3, %v3601_v36 }
 0x388   : > { %4727 = vmatmul.mubr.msk.bf16.gmra.mrb[60].mxu1 %vm739_vm3, %v3602_v33 }
 0x423   : > { %v4700_v17 = vpop.f32.mrb[32].mxu1 }
 0x424   : > { %v3706_v39 = vadd.f32 %v4700_v17, %v6682_v37  ;;  %v3697_v7 = vpop.f32.mrb[33].mxu1 }
 0x425   : > { %v3698_v22 = vadd.f32 %v6682_v37, %v3697_v7  ;;  %v4701_v8 = vpop.f32.mrb[34].mxu1 }
 0x426   : > { %3826 = vst.msk [vmem:[%s6687_s10 + $0x10] sm:$0xff] %vm739_vm3, %v3706_v39  ;;  %v3709_v56 = vadd.f32 %v4701_v8, %v6682_v37  ;;  %v3700_v14 = vpop.f32.mrb[35].mxu1 }
 0x427   : > { %3824 = vst.msk [vmem:[%s6687_s10] sm:$0xff] %vm739_vm3, %v3698_v22  ;;  %v3701_v57 = vadd.f32 %v6682_v37, %v3700_v14 }
 0x428   : > { %3827 = vst.msk [vmem:[%s6687_s10 + $0x18] sm:$0xff] %vm739_vm3, %v3709_v56 }
 0x429   : > { %3825 = vst.msk [vmem:[%s6687_s10 + $0x8] sm:$0xff] %vm739_vm3, %v3701_v57 }
 0x42b   : > { %v4704_v31 = vpop.f32.mrb[36].mxu1 }
 0x42c   : > { %v3722_v42 = vadd.f32 %v4704_v31, %v6682_v37  ;;  %v3713_v3 = vpop.f32.mrb[37].mxu1 }
 0x42d   : > { %v3714_v15 = vadd.f32 %v6682_v37, %v3713_v3  ;;  %v4705_v2 = vpop.f32.mrb[38].mxu1 }
 0x42e   : > { %3830 = vst.msk [vmem:[%s6687_s10 + $0x30] sm:$0xff] %vm739_vm3, %v3722_v42  ;;  %v3725_v46 = vadd.f32 %v4705_v2, %v6682_v37  ;;  %v3716_v44 = vpop.f32.mrb[39].mxu1 }
 0x42f   : > { %3828 = vst.msk [vmem:[%s6687_s10 + $0x20] sm:$0xff] %vm739_vm3, %v3714_v15  ;;  %v3717_v58 = vadd.f32 %v6682_v37, %v3716_v44 }
 0x430   : > { %3831 = vst.msk [vmem:[%s6687_s10 + $0x38] sm:$0xff] %vm739_vm3, %v3725_v46 }
 0x431   : > { %3829 = vst.msk [vmem:[%s6687_s10 + $0x28] sm:$0xff] %vm739_vm3, %v3717_v58 }
 0x433   : > { %v4708_v48 = vpop.f32.mrb[40].mxu1 }
 0x434   : > { %v3738_v11 = vadd.f32 %v4708_v48, %v6682_v37  ;;  %v3729_v47 = vpop.f32.mrb[41].mxu1 }
 0x435   : > { %v3730_v26 = vadd.f32 %v6682_v37, %v3729_v47  ;;  %v4709_v18 = vpop.f32.mrb[42].mxu1 }
 0x436   : > { %3834 = vst.msk [vmem:[%s6687_s10 + $0x50] sm:$0xff] %vm739_vm3, %v3738_v11  ;;  %v3741_v40 = vadd.f32 %v4709_v18, %v6682_v37  ;;  %v3732_v51 = vpop.f32.mrb[43].mxu1 }
 0x437   : > { %3832 = vst.msk [vmem:[%s6687_s10 + $0x40] sm:$0xff] %vm739_vm3, %v3730_v26  ;;  %v3733_v30 = vadd.f32 %v6682_v37, %v3732_v51 }
 0x438   : > { %3835 = vst.msk [vmem:[%s6687_s10 + $0x58] sm:$0xff] %vm739_vm3, %v3741_v40 }
 0x439   : > { %3833 = vst.msk [vmem:[%s6687_s10 + $0x48] sm:$0xff] %vm739_vm3, %v3733_v30 }
 0x43b   : > { %v4712_v52 = vpop.f32.mrb[44].mxu1 }
 0x43c   : > { %v3754_v12 = vadd.f32 %v4712_v52, %v6682_v37  ;;  %v3745_v13 = vpop.f32.mrb[45].mxu1 }
 0x43d   : > { %v3746_v53 = vadd.f32 %v6682_v37, %v3745_v13  ;;  %v4713_v54 = vpop.f32.mrb[46].mxu1 }
 0x43e   : > { %3838 = vst.msk [vmem:[%s6687_s10 + $0x70] sm:$0xff] %vm739_vm3, %v3754_v12  ;;  %v3757_v61 = vadd.f32 %v4713_v54, %v6682_v37  ;;  %v3748_v49 = vpop.f32.mrb[47].mxu1 }
 0x43f   : > { %3836 = vst.msk [vmem:[%s6687_s10 + $0x60] sm:$0xff] %vm739_vm3, %v3746_v53  ;;  %v3749_v62 = vadd.f32 %v6682_v37, %v3748_v49 }
 0x440   : > { %3839 = vst.msk [vmem:[%s6687_s10 + $0x78] sm:$0xff] %vm739_vm3, %v3757_v61 }
 0x441   : > { %3837 = vst.msk [vmem:[%s6687_s10 + $0x68] sm:$0xff] %vm739_vm3, %v3749_v62 }
 0x443   : > { %v4716_v5 = vpop.f32.mrb[48].mxu1 }
 0x444   : > { %v3770_v50 = vadd.f32 %v4716_v5, %v6682_v37  ;;  %v3761_v9 = vpop.f32.mrb[49].mxu1 }
 0x445   : > { %v3762_v43 = vadd.f32 %v6682_v37, %v3761_v9  ;;  %v4717_v63 = vpop.f32.mrb[50].mxu1 }
 0x446   : > { %3842 = vst.msk [vmem:[%s6687_s10 + $0x90] sm:$0xff] %vm739_vm3, %v3770_v50  ;;  %v3773_v0 = vadd.f32 %v4717_v63, %v6682_v37  ;;  %v3764_v38 = vpop.f32.mrb[51].mxu1 }
 0x447   : > { %3840 = vst.msk [vmem:[%s6687_s10 + $0x80] sm:$0xff] %vm739_vm3, %v3762_v43  ;;  %v3765_v41 = vadd.f32 %v6682_v37, %v3764_v38 }
 0x448   : > { %3843 = vst.msk [vmem:[%s6687_s10 + $0x98] sm:$0xff] %vm739_vm3, %v3773_v0 }
 0x449   : > { %3841 = vst.msk [vmem:[%s6687_s10 + $0x88] sm:$0xff] %vm739_vm3, %v3765_v41 }
 0x44b   : > { %v4720_v23 = vpop.f32.mrb[52].mxu1 }
 0x44c   : > { %v3786_v1 = vadd.f32 %v4720_v23, %v6682_v37  ;;  %v3777_v4 = vpop.f32.mrb[53].mxu1 }
 0x44d   : > { %v3778_v59 = vadd.f32 %v6682_v37, %v3777_v4  ;;  %v4721_v34 = vpop.f32.mrb[54].mxu1 }
 0x44e   : > { %3846 = vst.msk [vmem:[%s6687_s10 + $0xb0] sm:$0xff] %vm739_vm3, %v3786_v1  ;;  %v3789_v55 = vadd.f32 %v4721_v34, %v6682_v37  ;;  %v3780_v60 = vpop.f32.mrb[55].mxu1 }
 0x44f   : > { %3844 = vst.msk [vmem:[%s6687_s10 + $0xa0] sm:$0xff] %vm739_vm3, %v3778_v59  ;;  %v3781_v20 = vadd.f32 %v6682_v37, %v3780_v60 }
 0x450   : > { %3847 = vst.msk [vmem:[%s6687_s10 + $0xb8] sm:$0xff] %vm739_vm3, %v3789_v55 }
 0x451   : > { %3845 = vst.msk [vmem:[%s6687_s10 + $0xa8] sm:$0xff] %vm739_vm3, %v3781_v20 }
 0x453   : > { %v4724_v16 = vpop.f32.mrb[56].mxu1 }
 0x454   : > { %v3802_v21 = vadd.f32 %v4724_v16, %v6682_v37  ;;  %v3793_v19 = vpop.f32.mrb[57].mxu1 }
 0x455   : > { %v3794_v6 = vadd.f32 %v6682_v37, %v3793_v19  ;;  %v4725_v24 = vpop.f32.mrb[58].mxu1 }
 0x456   : > { %3850 = vst.msk [vmem:[%s6687_s10 + $0xd0] sm:$0xff] %vm739_vm3, %v3802_v21  ;;  %v3805_v25 = vadd.f32 %v4725_v24, %v6682_v37  ;;  %v3796_v45 = vpop.f32.mrb[59].mxu1 }
 0x457   : > { %3848 = vst.msk [vmem:[%s6687_s10 + $0xc0] sm:$0xff] %vm739_vm3, %v3794_v6  ;;  %v3797_v27 = vadd.f32 %v6682_v37, %v3796_v45 }
 0x458   : > { %3851 = vst.msk [vmem:[%s6687_s10 + $0xd8] sm:$0xff] %vm739_vm3, %v3805_v25 }
 0x459   : > { %3849 = vst.msk [vmem:[%s6687_s10 + $0xc8] sm:$0xff] %vm739_vm3, %v3797_v27 }
 0x45b   : > { %v4728_v28 = vpop.f32.mrb[60].mxu1 }
 0x45c   : > { %v3818_v29 = vadd.f32 %v4728_v28, %v6682_v37  ;;  %v3809_v35 = vpop.f32.mrb[61].mxu1 }
 0x45d   : > { %v3810_v10 = vadd.f32 %v6682_v37, %v3809_v35  ;;  %v4729_v32 = vpop.f32.mrb[62].mxu1 }
 0x45e   : > { %3854 = vst.msk [vmem:[%s6687_s10 + $0xf0] sm:$0xff] %vm739_vm3, %v3818_v29  ;;  %v3821_v33 = vadd.f32 %v4729_v32, %v6682_v37  ;;  %v3812_v36 = vpop.f32.mrb[63].mxu1 }
 0x45f   : > { %3852 = vst.msk [vmem:[%s6687_s10 + $0xe0] sm:$0xff] %vm739_vm3, %v3810_v10  ;;  %v3813_v17 = vadd.f32 %v6682_v37, %v3812_v36 }
 0x460   : > { %3855 = vst.msk [vmem:[%s6687_s10 + $0xf8] sm:$0xff] %vm739_vm3, %v3821_v33 }
 0x461   : > { %3853 = vst.msk [vmem:[%s6687_s10 + $0xe8] sm:$0xff] %vm739_vm3, %v3813_v17 }
 0x462   : > { %5316 = shalt.err (!%p5313_p12)
}
 0x463   : > { %s5317_s1 = scalar_lea.hbm %s6781_s29, 4096  ;;  %s5321_s24 = scalar_lea.hbm %s6841_s7, 8192 }
 0x464   : > { %p5318_p8 = scmp.ne.s32.totalorder %s6781_s29, %s5317_s1  ;;  %p5322_p2 = scmp.lt.u32.totalorder %s6781_s29, %s6841_s7 }
 0x465   : > { %p5323_p6 = scmp.lt.u32.totalorder %s5321_s24, %s5317_s1  ;;  %p5325_p5 = scmp.lt.u32.totalorder %s5317_s1, %s6781_s29 }
 0x466   : > { %p5319_p10 = pnand %p5318_p8, %p6894_p1 }
 0x467   : > { %p5324_p3 = por %p5323_p6, %p5322_p2 }
 0x468   : > { %p5320_p11 = pneg %p5319_p10 }
 0x469   : > { %p5326_p4 = por %p5325_p5, %p5324_p3 }
 0x46b   : > { %p5327_p0 = pnand %p5326_p4, %p5320_p11 }
 0x46d   : > { %5330 = shalt.err (!%p5327_p0)
}
 0x46e   : > { %s5397_s5 = smov 128   ;;  %s5398_s9 = smov 8  }
 0x46f   : > { %5018 = dma.vmem_to_hbm [thread:$0]  (%p6894_p1), %s6783_s16, 4096, %s6781_s29, %s3857_s28, %s5397_s5, %s5397_s5, %s5398_s9  }
 0x470 PF: > { %s6895_s18 = sld [smem:[#allocation21_spill]]  ;;  %s6896_s12 = sld [smem:[#allocation23_spill]] }
 0x471   : > { %s6897_s30 = sld [smem:[#allocation22_spill]] }
 0x476   : > { %s3885_s10 = sand.u32 1, %s6895_s18   ;;  %p6898_p13 = scmp.ne.s32.totalorder %s6896_s12, 0 }
 0x477   : > { %p6899_p7 = scmp.ge.s32.totalorder %s6897_s30, 2  ;;  %s3886_s3 = scalar_lea.sflag [#allocation5], %s3885_s10 }
 0x479   : > { %p5044_p9 = pnand %p6899_p7, %p6898_p13 }
 0x47b   : > { %5364 = dma.done.wait (!%p5044_p9), %s3886_s3, 4096  }
 0x47c   : > { %5366 = vsyncadd (!%p5044_p9), %s3886_s3, 4294963200  ;;  %s6900_s27 = sld [smem:[#allocation24_spill]]  ;;  %s6901_s13 = sld [smem:[#allocation25_spill]] }
 0x47d   : > { %s6902_s24 = smov %s5373_s25  ;;  %s6903_s25 = smov %s5377_s26 }
 0x482   : > { %p25_p12 = scmp.ge.s32.totalorder %s6900_s27, 4   ;;  %s6904_s26 = smov %s6901_s13 }
 0x484   :  { %27 = sbr.rel (!%p25_p12) target bundleno = 13 (0xd), region = 143 }
 0x48b   :  { %3891 = vsyncpa [#allocation4], 1 }
 0x48c   :  { %3893 = vsyncpa [#allocation4 + $0x1], 1 }
 0x48d   :  { %3894 = vsyncpa [#allocation7], 1 }
 0x48e   :  { %3896 = vsyncpa [#allocation7 + $0x1], 1 }
 0x48f   :  { %3897 = vsyncpa [#allocation10], 1 }
 0x490   :  { %3898 = vsyncpa [#allocation13], 1 }
 0x491   :  { %3899 = vsyncpa [#allocation5], 1 }
 0x492   :  { %3901 = vsyncpa [#allocation5 + $0x1], 1 }

// kernel: mul.30
= control target key start
LH: loop header
LB: loop body
LE: loop exit
PB: predicated region body
PF: predicated region fallthrough
CT: control target
= control target key end

     0   :  { %s56_s0 = inlined_call_operand.vmem [shape: f32[256,1], index: 0, kind: input, shape index: {}]   ;;  %s57_s1 = inlined_call_operand.vmem [shape: f32[256,1], index: 1, kind: input, shape index: {}]   ;;  %s58_s2 = inlined_call_operand.vmem [shape: f32[256,1], index: 2, kind: output, shape index: {}]  }
   0x1   :  { %v3_v0 = vld [vmem:[%s56_s0] sm:$0x1]  ;;  %v20_v2 = vld [vmem:[%s56_s0 + $0x1] sm:$0x1] }
   0x2   :  { %v4_v1 = vld [vmem:[%s57_s1] sm:$0x1]  ;;  %v21_v4 = vld [vmem:[%s57_s1 + $0x1] sm:$0x1] }
   0x3   :  { %v7_v3 = vmul.f32 %v4_v1, %v3_v0  ;;  %v16_v5 = vmul.f32 %v21_v4, %v20_v2 }
   0x5   :  { %9 = vst [vmem:[%s58_s2] sm:$0x1] %v7_v3  ;;  %22 = vst [vmem:[%s58_s2 + $0x1] sm:$0x1] %v16_v5 }

// kernel: rlfb_forward.12
= control target key start
LH: loop header
LB: loop body
LE: loop exit
PB: predicated region body
PF: predicated region fallthrough
CT: control target
= control target key end

     0   :  { %8 = vsyncpa [#allocation3], 0  ;;  %s5382_s0 = inlined_call_operand.hbm [shape: f32[2,8,2,8,32], index: 0, kind: input, shape index: {}]   ;;  %s5383_s1 = inlined_call_operand.hbm [shape: bf16[9,16,16], index: 1, kind: input, shape index: {}]   ;;  %s5384_s2 = inlined_call_operand.hbm [shape: f32[1,16], index: 2, kind: input, shape index: {}]   ;;  %s5385_s3 = inlined_call_operand.hbm [shape: f32[2,49,16], index: 3, kind: output, shape index: {}]  }
   0x1   :  { %10 = vsyncpa [#allocation3 + $0x1], 0 }
   0x2   :  { %11 = vsyncpa [#allocation6], 0 }
   0x3   :  { %12 = vsyncpa [#allocation4], 0 }
   0x4   :  { %14 = vsyncpa [#allocation4 + $0x1], 0  ;;  %s4142_s12 = smov 0   ;;  %s4144_s13 = smov 0  }
   0x5   :  { %s4146_s14 = smov 0   ;;  %s4148_s15 = smov 0  }
   0x6 LB: > { %s4163_s16 = sadd.s32 4294967295, %s4108_s15   ;;  %s3594_s17 = sadd.s32 4294967294, %s4108_s15   ;;  %s4108_s15 = sphi %s4148_s15, %s5529_s15   ;;  %s4104_s14 = sphi %s4146_s14, %s5528_s14   ;;  %s4100_s13 = sphi %s4144_s13, %s5527_s13   ;;  %s4096_s12 = sphi %s4142_s12, %s5526_s12  }
   0x7   : > { %p40_p0 = scmp.ne.s32.totalorder %s4100_s13, %s4096_s12  ;;  %p5386_p1 = scmp.eq.s32.totalorder %s4163_s16, 0 }
   0x8   : > { %p112_p3 = scmp.eq.s32.totalorder %s3594_s17, 1  ;;  %p3595_p5 = scmp.ge.s32.totalorder %s4108_s15, 1 }
   0x9   : > { %p4172_p4 = por %p5386_p1, %p40_p0  ;;  %p119_p7 = scmp.lt.s32.totalorder %s4108_s15, 3 }
   0xa   : > { %p4177_p6 = por %p112_p3, %p40_p0  ;;  %s4110_s21 = smov [#allocation5]  }
   0xb   : > { %s5433_s18 = scalar_select %p4172_p4, 1, 0 }
   0xc   : > { %s5434_s19 = scalar_select %p4177_p6, 1, 0 }
   0xd   : > { %p4182_p8 = pnand %p3595_p5, %p119_p7  ;;  %s131_s22 = sshll.u32 %s4110_s21, 4  ;;  %s4186_s22 = int_to_ptr.vmem [resolvable:$true] %s131_s22 }
   0xe   : > { %s4111_s24 = smov [#allocation7]   ;;  %s3952_s28 = scalar_lea.hbm %s5383_s1, 1152 }
   0xf   : > { %p3863_p9 = pneg %p4182_p8  ;;  %s145_s25 = sshll.u32 %s4111_s24, 4  ;;  %s4197_s25 = int_to_ptr.vmem [resolvable:$true] %s145_s25 }
  0x10   : > { %p3953_p12 = scmp.ne.s32.totalorder %s5383_s1, %s3952_s28  ;;  %p3959_p5 = scmp.lt.u32.totalorder %s3952_s28, %s5383_s1 }
  0x11   : > { %p4193_p11 = pnand %p3863_p9, %p5386_p1 }
  0x13   : > { %p3954_p13 = pneg %p4193_p11 }
  0x15   : > { %p3955_p0 = pnand %p3954_p13, %p3953_p12 }
  0x17   : > { %p3956_p3 = pneg %p3955_p0 }
  0x19   : > { %p3961_p7 = pnand %p3959_p5, %p3956_p3 }
  0x1b   : > { %3964 = shalt.err (!%p3961_p7)
}
  0x1c   : > { %s3965_s6 = scalar_lea.vmem %s4186_s22, 1152  ;;  %p3973_p2 = scmp.lt.s32.totalorder %s4186_s22, %s4186_s22 }
  0x1d   : > { %p3966_p9 = scmp.ne.s32.totalorder %s4186_s22, %s3965_s6  ;;  %p3974_p12 = scmp.lt.s32.totalorder %s3965_s6, %s3965_s6 }
  0x1f   : > { %p3968_p10 = pnand %p3966_p9, %p3954_p13  ;;  %p3975_p0 = por %p3974_p12, %p3973_p2 }
  0x21   : > { %p3969_p1 = pneg %p3968_p10 }
  0x23   : > { %p3976_p6 = pnand %p3975_p0, %p3969_p1 }
  0x25   : > { %3979 = shalt.err (!%p3976_p6)
}
  0x26   : > { %s4112_s7 = smov 64   ;;  %s4113_s8 = smov 4  }
  0x27   : > { %3866 = dma.hbm_to_vmem [thread:$0]  (!%p4193_p11), %s5383_s1, 1152, %s4186_s22, [#allocation6], %s4112_s7, %s4112_s7, %s4113_s8  }
  0x28   : > { %s3980_s21 = scalar_lea.hbm %s5384_s2, 16 }
  0x29   : > { %p3981_p2 = scmp.ne.s32.totalorder %s5384_s2, %s3980_s21  ;;  %p3987_p10 = scmp.lt.u32.totalorder %s3980_s21, %s5384_s2 }
  0x2b   : > { %p3983_p1 = pnand %p3981_p2, %p3954_p13 }
  0x2d   : > { %p3984_p6 = pneg %p3983_p1 }
  0x2f   : > { %p3989_p3 = pnand %p3987_p10, %p3984_p6 }
  0x31   : > { %3992 = shalt.err (!%p3989_p3)
}
  0x32   : > { %s3993_s22 = scalar_lea.vmem %s4197_s25, 16  ;;  %s4000_s29 = scalar_lea.vmem %s4197_s25, 32 }
  0x33   : > { %p3994_p5 = scmp.ne.s32.totalorder %s4197_s25, %s3993_s22  ;;  %p4001_p12 = scmp.lt.s32.totalorder %s4197_s25, %s4197_s25 }
  0x34   : > { %p4002_p0 = scmp.lt.s32.totalorder %s4000_s29, %s3993_s22 }
  0x35   : > { %p3996_p7 = pnand %p3994_p5, %p3954_p13 }
  0x36   : > { %p4003_p2 = por %p4002_p0, %p4001_p12 }
  0x37   : > { %p3997_p9 = pneg %p3996_p7 }
  0x39   : > { %p4004_p1 = pnand %p4003_p2, %p3997_p9 }
  0x3b   : > { %4007 = shalt.err (!%p4004_p1)
}
  0x3c   : > { %3869 = dma.hbm_to_vmem [thread:$0]  (!%p4193_p11), %s5384_s2, 16, %s4197_s25, [#allocation6]  }
  0x3d   : > { %s4253_s5 = sadd.s32 1, %s4108_s15   ;;  %s27_s23 = sadd.s32 1, %s4104_s14 }
  0x3e   : > { %s24_s6 = ssub.s32 %s4108_s15, %s4253_s5  ;;  %p34_p13 = scmp.ne.s32.totalorder %s4104_s14, %s4100_s13 }
  0x3f   : > { %p25_p6 = scmp.eq.s32.totalorder %s24_s6, 0  ;;  %p35_p10 = scmp.eq.s32.totalorder %s4108_s15, 0 }
  0x40   : > { %p5437_p3 = scmp.eq.s32.totalorder %s4163_s16, 1  ;;  %p3880_p7 = scmp.lt.s32.totalorder %s4108_s15, 2 }
  0x41   : > { %s4269_s8 = scalar_select %p25_p6, %s4104_s14, %s27_s23  }
  0x42   : > { %p4263_p5 = por %p5437_p3, %p34_p13  ;;  %p36_p9 = por %p35_p10, %p34_p13 }
  0x43   : > { %s156_s9 = sand.u32 1, %s4104_s14   ;;  %s3679_s25 = sshll.u32 %s4108_s15, 11 }
  0x44   : > { %s5438_s7 = scalar_select %p4263_p5, 1, 0 }
  0x45   : > { %s3599_s10 = sshll.u32 %s156_s9, 7  ;;  %s4276_s21 = scalar_lea.hbm %s5382_s0, %s3679_s25 }
  0x46   : > { %s160_s24 = scalar_lea.vmem [#allocation2], %s3599_s10  ;;  %p4280_p11 = pnand %p3880_p7, %p36_p9 }
  0x47   : > { %s167_s26 = sshll.u32 %s160_s24, 4  ;;  %s4284_s28 = scalar_lea.sflag [#allocation3], %s156_s9  ;;  %s4278_s26 = int_to_ptr.vmem [resolvable:$true] %s167_s26 }
  0x48   : > { %s4008_s22 = scalar_lea.hbm %s4276_s21, 2048  ;;  %p4010_p0 = pneg %p4280_p11 }
  0x49   : > { %p4009_p12 = scmp.ne.s32.totalorder %s4276_s21, %s4008_s22  ;;  %s4013_s4 = scalar_lea.hbm %s5382_s0, 4096 }
  0x4a   : > { %p4014_p13 = scmp.lt.u32.totalorder %s4276_s21, %s5382_s0  ;;  %p4015_p6 = scmp.lt.u32.totalorder %s4013_s4, %s4008_s22 }
  0x4b   : > { %p4011_p2 = pnand %p4010_p0, %p4009_p12  ;;  %p4017_p3 = scmp.lt.u32.totalorder %s4008_s22, %s4276_s21 }
  0x4c   : > { %p4016_p10 = por %p4015_p6, %p4014_p13 }
  0x4d   : > { %p4012_p1 = pneg %p4011_p2 }
  0x4e   : > { %p4018_p7 = por %p4017_p3, %p4016_p10 }
  0x50   : > { %p4019_p9 = pnand %p4018_p7, %p4012_p1 }
  0x52   : > { %4022 = shalt.err (!%p4019_p9)
}
  0x53   : > { %s4023_s9 = scalar_lea.vmem %s4278_s26, 2048  ;;  %s4114_s10 = smov [#allocation2]  }
  0x54   : > { %p4024_p12 = scmp.ne.s32.totalorder %s4278_s26, %s4023_s9  ;;  %s4028_s25 = sshll.u32 %s4114_s10, 4  ;;  %s4029_s25 = int_to_ptr.vmem [resolvable:$false] %s4028_s25 }
  0x55   : > { %s4030_s11 = scalar_lea.vmem %s4029_s25, 4096  ;;  %p4031_p4 = scmp.lt.s32.totalorder %s4278_s26, %s4029_s25 }
  0x56   : > { %p4026_p2 = pnand %p4024_p12, %p4010_p0  ;;  %p4032_p13 = scmp.lt.s32.totalorder %s4030_s11, %s4023_s9 }
  0x58   : > { %p4027_p5 = pneg %p4026_p2  ;;  %p4033_p6 = por %p4032_p13, %p4031_p4 }
  0x5a   : > { %p4034_p10 = pnand %p4033_p6, %p4027_p5 }
  0x5c   : > { %4037 = shalt.err (!%p4034_p10)
}
  0x5d   : > { %s4115_s17 = smov 128   ;;  %s4116_s24 = smov 8  }
  0x5e   : > { %3873 = dma.hbm_to_vmem [thread:$0]  (!%p4280_p11), %s4276_s21, 2048, %s4278_s26, %s4284_s28, %s4115_s17, %s4115_s17, %s4116_s24  }
  0x5f   : > { %179 = sbr.rel (%p4182_p8) target bundleno = 607 (0x25f), region = 32 }
  0x66   : > { %s4315_s22 = sand.u32 1, %s4100_s13   ;;  %p5440_p4 = scmp.ne.s32.totalorder %s5433_s18, 0 }
  0x67   : > { %s3603_s29 = sshll.u32 %s4315_s22, 7  ;;  %s182_s30 = scalar_lea.sflag [#allocation3], %s4315_s22 }
  0x68   : > { %s4319_s4 = scalar_lea.vmem [#allocation2], %s3603_s29 }
  0x69   : > { %4083 = dma.done.wait (%p5440_p4), %s182_s30, 2048  }
  0x6a   : > { %4085 = vsyncadd (%p5440_p4), %s182_s30, 4294965248  ;;  %p5441_p5 = scmp.eq.s32.totalorder %s4163_s16, 0 }
  0x6c   : > { %4087 = dma.done.wait (%p5441_p5), [#allocation6], 1168   ;;  %p5442_p8 = pmov %p5441_p5 }
  0x6d   : > { %v243_v0 = vlaneseq  ;;  %v4117_v1 = vmov 1966171168   ;;  %v218_v6 = vld [vmem:[%s4319_s4 + $0x8] sm:$0xff]  ;;  %v220_v7 = vld [vmem:[%s4319_s4 + $0x18] sm:$0xff]  ;;  %v217_v13 = vld [vmem:[%s4319_s4] sm:$0xff]  ;;  %s4118_s18 = smov 112  }
  0x6e   : > { %4089 = vsyncadd (%p5442_p8), [#allocation6], 4294966128  ;;  %v241_v2 = vunpack.c.l.s4 %v4117_v1  ;;  %v4334_v8 = vld [vmem:[%s4319_s4 + $0x28] sm:$0xff]  ;;  %v1501_v9 = vcombine.high %v218_v6, %v218_v6  ;;  %v1549_v11 = vcombine.high %v220_v7, %v220_v7  ;;  %v239_v15 = vcombine.high %v217_v13, %v217_v13  ;;  %v219_v42 = vld [vmem:[%s4319_s4 + $0x10] sm:$0xff]  ;;  %s3849_s20 = smul.u32 56, %s4315_s22  ;;  %p5523_p0 = scmp.ne.s32.totalorder %s5438_s7, 0 }
  0x6f   : > { %v244_v3 = vshrl.u32 %v243_v0, 7  ;;  %v3941_v29 = vld [vmem:[#allocation5 + $0x8] sm:$0xff]   ;;  %v287_v61 = vcombine.high %v219_v42, %v219_v42  ;;  %vm917_vm0 = vcmask 130048   ;;  %s3850_s26 = smul.u32 896, %s4163_s16  ;;  %vm3486_vm1 = vcmask 122880   ;;  %s3489_s16 = scalar_lea.sflag [#allocation4], %s4315_s22 }
  0x70   : > { %v242_v4 = vunpack.c.0.s8 %v241_v2  ;;  %3725 = vmatprep.subr.bf16.mxu1 %v3941_v29  ;;  %s5310_s21 = scalar_lea.vmem [#allocation8], %s3849_s20  ;;  %s4119_s10 = smov [#allocation8]  }
  0x71   : > { %3726 = vmatpush3.bf16.msra.mxu1 %v3941_v29  ;;  %s3502_s27 = sshll.u32 %s5310_s21, 4  ;;  %s5332_s6 = scalar_lea.hbm %s5385_s3, %s3850_s26  ;;  %s5334_s27 = int_to_ptr.vmem [resolvable:$true] %s3502_s27 }
  0x72   : > { %v4329_v5 = vsub.s32 %v242_v4, %v244_v3  ;;  %s4038_s9 = scalar_lea.vmem %s5334_s27, 896  ;;  %s4042_s25 = sshll.u32 %s4119_s10, 4  ;;  %s4043_s25 = int_to_ptr.vmem [resolvable:$false] %s4042_s25 }
  0x73   : > { %p4039_p11 = scmp.ne.s32.totalorder %s5334_s27, %s4038_s9  ;;  %s4044_s11 = scalar_lea.vmem %s4043_s25, 1792 }
  0x74   : > { %v1508_v10 = vrot.slane %v218_v6, %v4329_v5  ;;  %v1556_v12 = vrot.slane %v220_v7, %v4329_v5  ;;  %v1604_v14 = vrot.slane %v4334_v8, %v4329_v5  ;;  %v246_v16 = vrot.slane %v217_v13, %v4329_v5  ;;  %p4045_p7 = scmp.lt.s32.totalorder %s5334_s27, %s4043_s25  ;;  %p4046_p9 = scmp.lt.s32.totalorder %s4044_s11, %s4038_s9 }
  0x75   : > { %v1515_v17 = vrot.slane %v1501_v9, %v4329_v5  ;;  %v1563_v20 = vrot.slane %v1549_v11, %v4329_v5  ;;  %v253_v57 = vrot.slane %v239_v15, %v4329_v5  ;;  %v294_v6 = vrot.slane %v219_v42, %v4329_v5  ;;  %v4424_v11 = vld [vmem:[%s4319_s4 + $0x20] sm:$0xff]  ;;  %p4040_p1 = pnand %p4039_p11, %p5523_p0 }
  0x76   : > { %v1516_v18 = vcombine.high %v1508_v10, %v1508_v10  ;;  %v4344_v19 = vrot.slane %v1508_v10, %v4329_v5  ;;  %v1564_v21 = vcombine.high %v1556_v12, %v1556_v12  ;;  %v4348_v22 = vrot.slane %v1556_v12, %v4329_v5  ;;  %p4047_p12 = por %p4046_p9, %p4045_p7 }
  0x77   : > { %v1612_v23 = vcombine.high %v1604_v14, %v1604_v14  ;;  %v4351_v24 = vrot.slane %v1604_v14, %v4329_v5  ;;  %v1517_v25 = vcombine.high %v1515_v17, %v1515_v17  ;;  %v4354_v26 = vrot.slane %v1515_v17, %v4329_v5  ;;  %p4041_p3 = pneg %p4040_p1 }
  0x78   : > { %5443 = vst [vmem:[#allocation12_spill] sm:$0xff] %v4348_v22  ;;  %v4357_v27 = vrot.slane %v1516_v18, %v4329_v5  ;;  %v1565_v28 = vcombine.high %v1563_v20, %v1563_v20  ;;  %v4360_v30 = vrot.slane %v1563_v20, %v4329_v5  ;;  %v4363_v31 = vrot.slane %v1564_v21, %v4329_v5 }
  0x79   : > { %5444 = vst [vmem:[#allocation13_spill] sm:$0xff] %v4351_v24  ;;  %5445 = vst [vmem:[#allocation14_spill] sm:$0xff] %v4354_v26  ;;  %v1594_v32 = vcombine.high %v4348_v22, %v4348_v22  ;;  %v4368_v33 = vrot.slane %v1612_v23, %v4329_v5  ;;  %v4371_v34 = vrot.slane %v1517_v25, %v4329_v5  ;;  %p4048_p2 = pnand %p4047_p12, %p4041_p3 }
  0x7a   : > { %5446 = vst [vmem:[#allocation15_spill] sm:$0xff] %v4360_v30  ;;  %5447 = vst [vmem:[#allocation16_spill] sm:$0xff] %v4363_v31  ;;  %v4375_v35 = vcombine.high %v4354_v26, %v4354_v26  ;;  %v4378_v36 = vrot.slane %v1565_v28, %v4329_v5  ;;  %v1837_v37 = vcombine.low %v4344_v19, %v4357_v27 }
  0x7b   : > { %v1595_v38 = vcombine.high %v4360_v30, %v4360_v30  ;;  %v1596_v39 = vcombine.high %v4363_v31, %v4363_v31  ;;  %v3631_v40 = vcombine.high %v4344_v19, %v4357_v27  ;;  %v1886_v41 = vcombine.low %v4363_v31, %v1594_v32 }
  0x7c   : > { %5448 = vst [vmem:[#allocation17_spill] sm:$0xff] %v4375_v35  ;;  %5449 = vst [vmem:[#allocation18_spill] sm:$0xff] %v4378_v36  ;;  %v1839_v43 = vcombine.low %v4354_v26, %v4371_v34  ;;  %v1840_v44 = vcombine.low %v4375_v35, %v4348_v22  ;;  %v1847_v45 = vrot.slane %v1837_v37, %v4329_v5 }
  0x7d   : > { %v1889_v46 = vcombine.low %v4351_v24, %v4368_v33  ;;  %v1854_v47 = vrot.slane %v3631_v40, %v4329_v5  ;;  %v1887_v48 = vcombine.low %v1596_v39, %v4360_v30  ;;  %v1888_v49 = vcombine.low %v4378_v36, %v1595_v38 }
  0x7e   : > { %v1896_v50 = vrot.slane %v1886_v41, %v4329_v5  ;;  %v1861_v51 = vrot.slane %v1839_v43, %v4329_v5  ;;  %v1868_v52 = vrot.slane %v1840_v44, %v4329_v5  ;;  %v254_v59 = vcombine.high %v246_v16, %v246_v16 }
  0x7f   : > { %v1917_v53 = vrot.slane %v1889_v46, %v4329_v5  ;;  %v1869_v54 = vcombine.low %v1847_v45, %v1854_v47  ;;  %v1903_v55 = vrot.slane %v1887_v48, %v4329_v5  ;;  %v1910_v56 = vrot.slane %v1888_v49, %v4329_v5 }
  0x80   : > { %v1870_v58 = vcombine.low %v1861_v51, %v1868_v52  ;;  %v4408_v60 = vrot.slane %v246_v16, %v4329_v5  ;;  %v255_v1 = vcombine.high %v253_v57, %v253_v57  ;;  %v4413_v3 = vrot.slane %v253_v57, %v4329_v5  ;;  %v3943_v57 = vld [vmem:[#allocation5] sm:$0xff]  }
  0x81   : > { %v1877_v62 = vrot.slane %v1869_v54, %v4329_v5  ;;  %v1918_v63 = vcombine.low %v1896_v50, %v1903_v55  ;;  %v1919_v0 = vcombine.low %v1910_v56, %v1917_v53  ;;  %v4416_v4 = vrot.slane %v254_v59, %v4329_v5  ;;  %v224_v55 = vld [vmem:[%s4319_s4 + $0x38] sm:$0xff]  ;;  %v3942_v56 = vld [vmem:[#allocation5 + $0x20] sm:$0xff]   ;;  %3735 = vmatprep.subr.bf16.mxu1 %v3943_v57 }
  0x82   : > { %5450 = vst [vmem:[#allocation19_spill] sm:$0xff] %v4408_v60  ;;  %v1884_v2 = vrot.slane %v1870_v58, %v4329_v5  ;;  %5451 = vst [vmem:[#allocation20_spill] sm:$0xff] %v4413_v3  ;;  %v1597_v7 = vcombine.high %v4334_v8, %v4334_v8  ;;  %v301_v12 = vrot.slane %v287_v61, %v4329_v5  ;;  %3765 = vmatprep.subr.bf16.mxu0 %v3942_v56 }
  0x83   : > { %5452 = vst [vmem:[#allocation21_spill] sm:$0xff] %v4416_v4  ;;  %v1926_v9 = vrot.slane %v1918_v63, %v4329_v5  ;;  %v1933_v10 = vrot.slane %v1919_v0, %v4329_v5  ;;  %v4428_v14 = vrot.slane %v255_v1, %v4329_v5  ;;  %v302_v15 = vcombine.high %v294_v6, %v294_v6 }
  0x84   : > { %v1885_v13 = vcombine.low %v1877_v62, %v1884_v2  ;;  %v4431_v16 = vrot.slane %v294_v6, %v4329_v5  ;;  %v4435_v8 = vcombine.high %v4413_v3, %v4413_v3  ;;  %v303_v18 = vcombine.high %v301_v12, %v301_v12  ;;  %3766 = vmatpush3.bf16.msra.mxu0 %v3942_v56 }
  0x85   : > { %5453 = vst [vmem:[#allocation22_spill] sm:$0xff] %v4428_v14  ;;  %v1934_v17 = vcombine.low %v1926_v9, %v1933_v10  ;;  %v4438_v20 = vrot.slane %v301_v12, %v4329_v5  ;;  %v4441_v21 = vrot.slane %v302_v15, %v4329_v5  ;;  %v342_v25 = vrot.slane %v4424_v11, %v4329_v5 }
  0x86   : > { %5454 = vst [vmem:[#allocation23_spill] sm:$0xff] %v4435_v8  ;;  %v332_v23 = vcombine.high %v4431_v16, %v4431_v16  ;;  %v575_v28 = vcombine.low %v4408_v60, %v4416_v4  ;;  %v4452_v32 = vrot.slane %v303_v18, %v4329_v5  ;;  %v3606_v38 = vcombine.high %v4408_v60, %v4416_v4 }
  0x87   : > { %5455 = vst [vmem:[#allocation24_spill] sm:$0xff] %v4438_v20  ;;  %v4449_v29 = vpack.c.bf16 %v1934_v17, %v1885_v13  ;;  %v4456_v37 = vcombine.high %v4438_v20, %v4438_v20  ;;  %v334_v39 = vcombine.high %v4441_v21, %v4441_v21  ;;  %v350_v40 = vcombine.high %v342_v25, %v342_v25 }
  0x88   : > { %v4463_v41 = vrot.slane %v342_v25, %v4329_v5  ;;  %v577_v42 = vcombine.low %v4413_v3, %v4428_v14  ;;  %v578_v43 = vcombine.low %v4435_v8, %v4431_v16  ;;  %v585_v44 = vrot.slane %v575_v28, %v4329_v5 }
  0x89   : > { %5456 = vst [vmem:[#allocation25_spill] sm:$0xff] %v4449_v29  ;;  %2255 = vrot.lane.b32.xlu1 %v4449_v29, %s4118_s18  ;;  %v592_v45 = vrot.slane %v3606_v38, %v4329_v5  ;;  %v624_v46 = vcombine.low %v4441_v21, %v332_v23  ;;  %v4475_v47 = vrot.slane %v350_v40, %v4329_v5  ;;  %v4502_v23 = vld [vmem:[%s4319_s4 + $0x48] sm:$0xff] }
  0x8a   : > { %v599_v48 = vrot.slane %v577_v42, %v4329_v5  ;;  %v625_v49 = vcombine.low %v334_v39, %v4438_v20  ;;  %v626_v50 = vcombine.low %v4452_v32, %v4456_v37  ;;  %v606_v51 = vrot.slane %v578_v43, %v4329_v5 }
  0x8b   : > { %v607_v52 = vcombine.low %v585_v44, %v592_v45  ;;  %v634_v53 = vrot.slane %v624_v46, %v4329_v5  ;;  %v1077_v54 = vcombine.high %v4452_v32, %v4452_v32  ;;  %v627_v58 = vcombine.low %v4463_v41, %v4475_v47 }
  0x8c   : > { %v641_v59 = vrot.slane %v625_v49, %v4329_v5  ;;  %v648_v61 = vrot.slane %v626_v50, %v4329_v5  ;;  %v608_v62 = vcombine.low %v599_v48, %v606_v51  ;;  %v1611_v1 = vrot.slane %v1597_v7, %v4329_v5 }
  0x8d   : > { %v615_v63 = vrot.slane %v607_v52, %v4329_v5  ;;  %v3215_v0 = vcombine.low %v1077_v54, %v4475_v47  ;;  %v655_v2 = vrot.slane %v627_v58, %v4329_v5  ;;  %v1645_v9 = vcombine.high %v224_v55, %v224_v55 }
  0x8e   : > { %v656_v6 = vcombine.low %v634_v53, %v641_v59  ;;  %v1652_v10 = vrot.slane %v224_v55, %v4329_v5  ;;  %v622_v12 = vrot.slane %v608_v62, %v4329_v5  ;;  %v1613_v15 = vcombine.high %v1611_v1, %v1611_v1 }
  0x8f   : > { %v3222_v13 = vrot.slane %v3215_v0, %v4329_v5  ;;  %v4498_v17 = vrot.slane %v1611_v1, %v4329_v5  ;;  %v657_v18 = vcombine.low %v648_v61, %v655_v2  ;;  %v1659_v25 = vrot.slane %v1645_v9, %v4329_v5 }
  0x90   : > { %v664_v7 = vrot.slane %v656_v6, %v4329_v5  ;;  %v1660_v28 = vcombine.high %v1652_v10, %v1652_v10  ;;  %v623_v38 = vcombine.low %v615_v63, %v622_v12  ;;  %v4506_v40 = vrot.slane %v1613_v15, %v4329_v5 }
  0x91   : > { %v3223_v39 = vcombine.low %v648_v61, %v3222_v13  ;;  %v4510_v42 = vcombine.high %v4498_v17, %v4498_v17  ;;  %v671_v43 = vrot.slane %v657_v18, %v4329_v5  ;;  %v1661_v44 = vcombine.high %v1659_v25, %v1659_v25  ;;  %v223_v18 = vld [vmem:[%s4319_s4 + $0x30] sm:$0xff] }
  0x92   : > { %v4514_v45 = vrot.slane %v1652_v10, %v4329_v5  ;;  %v4517_v46 = vrot.slane %v1659_v25, %v4329_v5  ;;  %v4521_v49 = vrot.slane %v1660_v28, %v4329_v5  ;;  %v1700_v50 = vrot.slane %v4502_v23, %v4329_v5 }
  0x93   : > { %v3230_v48 = vrot.slane %v3223_v39, %v4329_v5  ;;  %v3632_v51 = vcombine.high %v4351_v24, %v4368_v33  ;;  %v672_v52 = vcombine.low %v664_v7, %v671_v43  ;;  %v4528_v53 = vrot.slane %v1661_v44, %v4329_v5 }
  0x94   : > { %v1690_v54 = vcombine.high %v4514_v45, %v4514_v45  ;;  %v1691_v55 = vcombine.high %v4517_v46, %v4517_v46  ;;  %v1692_v57 = vcombine.high %v4521_v49, %v4521_v49  ;;  %v1708_v58 = vcombine.high %v1700_v50, %v1700_v50 }
  0x95   : > { %v4534_v56 = vcombine.low %v664_v7, %v3230_v48  ;;  %v4539_v59 = vrot.slane %v1700_v50, %v4329_v5  ;;  %v4541_v61 = vpack.c.bf16 %v672_v52, %v623_v38  ;;  %v1936_v62 = vcombine.low %v4498_v17, %v4506_v40 }
  0x96   : > { %v1937_v63 = vcombine.low %v4510_v42, %v4514_v45  ;;  %v1938_v0 = vcombine.low %v4521_v49, %v1690_v54  ;;  %v335_v1 = vcombine.high %v4424_v11, %v4424_v11  ;;  %v4551_v2 = vrot.slane %v1708_v58, %v4329_v5 }
  0x97   : > { %5457 = vst [vmem:[#allocation26_spill] sm:$0xff] %v4534_v56  ;;  %5458 = vst [vmem:[#allocation27_spill] sm:$0xff] %v4541_v61  ;;  %v1945_v6 = vrot.slane %v3632_v51, %v4329_v5  ;;  %v1984_v9 = vcombine.low %v1692_v57, %v4517_v46  ;;  %903 = vrot.lane.b32.xlu0 %v4541_v61, %s4118_s18  ;;  %v1952_v10 = vrot.slane %v1936_v62, %v4329_v5  ;;  %v225_v62 = vld [vmem:[%s4319_s4 + $0x40] sm:$0xff] }
  0x98   : > { %v1959_v12 = vrot.slane %v1937_v63, %v4329_v5  ;;  %v1966_v13 = vrot.slane %v1938_v0, %v4329_v5  ;;  %v1985_v15 = vcombine.low %v4528_v53, %v1691_v55  ;;  %v1986_v11 = vcombine.low %v4539_v59, %v4551_v2 }
  0x99   : > { %v3633_v7 = vcombine.high %v4539_v59, %v4551_v2  ;;  %v1994_v25 = vrot.slane %v1984_v9, %v4329_v5  ;;  %v1967_v28 = vcombine.low %v1945_v6, %v1952_v10  ;;  %v349_v50 = vrot.slane %v335_v1, %v4329_v5 }
  0x9a   : > { %v1968_v38 = vcombine.low %v1959_v12, %v1966_v13  ;;  %v2001_v39 = vrot.slane %v1985_v15, %v4329_v5  ;;  %v2008_v44 = vrot.slane %v1986_v11, %v4329_v5  ;;  %v383_v51 = vcombine.high %v223_v18, %v223_v18 }
  0x9b   : > { %v2015_v48 = vrot.slane %v3633_v7, %v4329_v5  ;;  %v1975_v52 = vrot.slane %v1967_v28, %v4329_v5  ;;  %v390_v57 = vrot.slane %v223_v18, %v4329_v5  ;;  %v351_v63 = vcombine.high %v349_v50, %v349_v50 }
  0x9c   : > { %v1982_v54 = vrot.slane %v1968_v38, %v4329_v5  ;;  %v2016_v55 = vcombine.low %v1994_v25, %v2001_v39  ;;  %v4578_v0 = vrot.slane %v349_v50, %v4329_v5  ;;  %v397_v6 = vrot.slane %v383_v51, %v4329_v5 }
  0x9d   : > { %v2017_v58 = vcombine.low %v2008_v44, %v2015_v48  ;;  %v398_v1 = vcombine.high %v390_v57, %v390_v57  ;;  %v4583_v12 = vrot.slane %v390_v57, %v4329_v5  ;;  %v4587_v15 = vrot.slane %v351_v63, %v4329_v5 }
  0x9e   : > { %5459 = vst [vmem:[#allocation28_spill] sm:$0xff] %v4578_v0  ;;  %v1983_v9 = vcombine.low %v1975_v52, %v1982_v54  ;;  %v2024_v10 = vrot.slane %v2016_v55, %v4329_v5  ;;  %v4591_v18 = vcombine.high %v4578_v0, %v4578_v0  ;;  %v399_v11 = vcombine.high %v397_v6, %v397_v6 }
  0x9f   : > { %v2031_v13 = vrot.slane %v2017_v58, %v4329_v5  ;;  %5460 = vst [vmem:[#allocation29_spill] sm:$0xff] %v4587_v15  ;;  %v4594_v7 = vrot.slane %v397_v6, %v4329_v5  ;;  %v4597_v25 = vrot.slane %v398_v1, %v4329_v5  ;;  %v428_v28 = vcombine.high %v4583_v12, %v4583_v12 }
  0xa0   : > { %v438_v38 = vrot.slane %v225_v62, %v4329_v5  ;;  %v4603_v44 = vrot.slane %v399_v11, %v4329_v5  ;;  %v3607_v48 = vcombine.high %v4463_v41, %v4475_v47  ;;  %v674_v50 = vcombine.low %v4578_v0, %v4587_v15 }
  0xa1   : > { %v2032_v39 = vcombine.low %v2024_v10, %v2031_v13  ;;  %v4611_v51 = vcombine.high %v4594_v7, %v4594_v7  ;;  %v430_v52 = vcombine.high %v4597_v25, %v4597_v25  ;;  %v675_v58 = vcombine.low %v4591_v18, %v4583_v12 }
  0xa2   : > { %v446_v54 = vcombine.high %v438_v38, %v438_v38  ;;  %v4616_v55 = vrot.slane %v438_v38, %v4329_v5  ;;  %v676_v63 = vcombine.low %v4597_v25, %v428_v28  ;;  %v683_v6 = vrot.slane %v3607_v48, %v4329_v5 }
  0xa3   : > { %v4618_v57 = vpack.c.bf16 %v2032_v39, %v1983_v9  ;;  %v690_v1 = vrot.slane %v674_v50, %v4329_v5  ;;  %v722_v13 = vcombine.low %v430_v52, %v4594_v7  ;;  %v723_v11 = vcombine.low %v4603_v44, %v4611_v51  ;;  %v227_v39 = vld [vmem:[%s4319_s4 + $0x50] sm:$0xff] }
  0xa4   : > { %v4625_v10 = vrot.slane %v446_v54, %v4329_v5  ;;  %v697_v9 = vrot.slane %v675_v58, %v4329_v5  ;;  %v4635_v38 = vrot.slane %v676_v63, %v4329_v5  ;;  %v1079_v28 = vcombine.high %v4603_v44, %v4603_v44 }
  0xa5   : > { %5461 = vst [vmem:[#allocation30_spill] sm:$0xff] %v4618_v57  ;;  %2257 = vrot.lane.b32.xlu1 %v4618_v57, %s4118_s18  ;;  %v431_v48 = vcombine.high %v225_v62, %v225_v62  ;;  %v705_v54 = vcombine.low %v683_v6, %v690_v1  ;;  %v732_v43 = vrot.slane %v722_v13, %v4329_v5  ;;  %v4645_v57 = vld [vmem:[#allocation5 + $0x28] sm:$0xff]  }
  0xa6   : > { %5462 = vst [vmem:[#allocation31_spill] sm:$0xff] %v4635_v38  ;;  %v724_v50 = vcombine.low %v4616_v55, %v4625_v10  ;;  %v3608_v52 = vcombine.high %v4616_v55, %v4625_v10  ;;  %5463 = vst [vmem:[#allocation32_spill] sm:$0xff] %v4645_v57  ;;  %v706_v58 = vcombine.low %v697_v9, %v4635_v38  ;;  %3775 = vmatprep.subr.bf16.mxu0 %v4645_v57 }
  0xa7   : > { %v739_v63 = vrot.slane %v723_v11, %v4329_v5  ;;  %v3249_v29 = vcombine.low %v1079_v28, %v4625_v10  ;;  %v445_v62 = vrot.slane %v431_v48, %v4329_v5  ;;  %v4652_v6 = vrot.slane %v705_v54, %v4329_v5  ;;  %v229_v28 = vld [vmem:[%s4319_s4 + $0x60] sm:$0xff] }
  0xa8   : > { %v746_v1 = vrot.slane %v724_v50, %v4329_v5  ;;  %v753_v56 = vrot.slane %v3608_v52, %v4329_v5  ;;  %v479_v61 = vcombine.high %v227_v39, %v227_v39  ;;  %v720_v13 = vrot.slane %v706_v58, %v4329_v5 }
  0xa9   : > { %5464 = vst [vmem:[#allocation33_spill] sm:$0xff] %v4652_v6  ;;  %v754_v3 = vcombine.low %v732_v43, %v739_v63  ;;  %v3256_v9 = vrot.slane %v3249_v29, %v4329_v5  ;;  %v447_v11 = vcombine.high %v445_v62, %v445_v62  ;;  %v4661_v48 = vrot.slane %v445_v62, %v4329_v5 }
  0xaa   : > { %v755_v38 = vcombine.low %v746_v1, %v753_v56  ;;  %v486_v54 = vrot.slane %v227_v39, %v4329_v5  ;;  %v493_v50 = vrot.slane %v479_v61, %v4329_v5  ;;  %v721_v52 = vcombine.low %v4652_v6, %v720_v13 }
  0xab   : > { %v762_v4 = vrot.slane %v754_v3, %v4329_v5  ;;  %v3257_v57 = vcombine.low %v3256_v9, %v753_v56  ;;  %v4668_v58 = vrot.slane %v447_v11, %v4329_v5  ;;  %v4673_v43 = vcombine.high %v4661_v48, %v4661_v48 }
  0xac   : > { %v769_v29 = vrot.slane %v755_v38, %v4329_v5  ;;  %v494_v63 = vcombine.high %v486_v54, %v486_v54  ;;  %v495_v62 = vcombine.high %v493_v50, %v493_v50  ;;  %v4677_v61 = vrot.slane %v486_v54, %v4329_v5 }
  0xad   : > { %v3264_v39 = vrot.slane %v3257_v57, %v4329_v5  ;;  %v4680_v1 = vrot.slane %v493_v50, %v4329_v5  ;;  %v527_v3 = vcombine.high %v229_v28, %v229_v28  ;;  %v534_v9 = vrot.slane %v229_v28, %v4329_v5 }
  0xae   : > { %v770_v56 = vcombine.low %v762_v4, %v769_v29  ;;  %v4683_v13 = vrot.slane %v494_v63, %v4329_v5  ;;  %v4686_v38 = vrot.slane %v495_v62, %v4329_v5  ;;  %v524_v57 = vcombine.high %v4677_v61, %v4677_v61 }
  0xaf   : > { %v3265_v11 = vcombine.low %v762_v4, %v3264_v39  ;;  %v4693_v54 = vcombine.high %v4680_v1, %v4680_v1  ;;  %v541_v50 = vrot.slane %v527_v3, %v4329_v5  ;;  %v542_v63 = vcombine.high %v534_v9, %v534_v9 }
  0xb0   : > { %v4696_v6 = vpack.c.bf16 %v770_v56, %v721_v52  ;;  %v526_v29 = vcombine.high %v4683_v13, %v4683_v13  ;;  %v4701_v62 = vrot.slane %v534_v9, %v4329_v5  ;;  %v771_v39 = vcombine.low %v4661_v48, %v4668_v58 }
  0xb1   : > { %v543_v28 = vcombine.high %v541_v50, %v541_v50  ;;  %v4704_v4 = vrot.slane %v541_v50, %v4329_v5  ;;  %v772_v30 = vcombine.low %v4673_v43, %v4677_v61  ;;  %v4713_v52 = vrot.slane %v542_v63, %v4329_v5 }
  0xb2   : > { %5465 = vst [vmem:[#allocation34_spill] sm:$0xff] %v4696_v6  ;;  %905 = vrot.lane.b32.xlu0 %v4696_v6, %s4118_s18  ;;  %v773_v3 = vcombine.low %v4683_v13, %v524_v57  ;;  %v774_v56 = vcombine.low %v526_v29, %v4680_v1  ;;  %v820_v9 = vcombine.low %v4686_v38, %v4693_v54 }
  0xb3   : > { %5466 = vst [vmem:[#allocation35_spill] sm:$0xff] %v4713_v52  ;;  %v4720_v50 = vrot.slane %v543_v28, %v4329_v5  ;;  %v781_v36 = vrot.slane %v771_v39, %v4329_v5  ;;  %v788_v22 = vrot.slane %v772_v30, %v4329_v5  ;;  %v3668_v6 = vcombine.high %v4661_v48, %v4668_v58 }
  0xb4   : > { %v795_v63 = vrot.slane %v773_v3, %v4329_v5  ;;  %v802_v31 = vrot.slane %v774_v56, %v4329_v5  ;;  %v821_v57 = vcombine.low %v4701_v62, %v4713_v52  ;;  %v3609_v29 = vcombine.high %v4701_v62, %v4713_v52 }
  0xb5   : > { %v803_v60 = vcombine.low %v781_v36, %v788_v22  ;;  %v823_v28 = vcombine.low %v4704_v4, %v4720_v50  ;;  %v4735_v39 = vrot.slane %v820_v9, %v4329_v5  ;;  %v3273_v30 = vrot.slane %v3668_v6, %v4329_v5 }
  0xb6   : > { %v804_v24 = vcombine.low %v795_v63, %v802_v31  ;;  %v837_v3 = vrot.slane %v821_v57, %v4329_v5  ;;  %v844_v56 = vrot.slane %v3609_v29, %v4329_v5  ;;  %v4742_v14 = vcombine.high %v4704_v4, %v4704_v4 }
  0xb7   : > { %5467 = vst [vmem:[#allocation36_spill] sm:$0xff] %v4735_v39  ;;  %v811_v8 = vrot.slane %v803_v60, %v4329_v5  ;;  %v851_v22 = vrot.slane %v823_v28, %v4329_v5  ;;  %v3274_v35 = vcombine.low %v781_v36, %v3273_v30  ;;  %v380_v9 = vcombine.high %v4463_v41, %v4463_v41 }
  0xb8   : > { %v818_v26 = vrot.slane %v804_v24, %v4329_v5  ;;  %v852_v31 = vcombine.low %v4735_v39, %v837_v3  ;;  %v875_v6 = vrot.slane %v4742_v14, %v4329_v5  ;;  %v382_v60 = vcombine.high %v4475_v47, %v4475_v47 }
  0xb9   : > { %v853_v57 = vcombine.low %v844_v56, %v851_v22  ;;  %v3281_v29 = vrot.slane %v3274_v35, %v4329_v5  ;;  %v3620_v36 = vcombine.high %v4431_v16, %v4441_v21  ;;  %v1133_v3 = vcombine.low %v4438_v20, %v4452_v32 }
  0xba   : > { %v819_v28 = vcombine.low %v811_v8, %v818_v26  ;;  %v860_v24 = vrot.slane %v852_v31, %v4329_v5  ;;  %v882_v30 = vrot.slane %v875_v6, %v4329_v5  ;;  %v1135_v35 = vcombine.low %v4475_v47, %v380_v9 }
  0xbb   : > { %v4764_v39 = vrot.slane %v853_v57, %v4329_v5  ;;  %v3282_v56 = vcombine.low %v3281_v29, %v818_v26  ;;  %v4768_v22 = vrot.slane %v3620_v36, %v4329_v5  ;;  %v4773_v8 = vrot.slane %v1133_v3, %v4329_v5 }
  0xbc   : > { %v4770_v63 = vpack.c.bf16 %v882_v30, %v882_v30  ;;  %v1181_v31 = vcombine.low %v382_v60, %v4578_v0  ;;  %v1182_v6 = vcombine.low %v4587_v15, %v4591_v18  ;;  %v4782_v26 = vrot.slane %v1135_v35, %v4329_v5 }
  0xbd   : > { %5468 = vst [vmem:[#allocation37_spill] sm:$0xff] %v4764_v39  ;;  %v868_v20 = vcombine.low %v860_v24, %v4764_v39  ;;  %v4779_v57 = vpack.c.bf16 %v3282_v56, %v3265_v11  ;;  %v2819_v47 = vcombine.low %v4431_v16, %v4441_v21  ;;  %v2820_v18 = vcombine.low %v4456_v37, %v4463_v41 }
  0xbe   : > { %5469 = vst [vmem:[#allocation38_spill] sm:$0xff] %v4770_v63  ;;  %909 = vrot.lane.b32.xlu1 %v4770_v63, %s4118_s18  ;;  %v1191_v9 = vrot.slane %v1181_v31, %v4329_v5  ;;  %v1198_v29 = vrot.slane %v1182_v6, %v4329_v5  ;;  %v2852_v11 = vcombine.low %v4583_v12, %v4597_v25 }
  0xbf   : > { %5470 = vst [vmem:[#allocation39_spill] sm:$0xff] %v4779_v57  ;;  %v4794_v60 = vpack.c.bf16 %v868_v20, %v819_v28  ;;  %v2827_v36 = vrot.slane %v2819_v47, %v4329_v5  ;;  %v476_v16 = vcombine.high %v4616_v55, %v4616_v55  ;;  %v478_v24 = vcombine.high %v4625_v10, %v4625_v10 }
  0xc0   : > { %v1213_v30 = vcombine.low %v1191_v9, %v1198_v29  ;;  %v2834_v3 = vrot.slane %v2820_v18, %v4329_v5  ;;  %v2859_v56 = vrot.slane %v2852_v11, %v4329_v5  ;;  %v2860_v37 = vcombine.low %v4782_v26, %v1191_v9 }
  0xc1   : > { %5471 = vst [vmem:[#allocation40_spill] sm:$0xff] %v4794_v60  ;;  %907 = vrot.lane.b32.xlu0 %v4794_v60, %s4118_s18  ;;  %v2835_v20 = vcombine.low %v2827_v36, %v4768_v22  ;;  %v1078_v41 = vcombine.high %v4587_v15, %v4587_v15  ;;  %v3622_v28 = vcombine.high %v4583_v12, %v4597_v25 }
  0xc2   : > { %v1230_v35 = vcombine.low %v4594_v7, %v4603_v44  ;;  %v1221_v31 = vrot.slane %v1213_v30, %v4329_v5  ;;  %v2836_v6 = vcombine.low %v4773_v8, %v2834_v3  ;;  %v2861_v47 = vcombine.low %v1198_v29, %v2859_v56 }
  0xc3   : > { %v2868_v9 = vrot.slane %v2860_v37, %v4329_v5  ;;  %v2843_v18 = vrot.slane %v2835_v20, %v4329_v5  ;;  %v1183_v11 = vcombine.low %v1078_v41, %v4597_v25  ;;  %v1212_v36 = vrot.slane %v3622_v28, %v4329_v5 }
  0xc4   : > { %v3623_v57 = vcombine.high %v4594_v7, %v4603_v44  ;;  %v2850_v12 = vrot.slane %v2836_v6, %v4329_v5  ;;  %v2875_v39 = vrot.slane %v2861_v47, %v4329_v5  ;;  %v1232_v30 = vcombine.low %v4625_v10, %v476_v16 }
  0xc5   : > { %v1233_v3 = vcombine.low %v478_v24, %v4661_v48  ;;  %v1205_v29 = vrot.slane %v1183_v11, %v4329_v5  ;;  %v1240_v56 = vrot.slane %v1230_v35, %v4329_v5  ;;  %v1279_v25 = vcombine.low %v4668_v58, %v4673_v43 }
  0xc6   : > { %v1247_v37 = vrot.slane %v3623_v57, %v4329_v5  ;;  %v2851_v20 = vcombine.low %v2843_v18, %v2850_v12  ;;  %v2876_v41 = vcombine.low %v2868_v9, %v2875_v39  ;;  %v1254_v7 = vrot.slane %v1232_v30, %v4329_v5  ;;  %v231_v30 = vld [vmem:[%s4319_s4 + $0x70] sm:$0xff] }
  0xc7   : > { %v1261_v44 = vrot.slane %v1233_v3, %v4329_v5  ;;  %v1214_v28 = vcombine.low %v1205_v29, %v1212_v36  ;;  %v3624_v10 = vcombine.high %v4677_v61, %v4683_v13  ;;  %v4835_v48 = vrot.slane %v1279_v25, %v4329_v5 }
  0xc8   : > { %v1262_v6 = vcombine.low %v1240_v56, %v1247_v37  ;;  %v4837_v16 = vpack.c.bf16 %v2876_v41, %v2851_v20  ;;  %v2877_v43 = vcombine.low %v4611_v51, %v4616_v55  ;;  %v2885_v39 = vcombine.low %v1212_v36, %v1240_v56 }
  0xc9   : > { %v1263_v57 = vcombine.low %v1254_v7, %v1261_v44  ;;  %v1228_v24 = vrot.slane %v1214_v28, %v4329_v5  ;;  %v4846_v47 = vrot.slane %v3624_v10, %v4329_v5  ;;  %v2902_v9 = vcombine.low %v4677_v61, %v4683_v13 }
  0xca   : > { %5472 = vst [vmem:[#allocation41_spill] sm:$0xff] %v4837_v16  ;;  %v4843_v35 = vrot.slane %v1262_v6, %v4329_v5  ;;  %3117 = vrot.lane.b32.xlu0 %v4837_v16, %s4118_s18  ;;  %v2884_v51 = vrot.slane %v2877_v43, %v4329_v5  ;;  %v2893_v55 = vrot.slane %v2885_v39, %v4329_v5 }
  0xcb   : > { %v4853_v18 = vrot.slane %v1263_v57, %v4329_v5  ;;  %v2910_v11 = vcombine.low %v1261_v44, %v4835_v48  ;;  %v4858_v36 = vcombine.low %v1221_v31, %v1228_v24  ;;  %v2909_v12 = vrot.slane %v2902_v9, %v4329_v5  ;;  %v228_v9 = vld [vmem:[%s4319_s4 + $0x58] sm:$0xff] }
  0xcc   : > { %v572_v61 = vcombine.high %v4701_v62, %v4701_v62  ;;  %v574_v3 = vcombine.high %v4713_v52, %v4713_v52  ;;  %v2886_v56 = vcombine.low %v2884_v51, %v1254_v7  ;;  %v1282_v31 = vcombine.low %v4680_v1, %v4686_v38 }
  0xcd   : > { %v2918_v37 = vrot.slane %v2910_v11, %v4329_v5  ;;  %v2911_v25 = vcombine.low %v2909_v12, %v4846_v47  ;;  %v5473_v44 = vcombine.low %v4720_v50, %v4742_v14  ;;  %v2771_v10 = vcombine.high %v231_v30, %v231_v30 }
  0xce   : > { %v1329_v20 = vcombine.low %v4713_v52, %v572_v61  ;;  %v1330_v41 = vcombine.low %v574_v3, %v4704_v4  ;;  %v2900_v6 = vrot.slane %v2886_v56, %v4329_v5  ;;  %v4882_v7 = vrot.slane %v1282_v31, %v4329_v5 }
  0xcf   : > { %v4878_v28 = vrot.slane %v5473_v44, %v4329_v5  ;;  %v2778_v57 = vrot.slane %v231_v30, %v4329_v5  ;;  %v2925_v43 = vrot.slane %v2911_v25, %v4329_v5  ;;  %v2927_v14 = vcombine.low %v4693_v54, %v4701_v62 }
  0xd0   : > { %v4887_v39 = vrot.slane %v1329_v20, %v4329_v5  ;;  %v4890_v24 = vrot.slane %v1330_v41, %v4329_v5  ;;  %v2901_v51 = vcombine.low %v2893_v55, %v2900_v6  ;;  %v2785_v11 = vrot.slane %v2771_v10, %v4329_v5 }
  0xd1   : > { %v2786_v12 = vcombine.high %v2778_v57, %v2778_v57  ;;  %v4897_v61 = vrot.slane %v2778_v57, %v4329_v5  ;;  %v2926_v30 = vcombine.low %v2918_v37, %v2925_v43  ;;  %v2934_v3 = vrot.slane %v2927_v14, %v4329_v5 }
  0xd2   : > { %v2936_v56 = vcombine.low %v4887_v39, %v4890_v24  ;;  %v1693_v31 = vcombine.high %v4502_v23, %v4502_v23  ;;  %v2787_v25 = vcombine.high %v2785_v11, %v2785_v11  ;;  %v4905_v54 = vrot.slane %v2785_v11, %v4329_v5 }
  0xd3   : > { %v4908_v62 = vrot.slane %v2786_v12, %v4329_v5  ;;  %v1741_v55 = vcombine.high %v228_v9, %v228_v9  ;;  %v4910_v20 = vpack.c.bf16 %v2926_v30, %v2901_v51  ;;  %v2935_v37 = vcombine.low %v4882_v7, %v2934_v3 }
  0xd4   : > { %5474 = vst [vmem:[#allocation42_spill] sm:$0xff] %v4905_v54  ;;  %v2950_v41 = vrot.slane %v2936_v56, %v4329_v5  ;;  %v1707_v44 = vrot.slane %v1693_v31, %v4329_v5  ;;  %v4916_v6 = vrot.slane %v2787_v25, %v4329_v5  ;;  %v4924_v57 = vcombine.high %v4905_v54, %v4905_v54  ;;  %v230_v31 = vld [vmem:[%s4319_s4 + $0x68] sm:$0xff] }
  0xd5   : > { %5475 = vst [vmem:[#allocation43_spill] sm:$0xff] %v4910_v20  ;;  %v2952_v23 = vcombine.low %v4897_v61, %v4908_v62  ;;  %v3656_v10 = vcombine.high %v4897_v61, %v4908_v62  ;;  %3119 = vrot.lane.b32.xlu1 %v4910_v20, %s4118_s18  ;;  %v2943_v43 = vrot.slane %v2935_v37, %v4329_v5 }
  0xd6   : > { %v1709_v14 = vcombine.high %v1707_v44, %v1707_v44  ;;  %v4930_v51 = vrot.slane %v1707_v44, %v4329_v5  ;;  %v1748_v11 = vrot.slane %v228_v9, %v4329_v5  ;;  %v2954_v12 = vcombine.low %v4905_v54, %v4916_v6 }
  0xd7   : > { %v2961_v30 = vrot.slane %v2952_v23, %v4329_v5  ;;  %v2968_v3 = vrot.slane %v3656_v10, %v4329_v5  ;;  %v2999_v56 = vrot.slane %v4924_v57, %v4329_v5  ;;  %v2951_v25 = vcombine.low %v2943_v43, %v2950_v41 }
  0xd8   : > { %v4943_v44 = vrot.slane %v1709_v14, %v4329_v5  ;;  %v2975_v9 = vrot.slane %v2954_v12, %v4329_v5  ;;  %v1755_v23 = vrot.slane %v1741_v55, %v4329_v5  ;;  %v4951_v10 = vcombine.high %v4930_v51, %v4930_v51 }
  0xd9   : > { %v2976_v29 = vcombine.low %v4878_v28, %v2961_v30  ;;  %v3006_v52 = vrot.slane %v2999_v56, %v4329_v5  ;;  %v1756_v63 = vcombine.high %v1748_v11, %v1748_v11  ;;  %v4954_v41 = vrot.slane %v1748_v11, %v4329_v5 }
  0xda   : > { %5476 = vst [vmem:[#allocation44_spill] sm:$0xff] %v4943_v44  ;;  %v1789_v43 = vcombine.high %v230_v31, %v230_v31  ;;  %v2977_v37 = vcombine.low %v2968_v3, %v2975_v9  ;;  %v1757_v12 = vcombine.high %v1755_v23, %v1755_v23  ;;  %v4960_v30 = vrot.slane %v1755_v23, %v4329_v5 }
  0xdb   : > { %v2984_v14 = vrot.slane %v2976_v29, %v4329_v5  ;;  %v4957_v0 = vpack.c.bf16 %v3006_v52, %v3006_v52  ;;  %v4963_v55 = vrot.slane %v1756_v63, %v4329_v5  ;;  %v1786_v56 = vcombine.high %v4954_v41, %v4954_v41 }
  0xdc   : > { %5478 = vst [vmem:[#allocation46_spill] sm:$0xff] %v4960_v30  ;;  %v1796_v15 = vrot.slane %v230_v31, %v4329_v5  ;;  %v2991_v11 = vrot.slane %v2977_v37, %v4329_v5  ;;  %v4972_v52 = vrot.slane %v1757_v12, %v4329_v5  ;;  %v1803_v29 = vrot.slane %v1789_v43, %v4329_v5 }
  0xdd   : > { %5477 = vst [vmem:[#allocation45_spill] sm:$0xff] %v4957_v0  ;;  %3123 = vrot.lane.b32.xlu1 %v4957_v0, %s4118_s18  ;;  %v2033_v3 = vcombine.low %v4930_v51, %v4943_v44  ;;  %v1787_v63 = vcombine.high %v4960_v30, %v4960_v30  ;;  %v1788_v9 = vcombine.high %v4963_v55, %v4963_v55 }
  0xde   : > { %5479 = vst [vmem:[#allocation47_spill] sm:$0xff] %v4972_v52  ;;  %v1804_v31 = vcombine.high %v1796_v15, %v1796_v15  ;;  %v4982_v37 = vrot.slane %v1796_v15, %v4329_v5  ;;  %v2992_v23 = vcombine.low %v2984_v14, %v2991_v11  ;;  %v1805_v60 = vcombine.high %v1803_v29, %v1803_v29 }
  0xdf   : > { %v4985_v12 = vrot.slane %v1803_v29, %v4329_v5  ;;  %v2034_v43 = vcombine.low %v4951_v10, %v4954_v41  ;;  %v2035_v20 = vcombine.low %v4963_v55, %v1786_v56  ;;  %v2036_v16 = vcombine.low %v1788_v9, %v4960_v30 }
  0xe0   : > { %v4990_v0 = vrot.slane %v1804_v31, %v4329_v5  ;;  %v2043_v54 = vrot.slane %v2033_v3, %v4329_v5  ;;  %v4995_v44 = vpack.c.bf16 %v2992_v23, %v2951_v25  ;;  %v4998_v15 = vrot.slane %v1805_v60, %v4329_v5 }
  0xe1   : > { %5480 = vst [vmem:[#allocation48_spill] sm:$0xff] %v4985_v12  ;;  %v2050_v14 = vrot.slane %v2034_v43, %v4329_v5  ;;  %v2082_v11 = vcombine.low %v4972_v52, %v1787_v63  ;;  %v2057_v29 = vrot.slane %v2035_v20, %v4329_v5  ;;  %v2064_v31 = vrot.slane %v2036_v16, %v4329_v5 }
  0xe2   : > { %5481 = vst [vmem:[#allocation49_spill] sm:$0xff] %v4995_v44  ;;  %v2083_v56 = vcombine.low %v4982_v37, %v4990_v0  ;;  %v3634_v9 = vcombine.high %v4982_v37, %v4990_v0  ;;  %3121 = vrot.lane.b32.xlu0 %v4995_v44, %s4118_s18  ;;  %v2085_v60 = vcombine.low %v4985_v12, %v4998_v15 }
  0xe3   : > { %v2065_v25 = vcombine.low %v2043_v54, %v2050_v14  ;;  %v2092_v3 = vrot.slane %v2082_v11, %v4329_v5  ;;  %v5015_v20 = vcombine.high %v4985_v12, %v4985_v12  ;;  %v2066_v16 = vcombine.low %v2057_v29, %v2064_v31 }
  0xe4   : > { %v2099_v63 = vrot.slane %v2083_v56, %v4329_v5  ;;  %v2106_v23 = vrot.slane %v3634_v9, %v4329_v5  ;;  %v2113_v30 = vrot.slane %v2085_v60, %v4329_v5  ;;  %v2354_v9 = vcombine.high %v4506_v40, %v4506_v40 }
  0xe5   : > { %v2073_v43 = vrot.slane %v2065_v25, %v4329_v5  ;;  %v2137_v54 = vrot.slane %v5015_v20, %v4329_v5  ;;  %v2080_v14 = vrot.slane %v2066_v16, %v4329_v5  ;;  %v1644_v60 = vcombine.high %v4368_v33, %v4368_v33 }
  0xe6   : > { %v2114_v44 = vcombine.low %v2092_v3, %v2099_v63  ;;  %v2115_v11 = vcombine.low %v2106_v23, %v2113_v30  ;;  %v3647_v16 = vcombine.high %v4514_v45, %v4521_v49  ;;  %v5482_v23 = vcombine.low %v4506_v40, %v4510_v42 }
  0xe7   : > { %v2144_v52 = vrot.slane %v2137_v54, %v4329_v5  ;;  %v2081_v29 = vcombine.low %v2073_v43, %v2080_v14  ;;  %v2457_v3 = vcombine.low %v1644_v60, %v4498_v17  ;;  %v2506_v54 = vcombine.low %v4517_v46, %v4528_v53 }
  0xe8   : > { %v2122_v12 = vrot.slane %v2114_v44, %v4329_v5  ;;  %v2129_v31 = vrot.slane %v2115_v11, %v4329_v5  ;;  %v1738_v44 = vcombine.high %v4539_v59, %v4539_v59  ;;  %v2474_v59 = vrot.slane %v5482_v23, %v4329_v5 }
  0xe9   : > { %v5027_v56 = vpack.c.bf16 %v2144_v52, %v2144_v52  ;;  %v1740_v52 = vcombine.high %v4551_v2, %v4551_v2  ;;  %v2467_v63 = vrot.slane %v2457_v3, %v4329_v5  ;;  %v2488_v43 = vrot.slane %v3647_v16, %v4329_v5 }
  0xea   : > { %v2130_v25 = vcombine.low %v2122_v12, %v2129_v31  ;;  %v2459_v12 = vcombine.low %v2354_v9, %v4521_v49  ;;  %v3648_v11 = vcombine.high %v4517_v46, %v4528_v53  ;;  %v2508_v45 = vcombine.low %v4551_v2, %v1738_v44 }
  0xeb   : > { %2261 = vrot.lane.b32.xlu1 %v5027_v56, %s4118_s18  ;;  %v2489_v14 = vcombine.low %v2467_v63, %v2474_v59  ;;  %v1546_v49 = vcombine.high %v4344_v19, %v4344_v19  ;;  %v2509_v40 = vcombine.low %v1740_v52, %v4930_v51  ;;  %v2516_v42 = vrot.slane %v2506_v54, %v4329_v5  ;;  %v5483_v52 = vld [vmem:[#allocation14_spill] sm:$0xff]  ;;  %v5484_v63 = vld [vmem:[#allocation17_spill] sm:$0xff] }
  0xec   : > { %v5035_v30 = vpack.c.bf16 %v2130_v25, %v2081_v29  ;;  %v2481_v17 = vrot.slane %v2459_v12, %v4329_v5  ;;  %v1548_v31 = vcombine.high %v4357_v27, %v4357_v27  ;;  %v2523_v25 = vrot.slane %v3648_v11, %v4329_v5 }
  0xed   : > { %v2497_v9 = vrot.slane %v2489_v14, %v4329_v5  ;;  %v2530_v60 = vrot.slane %v2508_v45, %v4329_v5  ;;  %v2537_v53 = vrot.slane %v2509_v40, %v4329_v5  ;;  %v2352_v19 = vcombine.high %v4371_v34, %v4371_v34  ;;  %v5487_v14 = vld [vmem:[#allocation13_spill] sm:$0xff] }
  0xee   : > { %2259 = vrot.lane.b32.xlu0 %v5035_v30, %s4118_s18  ;;  %v2490_v29 = vcombine.low %v2481_v17, %v2488_v43  ;;  %v2538_v2 = vcombine.low %v2516_v42, %v2523_v25  ;;  %v2359_v51 = vcombine.low %v4357_v27, %v1546_v49  ;;  %v2360_v12 = vcombine.low %v1548_v31, %v5483_v52  ;;  %v5485_v17 = vld [vmem:[#allocation23_spill] sm:$0xff]  ;;  %v5486_v43 = vld [vmem:[#allocation22_spill] sm:$0xff]  ;;  %v5489_v49 = vld [vmem:[#allocation16_spill] sm:$0xff] }
  0xef   : > { %v2539_v3 = vcombine.low %v2530_v60, %v2537_v53  ;;  %v2361_v23 = vcombine.low %v4371_v34, %v5484_v63  ;;  %v1085_v54 = vcombine.low %v5486_v43, %v5485_v17  ;;  %v1642_v11 = vcombine.high %v5487_v14, %v5487_v14  ;;  %v5488_v27 = vld [vmem:[#allocation19_spill] sm:$0xff]  ;;  %v5490_v42 = vld [vmem:[#allocation12_spill] sm:$0xff]  ;;  %v5491_v60 = vld [vmem:[#allocation18_spill] sm:$0xff] }
  0xf0   : > { %v2504_v46 = vrot.slane %v2490_v29, %v4329_v5  ;;  %v2546_v16 = vrot.slane %v2538_v2, %v4329_v5  ;;  %v284_v45 = vcombine.high %v5488_v27, %v5488_v27  ;;  %v2362_v29 = vcombine.low %v2352_v19, %v5489_v49  ;;  %v5493_v2 = vld [vmem:[#allocation21_spill] sm:$0xff] }
  0xf1   : > { %v2553_v59 = vrot.slane %v2539_v3, %v4329_v5  ;;  %v2369_v40 = vrot.slane %v2359_v51, %v4329_v5  ;;  %v3645_v31 = vcombine.high %v5490_v42, %v5489_v49  ;;  %v2376_v25 = vrot.slane %v2360_v12, %v4329_v5 }
  0xf2   : > { %v5073_v44 = vcombine.low %v2497_v9, %v2504_v46  ;;  %v5492_v46 = vld [vmem:[#allocation15_spill] sm:$0xff]  ;;  %v286_v3 = vcombine.high %v5493_v2, %v5493_v2  ;;  %v1076_v52 = vcombine.high %v5486_v43, %v5486_v43  ;;  %v5494_v19 = vcombine.low %v4916_v6, %v4924_v57  ;;  %v5495_v43 = vld [vmem:[#allocation20_spill] sm:$0xff] }
  0xf3   : > { %v5090_v34 = vcombine.low %v2546_v16, %v2553_v59  ;;  %v2409_v53 = vcombine.low %v5492_v46, %v5491_v60  ;;  %v3646_v12 = vcombine.high %v5492_v46, %v5491_v60  ;;  %v2383_v63 = vrot.slane %v2361_v23, %v4329_v5 }
  0xf4   : > { %v5103_v51 = vrot.slane %v5494_v19, %v4329_v5  ;;  %v2411_v59 = vcombine.low %v4368_v33, %v1642_v11  ;;  %v1083_v17 = vcombine.low %v5493_v2, %v284_v45  ;;  %v1084_v14 = vcombine.low %v286_v3, %v5495_v43 }
  0xf5   : > { %v2675_v16 = vpack.c.bf16 %v5090_v34, %v5073_v44  ;;  %v2390_v57 = vrot.slane %v2362_v29, %v4329_v5  ;;  %v2418_v27 = vrot.slane %v3645_v31, %v4329_v5  ;;  %v1086_v49 = vcombine.low %v1076_v52, %v4441_v21  ;;  %v5496_v29 = vld [vmem:[#allocation24_spill] sm:$0xff] }
  0xf6   : > { %v1107_v42 = vrot.slane %v1085_v54, %v4329_v5  ;;  %v2425_v60 = vrot.slane %v2409_v53, %v4329_v5  ;;  %v1093_v23 = vrot.slane %v1083_v17, %v4329_v5  ;;  %v1100_v33 = vrot.slane %v1084_v14, %v4329_v5 }
  0xf7   : > { %v2432_v11 = vrot.slane %v3646_v12, %v4329_v5  ;;  %v1114_v45 = vrot.slane %v1086_v49, %v4329_v5  ;;  %v3621_v46 = vcombine.high %v5496_v29, %v4452_v32  ;;  %v1164_v21 = vcombine.low %v4768_v22, %v4773_v8 }
  0xf8   : > { %v1115_v31 = vcombine.low %v1093_v23, %v1100_v33  ;;  %v5497_v54 = vcombine.low %v4843_v35, %v4853_v18  ;;  %v1312_v53 = vcombine.low %v4846_v47, %v4882_v7  ;;  %v2392_v2 = vcombine.low %v2383_v63, %v2390_v57  ;;  %v5498_v23 = vld [vmem:[#allocation44_spill] sm:$0xff] }
  0xf9   : > { %v2439_v3 = vrot.slane %v2411_v59, %v4329_v5  ;;  %v1116_v32 = vcombine.low %v1107_v42, %v1114_v45  ;;  %v1156_v52 = vrot.slane %v3621_v46, %v4329_v5  ;;  %v2440_v22 = vcombine.low %v2418_v27, %v2425_v60 }
  0xfa   : > { %v1123_v8 = vrot.slane %v1115_v31, %v4329_v5  ;;  %v3625_v35 = vcombine.high %v4680_v1, %v4686_v38  ;;  %v1172_v47 = vrot.slane %v1164_v21, %v4329_v5  ;;  %v2607_v7 = vcombine.low %v4998_v15, %v5015_v20  ;;  %v5499_v21 = vld [vmem:[#allocation42_spill] sm:$0xff] }
  0xfb   : > { %v2256_v9 = vpop.permute.xlu1 %2255  ;;  %v1130_v18 = vrot.slane %v1116_v32, %v4329_v5  ;;  %v2441_v1 = vcombine.low %v2432_v11, %v2439_v3  ;;  %v2816_v20 = vcombine.high %v4897_v61, %v4897_v61  ;;  %v2406_v14 = vrot.slane %v2392_v2, %v4329_v5  ;;  %v5500_v2 = vld [vmem:[#allocation47_spill] sm:$0xff] }
  0xfc   : > { %3767 = vmatprep.mubr.msk.bf16.mxu0 %vm917_vm0, %v2256_v9  ;;  %v5118_v9 = vcombine.low %v2369_v40, %v2376_v25  ;;  %v5133_v40 = vpack.c.bf16 %v5497_v54, %v4858_v36  ;;  %v1080_v25 = vcombine.high %v4668_v58, %v4668_v58  ;;  %v1165_v58 = vcombine.low %v1156_v52, %v4782_v26 }
  0xfd   : > { %v1361_v36 = vcombine.low %v4890_v24, %v4878_v28  ;;  %v1338_v63 = vrot.slane %v3625_v35, %v4329_v5  ;;  %v1131_v59 = vcombine.low %v1123_v8, %v1130_v18  ;;  %v1326_v26 = vrot.slane %v1312_v53, %v4329_v5 }
  0xfe   : > { %v1280_v19 = vcombine.low %v1080_v25, %v4683_v13  ;;  %v2399_v12 = vrot.slane %v5118_v9, %v4329_v5  ;;  %v1179_v17 = vrot.slane %v1165_v58, %v4329_v5  ;;  %v2448_v57 = vrot.slane %v2440_v22, %v4329_v5 }
  0xff   : > { %v1360_v28 = vcombine.low %v1338_v63, %v4887_v39  ;;  %v1375_v24 = vrot.slane %v1361_v36, %v4329_v5  ;;  %v2818_v49 = vcombine.high %v4908_v62, %v4908_v62  ;;  %v1834_v42 = vcombine.high %v4982_v37, %v4982_v37 }
 0x100   : > { %v1296_v13 = vrot.slane %v1280_v19, %v4329_v5  ;;  %v1180_v27 = vcombine.low %v1172_v47, %v1179_v17  ;;  %v3669_v9 = vcombine.high %v4704_v4, %v4720_v50  ;;  %v1836_v61 = vcombine.high %v4990_v0, %v4990_v0  ;;  %v5502_v19 = vld [vmem:[#allocation48_spill] sm:$0xff] }
 0x101   : > { %v1368_v39 = vrot.slane %v1360_v28, %v4329_v5  ;;  %v2356_v33 = vcombine.high %v5498_v23, %v5498_v23  ;;  %v3301_v45 = vcombine.low %v4908_v62, %v2816_v20  ;;  %v2455_v37 = vrot.slane %v2441_v1, %v4329_v5  ;;  %v5501_v62 = vld [vmem:[#allocation46_spill] sm:$0xff] }
 0x102   : > { %v1311_v43 = vcombine.low %v4835_v48, %v1296_v13  ;;  %v5177_v11 = vpack.c.bf16 %v1180_v27, %v1131_v59  ;;  %v3302_v31 = vcombine.low %v2818_v49, %v5499_v21  ;;  %v2555_v4 = vcombine.low %v5498_v23, %v4951_v10  ;;  %v5503_v27 = vld [vmem:[#allocation32_spill] sm:$0xff] }
 0x103   : > { %v1376_v46 = vcombine.low %v1368_v39, %v1375_v24  ;;  %v3649_v54 = vcombine.high %v4954_v41, %v4963_v55  ;;  %v3310_v25 = vrot.slane %v3669_v9, %v4329_v5  ;;  %v3317_v53 = vrot.slane %v3301_v45, %v4329_v5  ;;  %v3945_v45 = vld [vmem:[#allocation5 + $0x10] sm:$0xff]   ;;  %v3950_v21 = vld [vmem:[#allocation5] sm:$0xff]  }
 0x104   : > { %v1319_v48 = vrot.slane %v1311_v43, %v4329_v5  ;;  %v2558_v3 = vcombine.low %v5501_v62, %v5500_v2  ;;  %v3650_v32 = vcombine.high %v5501_v62, %v5500_v2  ;;  %v3324_v22 = vrot.slane %v3302_v31, %v4329_v5  ;;  %v3946_v43 = vld [vmem:[#allocation5 + $0x30] sm:$0xff]   ;;  %v5504_v31 = vld [vmem:[#allocation41_spill] sm:$0xff] }
 0x105   : > { %v2556_v8 = vcombine.low %v2356_v33, %v4963_v55  ;;  %v2605_v10 = vcombine.low %v4990_v0, %v1834_v42  ;;  %v2606_v41 = vcombine.low %v1836_v61, %v5502_v19  ;;  %v3332_v35 = vcombine.low %v3310_v25, %v3317_v53  ;;  %v5507_v25 = vld [vmem:[#allocation49_spill] sm:$0xff]  ;;  %v3947_v53 = vld [vmem:[#allocation5 + $0x18] sm:$0xff]  }
 0x106   : > { %v1327_v29 = vcombine.low %v1319_v48, %v1326_v26  ;;  %v3333_v18 = vcombine.low %v3324_v22, %v5103_v51  ;;  %v2635_v58 = vrot.slane %v2607_v7, %v4329_v5  ;;  %v2407_v47 = vcombine.low %v2399_v12, %v2406_v14  ;;  %v5508_v2 = vld [vmem:[#allocation45_spill] sm:$0xff] }
 0x107   : > { %v2456_v36 = vcombine.low %v2448_v57, %v2455_v37  ;;  %v3340_v13 = vrot.slane %v3332_v35, %v4329_v5  ;;  %v2565_v63 = vrot.slane %v2555_v4, %v4329_v5  ;;  %v2579_v1 = vrot.slane %v3649_v54, %v4329_v5  ;;  %v3948_v37 = vld [vmem:[#allocation5 + $0x38] sm:$0xff]   ;;  %v5511_v22 = vld [vmem:[#allocation29_spill] sm:$0xff]  ;;  %v5513_v35 = vld [vmem:[#allocation38_spill] sm:$0xff] }
 0x108   : > { %v5193_v52 = vpack.c.bf16 %v1376_v46, %v1327_v29  ;;  %v2586_v59 = vrot.slane %v2558_v3, %v4329_v5  ;;  %v3347_v55 = vrot.slane %v3333_v18, %v4329_v5  ;;  %v2572_v0 = vrot.slane %v2556_v8, %v4329_v5  ;;  %v5505_v4 = vld [vmem:[#allocation43_spill] sm:$0xff]  ;;  %v5509_v3 = vld [vmem:[#allocation34_spill] sm:$0xff]  ;;  %v5512_v8 = vld [vmem:[#allocation28_spill] sm:$0xff] }
 0x109   : > { %v904_v60 = vpop.permute.xlu0 %903  ;;  %v2614_v17 = vrot.slane %v3650_v32, %v4329_v5  ;;  %v2621_v51 = vrot.slane %v2605_v10, %v4329_v5  ;;  %v2628_v7 = vrot.slane %v2606_v41, %v4329_v5  ;;  %v2674_v26 = vpack.c.bf16 %v2456_v36, %v2407_v47  ;;  %v5506_v54 = vld [vmem:[#allocation27_spill] sm:$0xff]  ;;  %v5510_v32 = vld [vmem:[#allocation40_spill] sm:$0xff] }
 0x10a   : > { %3727 = vmatprep.mubr.msk.bf16.mxu1 %vm917_vm0, %v904_v60  ;;  %v5210_v12 = vcombine.low %v3340_v13, %v3347_v55  ;;  %v2587_v28 = vcombine.low %v2565_v63, %v2572_v0  ;;  %v2588_v24 = vcombine.low %v2579_v1, %v2586_v59  ;;  %v2358_v9 = vcombine.high %v4998_v15, %v4998_v15  ;;  %v5514_v47 = vld [vmem:[#allocation31_spill] sm:$0xff]  ;;  %v5516_v55 = vld [vmem:[#allocation33_spill] sm:$0xff] }
 0x10b   : > { %v2636_v20 = vcombine.low %v2614_v17, %v2621_v51  ;;  %v2637_v14 = vcombine.low %v2628_v7, %v2635_v58  ;;  %v3667_v10 = vcombine.high %v5512_v8, %v5511_v22  ;;  %v1081_v41 = vcombine.high %v4686_v38, %v4686_v38  ;;  %v5515_v13 = vld [vmem:[#allocation35_spill] sm:$0xff]  ;;  %v5517_v17 = vld [vmem:[#allocation36_spill] sm:$0xff] }
 0x10c   : > { %v2595_v49 = vrot.slane %v2587_v28, %v4329_v5  ;;  %v2602_v42 = vrot.slane %v2588_v24, %v4329_v5  ;;  %v2659_v23 = vrot.slane %v2358_v9, %v4329_v5  ;;  %v1082_v18 = vcombine.high %v4720_v50, %v4720_v50 }
 0x10d   : > { %v2644_v48 = vrot.slane %v2636_v20, %v4329_v5  ;;  %v2651_v39 = vrot.slane %v2637_v14, %v4329_v5  ;;  %v3239_v19 = vrot.slane %v3667_v10, %v4329_v5  ;;  %v3283_v63 = vcombine.low %v1081_v41, %v5515_v13  ;;  %v5520_v14 = vld [vmem:[#allocation37_spill] sm:$0xff] }
 0x10e   : > { %v2603_v60 = vcombine.low %v2595_v49, %v2602_v42  ;;  %v2666_v46 = vrot.slane %v2659_v23, %v4329_v5  ;;  %v1383_v1 = vrot.slane %v1082_v18, %v4329_v5  ;;  %v5521_v42 = vld [vmem:[#allocation30_spill] sm:$0xff] }
 0x10f   : > { %v2652_v61 = vcombine.low %v2644_v48, %v2651_v39  ;;  %v3240_v36 = vcombine.low %v3239_v19, %v5514_v47  ;;  %v3290_v59 = vrot.slane %v3283_v63, %v4329_v5  ;;  %v5522_v48 = vld [vmem:[#allocation39_spill] sm:$0xff] }
 0x110   : > { %v2677_v15 = vpack.c.bf16 %v2666_v46, %v2666_v46  ;;  %v1390_v50 = vrot.slane %v1383_v1, %v4329_v5 }
 0x111   : > { %v2676_v33 = vpack.c.bf16 %v2652_v61, %v2603_v60  ;;  %v3247_v38 = vrot.slane %v3240_v36, %v4329_v5  ;;  %v3291_v51 = vcombine.low %v5517_v17, %v3290_v59  ;;  %v3675_v36 = vld [vmem:[#allocation7] ss:$0 sm:$0xff] }
 0x112   : > { %v1401_v7 = vpack.c.bf16 %v1390_v50, %v1390_v50 }
 0x113   : > { %v3248_v0 = vcombine.low %v5516_v55, %v3247_v38  ;;  %v3298_v20 = vrot.slane %v3291_v51, %v4329_v5 }
 0x117   : > { %v2258_v57 = vpop.permute.xlu1 %2257 }
 0x118   : > { %3768 = vmatmul.mubr.msk.bf16.vlgmr.msra.gmra.mrb[0].mxu0 %vm917_vm0, %v2258_v57  ;;  %v3299_v57 = vcombine.low %v3298_v20, %v5520_v14 }
 0x119   : > { %3776 = vmatpush3.bf16.msra.mxu0 %v5503_v27  ;;  %3777 = vmatprep.mubr.msk.bf16.mxu0 %vm917_vm0, %v2674_v26 }
 0x11a   : > { %3785 = vmatprep.subr.bf16.mxu0 %v3946_v43  ;;  %v3372_v49 = vpack.c.bf16 %v5210_v12, %v3299_v57 }
 0x124   : > { %v906_v29 = vpop.permute.xlu0 %905  ;;  %3778 = vmatmul.mubr.msk.bf16.vlgmr.msra.gmra.mrb[0].mxu0 %vm917_vm0, %v2675_v16  ;;  %v3949_v16 = vld [vmem:[#allocation5 + $0x40] sm:$0xff]  }
 0x125   : > { %3728 = vmatmul.mubr.msk.bf16.vlgmr.msra.gmra.mrb[0].mxu1 %vm917_vm0, %v906_v29  ;;  %3786 = vmatpush3.bf16.msra.mxu0 %v3946_v43  ;;  %v5518_v43 = vld [vmem:[#allocation26_spill] sm:$0xff] }
 0x126   : > { %3736 = vmatpush3.bf16.msra.mxu1 %v3950_v21  ;;  %3781 = vmatprep.mubr.msk.bf16.mxu0 %vm917_vm0, %v2676_v33  ;;  %v3370_v28 = vpack.c.bf16 %v3248_v0, %v5518_v43 }
 0x127   : > { %3745 = vmatprep.subr.bf16.mxu1 %v3945_v45  ;;  %3795 = vmatprep.subr.bf16.mxu0 %v3948_v37 }
 0x12c   : > { %3782 = vmatmul.mubr.msk.bf16.gmra.mrb[4].mxu0 %vm917_vm0, %v2677_v15 }
 0x12d   : > { %3787 = vmatprep.mubr.msk.bf16.mxu0 %vm917_vm0, %v5504_v31 }
 0x130   : > { %v910_v44 = vpop.permute.xlu1 %909 }
 0x133   : > { %v908_v34 = vpop.permute.xlu0 %907 }
 0x134   : > { %3731 = vmatprep.mubr.msk.bf16.mxu1 %vm917_vm0, %v908_v34  ;;  %3788 = vmatmul.mubr.msk.bf16.vlgmr.msra.gmra.mrb[0].mxu0 %vm917_vm0, %v5505_v4 }
 0x135   : > { %3732 = vmatmul.mubr.msk.bf16.gmra.mrb[4].mxu1 %vm917_vm0, %v910_v44  ;;  %3796 = vmatpush3.bf16.msra.mxu0 %v3948_v37 }
 0x136   : > { %3737 = vmatprep.mubr.msk.bf16.mxu1 %vm917_vm0, %v5506_v54  ;;  %3791 = vmatprep.mubr.msk.bf16.mxu0 %vm917_vm0, %v5507_v25 }
 0x137   : > { %3805 = vmatprep.subr.bf16.mxu0 %v3949_v16 }
 0x13c   : > { %3792 = vmatmul.mubr.msk.bf16.gmra.mrb[8].mxu0 %vm917_vm0, %v5508_v2  ;;  %v3118_v62 = vpop.permute.xlu0 %3117 }
 0x13d   : > { %3738 = vmatmul.mubr.msk.bf16.vlgmr.msra.gmra.mrb[0].mxu1 %vm917_vm0, %v5509_v3  ;;  %3797 = vmatprep.mubr.msk.bf16.mxu0 %vm917_vm0, %v3118_v62 }
 0x13e   : > { %3746 = vmatpush3.bf16.msra.mxu1 %v3945_v45  ;;  %3741 = vmatprep.mubr.msk.bf16.mxu1 %vm917_vm0, %v5510_v32 }
 0x13f   : > { %3755 = vmatprep.subr.bf16.mxu1 %v3947_v53 }
 0x145   : > { %3742 = vmatmul.mubr.msk.bf16.gmra.mrb[8].mxu1 %vm917_vm0, %v5513_v35 }
 0x146   : > { %3747 = vmatprep.mubr.msk.bf16.mxu1 %vm917_vm0, %v5177_v11  ;;  %v3951_v11 = vld [vmem:[#allocation5 + $0x20] sm:$0xff]  }
 0x147   : > { %v3120_v58 = vpop.permute.xlu1 %3119 }
 0x148   : > { %3798 = vmatmul.mubr.msk.bf16.vlgmr.msra.gmra.mrb[0].mxu0 %vm917_vm0, %v3120_v58 }
 0x149   : > { %3806 = vmatpush3.bf16.msra.mxu0 %v3949_v16 }
 0x14d   : > { %3748 = vmatmul.mubr.msk.bf16.vlgmr.msra.gmra.mrb[0].mxu1 %vm917_vm0, %v5133_v40  ;;  %v5519_v40 = vld [vmem:[#allocation25_spill] sm:$0xff] }
 0x14e   : > { %3756 = vmatpush3.bf16.msra.mxu1 %v3947_v53  ;;  %3751 = vmatprep.mubr.msk.bf16.mxu1 %vm917_vm0, %v5193_v52  ;;  %v3214_v52 = vcombine.high %v4916_v6, %v4916_v6 }
 0x14f   : > { %3815 = vmatprep.subr.bf16.mxu1 %v3951_v11  ;;  %v3124_v26 = vpop.permute.xlu1 %3123 }
 0x150   : > { %v3355_v27 = vrot.slane %v3214_v52, %v4329_v5 }
 0x152   : > { %v3362_v39 = vrot.slane %v3355_v27, %v4329_v5 }
 0x154   : > { %v3122_v24 = vpop.permute.xlu0 %3121  ;;  %v3373_v9 = vpack.c.bf16 %v3362_v39, %v3362_v39 }
 0x155   : > { %3752 = vmatmul.mubr.msk.bf16.gmra.mrb[12].mxu1 %vm917_vm0, %v1401_v7  ;;  %3801 = vmatprep.mubr.msk.bf16.mxu0 %vm917_vm0, %v3122_v24 }
 0x156   : > { %3757 = vmatprep.mubr.msk.bf16.mxu1 %vm917_vm0, %v5519_v40  ;;  %3802 = vmatmul.mubr.msk.bf16.gmra.mrb[12].mxu0 %vm917_vm0, %v3124_v26 }
 0x157   : > { %3807 = vmatprep.mubr.msk.bf16.mxu0 %vm917_vm0, %v3370_v28 }
 0x15d   : > { %3758 = vmatmul.mubr.msk.bf16.vlgmr.msra.gmra.mrb[0].mxu1 %vm917_vm0, %v5521_v42  ;;  %v2262_v12 = vpop.permute.xlu1 %2261 }
 0x15e   : > { %3816 = vmatpush3.bf16.msra.mxu1 %v3951_v11  ;;  %3761 = vmatprep.mubr.msk.bf16.mxu1 %vm917_vm0, %v5035_v30 }
 0x15f   : > { %3808 = vmatmul.mubr.msk.bf16.vlgmr.msra.gmra.mrb[0].mxu0 %vm917_vm0, %v5522_v48 }
 0x160   : > { %3811 = vmatprep.mubr.msk.bf16.mxu0 %vm917_vm0, %v3372_v49  ;;  %v2260_v6 = vpop.permute.xlu0 %2259 }
 0x165   : > { %3762 = vmatmul.mubr.msk.bf16.gmra.mrb[16].mxu1 %vm917_vm0, %v5027_v56 }
 0x166   : > { %3771 = vmatprep.mubr.msk.bf16.mxu1 %vm917_vm0, %v2260_v6 }
 0x167   : > { %3812 = vmatmul.mubr.msk.bf16.gmra.mrb[16].mxu0 %vm917_vm0, %v3373_v9 }
 0x16d   : > { %3772 = vmatmul.mubr.msk.bf16.vlgmr.msra.gmra.mrb[20].mxu1 %vm917_vm0, %v2262_v12 }
 0x1ff   : > { %v5297_v30 = vpop.f32.mrb[4].mxu0 }
 0x200   : > { %v5299_v60 = vpop.f32.mrb[5].mxu0 }
 0x201   : > { %v3784_v61 = vpop.f32.mrb[6].mxu0 }
 0x202   : > { %v5301_v5 = vpop.f32.mrb[7].mxu0 }
 0x208   : > { %v3733_v23 = vpop.f32.mrb[4].mxu1 }
 0x209   : > { %v980_v33 = vpop.f32.mrb[5].mxu1 }
 0x20a   : > { %v3734_v45 = vpop.f32.mrb[6].mxu1 }
 0x20b   : > { %v983_v37 = vpop.f32.mrb[7].mxu1 }
 0x20f   : > { %v5303_v29 = vpop.f32.mrb[8].mxu0 }
 0x210   : > { %v5305_v56 = vpop.f32.mrb[9].mxu0 }
 0x211   : > { %v3794_v46 = vpop.f32.mrb[10].mxu0 }
 0x212   : > { %v5307_v21 = vpop.f32.mrb[11].mxu0 }
 0x218   : > { %v3743_v15 = vpop.f32.mrb[8].mxu1 }
 0x219   : > { %v1071_v31 = vadd.f32 %v3743_v15, %v3733_v23  ;;  %v1062_v44 = vpop.f32.mrb[9].mxu1 }
 0x21a   : > { %v1063_v34 = vadd.f32 %v1062_v44, %v980_v33  ;;  %v3744_v16 = vpop.f32.mrb[10].mxu1 }
 0x21b   : > { %v1065_v4 = vpop.f32.mrb[11].mxu1 }
 0x21c   : > { %v1066_v54 = vadd.f32 %v1065_v4, %v983_v37 }
 0x228   : > { %v3753_v25 = vpop.f32.mrb[12].mxu1 }
 0x229   : > { %v1493_v53 = vadd.f32 %v3753_v25, %v1071_v31  ;;  %v1473_v2 = vpop.f32.mrb[13].mxu1  ;;  %v3803_v62 = vpop.f32.mrb[12].mxu0 }
 0x22a   : > { %v1491_v3 = vadd.f32 %v1473_v2, %v1063_v34  ;;  %v3754_v32 = vpop.f32.mrb[14].mxu1  ;;  %v3193_v22 = vpop.f32.mrb[13].mxu0 }
 0x22b   : > { %v1476_v8 = vpop.f32.mrb[15].mxu1  ;;  %v3804_v10 = vpop.f32.mrb[14].mxu0 }
 0x22c   : > { %v1492_v19 = vadd.f32 %v1476_v8, %v1066_v54  ;;  %v3196_v41 = vpop.f32.mrb[15].mxu0 }
 0x230   : > { %v3759_v35 = vpop.f32.mrb[0].mxu1 }
 0x231   : > { %v2211_v18 = vpop.f32.mrb[1].mxu1 }
 0x232   : > { %v3760_v58 = vpop.f32.mrb[2].mxu1  ;;  %v3809_v47 = vpop.f32.mrb[0].mxu0 }
 0x233   : > { %v2214_v13 = vpop.f32.mrb[3].mxu1  ;;  %v3817_v63 = vadd.f32 %v3809_v47, %v3759_v35  ;;  %v3429_v1 = vpop.f32.mrb[1].mxu0 }
 0x234   : > { %v3818_v38 = vadd.f32 %v3429_v1, %v2211_v18  ;;  %v3810_v59 = vpop.f32.mrb[2].mxu0 }
 0x235   : > { %v3475_v50 = vadd.f32 %v3817_v63, %v3675_v36  ;;  %v3819_v11 = vadd.f32 %v3810_v59, %v3760_v58  ;;  %v3432_v55 = vpop.f32.mrb[3].mxu0 }
 0x236   : > { %v3473_v0 = vadd.f32 %v3818_v38, %v3675_v36  ;;  %v3820_v17 = vadd.f32 %v3432_v55, %v2214_v13 }
 0x237   : > { %3482 = vst.msk [vmem:[%s5310_s21 + $0x10] sm:$0xff] %vm917_vm0, %v3475_v50  ;;  %v3476_v51 = vadd.f32 %v3819_v11, %v3675_v36 }
 0x238   : > { %v3763_v7 = vpop.f32.mrb[16].mxu1  ;;  %3480 = vst.msk [vmem:[%s5310_s21] sm:$0xff] %vm917_vm0, %v3473_v0  ;;  %v3474_v26 = vadd.f32 %v3820_v17, %v3675_v36 }
 0x239   : > { %v2247_v43 = vadd.f32 %v3763_v7, %v1493_v53  ;;  %v2227_v28 = vpop.f32.mrb[17].mxu1  ;;  %3483 = vst.msk [vmem:[%s5310_s21 + $0x18] sm:$0xff] %vm917_vm0, %v3476_v51 }
 0x23a   : > { %v2245_v24 = vadd.f32 %v2227_v28, %v1491_v3  ;;  %v3764_v20 = vpop.f32.mrb[18].mxu1  ;;  %3481 = vst.msk [vmem:[%s5310_s21 + $0x8] sm:$0xff] %vm917_vm0, %v3474_v26  ;;  %v3813_v40 = vpop.f32.mrb[16].mxu0 }
 0x23b   : > { %v2230_v52 = vpop.f32.mrb[19].mxu1  ;;  %v3445_v14 = vpop.f32.mrb[17].mxu0 }
 0x23c   : > { %v2246_v57 = vadd.f32 %v2230_v52, %v1492_v19  ;;  %v3814_v27 = vpop.f32.mrb[18].mxu0 }
 0x23d   : > { %v3448_v49 = vpop.f32.mrb[19].mxu0 }
 0x240   : > { %v3773_v42 = vpop.f32.mrb[20].mxu1 }
 0x241   : > { %v2351_v48 = vadd.f32 %v3773_v42, %v2247_v43  ;;  %v2331_v39 = vpop.f32.mrb[21].mxu1 }
 0x242   : > { %v2349_v6 = vadd.f32 %v2331_v39, %v2245_v24  ;;  %v3774_v9 = vpop.f32.mrb[22].mxu1 }
 0x243   : > { %v2769_v12 = vadd.f32 %v5297_v30, %v2351_v48  ;;  %v2334_v61 = vpop.f32.mrb[23].mxu1 }
 0x244   : > { %v2767_v23 = vadd.f32 %v5299_v60, %v2349_v6  ;;  %v2350_v33 = vadd.f32 %v2334_v61, %v2246_v57 }
 0x245   : > { %v3109_v45 = vadd.f32 %v5303_v29, %v2769_v12 }
 0x246   : > { %v2768_v37 = vadd.f32 %v5301_v5, %v2350_v33  ;;  %v3107_v46 = vadd.f32 %v5305_v56, %v2767_v23 }
 0x247   : > { %v3213_v15 = vadd.f32 %v3803_v62, %v3109_v45 }
 0x248   : > { %v3211_v31 = vadd.f32 %v3193_v22, %v3107_v46  ;;  %v3108_v44 = vadd.f32 %v5307_v21, %v2768_v37 }
 0x249   : > { %v3465_v34 = vadd.f32 %v3813_v40, %v3213_v15 }
 0x24a   : > { %v3463_v30 = vadd.f32 %v3445_v14, %v3211_v31  ;;  %v3212_v60 = vadd.f32 %v3196_v41, %v3108_v44 }
 0x24b   : > { %v3479_v16 = vadd.f32 %v3675_v36, %v3465_v34 }
 0x24c   : > { %v3477_v29 = vadd.f32 %v3675_v36, %v3463_v30  ;;  %v3464_v4 = vadd.f32 %v3448_v49, %v3212_v60 }
 0x24d   : > { %3487 = vst.msk [vmem:[%s5310_s21 + $0x30] sm:$0x1] %vm3486_vm1, %v3479_v16 }
 0x24e   : > { %3484 = vst.msk [vmem:[%s5310_s21 + $0x20] sm:$0xff] %vm917_vm0, %v3477_v29  ;;  %v3478_v5 = vadd.f32 %v3675_v36, %v3464_v4 }
 0x250   : > { %3485 = vst.msk [vmem:[%s5310_s21 + $0x28] sm:$0xff] %vm917_vm0, %v3478_v5 }
 0x251   : > { %4051 = shalt.err (!%p4048_p2)
}
 0x252   : > { %s4052_s17 = scalar_lea.hbm %s5332_s6, 896  ;;  %s4056_s30 = scalar_lea.hbm %s5385_s3, 1792 }
 0x253   : > { %p4053_p13 = scmp.ne.s32.totalorder %s5332_s6, %s4052_s17  ;;  %p4057_p4 = scmp.lt.u32.totalorder %s5332_s6, %s5385_s3 }
 0x254   : > { %p4058_p5 = scmp.lt.u32.totalorder %s4056_s30, %s4052_s17  ;;  %p4060_p11 = scmp.lt.u32.totalorder %s4052_s17, %s5332_s6 }
 0x255   : > { %p4054_p6 = pnand %p4053_p13, %p5523_p0 }
 0x256   : > { %p4059_p8 = por %p4058_p5, %p4057_p4 }
 0x257   : > { %p4055_p10 = pneg %p4054_p6 }
 0x258   : > { %p4061_p1 = por %p4060_p11, %p4059_p8 }
 0x25a   : > { %p4062_p3 = pnand %p4061_p1, %p4055_p10 }
 0x25c   : > { %4065 = shalt.err (!%p4062_p3)
}
 0x25d   : > { %s4120_s20 = smov 128   ;;  %s4121_s21 = smov 8  }
 0x25e   : > { %3861 = dma.vmem_to_hbm [thread:$0]  (%p5523_p0), %s5334_s27, 896, %s5332_s6, %s3489_s16, %s4120_s20, %s4120_s20, %s4121_s21  }
 0x25f PF: > { %s3517_s26 = sand.u32 1, %s4096_s12   ;;  %p5524_p7 = scmp.ne.s32.totalorder %s5434_s19, 0 }
 0x260   : > { %p5525_p9 = scmp.ge.s32.totalorder %s4108_s15, 2  ;;  %s3518_s28 = scalar_lea.sflag [#allocation4], %s3517_s26 }
 0x262   : > { %p3875_p12 = pnand %p5525_p9, %p5524_p7 }
 0x264   : > { %4091 = dma.done.wait (!%p3875_p12), %s3518_s28, 896  }
 0x265   : > { %4093 = vsyncadd (!%p3875_p12), %s3518_s28, 4294966400  ;;  %p17_p2 = scmp.ge.s32.totalorder %s4253_s5, 4   ;;  %s5526_s12 = smov %s4100_s13 }
 0x266   : > { %s5527_s13 = smov %s4104_s14  ;;  %s5528_s14 = smov %s4269_s8 }
 0x267   : > { %s5529_s15 = smov %s4253_s5  ;;  %19 = sbr.rel (!%p17_p2) target bundleno = 6 (0x6), region = 93 }
 0x26e   :  { %3523 = vsyncpa [#allocation3], 1 }
 0x26f   :  { %3525 = vsyncpa [#allocation3 + $0x1], 1 }
 0x270   :  { %3526 = vsyncpa [#allocation6], 1 }
 0x271   :  { %3527 = vsyncpa [#allocation4], 1 }
 0x272   :  { %3529 = vsyncpa [#allocation4 + $0x1], 1 }

// kernel: rlfb_forward.14
= control target key start
LH: loop header
LB: loop body
LE: loop exit
PB: predicated region body
PF: predicated region fallthrough
CT: control target
= control target key end

     0   :  { %8 = vsyncpa [#allocation4], 0  ;;  %s1452_s0 = inlined_call_operand.hbm [shape: f32[2,1,1,16], index: 0, kind: input, shape index: {}]   ;;  %s1453_s1 = inlined_call_operand.hbm [shape: bf16[9,16,16], index: 1, kind: input, shape index: {}]   ;;  %s1454_s2 = inlined_call_operand.hbm [shape: f32[1,16], index: 2, kind: input, shape index: {}]   ;;  %s1455_s3 = inlined_call_operand.hbm [shape: f32[2,1,16], index: 3, kind: output, shape index: {}]  }
   0x1   :  { %10 = vsyncpa [#allocation4 + $0x1], 0 }
   0x2   :  { %11 = vsyncpa [#allocation7], 0 }
   0x3   :  { %12 = vsyncpa [#allocation5], 0 }
   0x4   :  { %14 = vsyncpa [#allocation5 + $0x1], 0  ;;  %s1178_s12 = smov 0   ;;  %s1180_s13 = smov 0  }
   0x5   :  { %s1182_s14 = smov 0   ;;  %s1184_s15 = smov 0  }
   0x6 LB: > { %s1199_s16 = sadd.s32 4294967295, %s1148_s15   ;;  %s810_s17 = sadd.s32 4294967294, %s1148_s15   ;;  %s1148_s15 = sphi %s1184_s15, %s1475_s15   ;;  %s1144_s14 = sphi %s1182_s14, %s1474_s14   ;;  %s1140_s13 = sphi %s1180_s13, %s1473_s13   ;;  %s1136_s12 = sphi %s1178_s12, %s1472_s12  }
   0x7   : > { %p40_p0 = scmp.ne.s32.totalorder %s1140_s13, %s1136_s12  ;;  %p1456_p1 = scmp.eq.s32.totalorder %s1199_s16, 0 }
   0x8   : > { %p112_p3 = scmp.eq.s32.totalorder %s810_s17, 1  ;;  %p811_p5 = scmp.ge.s32.totalorder %s1148_s15, 1 }
   0x9   : > { %p1208_p4 = por %p1456_p1, %p40_p0  ;;  %p119_p7 = scmp.lt.s32.totalorder %s1148_s15, 3 }
   0xa   : > { %p1213_p6 = por %p112_p3, %p40_p0  ;;  %s1150_s21 = smov [#allocation6]  }
   0xb   : > { %s1459_s18 = scalar_select %p1208_p4, 1, 0 }
   0xc   : > { %s1460_s19 = scalar_select %p1213_p6, 1, 0 }
   0xd   : > { %p1218_p8 = pnand %p811_p5, %p119_p7  ;;  %s131_s22 = sshll.u32 %s1150_s21, 4  ;;  %s1222_s22 = int_to_ptr.vmem [resolvable:$true] %s131_s22 }
   0xe   : > { %s1151_s24 = smov [#allocation8]   ;;  %s992_s28 = scalar_lea.hbm %s1453_s1, 1152 }
   0xf   : > { %p924_p9 = pneg %p1218_p8  ;;  %s145_s25 = sshll.u32 %s1151_s24, 4  ;;  %s1233_s25 = int_to_ptr.vmem [resolvable:$true] %s145_s25 }
  0x10   : > { %p993_p12 = scmp.ne.s32.totalorder %s1453_s1, %s992_s28  ;;  %p999_p5 = scmp.lt.u32.totalorder %s992_s28, %s1453_s1 }
  0x11   : > { %p1229_p11 = pnand %p924_p9, %p1456_p1 }
  0x13   : > { %p994_p13 = pneg %p1229_p11 }
  0x15   : > { %p995_p0 = pnand %p994_p13, %p993_p12 }
  0x17   : > { %p996_p3 = pneg %p995_p0 }
  0x19   : > { %p1001_p7 = pnand %p999_p5, %p996_p3 }
  0x1b   : > { %1004 = shalt.err (!%p1001_p7)
}
  0x1c   : > { %s1005_s6 = scalar_lea.vmem %s1222_s22, 1152  ;;  %p1013_p2 = scmp.lt.s32.totalorder %s1222_s22, %s1222_s22 }
  0x1d   : > { %p1006_p9 = scmp.ne.s32.totalorder %s1222_s22, %s1005_s6  ;;  %p1014_p12 = scmp.lt.s32.totalorder %s1005_s6, %s1005_s6 }
  0x1f   : > { %p1008_p10 = pnand %p1006_p9, %p994_p13  ;;  %p1015_p0 = por %p1014_p12, %p1013_p2 }
  0x21   : > { %p1009_p1 = pneg %p1008_p10 }
  0x23   : > { %p1016_p6 = pnand %p1015_p0, %p1009_p1 }
  0x25   : > { %1019 = shalt.err (!%p1016_p6)
}
  0x26   : > { %s1152_s7 = smov 64   ;;  %s1153_s8 = smov 4  }
  0x27   : > { %927 = dma.hbm_to_vmem [thread:$0]  (!%p1229_p11), %s1453_s1, 1152, %s1222_s22, [#allocation7], %s1152_s7, %s1152_s7, %s1153_s8  }
  0x28   : > { %s1020_s21 = scalar_lea.hbm %s1454_s2, 16 }
  0x29   : > { %p1021_p2 = scmp.ne.s32.totalorder %s1454_s2, %s1020_s21  ;;  %p1027_p10 = scmp.lt.u32.totalorder %s1020_s21, %s1454_s2 }
  0x2b   : > { %p1023_p1 = pnand %p1021_p2, %p994_p13 }
  0x2d   : > { %p1024_p6 = pneg %p1023_p1 }
  0x2f   : > { %p1029_p3 = pnand %p1027_p10, %p1024_p6 }
  0x31   : > { %1032 = shalt.err (!%p1029_p3)
}
  0x32   : > { %s1033_s22 = scalar_lea.vmem %s1233_s25, 16  ;;  %s1040_s29 = scalar_lea.vmem %s1233_s25, 32 }
  0x33   : > { %p1034_p5 = scmp.ne.s32.totalorder %s1233_s25, %s1033_s22  ;;  %p1041_p12 = scmp.lt.s32.totalorder %s1233_s25, %s1233_s25 }
  0x34   : > { %p1042_p0 = scmp.lt.s32.totalorder %s1040_s29, %s1033_s22 }
  0x35   : > { %p1036_p7 = pnand %p1034_p5, %p994_p13 }
  0x36   : > { %p1043_p2 = por %p1042_p0, %p1041_p12 }
  0x37   : > { %p1037_p9 = pneg %p1036_p7 }
  0x39   : > { %p1044_p1 = pnand %p1043_p2, %p1037_p9 }
  0x3b   : > { %1047 = shalt.err (!%p1044_p1)
}
  0x3c   : > { %930 = dma.hbm_to_vmem [thread:$0]  (!%p1229_p11), %s1454_s2, 16, %s1233_s25, [#allocation7]  }
  0x3d   : > { %s1289_s5 = sadd.s32 1, %s1148_s15   ;;  %s27_s23 = sadd.s32 1, %s1144_s14 }
  0x3e   : > { %s24_s6 = ssub.s32 %s1148_s15, %s1289_s5  ;;  %p34_p13 = scmp.ne.s32.totalorder %s1144_s14, %s1140_s13 }
  0x3f   : > { %p25_p6 = scmp.eq.s32.totalorder %s24_s6, 0  ;;  %p35_p10 = scmp.eq.s32.totalorder %s1148_s15, 0 }
  0x40   : > { %p1463_p3 = scmp.eq.s32.totalorder %s1199_s16, 1  ;;  %p941_p7 = scmp.lt.s32.totalorder %s1148_s15, 2 }
  0x41   : > { %s1305_s8 = scalar_select %p25_p6, %s1144_s14, %s27_s23  }
  0x42   : > { %p1299_p5 = por %p1463_p3, %p34_p13  ;;  %p36_p9 = por %p35_p10, %p34_p13 }
  0x43   : > { %s156_s9 = sand.u32 1, %s1144_s14   ;;  %s815_s10 = sshll.u32 %s1148_s15, 4 }
  0x44   : > { %s1464_s7 = scalar_select %p1299_p5, 1, 0 }
  0x45   : > { %s159_s25 = scalar_lea.vmem [#allocation3], %s156_s9  ;;  %s1312_s24 = scalar_lea.hbm %s1452_s0, %s815_s10 }
  0x46   : > { %s166_s11 = sshll.u32 %s159_s25, 4  ;;  %p1316_p11 = pnand %p941_p7, %p36_p9  ;;  %s1314_s11 = int_to_ptr.vmem [resolvable:$true] %s166_s11 }
  0x47   : > { %s157_s27 = scalar_lea.sflag [#allocation4], %s156_s9  ;;  %s1048_s28 = scalar_lea.hbm %s1312_s24, 16 }
  0x48   : > { %p1049_p12 = scmp.ne.s32.totalorder %s1312_s24, %s1048_s28  ;;  %p1050_p0 = pneg %p1316_p11 }
  0x49   : > { %s1053_s30 = scalar_lea.hbm %s1452_s0, 32  ;;  %p1054_p13 = scmp.lt.u32.totalorder %s1312_s24, %s1452_s0 }
  0x4a   : > { %p1051_p2 = pnand %p1050_p0, %p1049_p12  ;;  %p1055_p6 = scmp.lt.u32.totalorder %s1053_s30, %s1048_s28 }
  0x4b   : > { %p1057_p3 = scmp.lt.u32.totalorder %s1048_s28, %s1312_s24 }
  0x4c   : > { %p1052_p1 = pneg %p1051_p2  ;;  %p1056_p10 = por %p1055_p6, %p1054_p13 }
  0x4e   : > { %p1058_p7 = por %p1057_p3, %p1056_p10 }
  0x50   : > { %p1059_p9 = pnand %p1058_p7, %p1052_p1 }
  0x52   : > { %1062 = shalt.err (!%p1059_p9)
}
  0x53   : > { %s1063_s6 = scalar_lea.vmem %s1314_s11, 16  ;;  %s1154_s9 = smov [#allocation3]  }
  0x54   : > { %p1064_p12 = scmp.ne.s32.totalorder %s1314_s11, %s1063_s6  ;;  %s1068_s10 = sshll.u32 %s1154_s9, 4  ;;  %s1069_s10 = int_to_ptr.vmem [resolvable:$false] %s1068_s10 }
  0x55   : > { %s1070_s25 = scalar_lea.vmem %s1069_s10, 32  ;;  %p1071_p4 = scmp.lt.s32.totalorder %s1314_s11, %s1069_s10 }
  0x56   : > { %p1066_p2 = pnand %p1064_p12, %p1050_p0  ;;  %p1072_p13 = scmp.lt.s32.totalorder %s1070_s25, %s1063_s6 }
  0x58   : > { %p1067_p5 = pneg %p1066_p2  ;;  %p1073_p6 = por %p1072_p13, %p1071_p4 }
  0x5a   : > { %p1074_p10 = pnand %p1073_p6, %p1067_p5 }
  0x5c   : > { %1077 = shalt.err (!%p1074_p10)
}
  0x5d   : > { %934 = dma.hbm_to_vmem [thread:$0]  (!%p1316_p11), %s1312_s24, 16, %s1314_s11, %s157_s27  }
  0x5e   : > { %175 = sbr.rel (%p1218_p8) target bundleno = 378 (0x17a), region = 32  ;;  %s1348_s17 = sand.u32 (!%p1218_p8), 1, %s1140_s13  }
  0x5f   : > { %s178_s21 = scalar_lea.sflag (!%p1218_p8), [#allocation4], %s1348_s17  ;;  %s180_s28 = scalar_lea.vmem (!%p1218_p8), [#allocation3], %s1348_s17 }
  0x60   : > { %p1466_p0 = scmp.ne.s32.totalorder (!%p1218_p8), %s1459_s18, 0 }
  0x65   : > { %1123 = dma.done.wait (%p1466_p0), %s178_s21, 16  }
  0x66   : > { %1125 = vsyncadd (%p1466_p0), %s178_s21, 4294967280  ;;  %p1467_p4 = scmp.eq.s32.totalorder %s1199_s16, 0 }
  0x68   : > { %1127 = dma.done.wait (%p1467_p4), [#allocation7], 1168   ;;  %p1468_p5 = pmov %p1467_p4 }
  0x69   : > { %vm210_vm0 = vcmask 124928   ;;  %v1155_v0 = vmov 0.0   ;;  %vm1156_vm1 = vmmov 0   ;;  %v983_v1 = vld [vmem:[#allocation6 + $0x8] sm:$0xff]   ;;  %v984_v2 = vld [vmem:[#allocation6] sm:$0xff]   ;;  %vm233_vm2 = vcmask 130048  }
  0x6a   : > { %1129 = vsyncadd (%p1468_p5), [#allocation7], 4294966128  ;;  %858 = vmatprep.subr.bf16.mxu0 %v1155_v0  ;;  %864 = vmatprep.subr.bf16.mxu1 %v1155_v0  ;;  %211 = vst.msk [vmem:[#allocation2] sm:$0x7] %vm210_vm0, %v1155_v0  ;;  %v985_v7 = vld [vmem:[#allocation6 + $0x10] sm:$0xff]   ;;  %v986_v8 = vld [vmem:[#allocation6 + $0x18] sm:$0xff]  }
  0x6b   : > { %212 = vst.msk [vmem:[#allocation2 + $0x4] sm:$0x7] %vm210_vm0, %v1155_v0  ;;  %213 = vst.msk [vmem:[#allocation2 + $0x8] sm:$0x7] %vm210_vm0, %v1155_v0  ;;  %860 = vmatprep.mubr.msk.bf16.mxu0 %vm1156_vm1, %v1155_v0  ;;  %866 = vmatprep.mubr.msk.bf16.mxu1 %vm1156_vm1, %v1155_v0  ;;  %vm216_vm3 = vcmask 122880   ;;  %v987_v13 = vld [vmem:[#allocation6 + $0x20] sm:$0xff]  }
  0x6c   : > { %859 = vmatpush3.bf16.msra.mxu0 %v983_v1  ;;  %865 = vmatpush3.bf16.msra.mxu1 %v984_v2  ;;  %v214_v11 = vld [vmem:[%s180_s28] sm:$0x1]  ;;  %v988_v15 = vld [vmem:[#allocation6 + $0x28] sm:$0xff]   ;;  %v990_v21 = vld [vmem:[#allocation6 + $0x38] sm:$0xff]   ;;  %s837_s18 = sshll.u32 %s1199_s16, 4  ;;  %s208_s20 = scalar_lea.vmem [#allocation9], %s1348_s17 }
  0x6d   : > { %870 = vmatprep.subr.bf16.mxu0 %v1155_v0  ;;  %876 = vmatprep.subr.bf16.mxu1 %v1155_v0  ;;  %217 = vst.msk [vmem:[#allocation2 + $0x5] sm:$0x1] %vm216_vm3, %v214_v11  ;;  %v989_v19 = vld [vmem:[#allocation6 + $0x30] sm:$0xff]   ;;  %v991_v25 = vld [vmem:[#allocation6 + $0x40] sm:$0xff]   ;;  %s728_s11 = sshll.u32 %s208_s20, 4  ;;  %s1407_s27 = scalar_lea.hbm %s1455_s3, %s837_s18  ;;  %s1409_s11 = int_to_ptr.vmem [resolvable:$true] %s728_s11 }
  0x6e   : > { %s716_s16 = scalar_lea.sflag [#allocation5], %s1348_s17  ;;  %s1078_s22 = scalar_lea.vmem %s1409_s11, 16 }
  0x6f   : > { %p1079_p8 = scmp.ne.s32.totalorder %s1409_s11, %s1078_s22  ;;  %p1469_p11 = scmp.ne.s32.totalorder %s1464_s7, 0 }
  0x70   : > { %s1157_s29 = smov [#allocation9]  }
  0x71   : > { %v222_v3 = vld [vmem:[#allocation2 + $0x1] sm:$0x1]  ;;  %v218_v4 = vld [vmem:[#allocation2] sm:$0x1]  ;;  %v326_v9 = vld [vmem:[#allocation2 + $0x2] sm:$0x1]  ;;  %p1080_p1 = pnand %p1079_p8, %p1469_p11 }
  0x72   : > { %v223_v5 = vpack.c.bf16 %v222_v3, %v222_v3  ;;  %v219_v6 = vpack.c.bf16 %v218_v4, %v218_v4  ;;  %v381_v10 = vld [vmem:[#allocation2 + $0x4] sm:$0x1]  ;;  %v327_v12 = vpack.c.bf16 %v326_v9, %v326_v9  ;;  %v491_v17 = vld [vmem:[#allocation2 + $0x6] sm:$0x1]  ;;  %v547_v22 = vld [vmem:[#allocation2 + $0x8] sm:$0x1] }
  0x73   : > { %v382_v14 = vpack.c.bf16 %v381_v10, %v381_v10  ;;  %v492_v20 = vpack.c.bf16 %v491_v17, %v491_v17  ;;  %v602_v23 = vld [vmem:[#allocation2 + $0x9] sm:$0x1]  ;;  %v548_v24 = vpack.c.bf16 %v547_v22, %v547_v22  ;;  %v657_v27 = vld [vmem:[#allocation2 + $0xa] sm:$0x1]  ;;  %p1081_p3 = pneg %p1080_p1  ;;  %s1082_s30 = sshll.u32 %s1157_s29, 4  ;;  %s1083_s30 = int_to_ptr.vmem [resolvable:$false] %s1082_s30 }
  0x74   : > { %861 = vmatmul.mubr.msk.bf16.vlgmr.msra.gmra.mrb[0].mxu0 %vm233_vm2, %v223_v5  ;;  %867 = vmatmul.mubr.msk.bf16.vlgmr.msra.gmra.mrb[0].mxu1 %vm233_vm2, %v219_v6  ;;  %v436_v16 = vld [vmem:[#allocation2 + $0x5] sm:$0x1]  ;;  %v603_v26 = vpack.c.bf16 %v602_v23, %v602_v23  ;;  %v658_v28 = vpack.c.bf16 %v657_v27, %v657_v27  ;;  %v712_v5 = vld [vmem:[#allocation8] sm:$0x1]  ;;  %s1084_s4 = scalar_lea.vmem %s1083_s30, 32  ;;  %p1085_p7 = scmp.lt.s32.totalorder %s1409_s11, %s1083_s30 }
  0x75   : > { %871 = vmatpush3.bf16.msra.mxu0 %v985_v7  ;;  %872 = vmatprep.mubr.msk.bf16.mxu0 %vm1156_vm1, %v1155_v0  ;;  %v437_v18 = vpack.c.bf16 %v436_v16, %v436_v16  ;;  %p1086_p9 = scmp.lt.s32.totalorder %s1084_s4, %s1078_s22 }
  0x76   : > { %877 = vmatpush3.bf16.msra.mxu1 %v986_v8  ;;  %882 = vmatprep.subr.bf16.mxu0 %v1155_v0 }
  0x77   : > { %878 = vmatprep.mubr.msk.bf16.mxu1 %vm1156_vm1, %v1155_v0  ;;  %888 = vmatprep.subr.bf16.mxu1 %v1155_v0  ;;  %p1087_p12 = por %p1086_p9, %p1085_p7 }
  0x79   : > { %p1088_p2 = pnand %p1087_p12, %p1081_p3 }
  0x7c   : > { %873 = vmatmul.mubr.msk.bf16.vlgmr.msra.gmra.mrb[4].mxu0 %vm233_vm2, %v327_v12  ;;  %879 = vmatmul.mubr.msk.bf16.vlgmr.msra.gmra.mrb[4].mxu1 %vm233_vm2, %v382_v14 }
  0x7d   : > { %883 = vmatpush3.bf16.msra.mxu0 %v987_v13  ;;  %884 = vmatprep.mubr.msk.bf16.mxu0 %vm1156_vm1, %v1155_v0 }
  0x7e   : > { %889 = vmatpush3.bf16.msra.mxu1 %v988_v15  ;;  %894 = vmatprep.subr.bf16.mxu0 %v1155_v0 }
  0x7f   : > { %890 = vmatprep.mubr.msk.bf16.mxu1 %vm1156_vm1, %v1155_v0  ;;  %900 = vmatprep.subr.bf16.mxu1 %v1155_v0 }
  0x84   : > { %885 = vmatmul.mubr.msk.bf16.vlgmr.msra.gmra.mrb[8].mxu0 %vm233_vm2, %v437_v18  ;;  %891 = vmatmul.mubr.msk.bf16.vlgmr.msra.gmra.mrb[8].mxu1 %vm233_vm2, %v492_v20 }
  0x85   : > { %895 = vmatpush3.bf16.msra.mxu0 %v989_v19  ;;  %896 = vmatprep.mubr.msk.bf16.mxu0 %vm1156_vm1, %v1155_v0 }
  0x86   : > { %901 = vmatpush3.bf16.msra.mxu1 %v990_v21  ;;  %906 = vmatprep.subr.bf16.mxu0 %v1155_v0 }
  0x87   : > { %902 = vmatprep.mubr.msk.bf16.mxu1 %vm1156_vm1, %v1155_v0 }
  0x8c   : > { %897 = vmatmul.mubr.msk.bf16.vlgmr.msra.gmra.mrb[12].mxu0 %vm233_vm2, %v548_v24  ;;  %903 = vmatmul.mubr.msk.bf16.vlgmr.msra.gmra.mrb[12].mxu1 %vm233_vm2, %v603_v26 }
  0x8d   : > { %907 = vmatpush3.bf16.msra.mxu0 %v991_v25  ;;  %908 = vmatprep.mubr.msk.bf16.mxu0 %vm1156_vm1, %v1155_v0 }
  0x94   : > { %909 = vmatmul.mubr.msk.bf16.vlgmr.msra.gmra.mrb[16].mxu0 %vm233_vm2, %v658_v28 }
 0x147   : > { %v271_v29 = vpop.f32.mrb[0].mxu0  ;;  %v320_v31 = vpop.f32.mrb[0].mxu1 }
 0x148   : > { %v862_v30 = vpop.f32.mrb[1].mxu0  ;;  %v321_v32 = vadd.f32 %v320_v31, %v271_v29  ;;  %v868_v34 = vpop.f32.mrb[1].mxu1 }
 0x149   : > { %v274_v33 = vpop.f32.mrb[2].mxu0  ;;  %v323_v36 = vpop.f32.mrb[2].mxu1 }
 0x14a   : > { %v863_v35 = vpop.f32.mrb[3].mxu0  ;;  %v869_v37 = vpop.f32.mrb[3].mxu1 }
 0x14f   : > { %v374_v38 = vpop.f32.mrb[4].mxu0  ;;  %v429_v41 = vpop.f32.mrb[4].mxu1 }
 0x150   : > { %v380_v39 = vadd.f32 %v374_v38, %v321_v32  ;;  %v874_v40 = vpop.f32.mrb[5].mxu0  ;;  %v880_v43 = vpop.f32.mrb[5].mxu1 }
 0x151   : > { %v377_v42 = vpop.f32.mrb[6].mxu0  ;;  %v432_v46 = vpop.f32.mrb[6].mxu1 }
 0x152   : > { %v435_v44 = vadd.f32 %v429_v41, %v380_v39  ;;  %v875_v45 = vpop.f32.mrb[7].mxu0  ;;  %v881_v47 = vpop.f32.mrb[7].mxu1 }
 0x157   : > { %v484_v48 = vpop.f32.mrb[8].mxu0  ;;  %v539_v51 = vpop.f32.mrb[8].mxu1 }
 0x158   : > { %v490_v49 = vadd.f32 %v484_v48, %v435_v44  ;;  %v886_v50 = vpop.f32.mrb[9].mxu0  ;;  %v892_v53 = vpop.f32.mrb[9].mxu1 }
 0x159   : > { %v487_v52 = vpop.f32.mrb[10].mxu0  ;;  %v542_v56 = vpop.f32.mrb[10].mxu1 }
 0x15a   : > { %v545_v54 = vadd.f32 %v539_v51, %v490_v49  ;;  %v887_v55 = vpop.f32.mrb[11].mxu0  ;;  %v893_v57 = vpop.f32.mrb[11].mxu1 }
 0x15f   : > { %v595_v58 = vpop.f32.mrb[12].mxu0  ;;  %v650_v61 = vpop.f32.mrb[12].mxu1 }
 0x160   : > { %v601_v59 = vadd.f32 %v595_v58, %v545_v54  ;;  %v898_v60 = vpop.f32.mrb[13].mxu0  ;;  %v904_v63 = vpop.f32.mrb[13].mxu1 }
 0x161   : > { %v598_v62 = vpop.f32.mrb[14].mxu0  ;;  %v653_v2 = vpop.f32.mrb[14].mxu1 }
 0x162   : > { %v656_v0 = vadd.f32 %v650_v61, %v601_v59  ;;  %v899_v1 = vpop.f32.mrb[15].mxu0  ;;  %v905_v3 = vpop.f32.mrb[15].mxu1 }
 0x167   : > { %v705_v4 = vpop.f32.mrb[16].mxu0 }
 0x168   : > { %v711_v6 = vadd.f32 %v705_v4, %v656_v0  ;;  %v910_v7 = vpop.f32.mrb[17].mxu0 }
 0x169   : > { %v708_v8 = vpop.f32.mrb[18].mxu0 }
 0x16a   : > { %v713_v9 = vadd.f32 %v712_v5, %v711_v6  ;;  %v911_v10 = vpop.f32.mrb[19].mxu0 }
 0x16c   : > { %714 = vst.msk [vmem:[%s208_s20] sm:$0x1] %vm216_vm3, %v713_v9 }
 0x16d   : > { %1091 = shalt.err (!%p1088_p2)
}
 0x16e   : > { %s1092_s23 = scalar_lea.hbm %s1407_s27, 16  ;;  %s1096_s10 = scalar_lea.hbm %s1455_s3, 32 }
 0x16f   : > { %p1093_p13 = scmp.ne.s32.totalorder %s1407_s27, %s1092_s23  ;;  %p1097_p0 = scmp.lt.u32.totalorder %s1407_s27, %s1455_s3 }
 0x170   : > { %p1098_p4 = scmp.lt.u32.totalorder %s1096_s10, %s1092_s23  ;;  %p1100_p8 = scmp.lt.u32.totalorder %s1092_s23, %s1407_s27 }
 0x171   : > { %p1094_p6 = pnand %p1093_p13, %p1469_p11 }
 0x172   : > { %p1099_p5 = por %p1098_p4, %p1097_p0 }
 0x173   : > { %p1095_p10 = pneg %p1094_p6 }
 0x174   : > { %p1101_p1 = por %p1100_p8, %p1099_p5 }
 0x176   : > { %p1102_p3 = pnand %p1101_p1, %p1095_p10 }
 0x178   : > { %1105 = shalt.err (!%p1102_p3)
}
 0x179   : > { %922 = dma.vmem_to_hbm [thread:$0]  (%p1469_p11), %s1409_s11, 16, %s1407_s27, %s716_s16  }
 0x17a PF: > { %s740_s21 = sand.u32 1, %s1136_s12   ;;  %p1470_p7 = scmp.ne.s32.totalorder %s1460_s19, 0 }
 0x17b   : > { %p1471_p9 = scmp.ge.s32.totalorder %s1148_s15, 2  ;;  %s741_s28 = scalar_lea.sflag [#allocation5], %s740_s21 }
 0x17d   : > { %p936_p12 = pnand %p1471_p9, %p1470_p7 }
 0x17f   : > { %1131 = dma.done.wait (!%p936_p12), %s741_s28, 16  }
 0x180   : > { %1133 = vsyncadd (!%p936_p12), %s741_s28, 4294967280  ;;  %p17_p2 = scmp.ge.s32.totalorder %s1289_s5, 4   ;;  %s1472_s12 = smov %s1140_s13 }
 0x181   : > { %s1473_s13 = smov %s1144_s14  ;;  %s1474_s14 = smov %s1305_s8 }
 0x182   : > { %s1475_s15 = smov %s1289_s5  ;;  %19 = sbr.rel (!%p17_p2) target bundleno = 6 (0x6), region = 95 }
 0x189   :  { %745 = vsyncpa [#allocation4], 1 }
 0x18a   :  { %747 = vsyncpa [#allocation4 + $0x1], 1 }
 0x18b   :  { %748 = vsyncpa [#allocation7], 1 }
 0x18c   :  { %749 = vsyncpa [#allocation5], 1 }
 0x18d   :  { %751 = vsyncpa [#allocation5 + $0x1], 1 }

// kernel: rlfb_forward.15
= control target key start
LH: loop header
LB: loop body
LE: loop exit
PB: predicated region body
PF: predicated region fallthrough
CT: control target
= control target key end

     0   :  { %s3514_s0 = inlined_call_operand.hbm [shape: f32[2,1,1,16], index: 0, kind: input, shape index: {}]   ;;  %s3515_s1 = inlined_call_operand.hbm [shape: f32[2,256,16], index: 1, kind: input, shape index: {}]   ;;  %s3516_s2 = inlined_call_operand.hbm [shape: f32[2,256,4], index: 2, kind: input, shape index: {}]   ;;  %s3517_s3 = inlined_call_operand.hbm [shape: f32[256,1], index: 3, kind: input, shape index: {}]   ;;  %s3518_s4 = inlined_call_operand.hbm [shape: bf16[16,16], index: 4, kind: input, shape index: {}]   ;;  %s3519_s5 = inlined_call_operand.hbm [shape: f32[1,16], index: 5, kind: input, shape index: {}]   ;;  %s3520_s6 = inlined_call_operand.hbm [shape: bf16[16,4], index: 6, kind: input, shape index: {}]   ;;  %s3521_s7 = inlined_call_operand.hbm [shape: f32[1,4], index: 7, kind: input, shape index: {}]   ;;  %s3522_s8 = inlined_call_operand.hbm [shape: f32[2,256,4], index: 8, kind: output, shape index: {}]  }
   0x1   :  { %3556 = sst [smem:[#allocation34_spill]] %s3515_s1 }
   0x2   :  { %3557 = sst [smem:[#allocation35_spill]] %s3517_s3 }
   0x3   :  { %3558 = sst [smem:[#allocation36_spill]] %s3519_s5 }
   0x4   :  { %3559 = sst [smem:[#allocation37_spill]] %s3522_s8 }
   0x5   :  { %13 = vsyncpa [#allocation3], 0 }
   0x6   :  { %15 = vsyncpa [#allocation3 + $0x1], 0 }
   0x7   :  { %16 = vsyncpa [#allocation6], 0 }
   0x8   :  { %18 = vsyncpa [#allocation6 + $0x1], 0 }
   0x9   :  { %19 = vsyncpa [#allocation9], 0 }
   0xa   :  { %20 = vsyncpa [#allocation12], 0 }
   0xb   :  { %21 = vsyncpa [#allocation15], 0 }
   0xc   :  { %22 = vsyncpa [#allocation4], 0 }
   0xd   :  { %24 = vsyncpa [#allocation4 + $0x1], 0  ;;  %s2738_s27 = smov 0   ;;  %s2740_s28 = smov 0  }
   0xe   :  { %s2742_s29 = smov 0   ;;  %s2744_s30 = smov 0  }
   0xf LB: > { %3560 = sst [smem:[#allocation23_spill]] %s2664_s27  ;;  %s2678_s9 = smov [#allocation8]   ;;  %s2676_s30 = sphi %s2744_s30, %s3612_s30   ;;  %s2672_s29 = sphi %s2742_s29, %s3615_s29   ;;  %s2668_s28 = sphi %s2740_s28, %s3614_s28   ;;  %s2664_s27 = sphi %s2738_s27, %s3613_s27  }
  0x10   : > { %3561 = sst [smem:[#allocation24_spill]] %s2668_s28  ;;  %s256_s10 = sshll.u32 %s2678_s9, 4  ;;  %s2765_s10 = int_to_ptr.vmem [resolvable:$true] %s256_s10 }
  0x11   : > { %3562 = sst [smem:[#allocation25_spill]] %s2672_s29  ;;  %s2759_s11 = sadd.s32 4294967295, %s2676_s30  }
  0x12   : > { %3563 = sst [smem:[#allocation26_spill]] %s2759_s11  ;;  %p1802_p0 = scmp.ge.s32.totalorder %s2676_s30, 1 }
  0x13   : > { %p3523_p1 = scmp.eq.s32.totalorder %s2759_s11, 0  ;;  %p231_p2 = scmp.eq.s32.totalorder %s2759_s11, 1 }
  0x14   : > { %p244_p3 = scmp.lt.s32.totalorder %s2676_s30, 3  ;;  %s2679_s13 = smov [#allocation11]  }
  0x15   : > { %s283_s14 = sshll.u32 %s2679_s13, 4  ;;  %s3567_s3 = sld [smem:[#allocation35_spill]]  ;;  %s2774_s14 = int_to_ptr.vmem [resolvable:$true] %s283_s14 }
  0x16   : > { %p2767_p4 = pnand %p1802_p0, %p244_p3 }
  0x18   : > { %s3564_s12 = scalar_select %p2767_p4, 1, 0 }
  0x19   : > { %p2149_p6 = pneg %p2767_p4 }
  0x1a   : > { %3565 = sst [smem:[#allocation27_spill]] %s3564_s12 }
  0x1b   : > { %p2778_p7 = pnand %p2149_p6, %p3523_p1  ;;  %s2364_s18 = scalar_lea.hbm %s3567_s3, 4096 }
  0x1c   : > { %p2365_p8 = scmp.ne.s32.totalorder %s3567_s3, %s2364_s18  ;;  %p2371_p12 = scmp.lt.u32.totalorder %s2364_s18, %s3567_s3 }
  0x1d   : > { %s3566_s15 = scalar_select %p2778_p7, 1, 0 }
  0x1e   : > { %p2790_p9 = pneg %p2778_p7 }
  0x20   : > { %s3568_s21 = scalar_select %p2790_p9, 1, 0 }
  0x21   : > { %p2367_p10 = pnand %p2790_p9, %p2365_p8 }
  0x23   : > { %p2368_p11 = pneg %p2367_p10 }
  0x25   : > { %p2373_p13 = pnand %p2371_p12, %p2368_p11 }
  0x27   : > { %2376 = shalt.err (!%p2373_p13)
}
  0x28   : > { %s2377_s24 = scalar_lea.vmem %s2765_s10, 4096  ;;  %p2385_p5 = scmp.lt.s32.totalorder %s2765_s10, %s2765_s10 }
  0x29   : > { %p2378_p0 = scmp.ne.s32.totalorder %s2765_s10, %s2377_s24  ;;  %p2386_p1 = scmp.lt.s32.totalorder %s2377_s24, %s2377_s24 }
  0x2b   : > { %p2380_p3 = pnand %p2378_p0, %p2790_p9  ;;  %p2387_p8 = por %p2386_p1, %p2385_p5 }
  0x2d   : > { %p2381_p6 = pneg %p2380_p3 }
  0x2f   : > { %p2388_p10 = pnand %p2387_p8, %p2381_p6 }
  0x31   : > { %2391 = shalt.err (!%p2388_p10)
}
  0x32   : > { %s3525_s25 = smov 128   ;;  %s3527_s26 = smov 8  }
  0x33   : > { %2152 = dma.hbm_to_vmem [thread:$0]  (!%p2778_p7), %s3567_s3, 4096, %s2765_s10, [#allocation9], %s3525_s25, %s3525_s25, %s3527_s26  }
  0x34   : > { %s3569_s5 = sld [smem:[#allocation36_spill]] }
  0x3a   : > { %s2392_s18 = scalar_lea.hbm %s3569_s5, 16 }
  0x3b   : > { %p2393_p1 = scmp.ne.s32.totalorder %s3569_s5, %s2392_s18  ;;  %p2399_p12 = scmp.lt.u32.totalorder %s2392_s18, %s3569_s5 }
  0x3d   : > { %p2395_p5 = pnand %p2393_p1, %p2790_p9 }
  0x3f   : > { %p2396_p11 = pneg %p2395_p5 }
  0x41   : > { %p2401_p13 = pnand %p2399_p12, %p2396_p11 }
  0x43   : > { %2404 = shalt.err (!%p2401_p13)
}
  0x44   : > { %s2405_s10 = scalar_lea.vmem %s2774_s14, 16  ;;  %s2412_s24 = scalar_lea.vmem %s2774_s14, 32 }
  0x45   : > { %p2406_p0 = scmp.ne.s32.totalorder %s2774_s14, %s2405_s10  ;;  %p2413_p8 = scmp.lt.s32.totalorder %s2774_s14, %s2774_s14 }
  0x46   : > { %p2414_p10 = scmp.lt.s32.totalorder %s2412_s24, %s2405_s10 }
  0x47   : > { %p2408_p3 = pnand %p2406_p0, %p2790_p9 }
  0x48   : > { %p2415_p1 = por %p2414_p10, %p2413_p8 }
  0x49   : > { %p2409_p6 = pneg %p2408_p3 }
  0x4b   : > { %p2416_p5 = pnand %p2415_p1, %p2409_p6 }
  0x4d   : > { %2419 = shalt.err (!%p2416_p5)
}
  0x4e   : > { %2158 = dma.hbm_to_vmem [thread:$0]  (!%p2778_p7), %s3569_s5, 16, %s2774_s14, [#allocation12]  }
  0x4f   : > { %s1801_s16 = sadd.s32 4294967294, %s2676_s30   ;;  %s2840_s17 = sadd.s32 1, %s2676_s30  }
  0x50   : > { %3570 = sst [smem:[#allocation28_spill]] %s2840_s17  ;;  %s37_s18 = sadd.s32 1, %s2672_s29 }
  0x51   : > { %s34_s19 = ssub.s32 %s2676_s30, %s2840_s17  ;;  %p44_p11 = scmp.ne.s32.totalorder %s2672_s29, %s2668_s28 }
  0x52   : > { %p35_p12 = scmp.eq.s32.totalorder %s34_s19, 0  ;;  %p45_p13 = scmp.eq.s32.totalorder %s2676_s30, 0 }
  0x53   : > { %p50_p0 = scmp.ne.s32.totalorder %s2668_s28, %s2664_s27  ;;  %p2852_p3 = por %p231_p2, %p44_p11 }
  0x54   : > { %s2857_s22 = scalar_select %p35_p12, %s2672_s29, %s37_s18  }
  0x55   : > { %s3571_s20 = scalar_select %p2852_p3, 1, 0 }
  0x56   : > { %3573 = sst [smem:[#allocation30_spill]] %s2857_s22  ;;  %p46_p6 = por %p45_p13, %p44_p11 }
  0x57   : > { %3572 = sst [smem:[#allocation29_spill]] %s3571_s20  ;;  %p3574_p8 = scmp.eq.s32.totalorder %s2759_s11, 0 }
  0x58   : > { %p237_p1 = scmp.eq.s32.totalorder %s1801_s16, 1  ;;  %p2184_p5 = scmp.lt.s32.totalorder %s2676_s30, 2 }
  0x59   : > { %p2861_p10 = por %p3574_p8, %p50_p0  ;;  %s2867_s23 = sand.u32 1, %s2672_s29  }
  0x5a   : > { %s335_s10 = sand.u32 1, %s2676_s30   ;;  %p2870_p4 = por %p237_p1, %p50_p0 }
  0x5b   : > { %s3575_s14 = scalar_select %p2861_p10, 1, 0 }
  0x5c   : > { %s3577_s24 = scalar_select %p2870_p4, 1, 0 }
  0x5d   : > { %3576 = sst [smem:[#allocation31_spill]] %s3575_s14  ;;  %p2874_p2 = pnand %p2184_p5, %p46_p6 }
  0x5e   : > { %3578 = sst [smem:[#allocation32_spill]] %s3577_s24  ;;  %s3529_s13 = sshll.u32 %s2867_s23, 8 }
  0x5f   : > { %s3579_s9 = scalar_select %p2874_p2, 1, 0 }
  0x60   : > { %s3530_s18 = sshll.u32 %s2676_s30, 12  ;;  %s339_s19 = scalar_lea.vmem [#allocation5], %s3529_s13 }
  0x61   : > { %s346_s16 = sshll.u32 %s339_s19, 4  ;;  %s3580_s1 = sld [smem:[#allocation34_spill]]  ;;  %s2889_s16 = int_to_ptr.vmem [resolvable:$true] %s346_s16 }
  0x62   : > { %s2891_s5 = scalar_lea.sflag [#allocation6], %s335_s10  ;;  %p2897_p12 = pneg %p2874_p2 }
  0x63   : > { %3581 = sst [smem:[#allocation33_spill]] %s2891_s5 }
  0x64   : > { %s3582_s13 = scalar_select %p2897_p12, 1, 0 }
  0x67   : > { %s2887_s3 = scalar_lea.hbm %s3580_s1, %s3530_s18  ;;  %s2425_s19 = scalar_lea.hbm %s3580_s1, 8192 }
  0x68   : > { %s2420_s22 = scalar_lea.hbm %s2887_s3, 4096  ;;  %p2426_p6 = scmp.lt.u32.totalorder %s2887_s3, %s3580_s1 }
  0x69   : > { %p2421_p11 = scmp.ne.s32.totalorder %s2887_s3, %s2420_s22  ;;  %p2427_p8 = scmp.lt.u32.totalorder %s2425_s19, %s2420_s22 }
  0x6a   : > { %p2429_p5 = scmp.lt.u32.totalorder %s2420_s22, %s2887_s3 }
  0x6b   : > { %p2423_p13 = pnand %p2897_p12, %p2421_p11  ;;  %p2428_p1 = por %p2427_p8, %p2426_p6 }
  0x6d   : > { %p2424_p0 = pneg %p2423_p13  ;;  %p2430_p4 = por %p2429_p5, %p2428_p1 }
  0x6f   : > { %p2431_p3 = pnand %p2430_p4, %p2424_p0 }
  0x71   : > { %2434 = shalt.err (!%p2431_p3)
}
  0x72   : > { %s2435_s10 = scalar_lea.vmem %s2889_s16, 4096  ;;  %s2682_s25 = smov [#allocation5]  }
  0x73   : > { %p2436_p11 = scmp.ne.s32.totalorder %s2889_s16, %s2435_s10  ;;  %s2440_s26 = sshll.u32 %s2682_s25, 4  ;;  %s2441_s26 = int_to_ptr.vmem [resolvable:$false] %s2440_s26 }
  0x74   : > { %s2442_s29 = scalar_lea.vmem %s2441_s26, 8192  ;;  %p2443_p7 = scmp.lt.s32.totalorder %s2889_s16, %s2441_s26 }
  0x75   : > { %p2438_p13 = pnand %p2436_p11, %p2897_p12  ;;  %p2444_p9 = scmp.lt.s32.totalorder %s2442_s29, %s2435_s10 }
  0x77   : > { %p2439_p10 = pneg %p2438_p13  ;;  %p2445_p6 = por %p2444_p9, %p2443_p7 }
  0x79   : > { %p2446_p8 = pnand %p2445_p6, %p2439_p10 }
  0x7b   : > { %2449 = shalt.err (!%p2446_p8)
}
  0x7c   : > { %s3583_s22 = smov 8   ;;  %s3584_s18 = smov 128  }
  0x7d   : > { %2171 = dma.hbm_to_vmem [thread:$0]  (!%p2874_p2), %s2887_s3, 4096, %s2889_s16, %s2891_s5, %s3584_s18, %s3584_s18, %s3583_s22  }
  0x7e   : > { %s3585_s19 = sshll.u32 %s2676_s30, 12  ;;  %s3586_s26 = sshll.u32 %s2867_s23, 8 }
  0x7f   : > { %s2929_s10 = scalar_lea.hbm %s3516_s2, %s3585_s19  ;;  %s360_s29 = scalar_lea.vmem [#allocation7], %s3586_s26 }
  0x80   : > { %s367_s17 = sshll.u32 %s360_s29, 4  ;;  %s2683_s24 = smov [#allocation10]   ;;  %s2933_s17 = int_to_ptr.vmem [resolvable:$true] %s367_s17 }
  0x81   : > { %s269_s27 = sshll.u32 %s2683_s24, 4  ;;  %s2450_s11 = scalar_lea.hbm %s3518_s4, 128  ;;  %s270_s27 = int_to_ptr.vmem [resolvable:$true] %s269_s27 }
  0x82   : > { %p2451_p4 = scmp.ne.s32.totalorder %s3518_s4, %s2450_s11  ;;  %p3587_p7 = scmp.ne.s32.totalorder %s3568_s21, 0 }
  0x83   : > { %p2457_p10 = scmp.lt.u32.totalorder %s2450_s11, %s3518_s4 }
  0x84   : > { %p2453_p9 = pnand %p2451_p4, %p3587_p7 }
  0x86   : > { %p2454_p3 = pneg %p2453_p9 }
  0x88   : > { %p2459_p0 = pnand %p2457_p10, %p2454_p3 }
  0x8a   : > { %2462 = shalt.err (!%p2459_p0)
}
  0x8b   : > { %s2463_s19 = scalar_lea.vmem %s270_s27, 128  ;;  %p2471_p13 = scmp.lt.s32.totalorder %s270_s27, %s270_s27 }
  0x8c   : > { %p2464_p1 = scmp.ne.s32.totalorder %s270_s27, %s2463_s19  ;;  %p2472_p6 = scmp.lt.s32.totalorder %s2463_s19, %s2463_s19 }
  0x8e   : > { %p2466_p5 = pnand %p2464_p1, %p3587_p7  ;;  %p2473_p8 = por %p2472_p6, %p2471_p13 }
  0x90   : > { %p2467_p11 = pneg %p2466_p5 }
  0x92   : > { %p2474_p2 = pnand %p2473_p8, %p2467_p11 }
  0x94   : > { %2477 = shalt.err (!%p2474_p2)
}
  0x95   : > { %s2684_s8 = smov 64   ;;  %s2685_s20 = smov 4  }
  0x96   : > { %p3588_p4 = scmp.ne.s32.totalorder %s3566_s15, 0  ;;  %s2686_s24 = smov [#allocation13]  }
  0x97   : > { %s293_s25 = sshll.u32 %s2686_s24, 4  ;;  %s2687_s26 = smov [#allocation14]   ;;  %s294_s25 = int_to_ptr.vmem [resolvable:$true] %s293_s25 }
  0x98   : > { %2155 = dma.hbm_to_vmem [thread:$0]  (!%p3588_p4), %s3518_s4, 128, %s270_s27, [#allocation9], %s2684_s8, %s2684_s8, %s2685_s20  }
  0x99   : > { %s307_s29 = sshll.u32 %s2687_s26, 4  ;;  %s2478_s16 = scalar_lea.hbm %s3520_s6, 128  ;;  %s308_s29 = int_to_ptr.vmem [resolvable:$true] %s307_s29 }
  0x9a   : > { %p2479_p2 = scmp.ne.s32.totalorder %s3520_s6, %s2478_s16  ;;  %p2485_p10 = scmp.lt.u32.totalorder %s2478_s16, %s3520_s6 }
  0x9c   : > { %p2481_p9 = pnand %p2479_p2, %p3587_p7 }
  0x9e   : > { %p2482_p3 = pneg %p2481_p9 }
  0xa0   : > { %p2487_p0 = pnand %p2485_p10, %p2482_p3 }
  0xa2   : > { %2490 = shalt.err (!%p2487_p0)
}
  0xa3   : > { %s2491_s27 = scalar_lea.vmem %s294_s25, 128  ;;  %p2499_p13 = scmp.lt.s32.totalorder %s294_s25, %s294_s25 }
  0xa4   : > { %p2492_p1 = scmp.ne.s32.totalorder %s294_s25, %s2491_s27  ;;  %p2500_p6 = scmp.lt.s32.totalorder %s2491_s27, %s2491_s27 }
  0xa6   : > { %p2494_p5 = pnand %p2492_p1, %p3587_p7  ;;  %p2501_p8 = por %p2500_p6, %p2499_p13 }
  0xa8   : > { %p2495_p11 = pneg %p2494_p5 }
  0xaa   : > { %p2502_p12 = pnand %p2501_p8, %p2495_p11 }
  0xac   : > { %2505 = shalt.err (!%p2502_p12)
}
  0xad   : > { %2161 = dma.hbm_to_vmem [thread:$0]  (!%p3588_p4), %s3520_s6, 128, %s294_s25, [#allocation12], %s2684_s8, %s2684_s8, %s2685_s20  }
  0xae   : > { %s2506_s11 = scalar_lea.hbm %s3521_s7, 16 }
  0xaf   : > { %p2507_p2 = scmp.ne.s32.totalorder %s3521_s7, %s2506_s11  ;;  %p2513_p12 = scmp.lt.u32.totalorder %s2506_s11, %s3521_s7 }
  0xb1   : > { %p2509_p9 = pnand %p2507_p2, %p3587_p7 }
  0xb3   : > { %p2510_p3 = pneg %p2509_p9 }
  0xb5   : > { %p2515_p10 = pnand %p2513_p12, %p2510_p3 }
  0xb7   : > { %2518 = shalt.err (!%p2515_p10)
}
  0xb8   : > { %s2519_s16 = scalar_lea.vmem %s308_s29, 16  ;;  %s2526_s8 = scalar_lea.vmem %s308_s29, 32 }
  0xb9   : > { %p2520_p0 = scmp.ne.s32.totalorder %s308_s29, %s2519_s16  ;;  %p2527_p11 = scmp.lt.s32.totalorder %s308_s29, %s308_s29 }
  0xba   : > { %p2528_p13 = scmp.lt.s32.totalorder %s2526_s8, %s2519_s16 }
  0xbb   : > { %p2522_p1 = pnand %p2520_p0, %p3587_p7 }
  0xbc   : > { %p2529_p6 = por %p2528_p13, %p2527_p11 }
  0xbd   : > { %p2523_p5 = pneg %p2522_p1 }
  0xbf   : > { %p2530_p8 = pnand %p2529_p6, %p2523_p5 }
  0xc1   : > { %2533 = shalt.err (!%p2530_p8)
}
  0xc2   : > { %2164 = dma.hbm_to_vmem [thread:$0]  (!%p3588_p4), %s3521_s7, 16, %s308_s29, [#allocation15]  }
  0xc3   : > { %s1809_s19 = sshll.u32 %s2676_s30, 4  ;;  %s321_s14 = scalar_lea.vmem [#allocation2], %s2867_s23 }
  0xc4   : > { %s2993_s28 = scalar_lea.hbm %s3514_s0, %s1809_s19  ;;  %s328_s15 = sshll.u32 %s321_s14, 4  ;;  %s329_s15 = int_to_ptr.vmem [resolvable:$true] %s328_s15 }
  0xc5   : > { %s319_s5 = scalar_lea.sflag [#allocation3], %s2867_s23  ;;  %s2534_s12 = scalar_lea.hbm %s2993_s28, 16 }
  0xc6   : > { %p2535_p7 = scmp.ne.s32.totalorder %s2993_s28, %s2534_s12  ;;  %p3589_p2 = scmp.ne.s32.totalorder %s3582_s13, 0 }
  0xc7   : > { %s2539_s24 = scalar_lea.hbm %s3514_s0, 32  ;;  %p2540_p4 = scmp.lt.u32.totalorder %s2993_s28, %s3514_s0 }
  0xc8   : > { %p2537_p9 = pnand %p2535_p7, %p3589_p2  ;;  %p2541_p12 = scmp.lt.u32.totalorder %s2539_s24, %s2534_s12 }
  0xc9   : > { %p2543_p0 = scmp.lt.u32.totalorder %s2534_s12, %s2993_s28 }
  0xca   : > { %p2538_p3 = pneg %p2537_p9  ;;  %p2542_p10 = por %p2541_p12, %p2540_p4 }
  0xcc   : > { %p2544_p1 = por %p2543_p0, %p2542_p10 }
  0xce   : > { %p2545_p5 = pnand %p2544_p1, %p2538_p3 }
  0xd0   : > { %2548 = shalt.err (!%p2545_p5)
}
  0xd1   : > { %s2549_s23 = scalar_lea.vmem %s329_s15, 16  ;;  %s2688_s1 = smov [#allocation2]  }
  0xd2   : > { %p2550_p11 = scmp.ne.s32.totalorder %s329_s15, %s2549_s23  ;;  %s2554_s16 = sshll.u32 %s2688_s1, 4  ;;  %s2555_s16 = int_to_ptr.vmem [resolvable:$false] %s2554_s16 }
  0xd3   : > { %s2556_s8 = scalar_lea.vmem %s2555_s16, 32  ;;  %p2557_p8 = scmp.lt.s32.totalorder %s329_s15, %s2555_s16 }
  0xd4   : > { %p2552_p13 = pnand %p2550_p11, %p3589_p2  ;;  %p2558_p7 = scmp.lt.s32.totalorder %s2556_s8, %s2549_s23 }
  0xd6   : > { %p2553_p6 = pneg %p2552_p13  ;;  %p2559_p9 = por %p2558_p7, %p2557_p8 }
  0xd8   : > { %p2560_p4 = pnand %p2559_p9, %p2553_p6 }
  0xda   : > { %2563 = shalt.err (!%p2560_p4)
}
  0xdb   : > { %p3590_p12 = scmp.ne.s32.totalorder %s3579_s9, 0  ;;  %s2564_s20 = scalar_lea.hbm %s2929_s10, 4096 }
  0xdc   : > { %p2565_p3 = scmp.ne.s32.totalorder %s2929_s10, %s2564_s20  ;;  %s2569_s21 = scalar_lea.hbm %s3516_s2, 8192 }
  0xdd   : > { %2168 = dma.hbm_to_vmem [thread:$0]  (!%p3590_p12), %s2993_s28, 16, %s329_s15, %s319_s5  }
  0xde   : > { %p2567_p10 = pnand %p2565_p3, %p3589_p2  ;;  %p2570_p1 = scmp.lt.u32.totalorder %s2929_s10, %s3516_s2 }
  0xdf   : > { %p2571_p5 = scmp.lt.u32.totalorder %s2569_s21, %s2564_s20  ;;  %p2573_p13 = scmp.lt.u32.totalorder %s2564_s20, %s2929_s10 }
  0xe0   : > { %p2568_p0 = pneg %p2567_p10 }
  0xe1   : > { %p2572_p11 = por %p2571_p5, %p2570_p1 }
  0xe3   : > { %p2574_p6 = por %p2573_p13, %p2572_p11 }
  0xe5   : > { %p2575_p8 = pnand %p2574_p6, %p2568_p0 }
  0xe7   : > { %2578 = shalt.err (!%p2575_p8)
}
  0xe8   : > { %s2579_s28 = scalar_lea.vmem %s2933_s17, 4096  ;;  %s2689_s15 = smov [#allocation7]  }
  0xe9   : > { %p2580_p7 = scmp.ne.s32.totalorder %s2933_s17, %s2579_s28  ;;  %s2584_s5 = sshll.u32 %s2689_s15, 4  ;;  %s2585_s5 = int_to_ptr.vmem [resolvable:$false] %s2584_s5 }
  0xea   : > { %s2586_s12 = scalar_lea.vmem %s2585_s5, 8192  ;;  %p2587_p3 = scmp.lt.s32.totalorder %s2933_s17, %s2585_s5 }
  0xeb   : > { %p2582_p9 = pnand %p2580_p7, %p3589_p2  ;;  %p2588_p10 = scmp.lt.s32.totalorder %s2586_s12, %s2579_s28 }
  0xed   : > { %p2583_p4 = pneg %p2582_p9  ;;  %p2589_p1 = por %p2588_p10, %p2587_p3 }
  0xef   : > { %p2590_p5 = pnand %p2589_p1, %p2583_p4 }
  0xf1   : > { %2593 = shalt.err (!%p2590_p5)
}
  0xf2   : > { %s3591_s29 = sld [smem:[#allocation33_spill]]  ;;  %s3592_s13 = sld [smem:[#allocation27_spill]] }
  0xf8   : > { %2174 = dma.hbm_to_vmem [thread:$0]  (!%p3590_p12), %s2929_s10, 4096, %s2933_s17, %s3591_s29, %s3584_s18, %s3584_s18, %s3583_s22  }
  0xf9   : > { %p3593_p2 = scmp.ne.s32.totalorder %s3592_s13, 0 }
  0xfa   : > { %s3594_s11 = sld [smem:[#allocation24_spill]] (!%p3593_p2) }
  0xfb   : > { %379 = sbr.rel (%p3593_p2) target bundleno = 889 (0x379), region = 52  ;;  %s3595_s24 = sld [smem:[#allocation31_spill]] (!%p3593_p2) }
 0x100   : > { %s3042_s26 = sand.u32 (!%p3593_p2), 1, %s3594_s11  }
 0x101   : > { %s382_s3 = scalar_lea.sflag (!%p3593_p2), [#allocation3], %s3042_s26  ;;  %s384_s23 = scalar_lea.vmem (!%p3593_p2), [#allocation2], %s3042_s26 }
 0x102   : > { %p3596_p0 = scmp.ne.s32.totalorder %s3595_s24, 0 }
 0x104   : > { %2639 = dma.done.wait (%p3596_p0), %s382_s3, 16  }
 0x105   : > { %2641 = vsyncadd (%p3596_p0), %s382_s3, 4294967280  ;;  %s3597_s9 = sld [smem:[#allocation26_spill]]  ;;  %s3052_s22 = sshll.u32 %s3042_s26, 8 }
 0x106   : > { %s3055_s10 = scalar_lea.vmem [#allocation5], %s3052_s22 }
 0x10b   : > { %s389_s17 = sand.u32 1, %s3597_s9  }
 0x10c   : > { %s390_s18 = scalar_lea.sflag [#allocation6], %s389_s17 }
 0x10d   : > { %2643 = dma.done.wait (%p3596_p0), %s390_s18, 8192  }
 0x10e   : > { %2645 = vsyncadd (%p3596_p0), %s390_s18, 4294959104  ;;  %s3062_s1 = scalar_lea.vmem [#allocation7], %s3052_s22  ;;  %p3598_p12 = scmp.eq.s32.totalorder %s3597_s9, 0 }
 0x110   : > { %2647 = dma.done.wait (%p3598_p12), [#allocation9], 4224   ;;  %p3599_p11 = pmov %p3598_p12 }
 0x112   : > { %2649 = vsyncadd (%p3599_p11), [#allocation9], 4294963072  ;;  %p3600_p13 = pmov %p3599_p11 }
 0x113   : > { %p3601_p6 = pmov %p3599_p11 }
 0x114   : > { %2651 = dma.done.wait (%p3600_p13), [#allocation12], 144  }
 0x115   : > { %2653 = vsyncadd (%p3601_p6), [#allocation12], 4294967152  ;;  %p3602_p8 = pmov %p3601_p6 }
 0x116   : > { %p3603_p7 = pmov %p3601_p6 }
 0x117   : > { %2655 = dma.done.wait (%p3602_p8), [#allocation15], 16  }
 0x118   : > { %2657 = vsyncadd (%p3603_p7), [#allocation15], 4294967280  ;;  %v2234_v0 = vld [vmem:[#allocation10] sm:$0xff]   ;;  %vm868_vm0 = vcmask 1040384   ;;  %v499_v2 = vld [vmem:[%s3055_s10 + $0x8] sm:$0xff]  ;;  %vm561_vm1 = vcmask 130048  }
 0x119   : > { %v498_v1 = vld [vmem:[%s3055_s10] sm:$0xff]  ;;  %v500_v3 = vld [vmem:[%s3055_s10 + $0x10] sm:$0xff]  ;;  %2001 = vmatprep.subr.bf16.mxu0 %v2234_v0  ;;  %v501_v5 = vld [vmem:[%s3055_s10 + $0x18] sm:$0xff]  ;;  %vm771_vm2 = vcmask 7168   ;;  %vm1593_vm3 = vcmask 31744   ;;  %s3353_s16 = scalar_lea.vmem [#allocation16], %s3052_s22 }
 0x11a   : > { %v530_v4 = vpack.c.bf16 %v499_v2, %v498_v1  ;;  %v465_v6 = vld [vmem:[%s384_s23] sm:$0x1]  ;;  %v502_v7 = vld [vmem:[%s3055_s10 + $0x20] sm:$0xff]  ;;  %2002 = vmatpush3.bf16.msra.mxu0 %v2234_v0  ;;  %v531_v8 = vpack.c.bf16 %v501_v5, %v500_v3  ;;  %v503_v9 = vld [vmem:[%s3055_s10 + $0x28] sm:$0xff]  ;;  %s1933_s8 = sshll.u32 %s3597_s9, 12  ;;  %s1640_s20 = sshll.u32 %s3353_s16, 4  ;;  %s3464_s20 = int_to_ptr.vmem [resolvable:$true] %s1640_s20 }
 0x11b   : > { %2119 = vmatprep.subr.msk.mxu1 %vm868_vm0, %v465_v6  ;;  %2035 = vmatprep.subr.msk.mxu0 %vm868_vm0, %v465_v6  ;;  %v532_v10 = vpack.c.bf16 %v503_v9, %v502_v7  ;;  %v504_v11 = vld [vmem:[%s3055_s10 + $0x30] sm:$0xff]  ;;  %v505_v13 = vld [vmem:[%s3055_s10 + $0x38] sm:$0xff]  ;;  %v482_v15 = vld [vmem:[#allocation8 + $0x80] sm:$0xff]  ;;  %s3604_s25 = sld [smem:[#allocation29_spill]]  ;;  %s1627_s15 = scalar_lea.sflag [#allocation4], %s3042_s26 }
 0x11c   : > { %2003 = vmatprep.mubr.msk.bf16.mxu0 %vm561_vm1, %v530_v4  ;;  %2120 = vmatpush3.msk.msra.mxu1 %vm868_vm0, %v465_v6  ;;  %v480_v12 = vld [vmem:[#allocation8 + $0x70] sm:$0xff]  ;;  %v481_v14 = vld [vmem:[#allocation8 + $0x78] sm:$0xff]  ;;  %v506_v16 = vld [vmem:[%s3055_s10 + $0x40] sm:$0xff]  ;;  %v533_v18 = vpack.c.bf16 %v505_v13, %v504_v11  ;;  %s3605_s27 = sld [smem:[#allocation37_spill]]  ;;  %s2594_s5 = scalar_lea.vmem %s3464_s20, 4096 }
 0x11d   : > { %2004 = vmatmul.mubr.msk.bf16.vlgmr.msra.gmra.mrb[0].mxu0 %vm561_vm1, %v531_v8  ;;  %v507_v17 = vld [vmem:[%s3055_s10 + $0x48] sm:$0xff]  ;;  %2058 = vmatprep.mubr.msk.f32.mxu1 %vm771_vm2, %v480_v12  ;;  %v484_v21 = vld [vmem:[#allocation8 + $0x90] sm:$0xff]  ;;  %v485_v22 = vld [vmem:[#allocation8 + $0x98] sm:$0xff]  ;;  %p2595_p9 = scmp.ne.s32.totalorder %s3464_s20, %s2594_s5  ;;  %s2690_s12 = smov [#allocation16]  }
 0x11e   : > { %2036 = vmatpush3.msk.msra.mxu0 %vm868_vm0, %v465_v6  ;;  %2007 = vmatprep.mubr.msk.bf16.mxu0 %vm561_vm1, %v532_v10  ;;  %v483_v19 = vld [vmem:[#allocation8 + $0x88] sm:$0xff]  ;;  %v534_v20 = vpack.c.bf16 %v507_v17, %v506_v16  ;;  %v508_v23 = vld [vmem:[%s3055_s10 + $0x50] sm:$0xff]  ;;  %v509_v24 = vld [vmem:[%s3055_s10 + $0x58] sm:$0xff]  ;;  %s2598_s29 = sshll.u32 %s2690_s12, 4  ;;  %s2599_s29 = int_to_ptr.vmem [resolvable:$false] %s2598_s29 }
 0x11f   : > { %2059 = vmatmul.mubr.msk.f32.vlgmr.msra.gmra.mrb[0].mxu1 %vm771_vm2, %v481_v14  ;;  %v486_v25 = vld [vmem:[#allocation8 + $0xa0] sm:$0xff]  ;;  %v511_v27 = vld [vmem:[%s3055_s10 + $0x68] sm:$0xff]  ;;  %v535_v28 = vpack.c.bf16 %v509_v24, %v508_v23  ;;  %v488_v31 = vld [vmem:[#allocation8 + $0xb0] sm:$0xff]  ;;  %s2600_s13 = scalar_lea.vmem %s2599_s29, 8192  ;;  %p2601_p1 = scmp.lt.s32.totalorder %s3464_s20, %s2599_s29 }
 0x120   : > { %2061 = vmatprep.mubr.msk.f32.mxu1 %vm771_vm2, %v482_v15  ;;  %v510_v26 = vld [vmem:[%s3055_s10 + $0x60] sm:$0xff]  ;;  %v487_v29 = vld [vmem:[#allocation8 + $0xa8] sm:$0xff]  ;;  %v512_v32 = vld [vmem:[%s3055_s10 + $0x70] sm:$0xff]  ;;  %p2602_p5 = scmp.lt.s32.totalorder %s2600_s13, %s2594_s5 }
 0x121   : > { %v536_v30 = vpack.c.bf16 %v511_v27, %v510_v26  ;;  %v489_v33 = vld [vmem:[#allocation8 + $0xb8] sm:$0xff]  ;;  %v490_v35 = vld [vmem:[#allocation8 + $0xc0] sm:$0xff]  ;;  %v515_v37 = vld [vmem:[%s3055_s10 + $0x88] sm:$0xff]  ;;  %p3607_p4 = scmp.ne.s32.totalorder %s3604_s25, 0 }
 0x122   : > { %v513_v34 = vld [vmem:[%s3055_s10 + $0x78] sm:$0xff]  ;;  %v514_v36 = vld [vmem:[%s3055_s10 + $0x80] sm:$0xff]  ;;  %v491_v39 = vld [vmem:[#allocation8 + $0xc8] sm:$0xff]  ;;  %s3606_s14 = smov %s3605_s27  ;;  %s3462_s28 = scalar_lea.hbm %s3605_s27, %s1933_s8 }
 0x123   : > { %2062 = vmatmul.mubr.msk.f32.gmra.mrb[2].mxu1 %vm771_vm2, %v483_v19  ;;  %v537_v38 = vpack.c.bf16 %v513_v34, %v512_v32  ;;  %v538_v40 = vpack.c.bf16 %v515_v37, %v514_v36  ;;  %v492_v41 = vld [vmem:[#allocation8 + $0xd0] sm:$0xff]  ;;  %v493_v42 = vld [vmem:[#allocation8 + $0xd8] sm:$0xff]  ;;  %v494_v45 = vld [vmem:[#allocation8 + $0xe0] sm:$0xff]  ;;  %p2596_p3 = pnand %p2595_p9, %p3607_p4  ;;  %p2603_p2 = por %p2602_p5, %p2601_p1 }
 0x124   : > { %2064 = vmatprep.mubr.msk.f32.mxu1 %vm771_vm2, %v484_v21  ;;  %v516_v43 = vld [vmem:[%s3055_s10 + $0x90] sm:$0xff]  ;;  %v517_v44 = vld [vmem:[%s3055_s10 + $0x98] sm:$0xff]  ;;  %v518_v46 = vld [vmem:[%s3055_s10 + $0xa0] sm:$0xff] }
 0x125   : > { %2008 = vmatmul.mubr.msk.bf16.gmra.mrb[4].mxu0 %vm561_vm1, %v533_v18  ;;  %v519_v47 = vld [vmem:[%s3055_s10 + $0xa8] sm:$0xff]  ;;  %v539_v48 = vpack.c.bf16 %v517_v44, %v516_v43  ;;  %v496_v51 = vld [vmem:[#allocation8 + $0xf0] sm:$0xff]  ;;  %v497_v52 = vld [vmem:[#allocation8 + $0xf8] sm:$0xff]  ;;  %p2597_p10 = pneg %p2596_p3 }
 0x126   : > { %2011 = vmatprep.mubr.msk.bf16.mxu0 %vm561_vm1, %v534_v20  ;;  %v495_v49 = vld [vmem:[#allocation8 + $0xe8] sm:$0xff]  ;;  %v540_v50 = vpack.c.bf16 %v519_v47, %v518_v46  ;;  %v520_v53 = vld [vmem:[%s3055_s10 + $0xb0] sm:$0xff]  ;;  %v521_v54 = vld [vmem:[%s3055_s10 + $0xb8] sm:$0xff] }
 0x127   : > { %2065 = vmatmul.mubr.msk.f32.gmra.mrb[4].mxu1 %vm771_vm2, %v485_v22  ;;  %v522_v55 = vld [vmem:[%s3055_s10 + $0xc0] sm:$0xff]  ;;  %v523_v56 = vld [vmem:[%s3055_s10 + $0xc8] sm:$0xff]  ;;  %v541_v57 = vpack.c.bf16 %v521_v54, %v520_v53  ;;  %v524_v59 = vld [vmem:[%s3055_s10 + $0xd0] sm:$0xff]  ;;  %p2604_p0 = pnand %p2603_p2, %p2597_p10 }
 0x128   : > { %2067 = vmatprep.mubr.msk.f32.mxu1 %vm771_vm2, %v486_v25  ;;  %v542_v58 = vpack.c.bf16 %v523_v56, %v522_v55  ;;  %v525_v60 = vld [vmem:[%s3055_s10 + $0xd8] sm:$0xff]  ;;  %v526_v61 = vld [vmem:[%s3055_s10 + $0xe0] sm:$0xff]  ;;  %v527_v62 = vld [vmem:[%s3055_s10 + $0xe8] sm:$0xff] }
 0x129   : > { %v543_v63 = vpack.c.bf16 %v525_v60, %v524_v59  ;;  %v544_v0 = vpack.c.bf16 %v527_v62, %v526_v61  ;;  %v528_v1 = vld [vmem:[%s3055_s10 + $0xf0] sm:$0xff]  ;;  %v529_v2 = vld [vmem:[%s3055_s10 + $0xf8] sm:$0xff]  ;;  %v466_v4 = vld [vmem:[#allocation8] sm:$0xff] }
 0x12a   : > { %v545_v3 = vpack.c.bf16 %v529_v2, %v528_v1  ;;  %v467_v5 = vld [vmem:[#allocation8 + $0x8] sm:$0xff]  ;;  %v468_v6 = vld [vmem:[#allocation8 + $0x10] sm:$0xff]  ;;  %v469_v7 = vld [vmem:[#allocation8 + $0x18] sm:$0xff] }
 0x12b   : > { %2068 = vmatmul.mubr.msk.f32.gmra.mrb[6].mxu1 %vm771_vm2, %v487_v29  ;;  %v470_v8 = vld [vmem:[#allocation8 + $0x20] sm:$0xff]  ;;  %v471_v9 = vld [vmem:[#allocation8 + $0x28] sm:$0xff]  ;;  %v472_v10 = vld [vmem:[#allocation8 + $0x30] sm:$0xff] }
 0x12c   : > { %2070 = vmatprep.mubr.msk.f32.mxu1 %vm771_vm2, %v488_v31  ;;  %v473_v11 = vld [vmem:[#allocation8 + $0x38] sm:$0xff]  ;;  %v474_v12 = vld [vmem:[#allocation8 + $0x40] sm:$0xff]  ;;  %v475_v13 = vld [vmem:[#allocation8 + $0x48] sm:$0xff] }
 0x12d   : > { %2012 = vmatmul.mubr.msk.bf16.gmra.mrb[8].mxu0 %vm561_vm1, %v535_v28  ;;  %v476_v14 = vld [vmem:[#allocation8 + $0x50] sm:$0xff]  ;;  %v477_v15 = vld [vmem:[#allocation8 + $0x58] sm:$0xff]  ;;  %v478_v16 = vld [vmem:[#allocation8 + $0x60] sm:$0xff] }
 0x12e   : > { %2015 = vmatprep.mubr.msk.bf16.mxu0 %vm561_vm1, %v536_v30  ;;  %v479_v17 = vld [vmem:[#allocation8 + $0x68] sm:$0xff] }
 0x12f   : > { %2071 = vmatmul.mubr.msk.f32.gmra.mrb[8].mxu1 %vm771_vm2, %v489_v33  ;;  %v2235_v18 = vld [vmem:[#allocation13] sm:$0xff]  }
 0x130   : > { %2073 = vmatprep.mubr.msk.f32.mxu1 %vm771_vm2, %v490_v35  ;;  %2085 = vmatprep.subr.bf16.mxu1 %v2235_v18 }
 0x131   : > { %2086 = vmatpush3.bf16.msra.mxu1 %v2235_v18 }
 0x133   : > { %2074 = vmatmul.mubr.msk.f32.gmra.mrb[10].mxu1 %vm771_vm2, %v491_v39 }
 0x134   : > { %2076 = vmatprep.mubr.msk.f32.mxu1 %vm771_vm2, %v492_v41 }
 0x135   : > { %2016 = vmatmul.mubr.msk.bf16.gmra.mrb[12].mxu0 %vm561_vm1, %v537_v38 }
 0x136   : > { %2019 = vmatprep.mubr.msk.bf16.mxu0 %vm561_vm1, %v538_v40 }
 0x137   : > { %2077 = vmatmul.mubr.msk.f32.gmra.mrb[12].mxu1 %vm771_vm2, %v493_v42  ;;  %v3184_v42 = vld [vmem:[#allocation11] ss:$0 sm:$0xff] }
 0x138   : > { %2079 = vmatprep.mubr.msk.f32.mxu1 %vm771_vm2, %v494_v45 }
 0x13b   : > { %2080 = vmatmul.mubr.msk.f32.gmra.mrb[14].mxu1 %vm771_vm2, %v495_v49 }
 0x13c   : > { %2082 = vmatprep.mubr.msk.f32.mxu1 %vm771_vm2, %v496_v51 }
 0x13d   : > { %2020 = vmatmul.mubr.msk.bf16.gmra.mrb[16].mxu0 %vm561_vm1, %v539_v48 }
 0x13e   : > { %2023 = vmatprep.mubr.msk.bf16.mxu0 %vm561_vm1, %v540_v50 }
 0x13f   : > { %2083 = vmatmul.mubr.msk.f32.gmra.mrb[16].mxu1 %vm771_vm2, %v497_v52 }
 0x145   : > { %2024 = vmatmul.mubr.msk.bf16.gmra.mrb[20].mxu0 %vm561_vm1, %v541_v57 }
 0x146   : > { %2027 = vmatprep.mubr.msk.bf16.mxu0 %vm561_vm1, %v542_v58 }
 0x14d   : > { %2028 = vmatmul.mubr.msk.bf16.gmra.mrb[24].mxu0 %vm561_vm1, %v543_v63 }
 0x14e   : > { %2031 = vmatprep.mubr.msk.bf16.mxu0 %vm561_vm1, %v544_v0 }
 0x155   : > { %2032 = vmatmul.mubr.msk.bf16.gmra.mrb[28].mxu0 %vm561_vm1, %v545_v3 }
 0x156   : > { %2037 = vmatprep.mubr.msk.f32.mxu0 %vm771_vm2, %v466_v4 }
 0x15d   : > { %2038 = vmatmul.mubr.msk.f32.vlgmr.msra.gmra.mrb[32].mxu0 %vm771_vm2, %v467_v5 }
 0x15e   : > { %2040 = vmatprep.mubr.msk.f32.mxu0 %vm771_vm2, %v468_v6 }
 0x161   : > { %2041 = vmatmul.mubr.msk.f32.gmra.mrb[34].mxu0 %vm771_vm2, %v469_v7 }
 0x162   : > { %2043 = vmatprep.mubr.msk.f32.mxu0 %vm771_vm2, %v470_v8 }
 0x165   : > { %2044 = vmatmul.mubr.msk.f32.gmra.mrb[36].mxu0 %vm771_vm2, %v471_v9 }
 0x166   : > { %2046 = vmatprep.mubr.msk.f32.mxu0 %vm771_vm2, %v472_v10 }
 0x169   : > { %2047 = vmatmul.mubr.msk.f32.gmra.mrb[38].mxu0 %vm771_vm2, %v473_v11 }
 0x16a   : > { %2049 = vmatprep.mubr.msk.f32.mxu0 %vm771_vm2, %v474_v12 }
 0x16d   : > { %2050 = vmatmul.mubr.msk.f32.gmra.mrb[40].mxu0 %vm771_vm2, %v475_v13 }
 0x16e   : > { %2052 = vmatprep.mubr.msk.f32.mxu0 %vm771_vm2, %v476_v14 }
 0x171   : > { %2053 = vmatmul.mubr.msk.f32.gmra.mrb[42].mxu0 %vm771_vm2, %v477_v15 }
 0x172   : > { %2055 = vmatprep.mubr.msk.f32.mxu0 %vm771_vm2, %v478_v16 }
 0x175   : > { %2056 = vmatmul.mubr.msk.f32.gmra.mrb[44].mxu0 %vm771_vm2, %v479_v17 }
 0x1f0   : > { %v3160_v19 = vpop.f32.mrb[0].mxu0 }
 0x1f1   : > { %v3162_v20 = vpop.f32.mrb[1].mxu0 }
 0x1f2   : > { %v3164_v21 = vpop.f32.mrb[2].mxu0  ;;  %v2060_v23 = vpop.f32.mrb[0].mxu1 }
 0x1f3   : > { %v3166_v22 = vpop.f32.mrb[3].mxu0  ;;  %v1008_v24 = vpop.f32.mrb[1].mxu1 }
 0x1f6   : > { %v2063_v25 = vpop.f32.mrb[2].mxu1 }
 0x1f7   : > { %v1018_v27 = vpop.f32.mrb[3].mxu1 }
 0x1f8   : > { %v3168_v26 = vpop.f32.mrb[4].mxu0 }
 0x1f9   : > { %v3170_v28 = vpop.f32.mrb[5].mxu0 }
 0x1fa   : > { %v3172_v29 = vpop.f32.mrb[6].mxu0  ;;  %v2066_v31 = vpop.f32.mrb[4].mxu1 }
 0x1fb   : > { %v3174_v30 = vpop.f32.mrb[7].mxu0  ;;  %v1028_v32 = vpop.f32.mrb[5].mxu1 }
 0x1fe   : > { %v2069_v33 = vpop.f32.mrb[6].mxu1 }
 0x1ff   : > { %v1038_v35 = vpop.f32.mrb[7].mxu1 }
 0x200   : > { %v3176_v34 = vpop.f32.mrb[8].mxu0 }
 0x201   : > { %v3178_v36 = vpop.f32.mrb[9].mxu0 }
 0x202   : > { %v3180_v37 = vpop.f32.mrb[10].mxu0  ;;  %v2072_v39 = vpop.f32.mrb[8].mxu1 }
 0x203   : > { %v3182_v38 = vpop.f32.mrb[11].mxu0  ;;  %v1048_v40 = vpop.f32.mrb[9].mxu1 }
 0x206   : > { %v2075_v41 = vpop.f32.mrb[10].mxu1 }
 0x207   : > { %v1058_v44 = vpop.f32.mrb[11].mxu1 }
 0x208   : > { %v2017_v43 = vpop.f32.mrb[12].mxu0 }
 0x209   : > { %v701_v45 = vadd.f32 %v2017_v43, %v3184_v42  ;;  %v3187_v46 = vpop.f32.mrb[13].mxu0 }
 0x20a   : > { %v2018_v47 = vpop.f32.mrb[14].mxu0  ;;  %v2078_v51 = vpop.f32.mrb[12].mxu1 }
 0x20b   : > { %v704_v48 = vadd.f32 %v2018_v47, %v3184_v42  ;;  %v3190_v49 = vpop.f32.mrb[15].mxu0  ;;  %v3192_v50 = vadd.f32 %v1008_v24, %v701_v45  ;;  %v1068_v52 = vpop.f32.mrb[13].mxu1 }
 0x20d   : > { %v3194_v53 = vadd.f32 %v2060_v23, %v704_v48 }
 0x20e   : > { %v2081_v55 = vpop.f32.mrb[14].mxu1 }
 0x20f   : > { %v1104_v54 = vpack.c.bf16 %v3194_v53, %v3192_v50  ;;  %v1078_v57 = vpop.f32.mrb[15].mxu1 }
 0x210   : > { %v2021_v56 = vpop.f32.mrb[16].mxu0 }
 0x211   : > { %v717_v58 = vadd.f32 %v2021_v56, %v3184_v42  ;;  %v708_v59 = vpop.f32.mrb[17].mxu0 }
 0x212   : > { %v709_v60 = vadd.f32 %v3184_v42, %v708_v59  ;;  %v2022_v61 = vpop.f32.mrb[18].mxu0  ;;  %v2084_v1 = vpop.f32.mrb[16].mxu1 }
 0x213   : > { %v720_v62 = vadd.f32 %v2022_v61, %v3184_v42  ;;  %v711_v63 = vpop.f32.mrb[19].mxu0  ;;  %v3201_v0 = vadd.f32 %v1028_v32, %v717_v58  ;;  %v1088_v4 = vpop.f32.mrb[17].mxu1 }
 0x214   : > { %v3203_v2 = vadd.f32 %v1018_v27, %v709_v60  ;;  %v712_v3 = vadd.f32 %v3184_v42, %v711_v63 }
 0x215   : > { %v3206_v5 = vadd.f32 %v2066_v31, %v720_v62 }
 0x216   : > { %v3208_v6 = vadd.f32 %v2063_v25, %v712_v3 }
 0x217   : > { %v1106_v7 = vpack.c.bf16 %v3206_v5, %v3201_v0 }
 0x218   : > { %v1105_v8 = vpack.c.bf16 %v3208_v6, %v3203_v2  ;;  %v2025_v9 = vpop.f32.mrb[20].mxu0 }
 0x219   : > { %v733_v10 = vadd.f32 %v2025_v9, %v3184_v42  ;;  %v724_v11 = vpop.f32.mrb[21].mxu0 }
 0x21a   : > { %v725_v12 = vadd.f32 %v3184_v42, %v724_v11  ;;  %v2026_v13 = vpop.f32.mrb[22].mxu0 }
 0x21b   : > { %v736_v14 = vadd.f32 %v2026_v13, %v3184_v42  ;;  %v727_v15 = vpop.f32.mrb[23].mxu0  ;;  %v3217_v16 = vadd.f32 %v1048_v40, %v733_v10  ;;  %v648_v13 = vadd.f32 %v3184_v42, %v3166_v22 }
 0x21c   : > { %v3219_v17 = vadd.f32 %v1038_v35, %v725_v12  ;;  %v728_v18 = vadd.f32 %v3184_v42, %v727_v15  ;;  %v645_v15 = vadd.f32 %v3184_v42, %v3162_v20  ;;  %v664_v20 = vadd.f32 %v3184_v42, %v3174_v30 }
 0x21d   : > { %v3222_v23 = vadd.f32 %v2072_v39, %v736_v14 }
 0x21e   : > { %v3224_v24 = vadd.f32 %v2069_v33, %v728_v18 }
 0x21f   : > { %v1108_v25 = vpack.c.bf16 %v3222_v23, %v3217_v16 }
 0x220   : > { %v1107_v27 = vpack.c.bf16 %v3224_v24, %v3219_v17  ;;  %v2029_v31 = vpop.f32.mrb[24].mxu0 }
 0x221   : > { %v749_v32 = vadd.f32 %v2029_v31, %v3184_v42  ;;  %v740_v43 = vpop.f32.mrb[25].mxu0 }
 0x222   : > { %v741_v40 = vadd.f32 %v3184_v42, %v740_v43  ;;  %v2030_v35 = vpop.f32.mrb[26].mxu0 }
 0x223   : > { %v752_v45 = vadd.f32 %v2030_v35, %v3184_v42  ;;  %v743_v47 = vpop.f32.mrb[27].mxu0  ;;  %v3233_v39 = vadd.f32 %v1068_v52, %v749_v32 }
 0x224   : > { %v3235_v33 = vadd.f32 %v1058_v44, %v741_v40  ;;  %v744_v48 = vadd.f32 %v3184_v42, %v743_v47  ;;  %v661_v47 = vadd.f32 %v3184_v42, %v3170_v28  ;;  %v680_v28 = vadd.f32 %v3184_v42, %v3182_v38 }
 0x225   : > { %v3238_v56 = vadd.f32 %v2078_v51, %v752_v45 }
 0x226   : > { %v3240_v58 = vadd.f32 %v2075_v41, %v744_v48 }
 0x227   : > { %v1110_v59 = vpack.c.bf16 %v3238_v56, %v3233_v39 }
 0x228   : > { %v1109_v60 = vpack.c.bf16 %v3240_v58, %v3235_v33  ;;  %v2033_v61 = vpop.f32.mrb[28].mxu0 }
 0x229   : > { %v765_v62 = vadd.f32 %v2033_v61, %v3184_v42  ;;  %v756_v63 = vpop.f32.mrb[29].mxu0 }
 0x22a   : > { %v757_v52 = vadd.f32 %v3184_v42, %v756_v63  ;;  %v2034_v44 = vpop.f32.mrb[30].mxu0 }
 0x22b   : > { %v768_v3 = vadd.f32 %v2034_v44, %v3184_v42  ;;  %v759_v9 = vpop.f32.mrb[31].mxu0  ;;  %v3249_v51 = vadd.f32 %v1088_v4, %v765_v62 }
 0x22c   : > { %v3251_v41 = vadd.f32 %v1078_v57, %v757_v52  ;;  %v760_v10 = vadd.f32 %v3184_v42, %v759_v9  ;;  %v669_v52 = vadd.f32 %v3168_v26, %v3184_v42  ;;  %v688_v26 = vadd.f32 %v3180_v37, %v3184_v42 }
 0x22d   : > { %v3254_v11 = vadd.f32 %v2084_v1, %v768_v3  ;;  %v653_v1 = vadd.f32 %v3160_v19, %v3184_v42  ;;  %v672_v19 = vadd.f32 %v3172_v29, %v3184_v42 }
 0x22e   : > { %v3256_v12 = vadd.f32 %v2081_v55, %v760_v10  ;;  %v656_v55 = vadd.f32 %v3164_v21, %v3184_v42  ;;  %v677_v10 = vadd.f32 %v3184_v42, %v3178_v36  ;;  %v696_v36 = vadd.f32 %v3184_v42, %v3190_v49 }
 0x22f   : > { %v1112_v14 = vpack.c.bf16 %v3254_v11, %v3249_v51 }
 0x230   : > { %v1111_v4 = vpack.c.bf16 %v3256_v12, %v3251_v41  ;;  %v2039_v57 = vpop.f32.mrb[32].mxu0 }
 0x231   : > { %v944_v18 = vadd.f32 %v2039_v57, %v648_v13  ;;  %v938_v31 = vpop.f32.mrb[33].mxu0 }
 0x232   : > { %v939_v32 = vadd.f32 %v938_v31, %v645_v15 }
 0x234   : > { %v1097_v22 = vpack.c.bf16 %v944_v18, %v939_v32  ;;  %v2042_v43 = vpop.f32.mrb[34].mxu0  ;;  %v685_v18 = vadd.f32 %v3176_v34, %v3184_v42 }
 0x235   : > { %v954_v40 = vadd.f32 %v2042_v43, %v656_v55  ;;  %v948_v35 = vpop.f32.mrb[35].mxu0 }
 0x236   : > { %v949_v45 = vadd.f32 %v948_v35, %v653_v1  ;;  %2087 = vmatprep.mubr.msk.bf16.mxu1 %vm561_vm1, %v1097_v22  ;;  %v693_v22 = vadd.f32 %v3184_v42, %v3187_v46  ;;  %v3330_v42 = vld [vmem:[#allocation14] ss:$0 sm:$0xff] }
 0x238   : > { %v1098_v48 = vpack.c.bf16 %v954_v40, %v949_v45  ;;  %v2045_v61 = vpop.f32.mrb[36].mxu0 }
 0x239   : > { %v964_v62 = vadd.f32 %v2045_v61, %v664_v20  ;;  %v958_v21 = vpop.f32.mrb[37].mxu0 }
 0x23a   : > { %v959_v63 = vadd.f32 %v958_v21, %v661_v47  ;;  %2088 = vmatmul.mubr.msk.bf16.vlgmr.msra.gmra.mrb[20].mxu1 %vm561_vm1, %v1098_v48 }
 0x23c   : > { %v1099_v44 = vpack.c.bf16 %v964_v62, %v959_v63  ;;  %v2048_v3 = vpop.f32.mrb[38].mxu0 }
 0x23d   : > { %v974_v9 = vadd.f32 %v2048_v3, %v672_v19  ;;  %v968_v30 = vpop.f32.mrb[39].mxu0 }
 0x23e   : > { %v969_v41 = vadd.f32 %v968_v30, %v669_v52  ;;  %2091 = vmatprep.mubr.msk.bf16.mxu1 %vm561_vm1, %v1099_v44 }
 0x240   : > { %v1100_v12 = vpack.c.bf16 %v974_v9, %v969_v41  ;;  %v2051_v13 = vpop.f32.mrb[40].mxu0 }
 0x241   : > { %v984_v15 = vadd.f32 %v2051_v13, %v680_v28  ;;  %v978_v29 = vpop.f32.mrb[41].mxu0 }
 0x242   : > { %v979_v57 = vadd.f32 %v978_v29, %v677_v10  ;;  %2092 = vmatmul.mubr.msk.bf16.gmra.mrb[24].mxu1 %vm561_vm1, %v1100_v12 }
 0x244   : > { %v1101_v31 = vpack.c.bf16 %v984_v15, %v979_v57  ;;  %v2054_v32 = vpop.f32.mrb[42].mxu0 }
 0x245   : > { %v994_v55 = vadd.f32 %v2054_v32, %v688_v26  ;;  %v988_v38 = vpop.f32.mrb[43].mxu0 }
 0x246   : > { %v989_v1 = vadd.f32 %v988_v38, %v685_v18  ;;  %2095 = vmatprep.mubr.msk.bf16.mxu1 %vm561_vm1, %v1101_v31  ;;  %v1339_v38 = vld [vmem:[%s3062_s1 + $0x10] sm:$0xff] }
 0x248   : > { %v1102_v43 = vpack.c.bf16 %v994_v55, %v989_v1  ;;  %v2057_v40 = vpop.f32.mrb[44].mxu0 }
 0x249   : > { %v1004_v35 = vadd.f32 %v2057_v40, %v696_v36  ;;  %v998_v37 = vpop.f32.mrb[45].mxu0 }
 0x24a   : > { %v999_v45 = vadd.f32 %v998_v37, %v693_v22  ;;  %2096 = vmatmul.mubr.msk.bf16.gmra.mrb[28].mxu1 %vm561_vm1, %v1102_v43  ;;  %v1337_v43 = vld [vmem:[%s3062_s1] sm:$0xff] }
 0x24c   : > { %v1103_v34 = vpack.c.bf16 %v1004_v35, %v999_v45 }
 0x24e   : > { %2099 = vmatprep.mubr.msk.bf16.mxu1 %vm561_vm1, %v1103_v34 }
 0x252   : > { %2100 = vmatmul.mubr.msk.bf16.gmra.mrb[32].mxu1 %vm561_vm1, %v1104_v54 }
 0x253   : > { %2103 = vmatprep.mubr.msk.bf16.mxu1 %vm561_vm1, %v1105_v8 }
 0x25a   : > { %2104 = vmatmul.mubr.msk.bf16.gmra.mrb[36].mxu1 %vm561_vm1, %v1106_v7 }
 0x25b   : > { %2107 = vmatprep.mubr.msk.bf16.mxu1 %vm561_vm1, %v1107_v27 }
 0x262   : > { %2108 = vmatmul.mubr.msk.bf16.gmra.mrb[40].mxu1 %vm561_vm1, %v1108_v25 }
 0x263   : > { %2111 = vmatprep.mubr.msk.bf16.mxu1 %vm561_vm1, %v1109_v60 }
 0x26a   : > { %2112 = vmatmul.mubr.msk.bf16.gmra.mrb[44].mxu1 %vm561_vm1, %v1110_v59 }
 0x26b   : > { %2115 = vmatprep.mubr.msk.bf16.mxu1 %vm561_vm1, %v1111_v4 }
 0x272   : > { %2116 = vmatmul.mubr.msk.bf16.gmra.mrb[48].mxu1 %vm561_vm1, %v1112_v14 }
 0x30d   : > { %v2089_v46 = vpop.f32.mrb[20].mxu1 }
 0x30e   : > { %v1219_v49 = vadd.f32 %v2089_v46, %v3330_v42  ;;  %v1210_v50 = vpop.f32.mrb[21].mxu1  ;;  %v1340_v46 = vld [vmem:[%s3062_s1 + $0x18] sm:$0xff] }
 0x30f   : > { %v1211_v53 = vadd.f32 %v3330_v42, %v1210_v50  ;;  %v2090_v54 = vpop.f32.mrb[22].mxu1 }
 0x310   : > { %v1896_v0 = vmul.f32 -1.442695, %v1219_v49  ;;  %v1222_v2 = vadd.f32 %v2090_v54, %v3330_v42  ;;  %v1213_v5 = vpop.f32.mrb[23].mxu1 }
 0x311   : > { %v1894_v6 = vmul.f32 -1.442695, %v1211_v53  ;;  %v1214_v7 = vadd.f32 %v3330_v42, %v1213_v5 }
 0x312   : > { %2236 = vpow2.f32 %v1896_v0  ;;  %v1897_v8 = vmul.f32 -1.442695, %v1222_v2  ;;  %v1338_v0 = vld [vmem:[%s3062_s1 + $0x8] sm:$0xff] }
 0x313   : > { %2238 = vpow2.f32 %v1894_v6  ;;  %v1895_v16 = vmul.f32 -1.442695, %v1214_v7 }
 0x314   : > { %2240 = vpow2.f32 %v1897_v8 }
 0x315   : > { %2242 = vpow2.f32 %v1895_v16  ;;  %v2093_v17 = vpop.f32.mrb[24].mxu1 }
 0x316   : > { %v1235_v23 = vadd.f32 %v2093_v17, %v3330_v42  ;;  %v1226_v24 = vpop.f32.mrb[25].mxu1 }
 0x317   : > { %v1227_v25 = vadd.f32 %v3330_v42, %v1226_v24  ;;  %v2094_v27 = vpop.f32.mrb[26].mxu1 }
 0x318   : > { %v1900_v39 = vmul.f32 -1.442695, %v1235_v23  ;;  %v1238_v33 = vadd.f32 %v2094_v27, %v3330_v42  ;;  %v1229_v56 = vpop.f32.mrb[27].mxu1 }
 0x319   : > { %v1898_v58 = vmul.f32 -1.442695, %v1227_v25  ;;  %v1230_v59 = vadd.f32 %v3330_v42, %v1229_v56 }
 0x31a   : > { %2244 = vpow2.f32 %v1900_v39  ;;  %v1901_v60 = vmul.f32 -1.442695, %v1238_v33 }
 0x31b   : > { %2246 = vpow2.f32 %v1898_v58  ;;  %v1899_v51 = vmul.f32 -1.442695, %v1230_v59  ;;  %v1343_v58 = vld [vmem:[%s3062_s1 + $0x30] sm:$0xff] }
 0x31c   : > { %v2237_v11 = vpop.eup %2236  ;;  %2248 = vpow2.f32 %v1901_v60 }
 0x31d   : > { %v2239_v14 = vpop.eup %2238  ;;  %v1467_v4 = vadd.f32 1.0, %v2237_v11  ;;  %2250 = vpow2.f32 %v1899_v51  ;;  %v2097_v20 = vpop.f32.mrb[28].mxu1 }
 0x31e   : > { %v2241_v47 = vpop.eup %2240  ;;  %v1465_v48 = vadd.f32 1.0, %v2239_v14  ;;  %v1251_v61 = vadd.f32 %v2097_v20, %v3330_v42  ;;  %v1242_v62 = vpop.f32.mrb[29].mxu1  ;;  %v1341_v14 = vld [vmem:[%s3062_s1 + $0x20] sm:$0xff] }
 0x31f   : > { %v2243_v21 = vpop.eup %2242  ;;  %2252 = vrcp.f32 %v1467_v4  ;;  %v1468_v63 = vadd.f32 1.0, %v2241_v47  ;;  %v1243_v19 = vadd.f32 %v3330_v42, %v1242_v62  ;;  %v2098_v52 = vpop.f32.mrb[30].mxu1  ;;  %v1344_v62 = vld [vmem:[%s3062_s1 + $0x38] sm:$0xff] }
 0x320   : > { %2254 = vrcp.f32 %v1465_v48  ;;  %v1466_v44 = vadd.f32 1.0, %v2243_v21  ;;  %v1904_v3 = vmul.f32 -1.442695, %v1251_v61  ;;  %v1254_v9 = vadd.f32 %v2098_v52, %v3330_v42  ;;  %v1245_v30 = vpop.f32.mrb[31].mxu1 }
 0x321   : > { %2256 = vrcp.f32 %v1468_v63  ;;  %v1902_v41 = vmul.f32 -1.442695, %v1243_v19  ;;  %v1246_v28 = vadd.f32 %v3330_v42, %v1245_v30 }
 0x322   : > { %2258 = vrcp.f32 %v1466_v44  ;;  %v1905_v10 = vmul.f32 -1.442695, %v1254_v9 }
 0x323   : > { %2260 = vpow2.f32 %v1904_v3  ;;  %v1903_v12 = vmul.f32 -1.442695, %v1246_v28  ;;  %v1342_v3 = vld [vmem:[%s3062_s1 + $0x28] sm:$0xff] }
 0x324   : > { %v2245_v13 = vpop.eup %2244  ;;  %2262 = vpow2.f32 %v1902_v41 }
 0x325   : > { %v2247_v15 = vpop.eup %2246  ;;  %v1471_v29 = vadd.f32 1.0, %v2245_v13  ;;  %2264 = vpow2.f32 %v1905_v10  ;;  %v2101_v57 = vpop.f32.mrb[32].mxu1 }
 0x326   : > { %v2249_v26 = vpop.eup %2248  ;;  %v1469_v18 = vadd.f32 1.0, %v2247_v15  ;;  %2266 = vpow2.f32 %v1903_v12  ;;  %v1267_v31 = vadd.f32 %v2101_v57, %v3330_v42  ;;  %v1258_v32 = vpop.f32.mrb[33].mxu1 }
 0x327   : > { %v2251_v55 = vpop.eup %2250  ;;  %2268 = vrcp.f32 %v1471_v29  ;;  %v1472_v1 = vadd.f32 1.0, %v2249_v26  ;;  %v1259_v36 = vadd.f32 %v3330_v42, %v1258_v32  ;;  %v2102_v22 = vpop.f32.mrb[34].mxu1 }
 0x328   : > { %2270 = vrcp.f32 %v1469_v18  ;;  %v1470_v40 = vadd.f32 1.0, %v2251_v55  ;;  %v1908_v35 = vmul.f32 -1.442695, %v1267_v31  ;;  %v1270_v37 = vadd.f32 %v2102_v22, %v3330_v42  ;;  %v1261_v45 = vpop.f32.mrb[35].mxu1  ;;  %v1347_v22 = vld [vmem:[%s3062_s1 + $0x50] sm:$0xff] }
 0x329   : > { %v2253_v34 = vpop.eup %2252  ;;  %2272 = vrcp.f32 %v1472_v1  ;;  %v1906_v49 = vmul.f32 -1.442695, %v1259_v36  ;;  %v1262_v50 = vadd.f32 %v3330_v42, %v1261_v45  ;;  %v1345_v45 = vld [vmem:[%s3062_s1 + $0x40] sm:$0xff] }
 0x32a   : > { %v2255_v53 = vpop.eup %2254  ;;  %v1563_v54 = vmul.f32 %v2253_v34, %v1339_v38  ;;  %2274 = vrcp.f32 %v1470_v40  ;;  %v1909_v2 = vmul.f32 -1.442695, %v1270_v37 }
 0x32b   : > { %v2257_v5 = vpop.eup %2256  ;;  %v1561_v6 = vmul.f32 %v2255_v53, %v1337_v43  ;;  %2276 = vpow2.f32 %v1908_v35  ;;  %v1907_v7 = vmul.f32 -1.442695, %v1262_v50  ;;  %v1348_v53 = vld [vmem:[%s3062_s1 + $0x58] sm:$0xff] }
 0x32c   : > { %v2259_v8 = vpop.eup %2258  ;;  %1596 = vst.msk [vmem:[%s3353_s16 + $0x10] sm:$0xff] %vm1593_vm3, %v1563_v54  ;;  %v1564_v16 = vmul.f32 %v2257_v5, %v1340_v46  ;;  %2278 = vpow2.f32 %v1906_v49  ;;  %v1346_v5 = vld [vmem:[%s3062_s1 + $0x48] sm:$0xff] }
 0x32d   : > { %v2261_v17 = vpop.eup %2260  ;;  %1594 = vst.msk [vmem:[%s3353_s16] sm:$0xff] %vm1593_vm3, %v1561_v6  ;;  %v1562_v23 = vmul.f32 %v2259_v8, %v1338_v0  ;;  %2280 = vpow2.f32 %v1909_v2  ;;  %v2105_v24 = vpop.f32.mrb[36].mxu1 }
 0x32e   : > { %v2263_v25 = vpop.eup %2262  ;;  %1597 = vst.msk [vmem:[%s3353_s16 + $0x18] sm:$0xff] %vm1593_vm3, %v1564_v16  ;;  %v1475_v27 = vadd.f32 1.0, %v2261_v17  ;;  %2282 = vpow2.f32 %v1907_v7  ;;  %v1283_v39 = vadd.f32 %v2105_v24, %v3330_v42  ;;  %v1274_v33 = vpop.f32.mrb[37].mxu1 }
 0x32f   : > { %v2265_v56 = vpop.eup %2264  ;;  %1595 = vst.msk [vmem:[%s3353_s16 + $0x8] sm:$0xff] %vm1593_vm3, %v1562_v23  ;;  %v1473_v59 = vadd.f32 1.0, %v2263_v25  ;;  %v1275_v60 = vadd.f32 %v3330_v42, %v1274_v33  ;;  %v2106_v51 = vpop.f32.mrb[38].mxu1 }
 0x330   : > { %v2267_v11 = vpop.eup %2266  ;;  %2284 = vrcp.f32 %v1475_v27  ;;  %v1476_v4 = vadd.f32 1.0, %v2265_v56  ;;  %v1912_v20 = vmul.f32 -1.442695, %v1283_v39  ;;  %v1286_v47 = vadd.f32 %v2106_v51, %v3330_v42  ;;  %v1277_v48 = vpop.f32.mrb[39].mxu1  ;;  %v1351_v51 = vld [vmem:[%s3062_s1 + $0x70] sm:$0xff] }
 0x331   : > { %v2269_v61 = vpop.eup %2268  ;;  %2286 = vrcp.f32 %v1473_v59  ;;  %v1474_v21 = vadd.f32 1.0, %v2267_v11  ;;  %v1910_v63 = vmul.f32 -1.442695, %v1275_v60  ;;  %v1278_v19 = vadd.f32 %v3330_v42, %v1277_v48 }
 0x332   : > { %v2271_v52 = vpop.eup %2270  ;;  %v1567_v44 = vmul.f32 %v2269_v61, %v1343_v58  ;;  %2288 = vrcp.f32 %v1476_v4  ;;  %v1913_v9 = vmul.f32 -1.442695, %v1286_v47  ;;  %v1349_v47 = vld [vmem:[%s3062_s1 + $0x60] sm:$0xff] }
 0x333   : > { %v2273_v30 = vpop.eup %2272  ;;  %v1565_v41 = vmul.f32 %v2271_v52, %v1341_v14  ;;  %2290 = vrcp.f32 %v1474_v21  ;;  %v1911_v28 = vmul.f32 -1.442695, %v1278_v19 }
 0x334   : > { %v2275_v10 = vpop.eup %2274  ;;  %1600 = vst.msk [vmem:[%s3353_s16 + $0x30] sm:$0xff] %vm1593_vm3, %v1567_v44  ;;  %v1568_v12 = vmul.f32 %v2273_v30, %v1344_v62  ;;  %2292 = vpow2.f32 %v1912_v20 }
 0x335   : > { %v2277_v13 = vpop.eup %2276  ;;  %1598 = vst.msk [vmem:[%s3353_s16 + $0x20] sm:$0xff] %vm1593_vm3, %v1565_v41  ;;  %v1566_v15 = vmul.f32 %v2275_v10, %v1342_v3  ;;  %2294 = vpow2.f32 %v1910_v63  ;;  %v2109_v29 = vpop.f32.mrb[40].mxu1  ;;  %v1352_v63 = vld [vmem:[%s3062_s1 + $0x78] sm:$0xff] }
 0x336   : > { %v2279_v57 = vpop.eup %2278  ;;  %1601 = vst.msk [vmem:[%s3353_s16 + $0x38] sm:$0xff] %vm1593_vm3, %v1568_v12  ;;  %v1479_v26 = vadd.f32 1.0, %v2277_v13  ;;  %2296 = vpow2.f32 %v1913_v9  ;;  %v1299_v18 = vadd.f32 %v2109_v29, %v3330_v42  ;;  %v1290_v31 = vpop.f32.mrb[41].mxu1  ;;  %v1350_v9 = vld [vmem:[%s3062_s1 + $0x68] sm:$0xff] }
 0x337   : > { %v2281_v32 = vpop.eup %2280  ;;  %1599 = vst.msk [vmem:[%s3353_s16 + $0x28] sm:$0xff] %vm1593_vm3, %v1566_v15  ;;  %v1477_v55 = vadd.f32 1.0, %v2279_v57  ;;  %2298 = vpow2.f32 %v1911_v28  ;;  %v1291_v38 = vadd.f32 %v3330_v42, %v1290_v31  ;;  %v2110_v1 = vpop.f32.mrb[42].mxu1 }
 0x338   : > { %v2283_v36 = vpop.eup %2282  ;;  %2300 = vrcp.f32 %v1479_v26  ;;  %v1480_v43 = vadd.f32 1.0, %v2281_v32  ;;  %v1916_v40 = vmul.f32 -1.442695, %v1299_v18  ;;  %v1302_v35 = vadd.f32 %v2110_v1, %v3330_v42  ;;  %v1293_v37 = vpop.f32.mrb[43].mxu1 }
 0x339   : > { %2302 = vrcp.f32 %v1477_v55  ;;  %v1478_v34 = vadd.f32 1.0, %v2283_v36  ;;  %v1914_v46 = vmul.f32 -1.442695, %v1291_v38  ;;  %v1294_v49 = vadd.f32 %v3330_v42, %v1293_v37 }
 0x33a   : > { %v2285_v50 = vpop.eup %2284  ;;  %2304 = vrcp.f32 %v1480_v43  ;;  %v1917_v54 = vmul.f32 -1.442695, %v1302_v35  ;;  %v1355_v35 = vld [vmem:[%s3062_s1 + $0x90] sm:$0xff] }
 0x33b   : > { %v2287_v0 = vpop.eup %2286  ;;  %v1571_v2 = vmul.f32 %v2285_v50, %v1347_v22  ;;  %2306 = vrcp.f32 %v1478_v34  ;;  %v1915_v6 = vmul.f32 -1.442695, %v1294_v49 }
 0x33c   : > { %v2289_v7 = vpop.eup %2288  ;;  %v1569_v8 = vmul.f32 %v2287_v0, %v1345_v45  ;;  %2308 = vpow2.f32 %v1916_v40 }
 0x33d   : > { %v2291_v16 = vpop.eup %2290  ;;  %1604 = vst.msk [vmem:[%s3353_s16 + $0x50] sm:$0xff] %vm1593_vm3, %v1571_v2  ;;  %v1572_v17 = vmul.f32 %v2289_v7, %v1348_v53  ;;  %2310 = vpow2.f32 %v1914_v46  ;;  %v2113_v23 = vpop.f32.mrb[44].mxu1  ;;  %v1353_v46 = vld [vmem:[%s3062_s1 + $0x80] sm:$0xff] }
 0x33e   : > { %v2293_v24 = vpop.eup %2292  ;;  %1602 = vst.msk [vmem:[%s3353_s16 + $0x40] sm:$0xff] %vm1593_vm3, %v1569_v8  ;;  %v1570_v25 = vmul.f32 %v2291_v16, %v1346_v5  ;;  %2312 = vpow2.f32 %v1917_v54  ;;  %v1315_v27 = vadd.f32 %v2113_v23, %v3330_v42  ;;  %v1306_v39 = vpop.f32.mrb[45].mxu1  ;;  %v1356_v54 = vld [vmem:[%s3062_s1 + $0x98] sm:$0xff] }
 0x33f   : > { %v2295_v33 = vpop.eup %2294  ;;  %1605 = vst.msk [vmem:[%s3353_s16 + $0x58] sm:$0xff] %vm1593_vm3, %v1572_v17  ;;  %v1483_v56 = vadd.f32 1.0, %v2293_v24  ;;  %2314 = vpow2.f32 %v1915_v6  ;;  %v1307_v58 = vadd.f32 %v3330_v42, %v1306_v39  ;;  %v2114_v59 = vpop.f32.mrb[46].mxu1  ;;  %v1354_v6 = vld [vmem:[%s3062_s1 + $0x88] sm:$0xff] }
 0x340   : > { %v2297_v60 = vpop.eup %2296  ;;  %1603 = vst.msk [vmem:[%s3353_s16 + $0x48] sm:$0xff] %vm1593_vm3, %v1570_v25  ;;  %v1481_v11 = vadd.f32 1.0, %v2295_v33  ;;  %v1318_v14 = vadd.f32 %v2114_v59, %v3330_v42  ;;  %v1309_v4 = vpop.f32.mrb[47].mxu1  ;;  %v1920_v61 = vmul.f32 -1.442695, %v1315_v27  ;;  %v1359_v33 = vld [vmem:[%s3062_s1 + $0xb0] sm:$0xff] }
 0x341   : > { %v2299_v20 = vpop.eup %2298  ;;  %2316 = vrcp.f32 %v1483_v56  ;;  %v1484_v48 = vadd.f32 1.0, %v2297_v60  ;;  %v1310_v62 = vadd.f32 %v3330_v42, %v1309_v4  ;;  %v1918_v52 = vmul.f32 -1.442695, %v1307_v58  ;;  %v1357_v59 = vld [vmem:[%s3062_s1 + $0xa0] sm:$0xff] }
 0x342   : > { %v2301_v21 = vpop.eup %2300  ;;  %2318 = vrcp.f32 %v1481_v11  ;;  %v1482_v19 = vadd.f32 1.0, %v2299_v20  ;;  %v1921_v30 = vmul.f32 -1.442695, %v1318_v14  ;;  %v1360_v11 = vld [vmem:[%s3062_s1 + $0xb8] sm:$0xff] }
 0x343   : > { %v2303_v44 = vpop.eup %2302  ;;  %v1575_v3 = vmul.f32 %v2301_v21, %v1351_v51  ;;  %2320 = vrcp.f32 %v1484_v48  ;;  %v1919_v10 = vmul.f32 -1.442695, %v1310_v62 }
 0x344   : > { %v2305_v41 = vpop.eup %2304  ;;  %v1573_v28 = vmul.f32 %v2303_v44, %v1349_v47  ;;  %2322 = vrcp.f32 %v1482_v19  ;;  %v1358_v47 = vld [vmem:[%s3062_s1 + $0xa8] sm:$0xff] }
 0x345   : > { %v2307_v12 = vpop.eup %2306  ;;  %1608 = vst.msk [vmem:[%s3353_s16 + $0x70] sm:$0xff] %vm1593_vm3, %v1575_v3  ;;  %v1576_v13 = vmul.f32 %v2305_v41, %v1352_v63  ;;  %2324 = vpow2.f32 %v1920_v61  ;;  %v2117_v15 = vpop.f32.mrb[48].mxu1  ;;  %v1363_v41 = vld [vmem:[%s3062_s1 + $0xd0] sm:$0xff] }
 0x346   : > { %v2309_v29 = vpop.eup %2308  ;;  %1606 = vst.msk [vmem:[%s3353_s16 + $0x60] sm:$0xff] %vm1593_vm3, %v1573_v28  ;;  %v1574_v57 = vmul.f32 %v2307_v12, %v1350_v9  ;;  %2326 = vpow2.f32 %v1918_v52  ;;  %v1331_v26 = vadd.f32 %v2117_v15, %v3330_v42  ;;  %v1322_v18 = vpop.f32.mrb[49].mxu1  ;;  %v1364_v15 = vld [vmem:[%s3062_s1 + $0xd8] sm:$0xff] }
 0x347   : > { %v2311_v31 = vpop.eup %2310  ;;  %1609 = vst.msk [vmem:[%s3353_s16 + $0x78] sm:$0xff] %vm1593_vm3, %v1576_v13  ;;  %v1487_v32 = vadd.f32 1.0, %v2309_v29  ;;  %2328 = vpow2.f32 %v1921_v30  ;;  %v1323_v55 = vadd.f32 %v3330_v42, %v1322_v18  ;;  %v2118_v38 = vpop.f32.mrb[50].mxu1 }
 0x348   : > { %v2313_v1 = vpop.eup %2312  ;;  %1607 = vst.msk [vmem:[%s3353_s16 + $0x68] sm:$0xff] %vm1593_vm3, %v1574_v57  ;;  %v1485_v36 = vadd.f32 1.0, %v2311_v31  ;;  %2330 = vpow2.f32 %v1919_v10  ;;  %v1334_v22 = vadd.f32 %v2118_v38, %v3330_v42  ;;  %v1325_v43 = vpop.f32.mrb[51].mxu1  ;;  %v1924_v45 = vmul.f32 -1.442695, %v1331_v26  ;;  %v1361_v10 = vld [vmem:[%s3062_s1 + $0xc0] sm:$0xff] }
 0x349   : > { %v2315_v40 = vpop.eup %2314  ;;  %2332 = vrcp.f32 %v1487_v32  ;;  %v1488_v37 = vadd.f32 1.0, %v2313_v1  ;;  %v1326_v34 = vadd.f32 %v3330_v42, %v1325_v43  ;;  %v1922_v50 = vmul.f32 -1.442695, %v1323_v55  ;;  %v1362_v26 = vld [vmem:[%s3062_s1 + $0xc8] sm:$0xff]  ;;  %v1367_v1 = vld [vmem:[%s3062_s1 + $0xf0] sm:$0xff]  ;;  %v1368_v43 = vld [vmem:[%s3062_s1 + $0xf8] sm:$0xff] }
 0x34a   : > { %2334 = vrcp.f32 %v1485_v36  ;;  %v1486_v49 = vadd.f32 1.0, %v2315_v40  ;;  %v1925_v0 = vmul.f32 -1.442695, %v1334_v22  ;;  %v1365_v36 = vld [vmem:[%s3062_s1 + $0xe0] sm:$0xff] }
 0x34b   : > { %v2317_v53 = vpop.eup %2316  ;;  %2336 = vrcp.f32 %v1488_v37  ;;  %v1923_v7 = vmul.f32 -1.442695, %v1326_v34  ;;  %v1366_v37 = vld [vmem:[%s3062_s1 + $0xe8] sm:$0xff] }
 0x34c   : > { %v2319_v2 = vpop.eup %2318  ;;  %v1579_v5 = vmul.f32 %v2317_v53, %v1355_v35  ;;  %2338 = vrcp.f32 %v1486_v49 }
 0x34d   : > { %v2321_v8 = vpop.eup %2320  ;;  %v1577_v16 = vmul.f32 %v2319_v2, %v1353_v46  ;;  %2340 = vpow2.f32 %v1924_v45 }
 0x34e   : > { %v2323_v42 = vpop.eup %2322  ;;  %1612 = vst.msk [vmem:[%s3353_s16 + $0x90] sm:$0xff] %vm1593_vm3, %v1579_v5  ;;  %v1580_v17 = vmul.f32 %v2321_v8, %v1356_v54  ;;  %2342 = vpow2.f32 %v1922_v50 }
 0x34f   : > { %v2325_v23 = vpop.eup %2324  ;;  %1610 = vst.msk [vmem:[%s3353_s16 + $0x80] sm:$0xff] %vm1593_vm3, %v1577_v16  ;;  %v1578_v24 = vmul.f32 %v2323_v42, %v1354_v6  ;;  %2344 = vpow2.f32 %v1925_v0 }
 0x350   : > { %v2327_v25 = vpop.eup %2326  ;;  %1613 = vst.msk [vmem:[%s3353_s16 + $0x98] sm:$0xff] %vm1593_vm3, %v1580_v17  ;;  %v1491_v27 = vadd.f32 1.0, %v2325_v23  ;;  %2346 = vpow2.f32 %v1923_v7 }
 0x351   : > { %v2329_v39 = vpop.eup %2328  ;;  %1611 = vst.msk [vmem:[%s3353_s16 + $0x88] sm:$0xff] %vm1593_vm3, %v1578_v24  ;;  %v1489_v56 = vadd.f32 1.0, %v2327_v25 }
 0x352   : > { %v2331_v58 = vpop.eup %2330  ;;  %2348 = vrcp.f32 %v1491_v27  ;;  %v1492_v60 = vadd.f32 1.0, %v2329_v39 }
 0x353   : > { %v2333_v51 = vpop.eup %2332  ;;  %2350 = vrcp.f32 %v1489_v56  ;;  %v1490_v14 = vadd.f32 1.0, %v2331_v58 }
 0x354   : > { %v2335_v4 = vpop.eup %2334  ;;  %v1583_v20 = vmul.f32 %v2333_v51, %v1359_v33  ;;  %2352 = vrcp.f32 %v1492_v60 }
 0x355   : > { %v2337_v48 = vpop.eup %2336  ;;  %v1581_v61 = vmul.f32 %v2335_v4, %v1357_v59  ;;  %2354 = vrcp.f32 %v1490_v14 }
 0x356   : > { %v2339_v62 = vpop.eup %2338  ;;  %1616 = vst.msk [vmem:[%s3353_s16 + $0xb0] sm:$0xff] %vm1593_vm3, %v1583_v20  ;;  %v1584_v21 = vmul.f32 %v2337_v48, %v1360_v11 }
 0x357   : > { %v2341_v63 = vpop.eup %2340  ;;  %1614 = vst.msk [vmem:[%s3353_s16 + $0xa0] sm:$0xff] %vm1593_vm3, %v1581_v61  ;;  %v1582_v19 = vmul.f32 %v2339_v62, %v1358_v47 }
 0x358   : > { %v2343_v52 = vpop.eup %2342  ;;  %1617 = vst.msk [vmem:[%s3353_s16 + $0xb8] sm:$0xff] %vm1593_vm3, %v1584_v21  ;;  %v1495_v44 = vadd.f32 1.0, %v2341_v63 }
 0x359   : > { %v2345_v3 = vpop.eup %2344  ;;  %1615 = vst.msk [vmem:[%s3353_s16 + $0xa8] sm:$0xff] %vm1593_vm3, %v1582_v19  ;;  %v1493_v9 = vadd.f32 1.0, %v2343_v52 }
 0x35a   : > { %v2347_v30 = vpop.eup %2346  ;;  %2356 = vrcp.f32 %v1495_v44  ;;  %v1496_v28 = vadd.f32 1.0, %v2345_v3 }
 0x35b   : > { %2358 = vrcp.f32 %v1493_v9  ;;  %v1494_v12 = vadd.f32 1.0, %v2347_v30 }
 0x35c   : > { %v2349_v13 = vpop.eup %2348  ;;  %2360 = vrcp.f32 %v1496_v28 }
 0x35d   : > { %v2351_v29 = vpop.eup %2350  ;;  %v1587_v57 = vmul.f32 %v2349_v13, %v1363_v41  ;;  %2362 = vrcp.f32 %v1494_v12 }
 0x35e   : > { %v2353_v18 = vpop.eup %2352  ;;  %v1585_v31 = vmul.f32 %v2351_v29, %v1361_v10 }
 0x35f   : > { %v2355_v32 = vpop.eup %2354  ;;  %1620 = vst.msk [vmem:[%s3353_s16 + $0xd0] sm:$0xff] %vm1593_vm3, %v1587_v57  ;;  %v1588_v55 = vmul.f32 %v2353_v18, %v1364_v15 }
 0x360   : > { %1618 = vst.msk [vmem:[%s3353_s16 + $0xc0] sm:$0xff] %vm1593_vm3, %v1585_v31  ;;  %v1586_v38 = vmul.f32 %v2355_v32, %v1362_v26 }
 0x361   : > { %1621 = vst.msk [vmem:[%s3353_s16 + $0xd8] sm:$0xff] %vm1593_vm3, %v1588_v55 }
 0x362   : > { %1619 = vst.msk [vmem:[%s3353_s16 + $0xc8] sm:$0xff] %vm1593_vm3, %v1586_v38 }
 0x364   : > { %v2357_v22 = vpop.eup %2356 }
 0x365   : > { %v2359_v40 = vpop.eup %2358  ;;  %v1591_v35 = vmul.f32 %v2357_v22, %v1367_v1 }
 0x366   : > { %v2361_v45 = vpop.eup %2360  ;;  %v1589_v34 = vmul.f32 %v2359_v40, %v1365_v36 }
 0x367   : > { %v2363_v46 = vpop.eup %2362  ;;  %1624 = vst.msk [vmem:[%s3353_s16 + $0xf0] sm:$0xff] %vm1593_vm3, %v1591_v35  ;;  %v1592_v49 = vmul.f32 %v2361_v45, %v1368_v43 }
 0x368   : > { %1622 = vst.msk [vmem:[%s3353_s16 + $0xe0] sm:$0xff] %vm1593_vm3, %v1589_v34  ;;  %v1590_v50 = vmul.f32 %v2363_v46, %v1366_v37 }
 0x369   : > { %1625 = vst.msk [vmem:[%s3353_s16 + $0xf8] sm:$0xff] %vm1593_vm3, %v1592_v49 }
 0x36a   : > { %1623 = vst.msk [vmem:[%s3353_s16 + $0xe8] sm:$0xff] %vm1593_vm3, %v1590_v50 }
 0x36b   : > { %2607 = shalt.err (!%p2604_p0)
}
 0x36c   : > { %s2608_s11 = scalar_lea.hbm %s3462_s28, 4096  ;;  %s2612_s23 = scalar_lea.hbm %s3606_s14, 8192 }
 0x36d   : > { %p2609_p12 = scmp.ne.s32.totalorder %s3462_s28, %s2608_s11  ;;  %p2613_p6 = scmp.lt.u32.totalorder %s3462_s28, %s3606_s14 }
 0x36e   : > { %p2614_p8 = scmp.lt.u32.totalorder %s2612_s23, %s2608_s11  ;;  %p2616_p9 = scmp.lt.u32.totalorder %s2608_s11, %s3462_s28 }
 0x36f   : > { %p2610_p11 = pnand %p2609_p12, %p3607_p4 }
 0x370   : > { %p2615_p7 = por %p2614_p8, %p2613_p6 }
 0x371   : > { %p2611_p13 = pneg %p2610_p11 }
 0x372   : > { %p2617_p3 = por %p2616_p9, %p2615_p7 }
 0x374   : > { %p2618_p10 = pnand %p2617_p3, %p2611_p13 }
 0x376   : > { %2621 = shalt.err (!%p2618_p10)
}
 0x377   : > { %s2691_s22 = smov 128   ;;  %s2692_s18 = smov 8  }
 0x378   : > { %2147 = dma.vmem_to_hbm [thread:$0]  (%p3607_p4), %s3464_s20, 4096, %s3462_s28, %s1627_s15, %s2691_s22, %s2691_s22, %s2692_s18  }
 0x379 PF: > { %s3608_s10 = sld [smem:[#allocation23_spill]]  ;;  %s3609_s1 = sld [smem:[#allocation32_spill]] }
 0x37a   : > { %p3611_p5 = scmp.ge.s32.totalorder %s2676_s30, 2 }
 0x37f   : > { %s1655_s16 = sand.u32 1, %s3608_s10   ;;  %p3610_p1 = scmp.ne.s32.totalorder %s3609_s1, 0 }
 0x380   : > { %s1656_s8 = scalar_lea.sflag [#allocation4], %s1655_s16 }
 0x381   : > { %p2176_p2 = pnand %p3611_p5, %p3610_p1 }
 0x383   : > { %2659 = dma.done.wait (!%p2176_p2), %s1656_s8, 4096  }
 0x384   : > { %2661 = vsyncadd (!%p2176_p2), %s1656_s8, 4294963200  ;;  %s3612_s30 = sld [smem:[#allocation28_spill]]  ;;  %s3613_s27 = sld [smem:[#allocation24_spill]] }
 0x385   : > { %s3614_s28 = sld [smem:[#allocation25_spill]]  ;;  %s3615_s29 = sld [smem:[#allocation30_spill]] }
 0x38a   : > { %p27_p0 = scmp.ge.s32.totalorder %s3612_s30, 4  }
 0x38c   :  { %29 = sbr.rel (!%p27_p0) target bundleno = 15 (0xf), region = 141 }
 0x393   :  { %1661 = vsyncpa [#allocation3], 1 }
 0x394   :  { %1663 = vsyncpa [#allocation3 + $0x1], 1 }
 0x395   :  { %1664 = vsyncpa [#allocation6], 1 }
 0x396   :  { %1666 = vsyncpa [#allocation6 + $0x1], 1 }
 0x397   :  { %1667 = vsyncpa [#allocation9], 1 }
 0x398   :  { %1668 = vsyncpa [#allocation12], 1 }
 0x399   :  { %1669 = vsyncpa [#allocation15], 1 }
 0x39a   :  { %1670 = vsyncpa [#allocation4], 1 }
 0x39b   :  { %1672 = vsyncpa [#allocation4 + $0x1], 1 }

</bundles_post_ra>
